<compile_context>
chip_gen: v6e
topology: v6e:2x2x1
jax: 0.10.0
libtpu: 0.0.40
codegen_flags: <defaults>
</compile_context>

<pallas_src>
import math

import jax
import jax.numpy as jnp
import numpy as np
from jax.experimental import pallas as pl
from jax.experimental.pallas import tpu as pltpu

LN_EPS = 1e-5  # PyTorch nn.LayerNorm default


def _gelu_exact(x):
    # nn.GELU() default = exact erf GELU.
    # TODO(synk): on v5e, jax.nn.gelu(approximate=True) would move this work off
    #             the VALU (EUP tanh) at a small numeric deviation from PyTorch.
    return 0.5 * x * (1.0 + jax.lax.erf(x * (1.0 / math.sqrt(2.0))))


def _layernorm(x, gamma, beta):
    # Single pass: var = E[x^2] - E[x]^2 (two independent lane reductions).
    mu = jnp.mean(x, axis=-1, keepdims=True)
    ms = jnp.mean(x * x, axis=-1, keepdims=True)
    var = ms - mu * mu
    return (x - mu) * jax.lax.rsqrt(var + LN_EPS) * gamma + beta


def _dot_bf16(a, b):
    # bf16 MXU operands, f32 accumulation.
    return jnp.dot(a.astype(jnp.bfloat16), b.astype(jnp.bfloat16),
                   preferred_element_type=jnp.float32)


def cross_attention_kernel(
    ie_ref,                    # (TILE_N, E)    f32   to_input-projected image tokens
    k2_ref, v2_ref,            # (B, T_pad, E)  bf16  projected text keys/values (resident)
    mask_ref,                  # (1, T_pad)     f32   additive key-padding mask (0 / -1e30)
    g1_ref, b1_ref,            # ln1
    wq_ref, bq_ref,            # fused to_q @ in_proj_q (scale folded), bias*scale
    wo_ref, bo_ref,            # mha out_proj
    g2_ref, b2_ref,            # ln2
    wf1_ref, bf1_ref,          # ff linear 1
    wf2_ref, bf2_ref,          # ff linear 2
    o_ref,                     # (TILE_N, E)    bf16  out2 + out1 (pre-to_output)
):
    b = pl.program_id(0)
    ie = ie_ref[...].astype(jnp.float32)                         # (TN, E)

    # ln1 + fused q projection (1/sqrt(E) already folded into weight/bias)
    norm_ie = _layernorm(ie, g1_ref[...], b1_ref[...])
    q2 = _dot_bf16(norm_ie, wq_ref[...]) + bq_ref[...]           # (TN, E)

    # scores against this batch's resident keys; f32 accumulation; additive mask
    k2 = k2_ref[b]                                               # (T_pad, E) bf16
    v2 = v2_ref[b]
    s = jax.lax.dot_general(q2.astype(jnp.bfloat16), k2,
                            dimension_numbers=(((1,), (1,)), ((), ())),
                            preferred_element_type=jnp.float32)  # (TN, T_pad)
    s = s + mask_ref[...]

    # softmax in f32; normalization folded after p@v via EUP reciprocal
    s = s - jnp.max(s, axis=-1, keepdims=True)
    p = jnp.exp(s)
    l = jnp.sum(p, axis=-1, keepdims=True)
    attn = _dot_bf16(p, v2)                                      # (TN, E)
    attn = attn * pl.reciprocal(l, approx=True)
    attn_out = _dot_bf16(attn, wo_ref[...]) + bo_ref[...]

    out1 = attn_out + ie

    # ff(ln2(out1)) + residual
    h = _layernorm(out1, g2_ref[...], b2_ref[...])
    h = _gelu_exact(_dot_bf16(h, wf1_ref[...]) + bf1_ref[...])
    h = _dot_bf16(h, wf2_ref[...]) + bf2_ref[...]
    o_ref[...] = (h + out1).astype(o_ref.dtype)


def _pick_tile_n(n_pad, batch):
    """Largest lane/sublane-friendly tile.  batch >= 2 already gives >= 2 parallel
    grid points (enough for v7x's 2 TCs; single-TC v5e/v6e iterate serially anyway),
    so use one tile per batch.  batch == 1: aim for exactly 2 aligned tiles."""
    cap = 1024
    if batch >= 2:
        if n_pad <= cap:
            return n_pad
        for t in (1024, 896, 768, 640, 512, 384, 256, 128):
            if n_pad % t == 0:
                return t
        return n_pad
    half = n_pad // 2
    if n_pad >= 256 and half % 128 == 0 and half <= cap:
        return half
    if n_pad <= cap:
        return n_pad
    for t in (1024, 512, 256, 128):
        if n_pad % t == 0:
            return t
    return n_pad


def cross_attention_pallas(image_nchw, text_embeds, params, *, tile_n=None):
    B, Cin, H, W = image_nchw.shape
    N = H * W
    _, T, Dt = text_embeds.shape
    E = params["wq"].shape[0]
    f32, bf16 = jnp.float32, jnp.bfloat16
    scale = 1.0 / math.sqrt(E)

    # ---- offline weight fusion (trace time, free) ----
    wq_f = (params["wq"] @ params["wpq"]) * scale                # (E, E)
    bq_f = params["bpq"] * scale                                 # (1, E)
    wk_f = params["wk"] @ params["wpk"]                          # (Dt, E)
    wv_f = params["wv"] @ params["wpv"]                          # (Dt, E)

    # ---- hoisted work (XLA): to_input conv, text-side k/v projections ----
    x_tokens = jnp.transpose(image_nchw, (0, 2, 3, 1)).reshape(B, N, Cin).astype(f32)
    ie = x_tokens @ params["wi"] + params["bi"]                  # (B, N, E)
    # TODO(synk): for large N, shipping ie in bf16 would halve the biggest input DMA.
    k2 = text_embeds.astype(f32) @ wk_f + params["bpk"]          # (B, T, E)
    v2 = text_embeds.astype(f32) @ wv_f + params["bpv"]          # (B, T, E)

    # pad token count N to (8,128)-friendly size; pad text length to lane-dense 128
    N_pad = 128 * pl.cdiv(N, 128) if N >= 128 else 8 * pl.cdiv(N, 8)
    if N_pad != N:
        ie = jnp.pad(ie, ((0, 0), (0, N_pad - N), (0, 0)))
    T_pad = 128 * pl.cdiv(T, 128)
    if T_pad != T:
        pad = ((0, 0), (0, T_pad - T), (0, 0))
        k2 = jnp.pad(k2, pad)
        v2 = jnp.pad(v2, pad)
    k2 = k2.astype(bf16)
    v2 = v2.astype(bf16)
    # precomputed additive key mask row (replaces per-step iota/compare/select)
    mask = jnp.where(jnp.arange(T_pad)[None, :] < T, 0.0, -1e30).astype(f32)

    if tile_n is None:
        tile_n = _pick_tile_n(int(N_pad), B)
    assert N_pad % tile_n == 0 and (tile_n % 8 == 0 or tile_n == N_pad)
    grid = (B, N_pad // tile_n)

    # bf16 MXU weights, f32 biases / LN params
    weights = [
        params["g1"], params["b1"],
        wq_f.astype(bf16), bq_f,
        params["wo"].astype(bf16), params["bo"],
        params["g2"], params["b2"],
        params["wf1"].astype(bf16), params["bf1"],
        params["wf2"].astype(bf16), params["bf2"],
    ]

    # advisory cost estimate for XLA scheduling
    w_bytes = sum(int(np.prod(w.shape)) * w.dtype.itemsize for w in weights)
    cost = pl.CostEstimate(
        flops=int(2 * B * N_pad * E * (4 * E + 2 * T_pad)),
        transcendentals=int(B * N_pad * (T_pad + E)),
        bytes_accessed=int(B * N_pad * E * (4 + 2) + 2 * B * T_pad * E * 2 + w_bytes),
    )

    # chip-aware VMEM limit: tight bound from actual footprint, capped by capacity
    kv_bytes = 2 * B * T_pad * E * 2
    vmem_needed = (2 * tile_n * E * (4 + 2)             # ie f32 + out bf16 tiles (dbl-buf)
                   + 2 * kv_bytes                        # resident k2/v2 (worst-case dbl-buf)
                   + 2 * (w_bytes + T_pad * 4)           # weights + mask (worst-case dbl-buf)
                   + 6 * tile_n * max(T_pad, E) * 4)     # f32 compute temporaries
    try:
        vmem_cap = int(pltpu.get_tpu_info().vmem_capacity_bytes)
    except Exception:
        vmem_cap = 64 << 20                              # v7x per-TC floor
    vmem_limit = int(min(max(2 * vmem_needed, 16 << 20), (3 * vmem_cap) // 4))

    out_shape = jax.ShapeDtypeStruct((B, N_pad, E), bf16)
    out_specs = pl.BlockSpec((None, tile_n, E), lambda b, n: (b, n, 0))

    def _run(single_buffer_invariants):
        def inv_spec(shape):
            ndim = len(shape)
            idx = lambda b, n, _nd=ndim: (0,) * _nd
            if single_buffer_invariants:
                return pl.BlockSpec(shape, idx, pipeline_mode=pl.Buffered(1))
            return pl.BlockSpec(shape, idx)

        in_specs = [
            pl.BlockSpec((None, tile_n, E), lambda b, n: (b, n, 0)),   # ie tile
            inv_spec((B, T_pad, E)),                                   # k2 resident
            inv_spec((B, T_pad, E)),                                   # v2 resident
            inv_spec((1, T_pad)),                                      # key mask
        ] + [inv_spec(w.shape) for w in weights]

        return pl.pallas_call(
            cross_attention_kernel,
            out_shape=out_shape,
            grid=grid,
            in_specs=in_specs,
            out_specs=out_specs,
            compiler_params=pltpu.CompilerParams(
                dimension_semantics=("parallel", "parallel"),
                vmem_limit_bytes=vmem_limit,
            ),
            cost_estimate=cost,
        )(ie, k2, v2, mask, *weights)

    try:
        out_tokens = _run(True)
    except Exception:
        # TODO(synk): pipeline_mode=pl.Buffered(1) rejected by this jax version;
        # fall back to default double-buffering of the grid-invariant inputs.
        out_tokens = _run(False)

    # to_output 1x1 conv (hoisted; bf16 operands, f32 accumulation), drop N padding
    y = jnp.dot(out_tokens[:, :N, :], params["wto"].astype(bf16),
                preferred_element_type=f32) + params["bto"]      # (B, N, Cin)
    y = jnp.transpose(y.reshape(B, H, W, Cin), (0, 3, 1, 2))
    return y.astype(image_nchw.dtype)


def cross_attention_reference(image_nchw, text_embeds, p):
    """Pure-JAX reference matching the PyTorch forward (for verification)."""
    B, Cin, H, W = image_nchw.shape
    x = jnp.transpose(image_nchw, (0, 2, 3, 1)).reshape(B, H * W, Cin)
    ie = x @ p["wi"] + p["bi"]
    mu = jnp.mean(ie, -1, keepdims=True)
    var = jnp.mean(jnp.square(ie - mu), -1, keepdims=True)
    norm_ie = (ie - mu) * jax.lax.rsqrt(var + LN_EPS) * p["g1"] + p["b1"]
    q = norm_ie @ p["wq"]
    k = text_embeds @ p["wk"]
    v = text_embeds @ p["wv"]
    q2 = q @ p["wpq"] + p["bpq"]
    k2 = k @ p["wpk"] + p["bpk"]
    v2 = v @ p["wpv"] + p["bpv"]
    scale = 1.0 / math.sqrt(q2.shape[-1])
    s = jnp.einsum("bnd,btd->bnt", q2 * scale, k2)
    attn = jax.nn.softmax(s, axis=-1) @ v2
    attn_out = attn @ p["wo"] + p["bo"]
    out1 = attn_out + ie
    mu2 = jnp.mean(out1, -1, keepdims=True)
    var2 = jnp.mean(jnp.square(out1 - mu2), -1, keepdims=True)
    h = (out1 - mu2) * jax.lax.rsqrt(var2 + LN_EPS) * p["g2"] + p["b2"]
    h = _gelu_exact(h @ p["wf1"] + p["bf1"]) @ p["wf2"] + p["bf2"]
    out = (h + out1) @ p["wto"] + p["bto"]
    return jnp.transpose(out.reshape(B, H, W, Cin), (0, 3, 1, 2))


def make_params(key, in_channels, text_dim, embed_dim):
    """Deterministic synthetic parameters (kernel layout: weights are (in, out))."""
    Cin, Dt, E = in_channels, text_dim, embed_dim
    shapes = {
        "wi": (Cin, E), "bi": (1, E),
        "g1": (1, E), "b1": (1, E),
        "wq": (E, E), "wk": (Dt, E), "wv": (Dt, E),
        "wpq": (E, E), "bpq": (1, E),
        "wpk": (E, E), "bpk": (1, E),
        "wpv": (E, E), "bpv": (1, E),
        "wo": (E, E), "bo": (1, E),
        "g2": (1, E), "b2": (1, E),
        "wf1": (E, E), "bf1": (1, E),
        "wf2": (E, E), "bf2": (1, E),
        "wto": (E, Cin), "bto": (1, Cin),
    }
    params = {}
    keys = jax.random.split(key, len(shapes))
    for k_rng, (name, shp) in zip(keys, shapes.items()):
        if name in ("g1", "g2"):
            params[name] = jnp.ones(shp, jnp.float32)            # LayerNorm weight init
        elif name in ("b1", "b2"):
            params[name] = jnp.zeros(shp, jnp.float32)           # LayerNorm bias init
        elif name.startswith("b"):
            params[name] = 0.02 * jax.random.normal(k_rng, shp, jnp.float32)
        else:
            params[name] = 0.05 * jax.random.normal(k_rng, shp, jnp.float32)
    return params


if __name__ == "__main__":
    # in_channels != embed_dim  =>  use_conv=True path (1x1 convs active).
    # E chosen as 128 so lane/MXU dims are aligned.
    B, Cin, H, W = 2, 4, 16, 16
    Dt, T = 16, 8
    E = 128

    key = jax.random.PRNGKey(0)
    k_img, k_txt, k_par = jax.random.split(key, 3)
    image_embeds = jax.random.normal(k_img, (B, Cin, H, W), jnp.float32)
    text_embeds = jax.random.normal(k_txt, (B, T, Dt), jnp.float32)
    params = make_params(k_par, Cin, Dt, E)

    out = cross_attention_pallas(image_embeds, text_embeds, params)
    out = jax.block_until_ready(out)

    ref = cross_attention_reference(image_embeds, text_embeds, params)
    assert out.shape == (B, Cin, H, W), out.shape
    np.testing.assert_allclose(np.asarray(out), np.asarray(ref), rtol=1e-2, atol=1e-2)

    print("KERNEL_OK")
</pallas_src>

<mosaic_0001>
module attributes {stable_mosaic.version = 11 : i64} {
  func.func @cross_attention_kernel(%arg0: i32, %arg1: i32, %arg2: memref<1x256x128xf32, #tpu.memory_space<vmem>>, %arg3: memref<2x128x128xbf16, #tpu.memory_space<vmem>>, %arg4: memref<2x128x128xbf16, #tpu.memory_space<vmem>>, %arg5: memref<1x128xf32, #tpu.memory_space<vmem>>, %arg6: memref<1x128xf32, #tpu.memory_space<vmem>>, %arg7: memref<1x128xf32, #tpu.memory_space<vmem>>, %arg8: memref<128x128xbf16, #tpu.memory_space<vmem>>, %arg9: memref<1x128xf32, #tpu.memory_space<vmem>>, %arg10: memref<128x128xbf16, #tpu.memory_space<vmem>>, %arg11: memref<1x128xf32, #tpu.memory_space<vmem>>, %arg12: memref<1x128xf32, #tpu.memory_space<vmem>>, %arg13: memref<1x128xf32, #tpu.memory_space<vmem>>, %arg14: memref<128x128xbf16, #tpu.memory_space<vmem>>, %arg15: memref<1x128xf32, #tpu.memory_space<vmem>>, %arg16: memref<128x128xbf16, #tpu.memory_space<vmem>>, %arg17: memref<1x128xf32, #tpu.memory_space<vmem>>, %arg18: memref<1x256x128xbf16, #tpu.memory_space<vmem>>) attributes {dimension_semantics = [#tpu.dimension_semantics<parallel>, #tpu.dimension_semantics<parallel>], iteration_bounds = array<i64: 2, 1>, scalar_prefetch = 0 : i64, scratch_operands = 0 : i64, tpu.core_type = #tpu.core_type<tc>, window_params = [{transform_indices = @transform_0, window_bounds = array<i64: 1, 256, 128>}, {pipeline_mode = #tpu.pipeline_mode<synchronous>, transform_indices = @transform_1, window_bounds = array<i64: 2, 128, 128>}, {pipeline_mode = #tpu.pipeline_mode<synchronous>, transform_indices = @transform_2, window_bounds = array<i64: 2, 128, 128>}, {pipeline_mode = #tpu.pipeline_mode<synchronous>, transform_indices = @transform_3, window_bounds = array<i64: 1, 128>}, {pipeline_mode = #tpu.pipeline_mode<synchronous>, transform_indices = @transform_4, window_bounds = array<i64: 1, 128>}, {pipeline_mode = #tpu.pipeline_mode<synchronous>, transform_indices = @transform_5, window_bounds = array<i64: 1, 128>}, {pipeline_mode = #tpu.pipeline_mode<synchronous>, transform_indices = @transform_6, window_bounds = array<i64: 128, 128>}, {pipeline_mode = #tpu.pipeline_mode<synchronous>, transform_indices = @transform_7, window_bounds = array<i64: 1, 128>}, {pipeline_mode = #tpu.pipeline_mode<synchronous>, transform_indices = @transform_8, window_bounds = array<i64: 128, 128>}, {pipeline_mode = #tpu.pipeline_mode<synchronous>, transform_indices = @transform_9, window_bounds = array<i64: 1, 128>}, {pipeline_mode = #tpu.pipeline_mode<synchronous>, transform_indices = @transform_10, window_bounds = array<i64: 1, 128>}, {pipeline_mode = #tpu.pipeline_mode<synchronous>, transform_indices = @transform_11, window_bounds = array<i64: 1, 128>}, {pipeline_mode = #tpu.pipeline_mode<synchronous>, transform_indices = @transform_12, window_bounds = array<i64: 128, 128>}, {pipeline_mode = #tpu.pipeline_mode<synchronous>, transform_indices = @transform_13, window_bounds = array<i64: 1, 128>}, {pipeline_mode = #tpu.pipeline_mode<synchronous>, transform_indices = @transform_14, window_bounds = array<i64: 128, 128>}, {pipeline_mode = #tpu.pipeline_mode<synchronous>, transform_indices = @transform_15, window_bounds = array<i64: 1, 128>}, {transform_indices = @transform_16, window_bounds = array<i64: 1, 256, 128>}]} {
    %c0 = arith.constant 0 : index
    %c0_0 = arith.constant 0 : index
    %c0_1 = arith.constant 0 : index
    %0 = vector.load %arg2[%c0, %c0_0, %c0_1] : memref<1x256x128xf32, #tpu.memory_space<vmem>>, vector<1x256x128xf32>
    %1 = vector.shape_cast %0 : vector<1x256x128xf32> to vector<256x128xf32>
    %c0_2 = arith.constant 0 : index
    %c0_3 = arith.constant 0 : index
    %2 = vector.load %arg6[%c0_2, %c0_3] : memref<1x128xf32, #tpu.memory_space<vmem>>, vector<1x128xf32>
    %c0_4 = arith.constant 0 : index
    %c0_5 = arith.constant 0 : index
    %3 = vector.load %arg7[%c0_4, %c0_5] : memref<1x128xf32, #tpu.memory_space<vmem>>, vector<1x128xf32>
    %cst = arith.constant dense<0.000000e+00> : vector<256xf32>
    %4 = vector.multi_reduction <add>, %1, %cst [1] : vector<256x128xf32> to vector<256xf32>
    %5 = vector.shape_cast %4 : vector<256xf32> to vector<256x1xf32>
    %cst_6 = arith.constant 1.280000e+02 : f32
    %6 = vector.broadcast %cst_6 : f32 to vector<256x1xf32>
    %7 = arith.divf %5, %6 : vector<256x1xf32>
    %8 = arith.mulf %1, %1 : vector<256x128xf32>
    %cst_7 = arith.constant dense<0.000000e+00> : vector<256xf32>
    %9 = vector.multi_reduction <add>, %8, %cst_7 [1] : vector<256x128xf32> to vector<256xf32>
    %10 = vector.shape_cast %9 : vector<256xf32> to vector<256x1xf32>
    %cst_8 = arith.constant 1.280000e+02 : f32
    %11 = vector.broadcast %cst_8 : f32 to vector<256x1xf32>
    %12 = arith.divf %10, %11 : vector<256x1xf32>
    %13 = arith.mulf %7, %7 : vector<256x1xf32>
    %14 = arith.subf %12, %13 : vector<256x1xf32>
    %15 = vector.broadcast %7 : vector<256x1xf32> to vector<256x128xf32>
    %16 = arith.subf %1, %15 : vector<256x128xf32>
    %cst_9 = arith.constant 9.99999974E-6 : f32
    %17 = vector.broadcast %cst_9 : f32 to vector<256x1xf32>
    %18 = arith.addf %14, %17 : vector<256x1xf32>
    %19 = math.rsqrt %18 : vector<256x1xf32>
    %20 = vector.broadcast %19 : vector<256x1xf32> to vector<256x128xf32>
    %21 = arith.mulf %16, %20 : vector<256x128xf32>
    %22 = vector.broadcast %2 : vector<1x128xf32> to vector<256x128xf32>
    %23 = arith.mulf %21, %22 : vector<256x128xf32>
    %24 = vector.broadcast %3 : vector<1x128xf32> to vector<256x128xf32>
    %25 = arith.addf %23, %24 : vector<256x128xf32>
    %c0_10 = arith.constant 0 : index
    %c0_11 = arith.constant 0 : index
    %26 = vector.load %arg8[%c0_10, %c0_11] : memref<128x128xbf16, #tpu.memory_space<vmem>>, vector<128x128xbf16>
    %27 = arith.truncf %25 : vector<256x128xf32> to vector<256x128xbf16>
    %cst_12 = arith.constant dense<0.000000e+00> : vector<256x128xf32>
    %28 = tpu.matmul %27, %26, %cst_12 {dimension_numbers = #tpu.dot_dimension_numbers<[1], [0], [0], [1], [0, 0, 1, 1], [], []>} : vector<256x128xbf16>, vector<128x128xbf16>, vector<256x128xf32> -> vector<256x128xf32>
    %c0_13 = arith.constant 0 : index
    %c0_14 = arith.constant 0 : index
    %29 = vector.load %arg9[%c0_13, %c0_14] : memref<1x128xf32, #tpu.memory_space<vmem>>, vector<1x128xf32>
    %30 = vector.broadcast %29 : vector<1x128xf32> to vector<256x128xf32>
    %31 = arith.addf %28, %30 : vector<256x128xf32>
    %32 = arith.index_cast %arg0 : i32 to index
    %c0_15 = arith.constant 0 : index
    %c0_16 = arith.constant 0 : index
    %33 = vector.load %arg3[%32, %c0_15, %c0_16] : memref<2x128x128xbf16, #tpu.memory_space<vmem>>, vector<1x128x128xbf16>
    %34 = vector.shape_cast %33 : vector<1x128x128xbf16> to vector<128x128xbf16>
    %35 = arith.index_cast %arg0 : i32 to index
    %c0_17 = arith.constant 0 : index
    %c0_18 = arith.constant 0 : index
    %36 = vector.load %arg4[%35, %c0_17, %c0_18] : memref<2x128x128xbf16, #tpu.memory_space<vmem>>, vector<1x128x128xbf16>
    %37 = vector.shape_cast %36 : vector<1x128x128xbf16> to vector<128x128xbf16>
    %38 = arith.truncf %31 : vector<256x128xf32> to vector<256x128xbf16>
    %cst_19 = arith.constant dense<0.000000e+00> : vector<256x128xf32>
    %39 = tpu.matmul %38, %34, %cst_19 {dimension_numbers = #tpu.dot_dimension_numbers<[1], [1], [0], [0], [0, 0, 1, 0], [], []>} : vector<256x128xbf16>, vector<128x128xbf16>, vector<256x128xf32> -> vector<256x128xf32>
    %c0_20 = arith.constant 0 : index
    %c0_21 = arith.constant 0 : index
    %40 = vector.load %arg5[%c0_20, %c0_21] : memref<1x128xf32, #tpu.memory_space<vmem>>, vector<1x128xf32>
    %41 = vector.broadcast %40 : vector<1x128xf32> to vector<256x128xf32>
    %42 = arith.addf %39, %41 : vector<256x128xf32>
    %cst_22 = arith.constant dense<0xFF800000> : vector<256xf32>
    %43 = vector.multi_reduction <maximumf>, %42, %cst_22 [1] : vector<256x128xf32> to vector<256xf32>
    %44 = vector.shape_cast %43 : vector<256xf32> to vector<256x1xf32>
    %45 = vector.broadcast %44 : vector<256x1xf32> to vector<256x128xf32>
    %46 = arith.subf %42, %45 : vector<256x128xf32>
    %47 = math.exp %46 : vector<256x128xf32>
    %cst_23 = arith.constant dense<0.000000e+00> : vector<256xf32>
    %48 = vector.multi_reduction <add>, %47, %cst_23 [1] : vector<256x128xf32> to vector<256xf32>
    %49 = vector.shape_cast %48 : vector<256xf32> to vector<256x1xf32>
    %50 = arith.truncf %47 : vector<256x128xf32> to vector<256x128xbf16>
    %cst_24 = arith.constant dense<0.000000e+00> : vector<256x128xf32>
    %51 = tpu.matmul %50, %37, %cst_24 {dimension_numbers = #tpu.dot_dimension_numbers<[1], [0], [0], [1], [0, 0, 1, 1], [], []>} : vector<256x128xbf16>, vector<128x128xbf16>, vector<256x128xf32> -> vector<256x128xf32>
    %52 = tpu.reciprocal %49 {approx = true} : vector<256x1xf32> -> vector<256x1xf32>
    %53 = vector.broadcast %52 : vector<256x1xf32> to vector<256x128xf32>
    %54 = arith.mulf %51, %53 : vector<256x128xf32>
    %c0_25 = arith.constant 0 : index
    %c0_26 = arith.constant 0 : index
    %55 = vector.load %arg10[%c0_25, %c0_26] : memref<128x128xbf16, #tpu.memory_space<vmem>>, vector<128x128xbf16>
    %56 = arith.truncf %54 : vector<256x128xf32> to vector<256x128xbf16>
    %cst_27 = arith.constant dense<0.000000e+00> : vector<256x128xf32>
    %57 = tpu.matmul %56, %55, %cst_27 {dimension_numbers = #tpu.dot_dimension_numbers<[1], [0], [0], [1], [0, 0, 1, 1], [], []>} : vector<256x128xbf16>, vector<128x128xbf16>, vector<256x128xf32> -> vector<256x128xf32>
    %c0_28 = arith.constant 0 : index
    %c0_29 = arith.constant 0 : index
    %58 = vector.load %arg11[%c0_28, %c0_29] : memref<1x128xf32, #tpu.memory_space<vmem>>, vector<1x128xf32>
    %59 = vector.broadcast %58 : vector<1x128xf32> to vector<256x128xf32>
    %60 = arith.addf %57, %59 : vector<256x128xf32>
    %61 = arith.addf %60, %1 : vector<256x128xf32>
    %c0_30 = arith.constant 0 : index
    %c0_31 = arith.constant 0 : index
    %62 = vector.load %arg12[%c0_30, %c0_31] : memref<1x128xf32, #tpu.memory_space<vmem>>, vector<1x128xf32>
    %c0_32 = arith.constant 0 : index
    %c0_33 = arith.constant 0 : index
    %63 = vector.load %arg13[%c0_32, %c0_33] : memref<1x128xf32, #tpu.memory_space<vmem>>, vector<1x128xf32>
    %cst_34 = arith.constant dense<0.000000e+00> : vector<256xf32>
    %64 = vector.multi_reduction <add>, %61, %cst_34 [1] : vector<256x128xf32> to vector<256xf32>
    %65 = vector.shape_cast %64 : vector<256xf32> to vector<256x1xf32>
    %cst_35 = arith.constant 1.280000e+02 : f32
    %66 = vector.broadcast %cst_35 : f32 to vector<256x1xf32>
    %67 = arith.divf %65, %66 : vector<256x1xf32>
    %68 = arith.mulf %61, %61 : vector<256x128xf32>
    %cst_36 = arith.constant dense<0.000000e+00> : vector<256xf32>
    %69 = vector.multi_reduction <add>, %68, %cst_36 [1] : vector<256x128xf32> to vector<256xf32>
    %70 = vector.shape_cast %69 : vector<256xf32> to vector<256x1xf32>
    %cst_37 = arith.constant 1.280000e+02 : f32
    %71 = vector.broadcast %cst_37 : f32 to vector<256x1xf32>
    %72 = arith.divf %70, %71 : vector<256x1xf32>
    %73 = arith.mulf %67, %67 : vector<256x1xf32>
    %74 = arith.subf %72, %73 : vector<256x1xf32>
    %75 = vector.broadcast %67 : vector<256x1xf32> to vector<256x128xf32>
    %76 = arith.subf %61, %75 : vector<256x128xf32>
    %cst_38 = arith.constant 9.99999974E-6 : f32
    %77 = vector.broadcast %cst_38 : f32 to vector<256x1xf32>
    %78 = arith.addf %74, %77 : vector<256x1xf32>
    %79 = math.rsqrt %78 : vector<256x1xf32>
    %80 = vector.broadcast %79 : vector<256x1xf32> to vector<256x128xf32>
    %81 = arith.mulf %76, %80 : vector<256x128xf32>
    %82 = vector.broadcast %62 : vector<1x128xf32> to vector<256x128xf32>
    %83 = arith.mulf %81, %82 : vector<256x128xf32>
    %84 = vector.broadcast %63 : vector<1x128xf32> to vector<256x128xf32>
    %85 = arith.addf %83, %84 : vector<256x128xf32>
    %c0_39 = arith.constant 0 : index
    %c0_40 = arith.constant 0 : index
    %86 = vector.load %arg14[%c0_39, %c0_40] : memref<128x128xbf16, #tpu.memory_space<vmem>>, vector<128x128xbf16>
    %87 = arith.truncf %85 : vector<256x128xf32> to vector<256x128xbf16>
    %cst_41 = arith.constant dense<0.000000e+00> : vector<256x128xf32>
    %88 = tpu.matmul %87, %86, %cst_41 {dimension_numbers = #tpu.dot_dimension_numbers<[1], [0], [0], [1], [0, 0, 1, 1], [], []>} : vector<256x128xbf16>, vector<128x128xbf16>, vector<256x128xf32> -> vector<256x128xf32>
    %c0_42 = arith.constant 0 : index
    %c0_43 = arith.constant 0 : index
    %89 = vector.load %arg15[%c0_42, %c0_43] : memref<1x128xf32, #tpu.memory_space<vmem>>, vector<1x128xf32>
    %90 = vector.broadcast %89 : vector<1x128xf32> to vector<256x128xf32>
    %91 = arith.addf %88, %90 : vector<256x128xf32>
    %cst_44 = arith.constant 5.000000e-01 : f32
    %92 = vector.broadcast %cst_44 : f32 to vector<256x128xf32>
    %93 = arith.mulf %92, %91 : vector<256x128xf32>
    %cst_45 = arith.constant 0.707106769 : f32
    %94 = vector.broadcast %cst_45 : f32 to vector<256x128xf32>
    %95 = arith.mulf %91, %94 : vector<256x128xf32>
    %96 = math.erf %95 : vector<256x128xf32>
    %cst_46 = arith.constant 1.000000e+00 : f32
    %97 = vector.broadcast %cst_46 : f32 to vector<256x128xf32>
    %98 = arith.addf %97, %96 : vector<256x128xf32>
    %99 = arith.mulf %93, %98 : vector<256x128xf32>
    %c0_47 = arith.constant 0 : index
    %c0_48 = arith.constant 0 : index
    %100 = vector.load %arg16[%c0_47, %c0_48] : memref<128x128xbf16, #tpu.memory_space<vmem>>, vector<128x128xbf16>
    %101 = arith.truncf %99 : vector<256x128xf32> to vector<256x128xbf16>
    %cst_49 = arith.constant dense<0.000000e+00> : vector<256x128xf32>
    %102 = tpu.matmul %101, %100, %cst_49 {dimension_numbers = #tpu.dot_dimension_numbers<[1], [0], [0], [1], [0, 0, 1, 1], [], []>} : vector<256x128xbf16>, vector<128x128xbf16>, vector<256x128xf32> -> vector<256x128xf32>
    %c0_50 = arith.constant 0 : index
    %c0_51 = arith.constant 0 : index
    %103 = vector.load %arg17[%c0_50, %c0_51] : memref<1x128xf32, #tpu.memory_space<vmem>>, vector<1x128xf32>
    %104 = vector.broadcast %103 : vector<1x128xf32> to vector<256x128xf32>
    %105 = arith.addf %102, %104 : vector<256x128xf32>
    %106 = arith.addf %105, %61 : vector<256x128xf32>
    %107 = arith.truncf %106 : vector<256x128xf32> to vector<256x128xbf16>
    %c0_52 = arith.constant 0 : index
    %c0_53 = arith.constant 0 : index
    %c0_54 = arith.constant 0 : index
    %108 = vector.load %arg18[%c0_52, %c0_53, %c0_54] : memref<1x256x128xbf16, #tpu.memory_space<vmem>>, vector<1x256x128xbf16>
    %109 = vector.shape_cast %108 : vector<1x256x128xbf16> to vector<256x128xbf16>
    %110 = vector.shape_cast %107 : vector<256x128xbf16> to vector<1x256x128xbf16>
    tpu.vector_store %arg18[%c0_52, %c0_53, %c0_54], %110 {strides = array<i32>} : memref<1x256x128xbf16, #tpu.memory_space<vmem>>, vector<1x256x128xbf16>,
    return
  }
  func.func @transform_0(%arg0: i32, %arg1: i32) -> (i32, i32, i32) {
    %c0_i32 = arith.constant 0 : i32
    %c0_i32_0 = arith.constant 0 : i32
    return %arg0, %arg1, %c0_i32 : i32, i32, i32
  }
  func.func @transform_1(%arg0: i32, %arg1: i32) -> (i32, i32, i32) {
    %c0_i32 = arith.constant 0 : i32
    %c0_i32_0 = arith.constant 0 : i32
    %c0_i32_1 = arith.constant 0 : i32
    %c0_i32_2 = arith.constant 0 : i32
    return %c0_i32, %c0_i32_0, %c0_i32_1 : i32, i32, i32
  }
  func.func @transform_2(%arg0: i32, %arg1: i32) -> (i32, i32, i32) {
    %c0_i32 = arith.constant 0 : i32
    %c0_i32_0 = arith.constant 0 : i32
    %c0_i32_1 = arith.constant 0 : i32
    %c0_i32_2 = arith.constant 0 : i32
    return %c0_i32, %c0_i32_0, %c0_i32_1 : i32, i32, i32
  }
  func.func @transform_3(%arg0: i32, %arg1: i32) -> (i32, i32) {
    %c0_i32 = arith.constant 0 : i32
    %c0_i32_0 = arith.constant 0 : i32
    %c0_i32_1 = arith.constant 0 : i32
    return %c0_i32, %c0_i32_0 : i32, i32
  }
  func.func @transform_4(%arg0: i32, %arg1: i32) -> (i32, i32) {
    %c0_i32 = arith.constant 0 : i32
    %c0_i32_0 = arith.constant 0 : i32
    %c0_i32_1 = arith.constant 0 : i32
    return %c0_i32, %c0_i32_0 : i32, i32
  }
  func.func @transform_5(%arg0: i32, %arg1: i32) -> (i32, i32) {
    %c0_i32 = arith.constant 0 : i32
    %c0_i32_0 = arith.constant 0 : i32
    %c0_i32_1 = arith.constant 0 : i32
    return %c0_i32, %c0_i32_0 : i32, i32
  }
  func.func @transform_6(%arg0: i32, %arg1: i32) -> (i32, i32) {
    %c0_i32 = arith.constant 0 : i32
    %c0_i32_0 = arith.constant 0 : i32
    %c0_i32_1 = arith.constant 0 : i32
    return %c0_i32, %c0_i32_0 : i32, i32
  }
  func.func @transform_7(%arg0: i32, %arg1: i32) -> (i32, i32) {
    %c0_i32 = arith.constant 0 : i32
    %c0_i32_0 = arith.constant 0 : i32
    %c0_i32_1 = arith.constant 0 : i32
    return %c0_i32, %c0_i32_0 : i32, i32
  }
  func.func @transform_8(%arg0: i32, %arg1: i32) -> (i32, i32) {
    %c0_i32 = arith.constant 0 : i32
    %c0_i32_0 = arith.constant 0 : i32
    %c0_i32_1 = arith.constant 0 : i32
    return %c0_i32, %c0_i32_0 : i32, i32
  }
  func.func @transform_9(%arg0: i32, %arg1: i32) -> (i32, i32) {
    %c0_i32 = arith.constant 0 : i32
    %c0_i32_0 = arith.constant 0 : i32
    %c0_i32_1 = arith.constant 0 : i32
    return %c0_i32, %c0_i32_0 : i32, i32
  }
  func.func @transform_10(%arg0: i32, %arg1: i32) -> (i32, i32) {
    %c0_i32 = arith.constant 0 : i32
    %c0_i32_0 = arith.constant 0 : i32
    %c0_i32_1 = arith.constant 0 : i32
    return %c0_i32, %c0_i32_0 : i32, i32
  }
  func.func @transform_11(%arg0: i32, %arg1: i32) -> (i32, i32) {
    %c0_i32 = arith.constant 0 : i32
    %c0_i32_0 = arith.constant 0 : i32
    %c0_i32_1 = arith.constant 0 : i32
    return %c0_i32, %c0_i32_0 : i32, i32
  }
  func.func @transform_12(%arg0: i32, %arg1: i32) -> (i32, i32) {
    %c0_i32 = arith.constant 0 : i32
    %c0_i32_0 = arith.constant 0 : i32
    %c0_i32_1 = arith.constant 0 : i32
    return %c0_i32, %c0_i32_0 : i32, i32
  }
  func.func @transform_13(%arg0: i32, %arg1: i32) -> (i32, i32) {
    %c0_i32 = arith.constant 0 : i32
    %c0_i32_0 = arith.constant 0 : i32
    %c0_i32_1 = arith.constant 0 : i32
    return %c0_i32, %c0_i32_0 : i32, i32
  }
  func.func @transform_14(%arg0: i32, %arg1: i32) -> (i32, i32) {
    %c0_i32 = arith.constant 0 : i32
    %c0_i32_0 = arith.constant 0 : i32
    %c0_i32_1 = arith.constant 0 : i32
    return %c0_i32, %c0_i32_0 : i32, i32
  }
  func.func @transform_15(%arg0: i32, %arg1: i32) -> (i32, i32) {
    %c0_i32 = arith.constant 0 : i32
    %c0_i32_0 = arith.constant 0 : i32
    %c0_i32_1 = arith.constant 0 : i32
    return %c0_i32, %c0_i32_0 : i32, i32
  }
  func.func @transform_16(%arg0: i32, %arg1: i32) -> (i32, i32, i32) {
    %c0_i32 = arith.constant 0 : i32
    %c0_i32_0 = arith.constant 0 : i32
    return %arg0, %arg1, %c0_i32 : i32, i32, i32
  }
}

module attributes {stable_mosaic.version = 11 : i64} {
  func.func @cross_attention_kernel(%arg0: i32, %arg1: i32, %arg2: memref<1x256x128xf32, #tpu.memory_space<vmem>>, %arg3: memref<2x128x128xbf16, #tpu.memory_space<vmem>>, %arg4: memref<2x128x128xbf16, #tpu.memory_space<vmem>>, %arg5: memref<1x128xf32, #tpu.memory_space<vmem>>, %arg6: memref<1x128xf32, #tpu.memory_space<vmem>>, %arg7: memref<1x128xf32, #tpu.memory_space<vmem>>, %arg8: memref<128x128xbf16, #tpu.memory_space<vmem>>, %arg9: memref<1x128xf32, #tpu.memory_space<vmem>>, %arg10: memref<128x128xbf16, #tpu.memory_space<vmem>>, %arg11: memref<1x128xf32, #tpu.memory_space<vmem>>, %arg12: memref<1x128xf32, #tpu.memory_space<vmem>>, %arg13: memref<1x128xf32, #tpu.memory_space<vmem>>, %arg14: memref<128x128xbf16, #tpu.memory_space<vmem>>, %arg15: memref<1x128xf32, #tpu.memory_space<vmem>>, %arg16: memref<128x128xbf16, #tpu.memory_space<vmem>>, %arg17: memref<1x128xf32, #tpu.memory_space<vmem>>, %arg18: memref<1x256x128xbf16, #tpu.memory_space<vmem>>) attributes {dimension_semantics = [#tpu.dimension_semantics<parallel>, #tpu.dimension_semantics<parallel>], iteration_bounds = array<i64: 2, 1>, scalar_prefetch = 0 : i64, scratch_operands = 0 : i64, tpu.core_type = #tpu.core_type<tc>, window_params = [{transform_indices = @transform_0, window_bounds = array<i64: 1, 256, 128>}, {pipeline_mode = #tpu.pipeline_mode<synchronous>, transform_indices = @transform_1, window_bounds = array<i64: 2, 128, 128>}, {pipeline_mode = #tpu.pipeline_mode<synchronous>, transform_indices = @transform_2, window_bounds = array<i64: 2, 128, 128>}, {pipeline_mode = #tpu.pipeline_mode<synchronous>, transform_indices = @transform_3, window_bounds = array<i64: 1, 128>}, {pipeline_mode = #tpu.pipeline_mode<synchronous>, transform_indices = @transform_4, window_bounds = array<i64: 1, 128>}, {pipeline_mode = #tpu.pipeline_mode<synchronous>, transform_indices = @transform_5, window_bounds = array<i64: 1, 128>}, {pipeline_mode = #tpu.pipeline_mode<synchronous>, transform_indices = @transform_6, window_bounds = array<i64: 128, 128>}, {pipeline_mode = #tpu.pipeline_mode<synchronous>, transform_indices = @transform_7, window_bounds = array<i64: 1, 128>}, {pipeline_mode = #tpu.pipeline_mode<synchronous>, transform_indices = @transform_8, window_bounds = array<i64: 128, 128>}, {pipeline_mode = #tpu.pipeline_mode<synchronous>, transform_indices = @transform_9, window_bounds = array<i64: 1, 128>}, {pipeline_mode = #tpu.pipeline_mode<synchronous>, transform_indices = @transform_10, window_bounds = array<i64: 1, 128>}, {pipeline_mode = #tpu.pipeline_mode<synchronous>, transform_indices = @transform_11, window_bounds = array<i64: 1, 128>}, {pipeline_mode = #tpu.pipeline_mode<synchronous>, transform_indices = @transform_12, window_bounds = array<i64: 128, 128>}, {pipeline_mode = #tpu.pipeline_mode<synchronous>, transform_indices = @transform_13, window_bounds = array<i64: 1, 128>}, {pipeline_mode = #tpu.pipeline_mode<synchronous>, transform_indices = @transform_14, window_bounds = array<i64: 128, 128>}, {pipeline_mode = #tpu.pipeline_mode<synchronous>, transform_indices = @transform_15, window_bounds = array<i64: 1, 128>}, {transform_indices = @transform_16, window_bounds = array<i64: 1, 256, 128>}]} {
    %c0 = arith.constant 0 : index
    %c0_0 = arith.constant 0 : index
    %c0_1 = arith.constant 0 : index
    %0 = vector.load %arg2[%c0, %c0_0, %c0_1] : memref<1x256x128xf32, #tpu.memory_space<vmem>>, vector<1x256x128xf32>
    %1 = vector.shape_cast %0 : vector<1x256x128xf32> to vector<256x128xf32>
    %c0_2 = arith.constant 0 : index
    %c0_3 = arith.constant 0 : index
    %2 = vector.load %arg6[%c0_2, %c0_3] : memref<1x128xf32, #tpu.memory_space<vmem>>, vector<1x128xf32>
    %c0_4 = arith.constant 0 : index
    %c0_5 = arith.constant 0 : index
    %3 = vector.load %arg7[%c0_4, %c0_5] : memref<1x128xf32, #tpu.memory_space<vmem>>, vector<1x128xf32>
    %cst = arith.constant dense<0.000000e+00> : vector<256xf32>
    %4 = vector.multi_reduction <add>, %1, %cst [1] : vector<256x128xf32> to vector<256xf32>
    %5 = vector.shape_cast %4 : vector<256xf32> to vector<256x1xf32>
    %cst_6 = arith.constant 1.280000e+02 : f32
    %6 = vector.broadcast %cst_6 : f32 to vector<256x1xf32>
    %7 = arith.divf %5, %6 : vector<256x1xf32>
    %8 = arith.mulf %1, %1 : vector<256x128xf32>
    %cst_7 = arith.constant dense<0.000000e+00> : vector<256xf32>
    %9 = vector.multi_reduction <add>, %8, %cst_7 [1] : vector<256x128xf32> to vector<256xf32>
    %10 = vector.shape_cast %9 : vector<256xf32> to vector<256x1xf32>
    %cst_8 = arith.constant 1.280000e+02 : f32
    %11 = vector.broadcast %cst_8 : f32 to vector<256x1xf32>
    %12 = arith.divf %10, %11 : vector<256x1xf32>
    %13 = arith.mulf %7, %7 : vector<256x1xf32>
    %14 = arith.subf %12, %13 : vector<256x1xf32>
    %15 = vector.broadcast %7 : vector<256x1xf32> to vector<256x128xf32>
    %16 = arith.subf %1, %15 : vector<256x128xf32>
    %cst_9 = arith.constant 9.99999974E-6 : f32
    %17 = vector.broadcast %cst_9 : f32 to vector<256x1xf32>
    %18 = arith.addf %14, %17 : vector<256x1xf32>
    %19 = math.rsqrt %18 : vector<256x1xf32>
    %20 = vector.broadcast %19 : vector<256x1xf32> to vector<256x128xf32>
    %21 = arith.mulf %16, %20 : vector<256x128xf32>
    %22 = vector.broadcast %2 : vector<1x128xf32> to vector<256x128xf32>
    %23 = arith.mulf %21, %22 : vector<256x128xf32>
    %24 = vector.broadcast %3 : vector<1x128xf32> to vector<256x128xf32>
    %25 = arith.addf %23, %24 : vector<256x128xf32>
    %c0_10 = arith.constant 0 : index
    %c0_11 = arith.constant 0 : index
    %26 = vector.load %arg8[%c0_10, %c0_11] : memref<128x128xbf16, #tpu.memory_space<vmem>>, vector<128x128xbf16>
    %27 = arith.truncf %25 : vector<256x128xf32> to vector<256x128xbf16>
    %cst_12 = arith.constant dense<0.000000e+00> : vector<256x128xf32>
    %28 = tpu.matmul %27, %26, %cst_12 {dimension_numbers = #tpu.dot_dimension_numbers<[1], [0], [0], [1], [0, 0, 1, 1], [], []>} : vector<256x128xbf16>, vector<128x128xbf16>, vector<256x128xf32> -> vector<256x128xf32>
    %c0_13 = arith.constant 0 : index
    %c0_14 = arith.constant 0 : index
    %29 = vector.load %arg9[%c0_13, %c0_14] : memref<1x128xf32, #tpu.memory_space<vmem>>, vector<1x128xf32>
    %30 = vector.broadcast %29 : vector<1x128xf32> to vector<256x128xf32>
    %31 = arith.addf %28, %30 : vector<256x128xf32>
    %32 = arith.index_cast %arg0 : i32 to index
    %c0_15 = arith.constant 0 : index
    %c0_16 = arith.constant 0 : index
    %33 = vector.load %arg3[%32, %c0_15, %c0_16] : memref<2x128x128xbf16, #tpu.memory_space<vmem>>, vector<1x128x128xbf16>
    %34 = vector.shape_cast %33 : vector<1x128x128xbf16> to vector<128x128xbf16>
    %35 = arith.index_cast %arg0 : i32 to index
    %c0_17 = arith.constant 0 : index
    %c0_18 = arith.constant 0 : index
    %36 = vector.load %arg4[%35, %c0_17, %c0_18] : memref<2x128x128xbf16, #tpu.memory_space<vmem>>, vector<1x128x128xbf16>
    %37 = vector.shape_cast %36 : vector<1x128x128xbf16> to vector<128x128xbf16>
    %38 = arith.truncf %31 : vector<256x128xf32> to vector<256x128xbf16>
    %cst_19 = arith.constant dense<0.000000e+00> : vector<256x128xf32>
    %39 = tpu.matmul %38, %34, %cst_19 {dimension_numbers = #tpu.dot_dimension_numbers<[1], [1], [0], [0], [0, 0, 1, 0], [], []>} : vector<256x128xbf16>, vector<128x128xbf16>, vector<256x128xf32> -> vector<256x128xf32>
    %c0_20 = arith.constant 0 : index
    %c0_21 = arith.constant 0 : index
    %40 = vector.load %arg5[%c0_20, %c0_21] : memref<1x128xf32, #tpu.memory_space<vmem>>, vector<1x128xf32>
    %41 = vector.broadcast %40 : vector<1x128xf32> to vector<256x128xf32>
    %42 = arith.addf %39, %41 : vector<256x128xf32>
    %cst_22 = arith.constant dense<0xFF800000> : vector<256xf32>
    %43 = vector.multi_reduction <maximumf>, %42, %cst_22 [1] : vector<256x128xf32> to vector<256xf32>
    %44 = vector.shape_cast %43 : vector<256xf32> to vector<256x1xf32>
    %45 = vector.broadcast %44 : vector<256x1xf32> to vector<256x128xf32>
    %46 = arith.subf %42, %45 : vector<256x128xf32>
    %47 = math.exp %46 : vector<256x128xf32>
    %cst_23 = arith.constant dense<0.000000e+00> : vector<256xf32>
    %48 = vector.multi_reduction <add>, %47, %cst_23 [1] : vector<256x128xf32> to vector<256xf32>
    %49 = vector.shape_cast %48 : vector<256xf32> to vector<256x1xf32>
    %50 = arith.truncf %47 : vector<256x128xf32> to vector<256x128xbf16>
    %cst_24 = arith.constant dense<0.000000e+00> : vector<256x128xf32>
    %51 = tpu.matmul %50, %37, %cst_24 {dimension_numbers = #tpu.dot_dimension_numbers<[1], [0], [0], [1], [0, 0, 1, 1], [], []>} : vector<256x128xbf16>, vector<128x128xbf16>, vector<256x128xf32> -> vector<256x128xf32>
    %52 = tpu.reciprocal %49 {approx = true} : vector<256x1xf32> -> vector<256x1xf32>
    %53 = vector.broadcast %52 : vector<256x1xf32> to vector<256x128xf32>
    %54 = arith.mulf %51, %53 : vector<256x128xf32>
    %c0_25 = arith.constant 0 : index
    %c0_26 = arith.constant 0 : index
    %55 = vector.load %arg10[%c0_25, %c0_26] : memref<128x128xbf16, #tpu.memory_space<vmem>>, vector<128x128xbf16>
    %56 = arith.truncf %54 : vector<256x128xf32> to vector<256x128xbf16>
    %cst_27 = arith.constant dense<0.000000e+00> : vector<256x128xf32>
    %57 = tpu.matmul %56, %55, %cst_27 {dimension_numbers = #tpu.dot_dimension_numbers<[1], [0], [0], [1], [0, 0, 1, 1], [], []>} : vector<256x128xbf16>, vector<128x128xbf16>, vector<256x128xf32> -> vector<256x128xf32>
    %c0_28 = arith.constant 0 : index
    %c0_29 = arith.constant 0 : index
    %58 = vector.load %arg11[%c0_28, %c0_29] : memref<1x128xf32, #tpu.memory_space<vmem>>, vector<1x128xf32>
    %59 = vector.broadcast %58 : vector<1x128xf32> to vector<256x128xf32>
    %60 = arith.addf %57, %59 : vector<256x128xf32>
    %61 = arith.addf %60, %1 : vector<256x128xf32>
    %c0_30 = arith.constant 0 : index
    %c0_31 = arith.constant 0 : index
    %62 = vector.load %arg12[%c0_30, %c0_31] : memref<1x128xf32, #tpu.memory_space<vmem>>, vector<1x128xf32>
    %c0_32 = arith.constant 0 : index
    %c0_33 = arith.constant 0 : index
    %63 = vector.load %arg13[%c0_32, %c0_33] : memref<1x128xf32, #tpu.memory_space<vmem>>, vector<1x128xf32>
    %cst_34 = arith.constant dense<0.000000e+00> : vector<256xf32>
    %64 = vector.multi_reduction <add>, %61, %cst_34 [1] : vector<256x128xf32> to vector<256xf32>
    %65 = vector.shape_cast %64 : vector<256xf32> to vector<256x1xf32>
    %cst_35 = arith.constant 1.280000e+02 : f32
    %66 = vector.broadcast %cst_35 : f32 to vector<256x1xf32>
    %67 = arith.divf %65, %66 : vector<256x1xf32>
    %68 = arith.mulf %61, %61 : vector<256x128xf32>
    %cst_36 = arith.constant dense<0.000000e+00> : vector<256xf32>
    %69 = vector.multi_reduction <add>, %68, %cst_36 [1] : vector<256x128xf32> to vector<256xf32>
    %70 = vector.shape_cast %69 : vector<256xf32> to vector<256x1xf32>
    %cst_37 = arith.constant 1.280000e+02 : f32
    %71 = vector.broadcast %cst_37 : f32 to vector<256x1xf32>
    %72 = arith.divf %70, %71 : vector<256x1xf32>
    %73 = arith.mulf %67, %67 : vector<256x1xf32>
    %74 = arith.subf %72, %73 : vector<256x1xf32>
    %75 = vector.broadcast %67 : vector<256x1xf32> to vector<256x128xf32>
    %76 = arith.subf %61, %75 : vector<256x128xf32>
    %cst_38 = arith.constant 9.99999974E-6 : f32
    %77 = vector.broadcast %cst_38 : f32 to vector<256x1xf32>
    %78 = arith.addf %74, %77 : vector<256x1xf32>
    %79 = math.rsqrt %78 : vector<256x1xf32>
    %80 = vector.broadcast %79 : vector<256x1xf32> to vector<256x128xf32>
    %81 = arith.mulf %76, %80 : vector<256x128xf32>
    %82 = vector.broadcast %62 : vector<1x128xf32> to vector<256x128xf32>
    %83 = arith.mulf %81, %82 : vector<256x128xf32>
    %84 = vector.broadcast %63 : vector<1x128xf32> to vector<256x128xf32>
    %85 = arith.addf %83, %84 : vector<256x128xf32>
    %c0_39 = arith.constant 0 : index
    %c0_40 = arith.constant 0 : index
    %86 = vector.load %arg14[%c0_39, %c0_40] : memref<128x128xbf16, #tpu.memory_space<vmem>>, vector<128x128xbf16>
    %87 = arith.truncf %85 : vector<256x128xf32> to vector<256x128xbf16>
    %cst_41 = arith.constant dense<0.000000e+00> : vector<256x128xf32>
    %88 = tpu.matmul %87, %86, %cst_41 {dimension_numbers = #tpu.dot_dimension_numbers<[1], [0], [0], [1], [0, 0, 1, 1], [], []>} : vector<256x128xbf16>, vector<128x128xbf16>, vector<256x128xf32> -> vector<256x128xf32>
    %c0_42 = arith.constant 0 : index
    %c0_43 = arith.constant 0 : index
    %89 = vector.load %arg15[%c0_42, %c0_43] : memref<1x128xf32, #tpu.memory_space<vmem>>, vector<1x128xf32>
    %90 = vector.broadcast %89 : vector<1x128xf32> to vector<256x128xf32>
    %91 = arith.addf %88, %90 : vector<256x128xf32>
    %cst_44 = arith.constant 5.000000e-01 : f32
    %92 = vector.broadcast %cst_44 : f32 to vector<256x128xf32>
    %93 = arith.mulf %92, %91 : vector<256x128xf32>
    %cst_45 = arith.constant 0.707106769 : f32
    %94 = vector.broadcast %cst_45 : f32 to vector<256x128xf32>
    %95 = arith.mulf %91, %94 : vector<256x128xf32>
    %96 = math.erf %95 : vector<256x128xf32>
    %cst_46 = arith.constant 1.000000e+00 : f32
    %97 = vector.broadcast %cst_46 : f32 to vector<256x128xf32>
    %98 = arith.addf %97, %96 : vector<256x128xf32>
    %99 = arith.mulf %93, %98 : vector<256x128xf32>
    %c0_47 = arith.constant 0 : index
    %c0_48 = arith.constant 0 : index
    %100 = vector.load %arg16[%c0_47, %c0_48] : memref<128x128xbf16, #tpu.memory_space<vmem>>, vector<128x128xbf16>
    %101 = arith.truncf %99 : vector<256x128xf32> to vector<256x128xbf16>
    %cst_49 = arith.constant dense<0.000000e+00> : vector<256x128xf32>
    %102 = tpu.matmul %101, %100, %cst_49 {dimension_numbers = #tpu.dot_dimension_numbers<[1], [0], [0], [1], [0, 0, 1, 1], [], []>} : vector<256x128xbf16>, vector<128x128xbf16>, vector<256x128xf32> -> vector<256x128xf32>
    %c0_50 = arith.constant 0 : index
    %c0_51 = arith.constant 0 : index
    %103 = vector.load %arg17[%c0_50, %c0_51] : memref<1x128xf32, #tpu.memory_space<vmem>>, vector<1x128xf32>
    %104 = vector.broadcast %103 : vector<1x128xf32> to vector<256x128xf32>
    %105 = arith.addf %102, %104 : vector<256x128xf32>
    %106 = arith.addf %105, %61 : vector<256x128xf32>
    %107 = arith.truncf %106 : vector<256x128xf32> to vector<256x128xbf16>
    %c0_52 = arith.constant 0 : index
    %c0_53 = arith.constant 0 : index
    %c0_54 = arith.constant 0 : index
    %108 = vector.load %arg18[%c0_52, %c0_53, %c0_54] : memref<1x256x128xbf16, #tpu.memory_space<vmem>>, vector<1x256x128xbf16>
    %109 = vector.shape_cast %108 : vector<1x256x128xbf16> to vector<256x128xbf16>
    %110 = vector.shape_cast %107 : vector<256x128xbf16> to vector<1x256x128xbf16>
    tpu.vector_store %arg18[%c0_52, %c0_53, %c0_54], %110 {strides = array<i32>} : memref<1x256x128xbf16, #tpu.memory_space<vmem>>, vector<1x256x128xbf16>,
    return
  }
  func.func @transform_0(%arg0: i32, %arg1: i32) -> (i32, i32, i32) {
    %c0_i32 = arith.constant 0 : i32
    %c0_i32_0 = arith.constant 0 : i32
    return %arg0, %arg1, %c0_i32 : i32, i32, i32
  }
  func.func @transform_1(%arg0: i32, %arg1: i32) -> (i32, i32, i32) {
    %c0_i32 = arith.constant 0 : i32
    %c0_i32_0 = arith.constant 0 : i32
    %c0_i32_1 = arith.constant 0 : i32
    %c0_i32_2 = arith.constant 0 : i32
    return %c0_i32, %c0_i32_0, %c0_i32_1 : i32, i32, i32
  }
  func.func @transform_2(%arg0: i32, %arg1: i32) -> (i32, i32, i32) {
    %c0_i32 = arith.constant 0 : i32
    %c0_i32_0 = arith.constant 0 : i32
    %c0_i32_1 = arith.constant 0 : i32
    %c0_i32_2 = arith.constant 0 : i32
    return %c0_i32, %c0_i32_0, %c0_i32_1 : i32, i32, i32
  }
  func.func @transform_3(%arg0: i32, %arg1: i32) -> (i32, i32) {
    %c0_i32 = arith.constant 0 : i32
    %c0_i32_0 = arith.constant 0 : i32
    %c0_i32_1 = arith.constant 0 : i32
    return %c0_i32, %c0_i32_0 : i32, i32
  }
  func.func @transform_4(%arg0: i32, %arg1: i32) -> (i32, i32) {
    %c0_i32 = arith.constant 0 : i32
    %c0_i32_0 = arith.constant 0 : i32
    %c0_i32_1 = arith.constant 0 : i32
    return %c0_i32, %c0_i32_0 : i32, i32
  }
  func.func @transform_5(%arg0: i32, %arg1: i32) -> (i32, i32) {
    %c0_i32 = arith.constant 0 : i32
    %c0_i32_0 = arith.constant 0 : i32
    %c0_i32_1 = arith.constant 0 : i32
    return %c0_i32, %c0_i32_0 : i32, i32
  }
  func.func @transform_6(%arg0: i32, %arg1: i32) -> (i32, i32) {
    %c0_i32 = arith.constant 0 : i32
    %c0_i32_0 = arith.constant 0 : i32
    %c0_i32_1 = arith.constant 0 : i32
    return %c0_i32, %c0_i32_0 : i32, i32
  }
  func.func @transform_7(%arg0: i32, %arg1: i32) -> (i32, i32) {
    %c0_i32 = arith.constant 0 : i32
    %c0_i32_0 = arith.constant 0 : i32
    %c0_i32_1 = arith.constant 0 : i32
    return %c0_i32, %c0_i32_0 : i32, i32
  }
  func.func @transform_8(%arg0: i32, %arg1: i32) -> (i32, i32) {
    %c0_i32 = arith.constant 0 : i32
    %c0_i32_0 = arith.constant 0 : i32
    %c0_i32_1 = arith.constant 0 : i32
    return %c0_i32, %c0_i32_0 : i32, i32
  }
  func.func @transform_9(%arg0: i32, %arg1: i32) -> (i32, i32) {
    %c0_i32 = arith.constant 0 : i32
    %c0_i32_0 = arith.constant 0 : i32
    %c0_i32_1 = arith.constant 0 : i32
    return %c0_i32, %c0_i32_0 : i32, i32
  }
  func.func @transform_10(%arg0: i32, %arg1: i32) -> (i32, i32) {
    %c0_i32 = arith.constant 0 : i32
    %c0_i32_0 = arith.constant 0 : i32
    %c0_i32_1 = arith.constant 0 : i32
    return %c0_i32, %c0_i32_0 : i32, i32
  }
  func.func @transform_11(%arg0: i32, %arg1: i32) -> (i32, i32) {
    %c0_i32 = arith.constant 0 : i32
    %c0_i32_0 = arith.constant 0 : i32
    %c0_i32_1 = arith.constant 0 : i32
    return %c0_i32, %c0_i32_0 : i32, i32
  }
  func.func @transform_12(%arg0: i32, %arg1: i32) -> (i32, i32) {
    %c0_i32 = arith.constant 0 : i32
    %c0_i32_0 = arith.constant 0 : i32
    %c0_i32_1 = arith.constant 0 : i32
    return %c0_i32, %c0_i32_0 : i32, i32
  }
  func.func @transform_13(%arg0: i32, %arg1: i32) -> (i32, i32) {
    %c0_i32 = arith.constant 0 : i32
    %c0_i32_0 = arith.constant 0 : i32
    %c0_i32_1 = arith.constant 0 : i32
    return %c0_i32, %c0_i32_0 : i32, i32
  }
  func.func @transform_14(%arg0: i32, %arg1: i32) -> (i32, i32) {
    %c0_i32 = arith.constant 0 : i32
    %c0_i32_0 = arith.constant 0 : i32
    %c0_i32_1 = arith.constant 0 : i32
    return %c0_i32, %c0_i32_0 : i32, i32
  }
  func.func @transform_15(%arg0: i32, %arg1: i32) -> (i32, i32) {
    %c0_i32 = arith.constant 0 : i32
    %c0_i32_0 = arith.constant 0 : i32
    %c0_i32_1 = arith.constant 0 : i32
    return %c0_i32, %c0_i32_0 : i32, i32
  }
  func.func @transform_16(%arg0: i32, %arg1: i32) -> (i32, i32, i32) {
    %c0_i32 = arith.constant 0 : i32
    %c0_i32_0 = arith.constant 0 : i32
    return %arg0, %arg1, %c0_i32 : i32, i32, i32
  }
}

</mosaic_0001>

<bundles_post_ra>
// kernel: tpu_custom_call.1
= control target key start
LH: loop header
LB: loop body
LE: loop exit
PB: predicated region body
PF: predicated region fallthrough
CT: control target
= control target key end

     0   :  { %s7129_s0 = inlined_call_operand.hbm [shape: f32[2,256,128], index: 0, kind: input, shape index: {}]   ;;  %s7130_s1 = inlined_call_operand.hbm [shape: bf16[2,128,128], index: 1, kind: input, shape index: {}]   ;;  %s7131_s2 = inlined_call_operand.hbm [shape: bf16[2,128,128], index: 2, kind: input, shape index: {}]   ;;  %s7132_s3 = inlined_call_operand.vmem [shape: f32[1,128], index: 3, kind: input, shape index: {}]   ;;  %s7133_s4 = inlined_call_operand.vmem [shape: f32[1,128], index: 4, kind: input, shape index: {}]   ;;  %s7134_s5 = inlined_call_operand.vmem [shape: f32[1,128], index: 5, kind: input, shape index: {}]   ;;  %s7135_s6 = inlined_call_operand.hbm [shape: bf16[128,128], index: 6, kind: input, shape index: {}]   ;;  %s7136_s7 = inlined_call_operand.vmem [shape: f32[1,128], index: 7, kind: input, shape index: {}]   ;;  %s7137_s8 = inlined_call_operand.hbm [shape: bf16[128,128], index: 8, kind: input, shape index: {}]   ;;  %s7138_s9 = inlined_call_operand.vmem [shape: f32[1,128], index: 9, kind: input, shape index: {}]   ;;  %s7139_s10 = inlined_call_operand.vmem [shape: f32[1,128], index: 10, kind: input, shape index: {}]   ;;  %s7140_s11 = inlined_call_operand.vmem [shape: f32[1,128], index: 11, kind: input, shape index: {}]   ;;  %s7141_s12 = inlined_call_operand.hbm [shape: bf16[128,128], index: 12, kind: input, shape index: {}]   ;;  %s7142_s13 = inlined_call_operand.vmem [shape: f32[1,128], index: 13, kind: input, shape index: {}]   ;;  %s7143_s14 = inlined_call_operand.hbm [shape: bf16[128,128], index: 14, kind: input, shape index: {}]   ;;  %s7144_s15 = inlined_call_operand.vmem [shape: f32[1,128], index: 15, kind: input, shape index: {}]   ;;  %s7145_s16 = inlined_call_operand.hbm [shape: bf16[2,256,128], index: 16, kind: output, shape index: {}]  }
   0x1   :  { %7151 = sst [smem:[#allocation23_spill]] %s7129_s0 }
   0x2   :  { %7152 = sst [smem:[#allocation24_spill]] %s7130_s1 }
   0x3   :  { %7153 = sst [smem:[#allocation25_spill]] %s7131_s2 }
   0x4   :  { %7154 = sst [smem:[#allocation26_spill]] %s7135_s6 }
   0x5   :  { %7155 = sst [smem:[#allocation27_spill]] %s7137_s8 }
   0x6   :  { %7156 = sst [smem:[#allocation28_spill]] %s7139_s10 }
   0x7   :  { %7157 = sst [smem:[#allocation29_spill]] %s7140_s11 }
   0x8   :  { %7158 = sst [smem:[#allocation30_spill]] %s7141_s12 }
   0x9   :  { %7159 = sst [smem:[#allocation31_spill]] %s7142_s13 }
   0xa   :  { %7160 = sst [smem:[#allocation32_spill]] %s7143_s14 }
   0xb   :  { %7161 = sst [smem:[#allocation33_spill]] %s7144_s15 }
   0xc   :  { %7162 = sst [smem:[#allocation34_spill]] %s7145_s16 }
   0xd   :  { %21 = vsyncpa [#allocation3], 0 }
   0xe   :  { %23 = vsyncpa [#allocation3 + $0x1], 0 }
   0xf   :  { %24 = vsyncpa [#allocation6], 0 }
  0x10   :  { %25 = vsyncpa [#allocation9], 0 }
  0x11   :  { %26 = vsyncpa [#allocation12], 0 }
  0x12   :  { %27 = vsyncpa [#allocation4], 0 }
  0x13   :  { %29 = vsyncpa [#allocation4 + $0x1], 0  ;;  %s5595_s21 = smov 0   ;;  %s5597_s22 = smov 0  }
  0x14   :  { %s5599_s23 = smov 0   ;;  %s5601_s24 = smov 0  }
  0x15   :  { %s5603_s25 = smov 0   ;;  %s5605_s26 = smov 0  }
  0x16 LB: > { %7163 = sst [smem:[#allocation20_spill]] %s5490_s25  ;;  %s7146_s27 = sadd.s32 4294967295, %s5494_s26   ;;  %s5494_s26 = sphi %s5605_s26, %s35_s26   ;;  %s5490_s25 = sphi %s5603_s25, %s7192_s25   ;;  %s5486_s24 = sphi %s5601_s24, %s7191_s24   ;;  %s5482_s23 = sphi %s5599_s23, %s7195_s23   ;;  %s5478_s22 = sphi %s5597_s22, %s7194_s22   ;;  %s5474_s21 = sphi %s5595_s21, %s7193_s21  }
  0x17   : > { %p3993_p0 = scmp.ge.s32.totalorder %s5494_s26, 1  ;;  %p5629_p1 = scmp.eq.s32.totalorder %s7146_s27, 0 }
  0x18   : > { %p423_p2 = scmp.lt.s32.totalorder %s5494_s26, 3  ;;  %s5496_s30 = smov [#allocation5]  }
  0x19   : > { %s435_s0 = sshll.u32 %s5496_s30, 4  ;;  %s5497_s18 = smov [#allocation8]   ;;  %s436_s0 = int_to_ptr.vmem [resolvable:$true] %s435_s0 }
  0x1a   : > { %p5634_p3 = pnand %p3993_p0, %p423_p2  ;;  %s470_s19 = sshll.u32 %s5497_s18, 4  ;;  %s471_s19 = int_to_ptr.vmem [resolvable:$true] %s470_s19 }
  0x1b   : > { %s5498_s20 = smov [#allocation11]   ;;  %s5229_s30 = scalar_lea.vmem %s436_s0, 2048 }
  0x1c   : > { %p4717_p4 = pneg %p5634_p3  ;;  %s508_s27 = sshll.u32 %s5498_s20, 4  ;;  %s509_s27 = int_to_ptr.vmem [resolvable:$true] %s508_s27 }
  0x1d   : > { %p5230_p8 = scmp.ne.s32.totalorder %s436_s0, %s5229_s30  ;;  %p5237_p11 = scmp.lt.s32.totalorder %s436_s0, %s436_s0 }
  0x1e   : > { %p5643_p6 = pnand %p4717_p4, %p5629_p1  ;;  %p5238_p12 = scmp.lt.s32.totalorder %s5229_s30, %s5229_s30 }
  0x20   : > { %p5649_p7 = pneg %p5643_p6  ;;  %p5239_p13 = por %p5238_p12, %p5237_p11 }
  0x22   : > { %p5232_p9 = pnand %p5230_p8, %p5649_p7 }
  0x24   : > { %p5233_p10 = pneg %p5232_p9 }
  0x26   : > { %p5240_p0 = pnand %p5239_p13, %p5233_p10 }
  0x28   : > { %5243 = shalt.err (!%p5240_p0)
}
  0x29   : > { %s5499_s18 = smov 64   ;;  %s5500_s20 = smov 4  }
  0x2a   : > { %s7168_s1 = sld [smem:[#allocation24_spill]]  ;;  %s5255_s11 = scalar_lea.vmem %s471_s19, 1024 }
  0x2b   : > { %p5256_p2 = scmp.ne.s32.totalorder %s471_s19, %s5255_s11  ;;  %p5263_p9 = scmp.lt.s32.totalorder %s471_s19, %s471_s19 }
  0x2c   : > { %p5264_p10 = scmp.lt.s32.totalorder %s5255_s11, %s5255_s11 }
  0x2d   : > { %p5258_p4 = pnand %p5256_p2, %p5649_p7 }
  0x2e   : > { %p5265_p11 = por %p5264_p10, %p5263_p9 }
  0x2f   : > { %p5259_p8 = pneg %p5258_p4 }
  0x30   : > { %4720 = dma.hbm_to_vmem [thread:$0]  (!%p5643_p6), %s7168_s1, 2048, %s436_s0, [#allocation6], %s5499_s18, %s5499_s18, %s5500_s20  }
  0x31   : > { %p5266_p12 = pnand %p5265_p11, %p5259_p8 }
  0x33   : > { %5269 = shalt.err (!%p5266_p12)
}
  0x34   : > { %s7169_s6 = sld [smem:[#allocation26_spill]]  ;;  %s5281_s13 = scalar_lea.vmem %s509_s27, 1024 }
  0x35   : > { %p5282_p13 = scmp.ne.s32.totalorder %s509_s27, %s5281_s13  ;;  %p5289_p4 = scmp.lt.s32.totalorder %s509_s27, %s509_s27 }
  0x36   : > { %p5290_p9 = scmp.lt.s32.totalorder %s5281_s13, %s5281_s13 }
  0x37   : > { %p5284_p0 = pnand %p5282_p13, %p5649_p7 }
  0x38   : > { %p5291_p8 = por %p5290_p9, %p5289_p4 }
  0x39   : > { %p5285_p2 = pneg %p5284_p0 }
  0x3a   : > { %4726 = dma.hbm_to_vmem [thread:$0]  (!%p5643_p6), %s7169_s6, 1024, %s471_s19, [#allocation9], %s5499_s18, %s5499_s18, %s5500_s20  }
  0x3b   : > { %p5292_p10 = pnand %p5291_p8, %p5285_p2 }
  0x3d   : > { %5295 = shalt.err (!%p5292_p10)
}
  0x3e   : > { %s7170_s12 = sld [smem:[#allocation30_spill]]  ;;  %s5501_s15 = smov [#allocation7]  }
  0x3f   : > { %s448_s0 = sshll.u32 %s5501_s15, 4  ;;  %s5502_s19 = smov [#allocation10]   ;;  %s449_s0 = int_to_ptr.vmem [resolvable:$true] %s448_s0 }
  0x40   : > { %s486_s30 = sshll.u32 %s5502_s19, 4  ;;  %s5307_s1 = scalar_lea.vmem %s449_s0, 2048  ;;  %s487_s30 = int_to_ptr.vmem [resolvable:$true] %s486_s30 }
  0x41   : > { %p5308_p11 = scmp.ne.s32.totalorder %s449_s0, %s5307_s1  ;;  %p5315_p0 = scmp.lt.s32.totalorder %s449_s0, %s449_s0 }
  0x42   : > { %p5316_p2 = scmp.lt.s32.totalorder %s5307_s1, %s5307_s1 }
  0x43   : > { %p5310_p12 = pnand %p5308_p11, %p5649_p7 }
  0x44   : > { %4732 = dma.hbm_to_vmem [thread:$0]  (!%p5643_p6), %s7170_s12, 1024, %s509_s27, [#allocation12], %s5499_s18, %s5499_s18, %s5500_s20  }
  0x45   : > { %p5311_p13 = pneg %p5310_p12  ;;  %p5317_p4 = por %p5316_p2, %p5315_p0 }
  0x47   : > { %p5318_p9 = pnand %p5317_p4, %p5311_p13 }
  0x49   : > { %5321 = shalt.err (!%p5318_p9)
}
  0x4a   : > { %s7171_s2 = sld [smem:[#allocation25_spill]]  ;;  %s5333_s11 = scalar_lea.vmem %s487_s30, 1024 }
  0x4b   : > { %p5334_p8 = scmp.ne.s32.totalorder %s487_s30, %s5333_s11  ;;  %p5341_p12 = scmp.lt.s32.totalorder %s487_s30, %s487_s30 }
  0x4c   : > { %p5342_p0 = scmp.lt.s32.totalorder %s5333_s11, %s5333_s11 }
  0x4d   : > { %p5336_p10 = pnand %p5334_p8, %p5649_p7 }
  0x4e   : > { %p5343_p13 = por %p5342_p0, %p5341_p12 }
  0x4f   : > { %p5337_p11 = pneg %p5336_p10 }
  0x50   : > { %4723 = dma.hbm_to_vmem [thread:$0]  (!%p5643_p6), %s7171_s2, 2048, %s449_s0, [#allocation6], %s5499_s18, %s5499_s18, %s5500_s20  }
  0x51   : > { %p5344_p2 = pnand %p5343_p13, %p5337_p11 }
  0x53   : > { %5347 = shalt.err (!%p5344_p2)
}
  0x54   : > { %s7172_s8 = sld [smem:[#allocation27_spill]]  ;;  %s5503_s15 = smov [#allocation13]  }
  0x55   : > { %s524_s0 = sshll.u32 %s5503_s15, 4  ;;  %s525_s0 = int_to_ptr.vmem [resolvable:$true] %s524_s0 }
  0x56   : > { %s5359_s19 = scalar_lea.vmem %s525_s0, 1024  ;;  %p5367_p10 = scmp.lt.s32.totalorder %s525_s0, %s525_s0 }
  0x57   : > { %p5360_p4 = scmp.ne.s32.totalorder %s525_s0, %s5359_s19  ;;  %p5368_p11 = scmp.lt.s32.totalorder %s5359_s19, %s5359_s19 }
  0x59   : > { %p5362_p9 = pnand %p5360_p4, %p5649_p7  ;;  %p5369_p12 = por %p5368_p11, %p5367_p10 }
  0x5a   : > { %4729 = dma.hbm_to_vmem [thread:$0]  (!%p5643_p6), %s7172_s8, 1024, %s487_s30, [#allocation9], %s5499_s18, %s5499_s18, %s5500_s20  }
  0x5b   : > { %p5363_p8 = pneg %p5362_p9 }
  0x5d   : > { %p5370_p0 = pnand %p5369_p12, %p5363_p8 }
  0x5f   : > { %5373 = shalt.err (!%p5370_p0)
}
  0x60   : > { %s7173_s14 = sld [smem:[#allocation32_spill]]  ;;  %s3992_s16 = sadd.s32 4294967294, %s5494_s26  }
  0x61   : > { %s47_s17 = sadd.s32 1, %s5490_s25  ;;  %s56_s13 = sadd.s32 1, %s5482_s23 }
  0x62   : > { %p49_p7 = scmp.ge.s32.totalorder %s47_s17, 2  ;;  %p63_p13 = scmp.ne.s32.totalorder %s5482_s23, %s5478_s22 }
  0x63   : > { %p64_p2 = scmp.eq.s32.totalorder %s5494_s26, 0  ;;  %p69_p9 = scmp.ne.s32.totalorder %s5478_s22, %s5474_s21 }
  0x64   : > { %s7197_s17 = smov (%p49_p7, %s47_s17), 0  ;;  %p416_p12 = scmp.eq.s32.totalorder %s3992_s16, 1 }
  0x65   : > { %7174 = sst [smem:[#allocation21_spill]] %s7197_s17  ;;  %p5721_p4 = por %p64_p2, %p63_p13 }
  0x66   : > { %4735 = dma.hbm_to_vmem [thread:$0]  (!%p5643_p6), %s7173_s14, 1024, %s525_s0, [#allocation12], %s5499_s18, %s5499_s18, %s5500_s20  }
  0x67   : > { %s51_s18 = ssub.s32 %s5490_s25, %s7197_s17  ;;  %s7176_s20 = sadd.s32 4294967295, %s5494_s26  }
  0x68   : > { %p410_p6 = scmp.eq.s32.totalorder %s7176_s20, 1  ;;  %p54_p8 = scmp.eq.s32.totalorder %s51_s18, 0 }
  0x69   : > { %p5733_p10 = por %p5629_p1, %p69_p9  ;;  %p5744_p0 = por %p416_p12, %p69_p9 }
  0x6a   : > { %p5737_p11 = por %p410_p6, %p63_p13  ;;  %p4750_p7 = scmp.lt.s32.totalorder %s5494_s26, 2 }
  0x6b   : > { %s5742_s15 = scalar_select %p54_p8, %s5482_s23, %s56_s13  }
  0x6c   : > { %s7179_s0 = scalar_select %p5744_p0, 1, 0 }
  0x6d   : > { %s541_s19 = sand.u32 1, %s5482_s23   ;;  %s4110_s27 = sshll.u32 %s5490_s25, 12 }
  0x6e   : > { %s4001_s30 = sshll.u32 %s541_s19, 8  ;;  %s7180_s2 = sld [smem:[#allocation23_spill]] }
  0x6f   : > { %s545_s8 = scalar_lea.vmem [#allocation2], %s4001_s30  ;;  %p5756_p13 = pnand %p4750_p7, %p5721_p4 }
  0x70   : > { %s554_s12 = sshll.u32 %s545_s8, 4  ;;  %s542_s16 = scalar_lea.sflag [#allocation3], %s541_s19  ;;  %s555_s12 = int_to_ptr.vmem [resolvable:$true] %s554_s12 }
  0x71   : > { %p5376_p2 = pneg %p5756_p13  ;;  %s5387_s13 = scalar_lea.vmem %s555_s12, 4096 }
  0x72   : > { %p5388_p9 = scmp.ne.s32.totalorder %s555_s12, %s5387_s13  ;;  %s5504_s17 = smov [#allocation2]  }
  0x73   : > { %s5392_s25 = sshll.u32 %s5504_s17, 4  ;;  %s5393_s25 = int_to_ptr.vmem [resolvable:$false] %s5392_s25 }
  0x74   : > { %s553_s6 = scalar_lea.hbm %s7180_s2, %s4110_s27  ;;  %p5390_p6 = pnand %p5388_p9, %p5376_p2 }
  0x75   : > { %s5394_s2 = scalar_lea.vmem %s5393_s25, 8192  ;;  %p5395_p12 = scmp.lt.s32.totalorder %s555_s12, %s5393_s25 }
  0x76   : > { %p5391_p8 = pneg %p5390_p6  ;;  %p5396_p5 = scmp.lt.s32.totalorder %s5394_s2, %s5387_s13 }
  0x78   : > { %p5397_p0 = por %p5396_p5, %p5395_p12 }
  0x7a   : > { %p5398_p4 = pnand %p5397_p0, %p5391_p8 }
  0x7c   : > { %5401 = shalt.err (!%p5398_p4)
}
  0x7d   : > { %s5505_s8 = smov 128   ;;  %s5506_s11 = smov 8  }
  0x7e   : > { %4739 = dma.hbm_to_vmem [thread:$0]  (!%p5756_p13), %s553_s6, 4096, %s555_s12, %s542_s16, %s5505_s8, %s5505_s8, %s5506_s11  }
  0x7f   : > { %566 = sbr.rel (%p5634_p3) target bundleno = 2027 (0x7eb), region = 84 }
  0x84   : > { %s5767_s19 = sand.u32 1, %s5478_s22  }
  0x85   : > { %s4005_s17 = sshll.u32 %s5767_s19, 8  ;;  %s569_s25 = scalar_lea.sflag [#allocation3], %s5767_s19 }
  0x86   : > { %s5771_s27 = scalar_lea.vmem [#allocation2], %s4005_s17 }
  0x87   : > { %5453 = dma.done.wait (%p5733_p10), %s569_s25, 4096  }
  0x88   : > { %5455 = vsyncadd (%p5733_p10), %s569_s25, 4294963200 }
  0x89   : > { %5457 = dma.done.wait (%p5629_p1), [#allocation6], 4096  }
  0x8a   : > { %5459 = vsyncadd (%p5629_p1), [#allocation6], 4294963200 }
  0x8b   : > { %5461 = dma.done.wait (%p5629_p1), [#allocation9], 2048  }
  0x8c   : > { %5463 = vsyncadd (%p5629_p1), [#allocation9], 4294965248 }
  0x8d   : > { %5465 = dma.done.wait (%p5629_p1), [#allocation12], 2048  }
  0x8e   : > { %5467 = vsyncadd (%p5629_p1), [#allocation12], 4294965248  ;;  %v5790_v0 = vld [vmem:[%s5771_s27 + $0x10] sm:$0xff]  ;;  %v5793_v1 = vld [vmem:[%s5771_s27] sm:$0xff]  ;;  %s4111_s6 = sshll.u32 %s5486_s24, 6  ;;  %s7183_s25 = sld [smem:[#allocation28_spill]] }
  0x8f   : > { %686 = vadd.xlane.f32.xlu1 %v5790_v0  ;;  %682 = vadd.xlane.f32.xlu0 %v5793_v1  ;;  %v5798_v2 = vld [vmem:[%s5771_s27 + $0x18] sm:$0xff]  ;;  %v5801_v3 = vld [vmem:[%s5771_s27 + $0x8] sm:$0xff]  ;;  %v779_v5 = vmul.f32 %v5793_v1, %v5793_v1  ;;  %v781_v7 = vmul.f32 %v5790_v0, %v5790_v0  ;;  %v5817_v9 = vld [vmem:[%s5771_s27 + $0x20] sm:$0xff]  ;;  %s6015_s28 = scalar_lea.vmem [#allocation5], %s4111_s6  ;;  %s6046_s30 = scalar_lea.vmem [#allocation7], %s4111_s6 }
  0x90   : > { %v780_v4 = vmul.f32 %v5801_v3, %v5801_v3  ;;  %v782_v6 = vmul.f32 %v5798_v2, %v5798_v2  ;;  %v5814_v8 = vld [vmem:[%s5771_s27 + $0x28] sm:$0xff]  ;;  %v5820_v10 = vld [vmem:[%s5771_s27 + $0x38] sm:$0xff]  ;;  %v5823_v11 = vld [vmem:[%s5771_s27 + $0x30] sm:$0xff]  ;;  %v783_v14 = vmul.f32 %v5817_v9, %v5817_v9  ;;  %s7184_s12 = sld [smem:[#allocation29_spill]]  ;;  %s4012_s20 = sshll.u32 %s5767_s19, 7 }
  0x91   : > { %v4818_v12 = vld [vmem:[#allocation8 + $0x38] sm:$0xff]   ;;  %v784_v13 = vmul.f32 %v5814_v8, %v5814_v8  ;;  %v4819_v15 = vld [vmem:[#allocation8 + $0x30] sm:$0xff]   ;;  %v786_v16 = vmul.f32 %v5820_v10, %v5820_v10  ;;  %v785_v17 = vmul.f32 %v5823_v11, %v5823_v11  ;;  %v4820_v18 = vld [vmem:[#allocation8 + $0x28] sm:$0xff]   ;;  %s7185_s29 = sld [smem:[#allocation31_spill]]  ;;  %s7000_s16 = scalar_lea.vmem [#allocation14], %s4012_s20 }
  0x92   : > { %4385 = vmatprep.subr.bf16.mxu0 %v4818_v12  ;;  %v5838_v19 = vld [vmem:[%s5771_s27 + $0x48] sm:$0xff]  ;;  %v5841_v20 = vld [vmem:[%s5771_s27 + $0x40] sm:$0xff]  ;;  %v5846_v22 = vld [vmem:[%s5771_s27 + $0x58] sm:$0xff]  ;;  %s7186_s18 = sld [smem:[#allocation33_spill]]  ;;  %s4145_s13 = sshll.u32 %s5486_s24, 11 }
  0x93   : > { %688 = vadd.xlane.f32.xlu1 %v5798_v2  ;;  %684 = vadd.xlane.f32.xlu0 %v5801_v3  ;;  %v4821_v21 = vld [vmem:[#allocation8 + $0x20] sm:$0xff]   ;;  %v5849_v23 = vld [vmem:[%s5771_s27 + $0x50] sm:$0xff]  ;;  %v4822_v24 = vld [vmem:[#allocation8 + $0x18] sm:$0xff]   ;;  %v788_v25 = vmul.f32 %v5838_v19, %v5838_v19  ;;  %v787_v26 = vmul.f32 %v5841_v20, %v5841_v20  ;;  %v790_v28 = vmul.f32 %v5846_v22, %v5846_v22  ;;  %s3843_s2 = sshll.u32 %s7000_s16, 4  ;;  %s7188_s17 = sld [smem:[#allocation34_spill]]  ;;  %s7079_s2 = int_to_ptr.vmem [resolvable:$true] %s3843_s2 }
  0x94   : > { %4386 = vmatpush3.bf16.msra.mxu0 %v4818_v12  ;;  %v4823_v27 = vld [vmem:[#allocation8 + $0x10] sm:$0xff]   ;;  %v789_v29 = vmul.f32 %v5849_v23, %v5849_v23  ;;  %v4824_v30 = vld [vmem:[#allocation8 + $0x8] sm:$0xff]   ;;  %v5865_v32 = vld [vmem:[%s5771_s27 + $0x60] sm:$0xff]  ;;  %s3828_s24 = scalar_lea.sflag [#allocation4], %s5767_s19  ;;  %s5507_s6 = smov [#allocation14]  }
  0x95   : > { %4387 = vmatprep.subr.bf16.mxu0 %v4819_v15  ;;  %v5862_v31 = vld [vmem:[%s5771_s27 + $0x68] sm:$0xff]  ;;  %v4825_v33 = vld [vmem:[#allocation8] sm:$0xff]   ;;  %v5870_v34 = vld [vmem:[%s5771_s27 + $0x78] sm:$0xff]  ;;  %v791_v37 = vmul.f32 %v5865_v32, %v5865_v32 }
  0x96   : > { %v5873_v35 = vld [vmem:[%s5771_s27 + $0x70] sm:$0xff]  ;;  %v792_v36 = vmul.f32 %v5862_v31, %v5862_v31  ;;  %v794_v38 = vmul.f32 %v5870_v34, %v5870_v34  ;;  %v5886_v40 = vld [vmem:[%s5771_s27 + $0x88] sm:$0xff]  ;;  %v5889_v41 = vld [vmem:[%s5771_s27 + $0x80] sm:$0xff] }
  0x97   : > { %813 = vadd.xlane.f32.xlu1 %v780_v4  ;;  %811 = vadd.xlane.f32.xlu0 %v779_v5  ;;  %v793_v39 = vmul.f32 %v5873_v35, %v5873_v35  ;;  %v5894_v42 = vld [vmem:[%s5771_s27 + $0x98] sm:$0xff]  ;;  %v5897_v43 = vld [vmem:[%s5771_s27 + $0x90] sm:$0xff]  ;;  %v796_v44 = vmul.f32 %v5886_v40, %v5886_v40  ;;  %v795_v45 = vmul.f32 %v5889_v41, %v5889_v41  ;;  %v5910_v48 = vld [vmem:[%s5771_s27 + $0xa8] sm:$0xff] }
  0x98   : > { %4388 = vmatpush3.bf16.msra.mxu0 %v4819_v15  ;;  %v798_v46 = vmul.f32 %v5894_v42, %v5894_v42  ;;  %v797_v47 = vmul.f32 %v5897_v43, %v5897_v43  ;;  %v5913_v49 = vld [vmem:[%s5771_s27 + $0xa0] sm:$0xff]  ;;  %v5918_v50 = vld [vmem:[%s5771_s27 + $0xb8] sm:$0xff]  ;;  %v5921_v51 = vld [vmem:[%s5771_s27 + $0xb0] sm:$0xff]  ;;  %v800_v52 = vmul.f32 %v5910_v48, %v5910_v48 }
  0x99   : > { %4389 = vmatprep.subr.bf16.mxu0 %v4820_v18  ;;  %v799_v53 = vmul.f32 %v5913_v49, %v5913_v49  ;;  %v802_v54 = vmul.f32 %v5918_v50, %v5918_v50  ;;  %v801_v55 = vmul.f32 %v5921_v51, %v5921_v51  ;;  %v5934_v56 = vld [vmem:[%s5771_s27 + $0xc8] sm:$0xff]  ;;  %v5937_v57 = vld [vmem:[%s5771_s27 + $0xc0] sm:$0xff]  ;;  %v5942_v58 = vld [vmem:[%s5771_s27 + $0xd8] sm:$0xff] }
  0x9a   : > { %v5945_v59 = vld [vmem:[%s5771_s27 + $0xd0] sm:$0xff]  ;;  %v804_v60 = vmul.f32 %v5934_v56, %v5934_v56  ;;  %v803_v61 = vmul.f32 %v5937_v57, %v5937_v57  ;;  %v806_v62 = vmul.f32 %v5942_v58, %v5942_v58  ;;  %v5958_v4 = vld [vmem:[%s5771_s27 + $0xe8] sm:$0xff]  ;;  %v5961_v5 = vld [vmem:[%s5771_s27 + $0xe0] sm:$0xff] }
  0x9b   : > { %817 = vadd.xlane.f32.xlu1 %v782_v6  ;;  %815 = vadd.xlane.f32.xlu0 %v781_v7  ;;  %v805_v63 = vmul.f32 %v5945_v59, %v5945_v59  ;;  %v5966_v6 = vld [vmem:[%s5771_s27 + $0xf8] sm:$0xff]  ;;  %v5969_v7 = vld [vmem:[%s5771_s27 + $0xf0] sm:$0xff]  ;;  %v808_v12 = vmul.f32 %v5958_v4, %v5958_v4 }
  0x9c   : > { %4390 = vmatpush3.bf16.msra.mxu0 %v4820_v18  ;;  %v809_v15 = vmul.f32 %v5969_v7, %v5969_v7 }
  0x9d   : > { %4391 = vmatprep.subr.bf16.mxu0 %v4821_v21 }
  0x9f   : > { %692 = vadd.xlane.f32.xlu1 %v5814_v8  ;;  %690 = vadd.xlane.f32.xlu0 %v5817_v9 }
  0xa0   : > { %4392 = vmatpush3.bf16.msra.mxu0 %v4821_v21 }
  0xa1   : > { %4393 = vmatprep.subr.bf16.mxu0 %v4822_v24 }
  0xa3   : > { %696 = vadd.xlane.f32.xlu1 %v5820_v10  ;;  %694 = vadd.xlane.f32.xlu0 %v5823_v11 }
  0xa4   : > { %4394 = vmatpush3.bf16.msra.mxu0 %v4822_v24 }
  0xa5   : > { %4395 = vmatprep.subr.bf16.mxu0 %v4823_v27 }
  0xa7   : > { %821 = vadd.xlane.f32.xlu1 %v784_v13  ;;  %819 = vadd.xlane.f32.xlu0 %v783_v14  ;;  %v807_v13 = vmul.f32 %v5961_v5, %v5961_v5  ;;  %v810_v14 = vmul.f32 %v5966_v6, %v5966_v6 }
  0xa8   : > { %4396 = vmatpush3.bf16.msra.mxu0 %v4823_v27 }
  0xa9   : > { %4397 = vmatprep.subr.bf16.mxu0 %v4824_v30 }
  0xab   : > { %825 = vadd.xlane.f32.xlu1 %v786_v16  ;;  %823 = vadd.xlane.f32.xlu0 %v785_v17 }
  0xac   : > { %4398 = vmatpush3.bf16.msra.mxu0 %v4824_v30 }
  0xad   : > { %4399 = vmatprep.subr.bf16.mxu0 %v4825_v33 }
  0xaf   : > { %700 = vadd.xlane.f32.xlu1 %v5838_v19  ;;  %698 = vadd.xlane.f32.xlu0 %v5841_v20 }
  0xb0   : > { %4400 = vmatpush3.bf16.msra.mxu0 %v4825_v33 }
  0xb3   : > { %704 = vadd.xlane.f32.xlu1 %v5846_v22  ;;  %702 = vadd.xlane.f32.xlu0 %v5849_v23 }
  0xb7   : > { %829 = vadd.xlane.f32.xlu1 %v788_v25  ;;  %827 = vadd.xlane.f32.xlu0 %v787_v26 }
  0xbb   : > { %833 = vadd.xlane.f32.xlu1 %v790_v28  ;;  %831 = vadd.xlane.f32.xlu0 %v789_v29 }
  0xbf   : > { %708 = vadd.xlane.f32.xlu1 %v5862_v31  ;;  %706 = vadd.xlane.f32.xlu0 %v5865_v32 }
  0xc3   : > { %712 = vadd.xlane.f32.xlu1 %v5870_v34  ;;  %710 = vadd.xlane.f32.xlu0 %v5873_v35 }
  0xc7   : > { %837 = vadd.xlane.f32.xlu1 %v792_v36  ;;  %835 = vadd.xlane.f32.xlu0 %v791_v37 }
  0xcb   : > { %841 = vadd.xlane.f32.xlu1 %v794_v38  ;;  %839 = vadd.xlane.f32.xlu0 %v793_v39 }
  0xcf   : > { %716 = vadd.xlane.f32.xlu1 %v5886_v40  ;;  %714 = vadd.xlane.f32.xlu0 %v5889_v41 }
  0xd3   : > { %720 = vadd.xlane.f32.xlu1 %v5894_v42  ;;  %718 = vadd.xlane.f32.xlu0 %v5897_v43 }
  0xd7   : > { %845 = vadd.xlane.f32.xlu1 %v796_v44  ;;  %843 = vadd.xlane.f32.xlu0 %v795_v45 }
  0xdb   : > { %849 = vadd.xlane.f32.xlu1 %v798_v46  ;;  %847 = vadd.xlane.f32.xlu0 %v797_v47 }
  0xdf   : > { %724 = vadd.xlane.f32.xlu1 %v5910_v48  ;;  %722 = vadd.xlane.f32.xlu0 %v5913_v49 }
  0xe3   : > { %728 = vadd.xlane.f32.xlu1 %v5918_v50  ;;  %726 = vadd.xlane.f32.xlu0 %v5921_v51 }
  0xe7   : > { %853 = vadd.xlane.f32.xlu1 %v800_v52  ;;  %851 = vadd.xlane.f32.xlu0 %v799_v53 }
  0xeb   : > { %857 = vadd.xlane.f32.xlu1 %v802_v54  ;;  %855 = vadd.xlane.f32.xlu0 %v801_v55 }
  0xef   : > { %732 = vadd.xlane.f32.xlu1 %v5934_v56  ;;  %730 = vadd.xlane.f32.xlu0 %v5937_v57 }
  0xf3   : > { %736 = vadd.xlane.f32.xlu1 %v5942_v58  ;;  %734 = vadd.xlane.f32.xlu0 %v5945_v59 }
  0xf7   : > { %861 = vadd.xlane.f32.xlu1 %v804_v60  ;;  %859 = vadd.xlane.f32.xlu0 %v803_v61 }
  0xfb   : > { %865 = vadd.xlane.f32.xlu1 %v806_v62  ;;  %863 = vadd.xlane.f32.xlu0 %v805_v63 }
  0xff   : > { %740 = vadd.xlane.f32.xlu1 %v5958_v4  ;;  %738 = vadd.xlane.f32.xlu0 %v5961_v5 }
 0x103   : > { %744 = vadd.xlane.f32.xlu1 %v5966_v6  ;;  %742 = vadd.xlane.f32.xlu0 %v5969_v7 }
 0x107   : > { %869 = vadd.xlane.f32.xlu1 %v808_v12  ;;  %867 = vadd.xlane.f32.xlu0 %v807_v13 }
 0x10b   : > { %873 = vadd.xlane.f32.xlu1 %v810_v14  ;;  %871 = vadd.xlane.f32.xlu0 %v809_v15 }
 0x118   : > { %v687_v16 = vpop.xlane.xlu1 %686  ;;  %v683_v17 = vpop.xlane.xlu0 %682 }
 0x119   : > { %v747_v24 = vmul.f32 0.0078125, %v683_v17  ;;  %v5981_v26 = vmul.f32 0.0078125, %v687_v16 }
 0x11b   : > { %v907_v30 = vmul.f32 %v747_v24, %v747_v24  ;;  %v909_v44 = vmul.f32 %v5981_v26, %v5981_v26 }
 0x11c   : > { %v689_v18 = vpop.xlane.xlu1 %688  ;;  %v685_v21 = vpop.xlane.xlu0 %684 }
 0x11d   : > { %v748_v25 = vmul.f32 0.0078125, %v685_v21  ;;  %v5983_v27 = vmul.f32 0.0078125, %v689_v18 }
 0x11f   : > { %v908_v33 = vmul.f32 %v748_v25, %v748_v25  ;;  %v910_v45 = vmul.f32 %v5983_v27, %v5983_v27 }
 0x120   : > { %v814_v28 = vpop.xlane.xlu1 %813  ;;  %v812_v29 = vpop.xlane.xlu0 %811 }
 0x121   : > { %v876_v36 = vmul.f32 0.0078125, %v814_v28  ;;  %v875_v37 = vmul.f32 0.0078125, %v812_v29 }
 0x123   : > { %v940_v38 = vsub.f32 %v876_v36, %v908_v33  ;;  %v939_v39 = vsub.f32 %v875_v37, %v907_v30 }
 0x124   : > { %v818_v46 = vpop.xlane.xlu1 %817  ;;  %v816_v47 = vpop.xlane.xlu0 %815 }
 0x125   : > { %v1004_v52 = vadd.f32 1e-05, %v940_v38  ;;  %v1003_v53 = vadd.f32 1e-05, %v939_v39  ;;  %v878_v54 = vmul.f32 0.0078125, %v818_v46  ;;  %v877_v55 = vmul.f32 0.0078125, %v816_v47 }
 0x126   : > { %v971_v46 = vsub.f32 %v5793_v1, %v747_v24  ;;  %v972_v47 = vsub.f32 %v5801_v3, %v748_v25 }
 0x127   : > { %4866 = vrsqrt.f32 %v1004_v52  ;;  %v942_v60 = vsub.f32 %v878_v54, %v910_v45  ;;  %v941_v61 = vsub.f32 %v877_v55, %v909_v44  ;;  %v6005_v44 = vld [vmem:[%s7133_s4] ss:$0 sm:$0xff] }
 0x128   : > { %4868 = vrsqrt.f32 %v1003_v53  ;;  %v693_v62 = vpop.xlane.xlu1 %692  ;;  %v691_v63 = vpop.xlane.xlu0 %690 }
 0x129   : > { %v1006_v12 = vadd.f32 1e-05, %v942_v60  ;;  %v1005_v13 = vadd.f32 1e-05, %v941_v61  ;;  %v5989_v16 = vmul.f32 0.0078125, %v693_v62  ;;  %v5991_v17 = vmul.f32 0.0078125, %v691_v63 }
 0x12a   : > { %v4826_v60 = vld [vmem:[%s6015_s28 + $0x38] sm:$0xff]  }
 0x12b   : > { %4870 = vrsqrt.f32 %v1006_v12  ;;  %v912_v30 = vmul.f32 %v5989_v16, %v5989_v16  ;;  %v911_v33 = vmul.f32 %v5991_v17, %v5991_v17  ;;  %4433 = vmatprep.subr.bf16.mxu1 %v4826_v60  ;;  %v4827_v12 = vld [vmem:[%s6015_s28 + $0x30] sm:$0xff]  }
 0x12c   : > { %4872 = vrsqrt.f32 %v1005_v13  ;;  %v697_v14 = vpop.xlane.xlu1 %696  ;;  %v695_v15 = vpop.xlane.xlu0 %694  ;;  %v973_v13 = vsub.f32 %v5790_v0, %v5981_v26  ;;  %4434 = vmatpush3.bf16.xpose.msra.mxu1 %v4826_v60 }
 0x12d   : > { %v5993_v18 = vmul.f32 0.0078125, %v697_v14  ;;  %v5995_v21 = vmul.f32 0.0078125, %v695_v15  ;;  %4435 = vmatprep.subr.bf16.mxu1 %v4827_v12 }
 0x12f   : > { %v914_v52 = vmul.f32 %v5993_v18, %v5993_v18  ;;  %v913_v53 = vmul.f32 %v5995_v21, %v5995_v21 }
 0x130   : > { %v822_v28 = vpop.xlane.xlu1 %821  ;;  %v820_v29 = vpop.xlane.xlu0 %819 }
 0x131   : > { %v880_v36 = vmul.f32 0.0078125, %v822_v28  ;;  %v879_v37 = vmul.f32 0.0078125, %v820_v29  ;;  %v6024_v28 = vld [vmem:[%s7134_s5] ss:$0 sm:$0xff] }
 0x133   : > { %v944_v38 = vsub.f32 %v880_v36, %v912_v30  ;;  %v943_v39 = vsub.f32 %v879_v37, %v911_v33  ;;  %v974_v30 = vsub.f32 %v5798_v2, %v5983_v27 }
 0x134   : > { %v4867_v45 = vpop.eup %4866  ;;  %v826_v54 = vpop.xlane.xlu1 %825  ;;  %4436 = vmatpush3.bf16.xpose.msra.mxu1 %v4827_v12  ;;  %v976_v12 = vsub.f32 %v5814_v8, %v5989_v16 }
 0x135   : > { %v824_v55 = vpop.xlane.xlu0 %823  ;;  %v4869_v61 = vpop.eup %4868  ;;  %v1008_v62 = vadd.f32 1e-05, %v944_v38  ;;  %v1007_v63 = vadd.f32 1e-05, %v943_v39  ;;  %v882_v1 = vmul.f32 0.0078125, %v826_v54  ;;  %v1068_v25 = vmul.f32 %v4867_v45, %v972_v47 }
 0x136   : > { %v881_v24 = vmul.f32 0.0078125, %v824_v55  ;;  %v1067_v3 = vmul.f32 %v4869_v61, %v971_v46  ;;  %v4828_v61 = vld [vmem:[%s6015_s28 + $0x28] sm:$0xff]  }
 0x137   : > { %4874 = vrsqrt.f32 %v1008_v62  ;;  %v946_v14 = vsub.f32 %v882_v1, %v914_v52  ;;  %v1106_v0 = vmul.f32 %v6005_v44, %v1068_v25  ;;  %4437 = vmatprep.subr.bf16.mxu1 %v4828_v61 }
 0x138   : > { %v945_v15 = vsub.f32 %v881_v24, %v913_v53  ;;  %v4871_v29 = vpop.eup %4870  ;;  %4876 = vrsqrt.f32 %v1007_v63  ;;  %v701_v33 = vpop.xlane.xlu1 %700  ;;  %v1105_v37 = vmul.f32 %v6005_v44, %v1067_v3 }
 0x139   : > { %v699_v36 = vpop.xlane.xlu0 %698  ;;  %v4873_v26 = vpop.eup %4872  ;;  %v1010_v38 = vadd.f32 1e-05, %v946_v14  ;;  %v1144_v46 = vadd.f32 %v6024_v28, %v1106_v0  ;;  %v1070_v52 = vmul.f32 %v4871_v29, %v974_v30  ;;  %v6032_v2 = vmul.f32 0.0078125, %v701_v33 }
 0x13a   : > { %v1009_v39 = vadd.f32 1e-05, %v945_v15  ;;  %v1143_v45 = vadd.f32 %v6024_v28, %v1105_v37  ;;  %v1069_v47 = vmul.f32 %v4873_v26, %v973_v13  ;;  %v6034_v27 = vmul.f32 0.0078125, %v699_v36 }
 0x13b   : > { %4878 = vrsqrt.f32 %v1010_v38  ;;  %v1108_v1 = vmul.f32 %v6005_v44, %v1070_v52  ;;  %v916_v14 = vmul.f32 %v6032_v2, %v6032_v2  ;;  %v975_v26 = vsub.f32 %v5817_v9, %v5991_v17 }
 0x13c   : > { %4880 = vrsqrt.f32 %v1009_v39  ;;  %v705_v53 = vpop.xlane.xlu1 %704  ;;  %v1191_v55 = vpack.c.bf16 %v1144_v46, %v1143_v45  ;;  %v1107_v60 = vmul.f32 %v6005_v44, %v1069_v47  ;;  %v915_v15 = vmul.f32 %v6034_v27, %v6034_v27  ;;  %v4829_v47 = vld [vmem:[%s6015_s28 + $0x20] sm:$0xff]   ;;  %4438 = vmatpush3.bf16.xpose.msra.mxu1 %v4828_v61 }
 0x13d   : > { %v703_v54 = vpop.xlane.xlu0 %702  ;;  %v6038_v62 = vmul.f32 0.0078125, %v705_v53  ;;  %v1146_v13 = vadd.f32 %v6024_v28, %v1108_v1  ;;  %v978_v9 = vsub.f32 %v5820_v10, %v5993_v18  ;;  %4439 = vmatprep.subr.bf16.mxu1 %v4829_v47 }
 0x13e   : > { %v6040_v63 = vmul.f32 0.0078125, %v703_v54  ;;  %4401 = vmatprep.mubr.bf16.mxu0 %v1191_v55  ;;  %v1145_v24 = vadd.f32 %v6024_v28, %v1107_v60 }
 0x13f   : > { %v918_v38 = vmul.f32 %v6038_v62, %v6038_v62 }
 0x140   : > { %v830_v3 = vpop.xlane.xlu1 %829  ;;  %v1192_v33 = vpack.c.bf16 %v1146_v13, %v1145_v24  ;;  %v917_v39 = vmul.f32 %v6040_v63, %v6040_v63 }
 0x141   : > { %v828_v25 = vpop.xlane.xlu0 %827  ;;  %v884_v29 = vmul.f32 0.0078125, %v830_v3  ;;  %v977_v3 = vsub.f32 %v5823_v11, %v5995_v21 }
 0x142   : > { %v883_v30 = vmul.f32 0.0078125, %v828_v25  ;;  %4402 = vmatmul.mubr.bf16.vlgmr.msra.gmra.mxu0 %v1192_v33 }
 0x143   : > { %v948_v36 = vsub.f32 %v884_v29, %v916_v14 }
 0x144   : > { %v947_v37 = vsub.f32 %v883_v30, %v915_v15  ;;  %v4875_v0 = vpop.eup %4874  ;;  %v834_v45 = vpop.xlane.xlu1 %833  ;;  %4440 = vmatpush3.bf16.xpose.msra.mxu1 %v4829_v47 }
 0x145   : > { %v832_v46 = vpop.xlane.xlu0 %831  ;;  %v4877_v52 = vpop.eup %4876  ;;  %v1012_v53 = vadd.f32 1e-05, %v948_v36  ;;  %v886_v55 = vmul.f32 0.0078125, %v834_v45  ;;  %v1072_v8 = vmul.f32 %v4875_v0, %v976_v12  ;;  %v4830_v12 = vld [vmem:[%s6015_s28 + $0x18] sm:$0xff]  }
 0x146   : > { %v1011_v54 = vadd.f32 1e-05, %v947_v37  ;;  %v885_v60 = vmul.f32 0.0078125, %v832_v46  ;;  %v1071_v1 = vmul.f32 %v4877_v52, %v975_v26  ;;  %4441 = vmatprep.subr.bf16.mxu1 %v4830_v12 }
 0x147   : > { %4882 = vrsqrt.f32 %v1012_v53  ;;  %v950_v16 = vsub.f32 %v886_v55, %v918_v38  ;;  %v1110_v15 = vmul.f32 %v6005_v44, %v1072_v8 }
 0x148   : > { %v949_v17 = vsub.f32 %v885_v60, %v917_v39  ;;  %v4879_v24 = vpop.eup %4878  ;;  %4884 = vrsqrt.f32 %v1011_v54  ;;  %v709_v25 = vpop.xlane.xlu1 %708  ;;  %v1109_v14 = vmul.f32 %v6005_v44, %v1071_v1 }
 0x149   : > { %v707_v13 = vpop.xlane.xlu0 %706  ;;  %v4881_v29 = vpop.eup %4880  ;;  %v1014_v30 = vadd.f32 1e-05, %v950_v16  ;;  %v1148_v61 = vadd.f32 %v6024_v28, %v1110_v15  ;;  %v1074_v36 = vmul.f32 %v4879_v24, %v978_v9  ;;  %v6072_v26 = vmul.f32 0.0078125, %v709_v25 }
 0x14a   : > { %v1013_v10 = vadd.f32 1e-05, %v949_v17  ;;  %v1147_v18 = vadd.f32 %v6024_v28, %v1109_v14  ;;  %v1073_v33 = vmul.f32 %v4881_v29, %v977_v3  ;;  %v6074_v38 = vmul.f32 0.0078125, %v707_v13 }
 0x14b   : > { %4886 = vrsqrt.f32 %v1014_v30  ;;  %v1112_v39 = vmul.f32 %v6005_v44, %v1074_v36  ;;  %v920_v60 = vmul.f32 %v6072_v26, %v6072_v26  ;;  %v980_v3 = vsub.f32 %v5838_v19, %v6032_v2  ;;  %v4831_v30 = vld [vmem:[%s6015_s28 + $0x10] sm:$0xff]  }
 0x14c   : > { %4888 = vrsqrt.f32 %v1013_v10  ;;  %v713_v11 = vpop.xlane.xlu1 %712  ;;  %v1193_v37 = vpack.c.bf16 %v1148_v61, %v1147_v18  ;;  %v1111_v0 = vmul.f32 %v6005_v44, %v1073_v33  ;;  %v919_v1 = vmul.f32 %v6074_v38, %v6074_v38  ;;  %4442 = vmatpush3.bf16.xpose.msra.mxu1 %v4830_v12 }
 0x14d   : > { %v711_v21 = vpop.xlane.xlu0 %710  ;;  %v6078_v46 = vmul.f32 0.0078125, %v713_v11  ;;  %v1150_v55 = vadd.f32 %v6024_v28, %v1112_v39  ;;  %v979_v25 = vsub.f32 %v5841_v20, %v6034_v27  ;;  %v982_v20 = vsub.f32 %v5846_v22, %v6038_v62  ;;  %4443 = vmatprep.subr.bf16.mxu1 %v4831_v30 }
 0x14e   : > { %4405 = vmatprep.mubr.bf16.mxu0 %v1193_v37  ;;  %v1149_v45 = vadd.f32 %v6024_v28, %v1111_v0  ;;  %v6080_v52 = vmul.f32 0.0078125, %v711_v21  ;;  %v981_v37 = vsub.f32 %v5849_v23, %v6040_v63 }
 0x14f   : > { %v922_v13 = vmul.f32 %v6078_v46, %v6078_v46 }
 0x150   : > { %v838_v53 = vpop.xlane.xlu1 %837  ;;  %v1194_v16 = vpack.c.bf16 %v1150_v55, %v1149_v45  ;;  %v921_v14 = vmul.f32 %v6080_v52, %v6080_v52 }
 0x151   : > { %v836_v54 = vpop.xlane.xlu0 %835  ;;  %v888_v8 = vmul.f32 0.0078125, %v838_v53 }
 0x152   : > { %v887_v9 = vmul.f32 0.0078125, %v836_v54  ;;  %4406 = vmatmul.mubr.bf16.gmra.mxu0 %v1194_v16  ;;  %v4832_v16 = vld [vmem:[%s6015_s28 + $0x8] sm:$0xff]  }
 0x153   : > { %v952_v47 = vsub.f32 %v888_v8, %v920_v60 }
 0x154   : > { %v951_v17 = vsub.f32 %v887_v9, %v919_v1  ;;  %v4883_v24 = vpop.eup %4882  ;;  %v842_v15 = vpop.xlane.xlu1 %841  ;;  %4444 = vmatpush3.bf16.xpose.msra.mxu1 %v4831_v30 }
 0x155   : > { %v840_v29 = vpop.xlane.xlu0 %839  ;;  %v4885_v10 = vpop.eup %4884  ;;  %v1016_v18 = vadd.f32 1e-05, %v952_v47  ;;  %v890_v33 = vmul.f32 0.0078125, %v842_v15  ;;  %v1076_v19 = vmul.f32 %v4883_v24, %v980_v3  ;;  %4445 = vmatprep.subr.bf16.mxu1 %v4832_v16 }
 0x156   : > { %v1015_v61 = vadd.f32 1e-05, %v951_v17  ;;  %v889_v36 = vmul.f32 0.0078125, %v840_v29  ;;  %v1075_v11 = vmul.f32 %v4885_v10, %v979_v25 }
 0x157   : > { %4890 = vrsqrt.f32 %v1016_v18  ;;  %v954_v2 = vsub.f32 %v890_v33, %v922_v13  ;;  %v1114_v53 = vmul.f32 %v6005_v44, %v1076_v19 }
 0x158   : > { %v953_v27 = vsub.f32 %v889_v36, %v921_v14  ;;  %v4887_v21 = vpop.eup %4886  ;;  %4892 = vrsqrt.f32 %v1015_v61  ;;  %v717_v0 = vpop.xlane.xlu1 %716  ;;  %v1113_v45 = vmul.f32 %v6005_v44, %v1075_v11 }
 0x159   : > { %v715_v39 = vpop.xlane.xlu0 %714  ;;  %v4889_v54 = vpop.eup %4888  ;;  %v1018_v55 = vadd.f32 1e-05, %v954_v2  ;;  %v1152_v12 = vadd.f32 %v6024_v28, %v1114_v53  ;;  %v1078_v1 = vmul.f32 %v4887_v21, %v982_v20  ;;  %v6106_v47 = vmul.f32 0.0078125, %v717_v0 }
 0x15a   : > { %v1017_v22 = vadd.f32 1e-05, %v953_v27  ;;  %v1151_v62 = vadd.f32 %v6024_v28, %v1113_v45  ;;  %v1077_v60 = vmul.f32 %v4889_v54, %v981_v37  ;;  %v6108_v17 = vmul.f32 0.0078125, %v715_v39 }
 0x15b   : > { %4894 = vrsqrt.f32 %v1018_v55  ;;  %v1116_v24 = vmul.f32 %v6005_v44, %v1078_v1  ;;  %v924_v10 = vmul.f32 %v6106_v47, %v6106_v47  ;;  %v984_v20 = vsub.f32 %v5862_v31, %v6072_v26 }
 0x15c   : > { %4896 = vrsqrt.f32 %v1017_v22  ;;  %v721_v23 = vpop.xlane.xlu1 %720  ;;  %v1195_v8 = vpack.c.bf16 %v1152_v12, %v1151_v62  ;;  %v1115_v9 = vmul.f32 %v6005_v44, %v1077_v60  ;;  %v923_v18 = vmul.f32 %v6108_v17, %v6108_v17  ;;  %4446 = vmatpush3.bf16.xpose.msra.mxu1 %v4832_v16 }
 0x15d   : > { %v719_v63 = vpop.xlane.xlu0 %718  ;;  %v6112_v25 = vmul.f32 0.0078125, %v721_v23  ;;  %v1154_v29 = vadd.f32 %v6024_v28, %v1116_v24  ;;  %v983_v2 = vsub.f32 %v5865_v32, %v6074_v38  ;;  %v986_v31 = vsub.f32 %v5870_v34, %v6078_v46 }
 0x15e   : > { %4409 = vmatprep.mubr.bf16.mxu0 %v1195_v8  ;;  %v1153_v3 = vadd.f32 %v6024_v28, %v1115_v9  ;;  %v6114_v13 = vmul.f32 0.0078125, %v719_v63  ;;  %v985_v12 = vsub.f32 %v5873_v35, %v6080_v52 }
 0x15f   : > { %v926_v27 = vmul.f32 %v6112_v25, %v6112_v25 }
 0x160   : > { %v846_v14 = vpop.xlane.xlu1 %845  ;;  %v1196_v36 = vpack.c.bf16 %v1154_v29, %v1153_v3  ;;  %v925_v21 = vmul.f32 %v6114_v13, %v6114_v13 }
 0x161   : > { %v844_v15 = vpop.xlane.xlu0 %843  ;;  %v892_v61 = vmul.f32 0.0078125, %v846_v14 }
 0x162   : > { %v891_v33 = vmul.f32 0.0078125, %v844_v15  ;;  %4410 = vmatmul.mubr.bf16.gmra.mxu0 %v1196_v36 }
 0x163   : > { %v956_v11 = vsub.f32 %v892_v61, %v924_v10 }
 0x164   : > { %v955_v30 = vsub.f32 %v891_v33, %v923_v18  ;;  %v4891_v19 = vpop.eup %4890  ;;  %v850_v37 = vpop.xlane.xlu1 %849 }
 0x165   : > { %v848_v0 = vpop.xlane.xlu0 %847  ;;  %v4893_v39 = vpop.eup %4892  ;;  %v1020_v45 = vadd.f32 1e-05, %v956_v11  ;;  %v894_v54 = vmul.f32 0.0078125, %v850_v37  ;;  %v1080_v62 = vmul.f32 %v4891_v19, %v984_v20 }
 0x166   : > { %v1019_v53 = vadd.f32 1e-05, %v955_v30  ;;  %v893_v55 = vmul.f32 0.0078125, %v848_v0  ;;  %v1079_v22 = vmul.f32 %v4893_v39, %v983_v2 }
 0x167   : > { %4898 = vrsqrt.f32 %v1020_v45  ;;  %v958_v32 = vsub.f32 %v894_v54, %v926_v27  ;;  %v1118_v63 = vmul.f32 %v6005_v44, %v1080_v62  ;;  %v987_v54 = vsub.f32 %v5889_v41, %v6108_v17 }
 0x168   : > { %v957_v26 = vsub.f32 %v893_v55, %v925_v21  ;;  %v4895_v38 = vpop.eup %4894  ;;  %4900 = vrsqrt.f32 %v1019_v53  ;;  %v725_v60 = vpop.xlane.xlu1 %724  ;;  %v1117_v23 = vmul.f32 %v6005_v44, %v1079_v22  ;;  %v988_v53 = vsub.f32 %v5886_v40, %v6106_v47 }
 0x169   : > { %v723_v1 = vpop.xlane.xlu0 %722  ;;  %v4897_v8 = vpop.eup %4896  ;;  %v1022_v9 = vadd.f32 1e-05, %v958_v32  ;;  %v1156_v46 = vadd.f32 %v6024_v28, %v1118_v63  ;;  %v1082_v16 = vmul.f32 %v4895_v38, %v986_v31  ;;  %v6138_v29 = vmul.f32 0.0078125, %v725_v60 }
 0x16a   : > { %v1021_v24 = vadd.f32 1e-05, %v957_v26  ;;  %v1155_v34 = vadd.f32 %v6024_v28, %v1117_v23  ;;  %v1081_v3 = vmul.f32 %v4897_v8, %v985_v12  ;;  %v6140_v10 = vmul.f32 0.0078125, %v723_v1 }
 0x16b   : > { %4902 = vrsqrt.f32 %v1022_v9  ;;  %v1120_v18 = vmul.f32 %v6005_v44, %v1082_v16  ;;  %v928_v20 = vmul.f32 %v6138_v29, %v6138_v29  ;;  %v990_v40 = vsub.f32 %v5894_v42, %v6112_v25 }
 0x16c   : > { %4904 = vrsqrt.f32 %v1021_v24  ;;  %v729_v14 = vpop.xlane.xlu1 %728  ;;  %v1197_v52 = vpack.c.bf16 %v1156_v46, %v1155_v34  ;;  %v1119_v15 = vmul.f32 %v6005_v44, %v1081_v3  ;;  %v927_v2 = vmul.f32 %v6140_v10, %v6140_v10 }
 0x16d   : > { %v727_v35 = vpop.xlane.xlu0 %726  ;;  %v6144_v33 = vmul.f32 0.0078125, %v729_v14  ;;  %v1158_v19 = vadd.f32 %v6024_v28, %v1120_v18  ;;  %v989_v63 = vsub.f32 %v5897_v43, %v6114_v13 }
 0x16e   : > { %4413 = vmatprep.mubr.bf16.mxu0 %v1197_v52  ;;  %v1157_v61 = vadd.f32 %v6024_v28, %v1119_v15  ;;  %v6146_v36 = vmul.f32 0.0078125, %v727_v35 }
 0x16f   : > { %v930_v55 = vmul.f32 %v6144_v33, %v6144_v33 }
 0x170   : > { %v854_v11 = vpop.xlane.xlu1 %853  ;;  %v1198_v37 = vpack.c.bf16 %v1158_v19, %v1157_v61  ;;  %v929_v22 = vmul.f32 %v6146_v36, %v6146_v36 }
 0x171   : > { %v852_v30 = vpop.xlane.xlu0 %851  ;;  %v896_v27 = vmul.f32 0.0078125, %v854_v11 }
 0x172   : > { %v895_v21 = vmul.f32 0.0078125, %v852_v30  ;;  %4414 = vmatmul.mubr.bf16.gmra.mxu0 %v1198_v37 }
 0x173   : > { %v960_v0 = vsub.f32 %v896_v27, %v928_v20 }
 0x174   : > { %v959_v39 = vsub.f32 %v895_v21, %v927_v2  ;;  %v4899_v45 = vpop.eup %4898  ;;  %v858_v62 = vpop.xlane.xlu1 %857 }
 0x175   : > { %v856_v31 = vpop.xlane.xlu0 %855  ;;  %v4901_v32 = vpop.eup %4900  ;;  %v1024_v26 = vadd.f32 1e-05, %v960_v0  ;;  %v898_v12 = vmul.f32 0.0078125, %v858_v62  ;;  %v1084_v23 = vmul.f32 %v4899_v45, %v988_v53  ;;  %v992_v62 = vsub.f32 %v5910_v48, %v6138_v29  ;;  %v4833_v48 = vld [vmem:[%s6015_s28] sm:$0xff]  }
 0x176   : > { %v1023_v38 = vadd.f32 1e-05, %v959_v39  ;;  %v897_v60 = vmul.f32 0.0078125, %v856_v31  ;;  %v1083_v1 = vmul.f32 %v4901_v32, %v987_v54  ;;  %v991_v31 = vsub.f32 %v5913_v49, %v6140_v10  ;;  %4447 = vmatprep.subr.bf16.mxu1 %v4833_v48 }
 0x177   : > { %4906 = vrsqrt.f32 %v1024_v26  ;;  %v962_v41 = vsub.f32 %v898_v12, %v930_v55  ;;  %v1122_v34 = vmul.f32 %v6005_v44, %v1084_v23  ;;  %v994_v49 = vsub.f32 %v5918_v50, %v6144_v33  ;;  %4448 = vmatpush3.bf16.xpose.msra.mxu1 %v4833_v48 }
 0x178   : > { %v961_v47 = vsub.f32 %v897_v60, %v929_v22  ;;  %v4903_v17 = vpop.eup %4902  ;;  %4908 = vrsqrt.f32 %v1023_v38  ;;  %v733_v8 = vpop.xlane.xlu1 %732  ;;  %v1121_v24 = vmul.f32 %v6005_v44, %v1083_v1 }
 0x179   : > { %v731_v9 = vpop.xlane.xlu0 %730  ;;  %v4905_v46 = vpop.eup %4904  ;;  %v1026_v3 = vadd.f32 1e-05, %v962_v41  ;;  %v1160_v42 = vadd.f32 %v6024_v28, %v1122_v34  ;;  %v1086_v35 = vmul.f32 %v4903_v17, %v990_v40  ;;  %v6170_v18 = vmul.f32 0.0078125, %v733_v8 }
 0x17a   : > { %v1025_v16 = vadd.f32 1e-05, %v961_v47  ;;  %v1159_v14 = vadd.f32 %v6024_v28, %v1121_v24  ;;  %v1085_v25 = vmul.f32 %v4905_v46, %v989_v63  ;;  %v6172_v61 = vmul.f32 0.0078125, %v731_v9 }
 0x17b   : > { %4910 = vrsqrt.f32 %v1026_v3  ;;  %v1124_v11 = vmul.f32 %v6005_v44, %v1086_v35  ;;  %v932_v37 = vmul.f32 %v6170_v18, %v6170_v18  ;;  %v993_v8 = vsub.f32 %v5921_v51, %v6146_v36 }
 0x17c   : > { %4912 = vrsqrt.f32 %v1025_v16  ;;  %v737_v52 = vpop.xlane.xlu1 %736  ;;  %v1199_v13 = vpack.c.bf16 %v1160_v42, %v1159_v14  ;;  %v1123_v15 = vmul.f32 %v6005_v44, %v1085_v25  ;;  %v931_v0 = vmul.f32 %v6172_v61, %v6172_v61 }
 0x17d   : > { %v735_v43 = vpop.xlane.xlu0 %734  ;;  %v6176_v19 = vmul.f32 0.0078125, %v737_v52  ;;  %v1162_v21 = vadd.f32 %v6024_v28, %v1124_v11 }
 0x17e   : > { %4417 = vmatprep.mubr.bf16.mxu0 %v1199_v13  ;;  %v1161_v30 = vadd.f32 %v6024_v28, %v1123_v15  ;;  %v6178_v20 = vmul.f32 0.0078125, %v735_v43 }
 0x17f   : > { %v934_v32 = vmul.f32 %v6176_v19, %v6176_v19 }
 0x180   : > { %v862_v2 = vpop.xlane.xlu1 %861  ;;  %v1200_v53 = vpack.c.bf16 %v1162_v21, %v1161_v30  ;;  %v933_v26 = vmul.f32 %v6178_v20, %v6178_v20 }
 0x181   : > { %v860_v27 = vpop.xlane.xlu0 %859  ;;  %v900_v39 = vmul.f32 0.0078125, %v862_v2 }
 0x182   : > { %v899_v45 = vmul.f32 0.0078125, %v860_v27  ;;  %4418 = vmatmul.mubr.bf16.gmra.mxu0 %v1200_v53 }
 0x183   : > { %v964_v54 = vsub.f32 %v900_v39, %v932_v37 }
 0x184   : > { %v963_v55 = vsub.f32 %v899_v45, %v931_v0  ;;  %v4907_v22 = vpop.eup %4906  ;;  %v866_v38 = vpop.xlane.xlu1 %865 }
 0x185   : > { %v864_v12 = vpop.xlane.xlu0 %863  ;;  %v4909_v60 = vpop.eup %4908  ;;  %v1028_v1 = vadd.f32 1e-05, %v964_v54  ;;  %v902_v40 = vmul.f32 0.0078125, %v866_v38  ;;  %v1088_v17 = vmul.f32 %v4907_v22, %v992_v62 }
 0x186   : > { %v1027_v23 = vadd.f32 1e-05, %v963_v55  ;;  %v901_v41 = vmul.f32 0.0078125, %v864_v12  ;;  %v1087_v47 = vmul.f32 %v4909_v60, %v991_v31  ;;  %v996_v31 = vsub.f32 %v5934_v56, %v6170_v18 }
 0x187   : > { %4914 = vrsqrt.f32 %v1028_v1  ;;  %v966_v29 = vsub.f32 %v902_v40, %v934_v32  ;;  %v1126_v46 = vmul.f32 %v6005_v44, %v1088_v17  ;;  %v995_v32 = vsub.f32 %v5937_v57, %v6172_v61 }
 0x188   : > { %v965_v10 = vsub.f32 %v901_v41, %v933_v26  ;;  %v4911_v63 = vpop.eup %4910  ;;  %4916 = vrsqrt.f32 %v1027_v23  ;;  %v741_v9 = vpop.xlane.xlu1 %740  ;;  %v1125_v34 = vmul.f32 %v6005_v44, %v1087_v47  ;;  %v998_v56 = vsub.f32 %v5942_v58, %v6176_v19 }
 0x189   : > { %v739_v24 = vpop.xlane.xlu0 %738  ;;  %v4913_v3 = vpop.eup %4912  ;;  %v1030_v16 = vadd.f32 1e-05, %v966_v29  ;;  %v1164_v33 = vadd.f32 %v6024_v28, %v1126_v46  ;;  %v1090_v25 = vmul.f32 %v4911_v63, %v994_v49  ;;  %v6203_v43 = vmul.f32 0.0078125, %v741_v9 }
 0x18a   : > { %v1029_v14 = vadd.f32 1e-05, %v965_v10  ;;  %v1163_v50 = vadd.f32 %v6024_v28, %v1125_v34  ;;  %v1089_v42 = vmul.f32 %v4913_v3, %v993_v8  ;;  %v6205_v13 = vmul.f32 0.0078125, %v739_v24 }
 0x18b   : > { %4918 = vrsqrt.f32 %v1030_v16  ;;  %v1128_v15 = vmul.f32 %v6005_v44, %v1090_v25  ;;  %v936_v0 = vmul.f32 %v6203_v43, %v6203_v43  ;;  %v997_v49 = vsub.f32 %v5945_v59, %v6178_v20 }
 0x18c   : > { %4920 = vrsqrt.f32 %v1029_v14  ;;  %v745_v51 = vpop.xlane.xlu1 %744  ;;  %v1201_v35 = vpack.c.bf16 %v1164_v33, %v1163_v50  ;;  %v1127_v52 = vmul.f32 %v6005_v44, %v1089_v42  ;;  %v935_v39 = vmul.f32 %v6205_v13, %v6205_v13 }
 0x18d   : > { %v743_v36 = vpop.xlane.xlu0 %742  ;;  %v6209_v30 = vmul.f32 0.0078125, %v745_v51  ;;  %v1166_v37 = vadd.f32 %v6024_v28, %v1128_v15  ;;  %v1000_v50 = vsub.f32 %v5958_v4, %v6203_v43  ;;  %v999_v42 = vsub.f32 %v5961_v5, %v6205_v13 }
 0x18e   : > { %4421 = vmatprep.mubr.bf16.mxu0 %v1201_v35  ;;  %v1165_v11 = vadd.f32 %v6024_v28, %v1127_v52  ;;  %v6211_v2 = vmul.f32 0.0078125, %v743_v36 }
 0x18f   : > { %v938_v26 = vmul.f32 %v6209_v30, %v6209_v30  ;;  %v1002_v35 = vsub.f32 %v5966_v6, %v6209_v30 }
 0x190   : > { %v870_v27 = vpop.xlane.xlu1 %869  ;;  %v1202_v54 = vpack.c.bf16 %v1166_v37, %v1165_v11  ;;  %v937_v38 = vmul.f32 %v6211_v2, %v6211_v2  ;;  %v1001_v11 = vsub.f32 %v5969_v7, %v6211_v2 }
 0x191   : > { %v868_v21 = vpop.xlane.xlu0 %867  ;;  %v904_v45 = vmul.f32 0.0078125, %v870_v27 }
 0x192   : > { %v903_v53 = vmul.f32 0.0078125, %v868_v21  ;;  %4422 = vmatmul.mubr.bf16.gmra.mxu0 %v1202_v54  ;;  %v6257_v54 = vld [vmem:[%s7136_s7] ss:$0 sm:$0xff] }
 0x193   : > { %v968_v55 = vsub.f32 %v904_v45, %v936_v0 }
 0x194   : > { %v967_v22 = vsub.f32 %v903_v53, %v935_v39  ;;  %v4915_v62 = vpop.eup %4914  ;;  %v874_v12 = vpop.xlane.xlu1 %873 }
 0x195   : > { %v872_v60 = vpop.xlane.xlu0 %871  ;;  %v4917_v1 = vpop.eup %4916  ;;  %v1032_v23 = vadd.f32 1e-05, %v968_v55  ;;  %v906_v41 = vmul.f32 0.0078125, %v874_v12  ;;  %v1092_v48 = vmul.f32 %v4915_v62, %v996_v31 }
 0x196   : > { %v1031_v40 = vadd.f32 1e-05, %v967_v22  ;;  %v905_v47 = vmul.f32 0.0078125, %v872_v60  ;;  %v1091_v17 = vmul.f32 %v4917_v1, %v995_v32 }
 0x197   : > { %4922 = vrsqrt.f32 %v1032_v23  ;;  %v970_v57 = vsub.f32 %v906_v41, %v938_v26  ;;  %v1130_v10 = vmul.f32 %v6005_v44, %v1092_v48 }
 0x198   : > { %v969_v18 = vsub.f32 %v905_v47, %v937_v38  ;;  %v4919_v61 = vpop.eup %4918  ;;  %4924 = vrsqrt.f32 %v1031_v40  ;;  %v1129_v29 = vmul.f32 %v6005_v44, %v1091_v17 }
 0x199   : > { %v4921_v63 = vpop.eup %4920  ;;  %v1034_v8 = vadd.f32 1e-05, %v970_v57  ;;  %v1094_v24 = vmul.f32 %v4919_v61, %v998_v56  ;;  %v1168_v58 = vadd.f32 %v6024_v28, %v1130_v10 }
 0x19a   : > { %v1033_v9 = vadd.f32 1e-05, %v969_v18  ;;  %v1167_v34 = vadd.f32 %v6024_v28, %v1129_v29  ;;  %v1093_v19 = vmul.f32 %v4921_v63, %v997_v49 }
 0x19b   : > { %4926 = vrsqrt.f32 %v1034_v8  ;;  %v1132_v46 = vmul.f32 %v6005_v44, %v1094_v24 }
 0x19c   : > { %4928 = vrsqrt.f32 %v1033_v9  ;;  %v1203_v3 = vpack.c.bf16 %v1168_v58, %v1167_v34  ;;  %v1131_v59 = vmul.f32 %v6005_v44, %v1093_v19 }
 0x19d   : > { %v1170_v20 = vadd.f32 %v6024_v28, %v1132_v46 }
 0x19e   : > { %4425 = vmatprep.mubr.bf16.mxu0 %v1203_v3  ;;  %v1169_v16 = vadd.f32 %v6024_v28, %v1131_v59 }
 0x1a0   : > { %v1204_v14 = vpack.c.bf16 %v1170_v20, %v1169_v16 }
 0x1a2   : > { %4426 = vmatmul.mubr.bf16.gmra.mxu0 %v1204_v14 }
 0x1a4   : > { %v4923_v33 = vpop.eup %4922 }
 0x1a5   : > { %v4925_v25 = vpop.eup %4924  ;;  %v1096_v51 = vmul.f32 %v4923_v33, %v1000_v50 }
 0x1a6   : > { %v1095_v36 = vmul.f32 %v4925_v25, %v999_v42 }
 0x1a7   : > { %v1134_v52 = vmul.f32 %v6005_v44, %v1096_v51 }
 0x1a8   : > { %v4927_v15 = vpop.eup %4926  ;;  %v1133_v27 = vmul.f32 %v6005_v44, %v1095_v36 }
 0x1a9   : > { %v4929_v21 = vpop.eup %4928  ;;  %v1172_v4 = vadd.f32 %v6024_v28, %v1134_v52  ;;  %v1098_v43 = vmul.f32 %v4927_v15, %v1002_v35 }
 0x1aa   : > { %v1171_v5 = vadd.f32 %v6024_v28, %v1133_v27  ;;  %v1097_v13 = vmul.f32 %v4929_v21, %v1001_v11 }
 0x1ab   : > { %v1136_v37 = vmul.f32 %v6005_v44, %v1098_v43 }
 0x1ac   : > { %v1205_v0 = vpack.c.bf16 %v1172_v4, %v1171_v5  ;;  %v1135_v6 = vmul.f32 %v6005_v44, %v1097_v13 }
 0x1ad   : > { %v1174_v30 = vadd.f32 %v6024_v28, %v1136_v37 }
 0x1ae   : > { %4429 = vmatprep.mubr.bf16.mxu0 %v1205_v0  ;;  %v1173_v39 = vadd.f32 %v6024_v28, %v1135_v6 }
 0x1b0   : > { %v1206_v7 = vpack.c.bf16 %v1174_v30, %v1173_v39 }
 0x1b2   : > { %4430 = vmatmul.mubr.bf16.gmra.mxu0 %v1206_v7 }
 0x202   : > { %v4403_v2 = vpop.f32.mrf.mxu0 }
 0x203   : > { %v1305_v31 = vadd.f32 %v4403_v2, %v6257_v54 }
 0x204   : > { %v1296_v45 = vpop.f32.mrf.mxu0 }
 0x205   : > { %v1297_v44 = vadd.f32 %v6257_v54, %v1296_v45 }
 0x206   : > { %v4404_v53 = vpop.f32.mrf.mxu0 }
 0x207   : > { %v1308_v55 = vadd.f32 %v4404_v53, %v6257_v54 }
 0x208   : > { %v1299_v22 = vpop.f32.mrf.mxu0 }
 0x209   : > { %v1300_v62 = vadd.f32 %v6257_v54, %v1299_v22  ;;  %v1461_v32 = vpack.c.bf16 %v1308_v55, %v1305_v31 }
 0x20b   : > { %v1460_v28 = vpack.c.bf16 %v1300_v62, %v1297_v44 }
 0x20d   : > { %4449 = vmatprep.mubr.bf16.mxu1 %v1460_v28 }
 0x20e   : > { %4450 = vmatmul.mubr.bf16.vlgmr.msra.gmra.mxu1 %v1461_v32 }
 0x212   : > { %v4407_v26 = vpop.f32.mrf.mxu0 }
 0x213   : > { %v1321_v41 = vadd.f32 %v4407_v26, %v6257_v54 }
 0x214   : > { %v1312_v38 = vpop.f32.mrf.mxu0 }
 0x215   : > { %v1313_v23 = vadd.f32 %v6257_v54, %v1312_v38 }
 0x216   : > { %v4408_v12 = vpop.f32.mrf.mxu0 }
 0x217   : > { %v1324_v60 = vadd.f32 %v4408_v12, %v6257_v54 }
 0x218   : > { %v1315_v1 = vpop.f32.mrf.mxu0 }
 0x219   : > { %v1316_v40 = vadd.f32 %v6257_v54, %v1315_v1  ;;  %v1463_v17 = vpack.c.bf16 %v1324_v60, %v1321_v41  ;;  %v4834_v41 = vld [vmem:[%s6046_s30 + $0x38] sm:$0xff]  }
 0x21a   : > { %4481 = vmatprep.subr.bf16.mxu0 %v4834_v41 }
 0x21b   : > { %v1462_v47 = vpack.c.bf16 %v1316_v40, %v1313_v23  ;;  %4482 = vmatpush3.bf16.msra.mxu0 %v4834_v41 }
 0x21d   : > { %4453 = vmatprep.mubr.bf16.mxu1 %v1462_v47  ;;  %v4835_v47 = vld [vmem:[%s6046_s30 + $0x30] sm:$0xff]  }
 0x21e   : > { %4454 = vmatmul.mubr.bf16.gmra.mxu1 %v1463_v17  ;;  %4483 = vmatprep.subr.bf16.mxu0 %v4835_v47  ;;  %v4836_v17 = vld [vmem:[%s6046_s30 + $0x28] sm:$0xff]  }
 0x21f   : > { %4484 = vmatpush3.bf16.msra.mxu0 %v4835_v47 }
 0x220   : > { %4485 = vmatprep.subr.bf16.mxu0 %v4836_v17 }
 0x222   : > { %v4411_v48 = vpop.f32.mrf.mxu0 }
 0x223   : > { %v1337_v10 = vadd.f32 %v4411_v48, %v6257_v54  ;;  %4486 = vmatpush3.bf16.msra.mxu0 %v4836_v17  ;;  %v4837_v48 = vld [vmem:[%s6046_s30 + $0x20] sm:$0xff]  }
 0x224   : > { %v1328_v56 = vpop.f32.mrf.mxu0  ;;  %4487 = vmatprep.subr.bf16.mxu0 %v4837_v48 }
 0x225   : > { %v1329_v49 = vadd.f32 %v6257_v54, %v1328_v56  ;;  %v4838_v56 = vld [vmem:[%s6046_s30 + $0x18] sm:$0xff]  }
 0x226   : > { %v4412_v57 = vpop.f32.mrf.mxu0 }
 0x227   : > { %v1340_v18 = vadd.f32 %v4412_v57, %v6257_v54  ;;  %4488 = vmatpush3.bf16.msra.mxu0 %v4837_v48 }
 0x228   : > { %v1331_v61 = vpop.f32.mrf.mxu0  ;;  %4489 = vmatprep.subr.bf16.mxu0 %v4838_v56 }
 0x229   : > { %v1332_v29 = vadd.f32 %v6257_v54, %v1331_v61  ;;  %v1465_v8 = vpack.c.bf16 %v1340_v18, %v1337_v10 }
 0x22b   : > { %v1464_v63 = vpack.c.bf16 %v1332_v29, %v1329_v49  ;;  %4490 = vmatpush3.bf16.msra.mxu0 %v4838_v56 }
 0x22d   : > { %4457 = vmatprep.mubr.bf16.mxu1 %v1464_v63 }
 0x22e   : > { %4458 = vmatmul.mubr.bf16.gmra.mxu1 %v1465_v8 }
 0x232   : > { %v4415_v9 = vpop.f32.mrf.mxu0 }
 0x233   : > { %v1353_v59 = vadd.f32 %v4415_v9, %v6257_v54 }
 0x234   : > { %v1344_v24 = vpop.f32.mrf.mxu0 }
 0x235   : > { %v1345_v46 = vadd.f32 %v6257_v54, %v1344_v24 }
 0x236   : > { %v4416_v34 = vpop.f32.mrf.mxu0 }
 0x237   : > { %v1356_v58 = vadd.f32 %v4416_v34, %v6257_v54 }
 0x238   : > { %v1347_v19 = vpop.f32.mrf.mxu0 }
 0x239   : > { %v1348_v3 = vadd.f32 %v6257_v54, %v1347_v19  ;;  %v1467_v16 = vpack.c.bf16 %v1356_v58, %v1353_v59  ;;  %v4839_v58 = vld [vmem:[%s6046_s30 + $0x10] sm:$0xff]  }
 0x23a   : > { %4491 = vmatprep.subr.bf16.mxu0 %v4839_v58 }
 0x23b   : > { %v1466_v20 = vpack.c.bf16 %v1348_v3, %v1345_v46  ;;  %4492 = vmatpush3.bf16.msra.mxu0 %v4839_v58 }
 0x23d   : > { %4461 = vmatprep.mubr.bf16.mxu1 %v1466_v20 }
 0x23e   : > { %4462 = vmatmul.mubr.bf16.gmra.mxu1 %v1467_v16  ;;  %v4840_v16 = vld [vmem:[%s6046_s30 + $0x8] sm:$0xff]  }
 0x23f   : > { %4493 = vmatprep.subr.bf16.mxu0 %v4840_v16 }
 0x240   : > { %4494 = vmatpush3.bf16.msra.mxu0 %v4840_v16 }
 0x242   : > { %v4419_v14 = vpop.f32.mrf.mxu0 }
 0x243   : > { %v1369_v35 = vadd.f32 %v4419_v14, %v6257_v54 }
 0x244   : > { %v1360_v50 = vpop.f32.mrf.mxu0 }
 0x245   : > { %v1361_v51 = vadd.f32 %v6257_v54, %v1360_v50 }
 0x246   : > { %v4420_v33 = vpop.f32.mrf.mxu0 }
 0x247   : > { %v1372_v42 = vadd.f32 %v4420_v33, %v6257_v54 }
 0x248   : > { %v1363_v25 = vpop.f32.mrf.mxu0 }
 0x249   : > { %v1364_v36 = vadd.f32 %v6257_v54, %v1363_v25  ;;  %v1469_v15 = vpack.c.bf16 %v1372_v42, %v1369_v35  ;;  %v4841_v42 = vld [vmem:[%s6046_s30] sm:$0xff]  }
 0x24a   : > { %4495 = vmatprep.subr.bf16.mxu0 %v4841_v42 }
 0x24b   : > { %v1468_v52 = vpack.c.bf16 %v1364_v36, %v1361_v51  ;;  %4496 = vmatpush3.bf16.msra.mxu0 %v4841_v42 }
 0x24d   : > { %4465 = vmatprep.mubr.bf16.mxu1 %v1468_v52 }
 0x24e   : > { %4466 = vmatmul.mubr.bf16.gmra.mxu1 %v1469_v15 }
 0x252   : > { %v4423_v11 = vpop.f32.mrf.mxu0 }
 0x253   : > { %v1385_v37 = vadd.f32 %v4423_v11, %v6257_v54 }
 0x254   : > { %v1376_v27 = vpop.f32.mrf.mxu0 }
 0x255   : > { %v1377_v5 = vadd.f32 %v6257_v54, %v1376_v27 }
 0x256   : > { %v4424_v21 = vpop.f32.mrf.mxu0 }
 0x257   : > { %v1388_v4 = vadd.f32 %v4424_v21, %v6257_v54 }
 0x258   : > { %v1379_v43 = vpop.f32.mrf.mxu0 }
 0x259   : > { %v1380_v13 = vadd.f32 %v6257_v54, %v1379_v43  ;;  %v1471_v6 = vpack.c.bf16 %v1388_v4, %v1385_v37 }
 0x25b   : > { %v1470_v0 = vpack.c.bf16 %v1380_v13, %v1377_v5 }
 0x25d   : > { %4469 = vmatprep.mubr.bf16.mxu1 %v1470_v0 }
 0x25e   : > { %4470 = vmatmul.mubr.bf16.gmra.mxu1 %v1471_v6 }
 0x262   : > { %v4427_v30 = vpop.f32.mrf.mxu0 }
 0x263   : > { %v1401_v22 = vadd.f32 %v4427_v30, %v6257_v54 }
 0x264   : > { %v1392_v39 = vpop.f32.mrf.mxu0 }
 0x265   : > { %v1393_v53 = vadd.f32 %v6257_v54, %v1392_v39 }
 0x266   : > { %v4428_v7 = vpop.f32.mrf.mxu0 }
 0x267   : > { %v1404_v2 = vadd.f32 %v4428_v7, %v6257_v54 }
 0x268   : > { %v1395_v45 = vpop.f32.mrf.mxu0 }
 0x269   : > { %v1396_v55 = vadd.f32 %v6257_v54, %v1395_v45  ;;  %v1473_v62 = vpack.c.bf16 %v1404_v2, %v1401_v22 }
 0x26b   : > { %v1472_v44 = vpack.c.bf16 %v1396_v55, %v1393_v53 }
 0x26d   : > { %4473 = vmatprep.mubr.bf16.mxu1 %v1472_v44 }
 0x26e   : > { %4474 = vmatmul.mubr.bf16.gmra.mxu1 %v1473_v62 }
 0x272   : > { %v4431_v31 = vpop.f32.mrf.mxu0 }
 0x273   : > { %v1417_v1 = vadd.f32 %v4431_v31, %v6257_v54 }
 0x274   : > { %v1408_v28 = vpop.f32.mrf.mxu0 }
 0x275   : > { %v1409_v12 = vadd.f32 %v6257_v54, %v1408_v28 }
 0x276   : > { %v4432_v32 = vpop.f32.mrf.mxu0 }
 0x277   : > { %v1420_v26 = vadd.f32 %v4432_v32, %v6257_v54 }
 0x278   : > { %v1411_v38 = vpop.f32.mrf.mxu0 }
 0x279   : > { %v1412_v60 = vadd.f32 %v6257_v54, %v1411_v38  ;;  %v1475_v40 = vpack.c.bf16 %v1420_v26, %v1417_v1  ;;  %v6299_v54 = vld [vmem:[%s7132_s3] ss:$0 sm:$0xff] }
 0x27b   : > { %v1474_v23 = vpack.c.bf16 %v1412_v60, %v1409_v12 }
 0x27d   : > { %4477 = vmatprep.mubr.bf16.mxu1 %v1474_v23 }
 0x27e   : > { %4478 = vmatmul.mubr.bf16.gmra.mxu1 %v1475_v40 }
 0x2ce   : > { %v4451_v57 = vpop.f32.mrf.mxu1 }
 0x2cf   : > { %v6306_v10 = vadd.f32 %v4451_v57, %v6299_v54 }
 0x2d0   : > { %v1565_v18 = vpop.f32.mrf.mxu1 }
 0x2d1   : > { %v6302_v61 = vadd.f32 %v6299_v54, %v1565_v18 }
 0x2d2   : > { %v4452_v49 = vpop.f32.mrf.mxu1 }
 0x2d3   : > { %1692 = vmax.xlane.f32.xlu0 %v6302_v61  ;;  %v6314_v8 = vadd.f32 %v4452_v49, %v6299_v54 }
 0x2d4   : > { %v1568_v29 = vpop.f32.mrf.mxu1 }
 0x2d5   : > { %v6309_v63 = vadd.f32 %v6299_v54, %v1568_v29 }
 0x2d7   : > { %1694 = vmax.xlane.f32.xlu1 %v6309_v63  ;;  %1696 = vmax.xlane.f32.xlu0 %v6306_v10 }
 0x2db   : > { %1698 = vmax.xlane.f32.xlu1 %v6314_v8 }
 0x2de   : > { %v4455_v9 = vpop.f32.mrf.mxu1 }
 0x2df   : > { %v6323_v3 = vadd.f32 %v4455_v9, %v6299_v54 }
 0x2e0   : > { %v1581_v24 = vpop.f32.mrf.mxu1 }
 0x2e1   : > { %v6318_v34 = vadd.f32 %v6299_v54, %v1581_v24 }
 0x2e2   : > { %v4456_v19 = vpop.f32.mrf.mxu1 }
 0x2e3   : > { %1700 = vmax.xlane.f32.xlu0 %v6318_v34  ;;  %v6331_v20 = vadd.f32 %v4456_v19, %v6299_v54 }
 0x2e4   : > { %v1584_v46 = vpop.f32.mrf.mxu1 }
 0x2e5   : > { %v6326_v59 = vadd.f32 %v6299_v54, %v1584_v46 }
 0x2e7   : > { %1702 = vmax.xlane.f32.xlu1 %v6326_v59  ;;  %1704 = vmax.xlane.f32.xlu0 %v6323_v3 }
 0x2eb   : > { %1706 = vmax.xlane.f32.xlu1 %v6331_v20 }
 0x2ee   : > { %v4459_v14 = vpop.f32.mrf.mxu1 }
 0x2ef   : > { %v6341_v36 = vadd.f32 %v4459_v14, %v6299_v54 }
 0x2f0   : > { %v1597_v50 = vpop.f32.mrf.mxu1 }
 0x2f1   : > { %v6336_v33 = vadd.f32 %v6299_v54, %v1597_v50 }
 0x2f2   : > { %v4460_v25 = vpop.f32.mrf.mxu1 }
 0x2f3   : > { %1708 = vmax.xlane.f32.xlu0 %v6336_v33  ;;  %v6349_v52 = vadd.f32 %v4460_v25, %v6299_v54 }
 0x2f4   : > { %v1600_v51 = vpop.f32.mrf.mxu1 }
 0x2f5   : > { %v6344_v35 = vadd.f32 %v6299_v54, %v1600_v51 }
 0x2f7   : > { %1710 = vmax.xlane.f32.xlu1 %v6344_v35  ;;  %1712 = vmax.xlane.f32.xlu0 %v6341_v36 }
 0x2fb   : > { %1714 = vmax.xlane.f32.xlu1 %v6349_v52 }
 0x2fe   : > { %v4463_v15 = vpop.f32.mrf.mxu1 }
 0x2ff   : > { %v6357_v43 = vadd.f32 %v4463_v15, %v6299_v54 }
 0x300   : > { %v1613_v11 = vpop.f32.mrf.mxu1 }
 0x301   : > { %v6353_v27 = vadd.f32 %v6299_v54, %v1613_v11 }
 0x302   : > { %v4464_v21 = vpop.f32.mrf.mxu1 }
 0x303   : > { %1716 = vmax.xlane.f32.xlu0 %v6353_v27  ;;  %v6365_v13 = vadd.f32 %v4464_v21, %v6299_v54 }
 0x304   : > { %v1616_v4 = vpop.f32.mrf.mxu1 }
 0x305   : > { %v6360_v5 = vadd.f32 %v6299_v54, %v1616_v4 }
 0x307   : > { %1718 = vmax.xlane.f32.xlu1 %v6360_v5  ;;  %1720 = vmax.xlane.f32.xlu0 %v6357_v43 }
 0x30b   : > { %1722 = vmax.xlane.f32.xlu1 %v6365_v13 }
 0x30e   : > { %v4467_v37 = vpop.f32.mrf.mxu1 }
 0x30f   : > { %v6373_v7 = vadd.f32 %v4467_v37, %v6299_v54 }
 0x310   : > { %v1629_v0 = vpop.f32.mrf.mxu1 }
 0x311   : > { %v6369_v6 = vadd.f32 %v6299_v54, %v1629_v0 }
 0x312   : > { %v4468_v30 = vpop.f32.mrf.mxu1 }
 0x313   : > { %1724 = vmax.xlane.f32.xlu0 %v6369_v6  ;;  %v6381_v45 = vadd.f32 %v4468_v30, %v6299_v54 }
 0x314   : > { %v1632_v39 = vpop.f32.mrf.mxu1 }
 0x315   : > { %v6376_v2 = vadd.f32 %v6299_v54, %v1632_v39 }
 0x317   : > { %1726 = vmax.xlane.f32.xlu1 %v6376_v2  ;;  %1728 = vmax.xlane.f32.xlu0 %v6373_v7 }
 0x31b   : > { %1730 = vmax.xlane.f32.xlu1 %v6381_v45 }
 0x31e   : > { %v4471_v53 = vpop.f32.mrf.mxu1 }
 0x31f   : > { %v6389_v31 = vadd.f32 %v4471_v53, %v6299_v54 }
 0x320   : > { %v1645_v55 = vpop.f32.mrf.mxu1 }
 0x321   : > { %v6385_v22 = vadd.f32 %v6299_v54, %v1645_v55 }
 0x322   : > { %v4472_v44 = vpop.f32.mrf.mxu1 }
 0x323   : > { %1732 = vmax.xlane.f32.xlu0 %v6385_v22  ;;  %v6397_v32 = vadd.f32 %v4472_v44, %v6299_v54 }
 0x324   : > { %v1648_v62 = vpop.f32.mrf.mxu1 }
 0x325   : > { %v6392_v28 = vadd.f32 %v6299_v54, %v1648_v62 }
 0x327   : > { %1734 = vmax.xlane.f32.xlu1 %v6392_v28  ;;  %1736 = vmax.xlane.f32.xlu0 %v6389_v31 }
 0x32b   : > { %1738 = vmax.xlane.f32.xlu1 %v6397_v32 }
 0x32e   : > { %v4475_v26 = vpop.f32.mrf.mxu1 }
 0x32f   : > { %v6405_v23 = vadd.f32 %v4475_v26, %v6299_v54 }
 0x330   : > { %v1661_v38 = vpop.f32.mrf.mxu1 }
 0x331   : > { %v6401_v12 = vadd.f32 %v6299_v54, %v1661_v38 }
 0x332   : > { %v4476_v60 = vpop.f32.mrf.mxu1 }
 0x333   : > { %1740 = vmax.xlane.f32.xlu0 %v6401_v12  ;;  %v6413_v41 = vadd.f32 %v4476_v60, %v6299_v54 }
 0x334   : > { %v1664_v1 = vpop.f32.mrf.mxu1 }
 0x335   : > { %v6408_v40 = vadd.f32 %v6299_v54, %v1664_v1 }
 0x337   : > { %1742 = vmax.xlane.f32.xlu1 %v6408_v40  ;;  %1744 = vmax.xlane.f32.xlu0 %v6405_v23 }
 0x33b   : > { %1746 = vmax.xlane.f32.xlu1 %v6413_v41 }
 0x33e   : > { %v4479_v47 = vpop.f32.mrf.mxu1 }
 0x33f   : > { %v6421_v18 = vadd.f32 %v4479_v47, %v6299_v54 }
 0x340   : > { %v1677_v17 = vpop.f32.mrf.mxu1 }
 0x341   : > { %v6417_v48 = vadd.f32 %v6299_v54, %v1677_v17 }
 0x342   : > { %v4480_v56 = vpop.f32.mrf.mxu1 }
 0x343   : > { %1748 = vmax.xlane.f32.xlu0 %v6417_v48  ;;  %v6429_v29 = vadd.f32 %v4480_v56, %v6299_v54  ;;  %v4842_v56 = vld [vmem:[#allocation10 + $0x38] sm:$0xff]  }
 0x344   : > { %v1680_v57 = vpop.f32.mrf.mxu1  ;;  %4529 = vmatprep.subr.bf16.mxu1 %v4842_v56 }
 0x345   : > { %v6424_v49 = vadd.f32 %v6299_v54, %v1680_v57  ;;  %4530 = vmatpush3.bf16.msra.mxu1 %v4842_v56  ;;  %v4847_v56 = vld [vmem:[#allocation10 + $0x10] sm:$0xff]  }
 0x347   : > { %1750 = vmax.xlane.f32.xlu1 %v6424_v49  ;;  %1752 = vmax.xlane.f32.xlu0 %v6421_v18 }
 0x34b   : > { %1754 = vmax.xlane.f32.xlu1 %v6429_v29 }
 0x35c   : > { %v1693_v9 = vpop.xlane.xlu0 %1692 }
 0x35d   : > { %v1756_v24 = vsub.f32 %v6302_v61, %v1693_v9 }
 0x35f   : > { %v1788_v58 = vmul.f32 1.442695, %v1756_v24 }
 0x360   : > { %v1695_v19 = vpop.xlane.xlu1 %1694  ;;  %v1697_v46 = vpop.xlane.xlu0 %1696 }
 0x361   : > { %4930 = vpow2.f32 %v1788_v58  ;;  %v1757_v16 = vsub.f32 %v6309_v63, %v1695_v19  ;;  %v1758_v14 = vsub.f32 %v6306_v10, %v1697_v46 }
 0x363   : > { %v1790_v50 = vmul.f32 1.442695, %v1757_v16  ;;  %v1792_v42 = vmul.f32 1.442695, %v1758_v14  ;;  %v4843_v14 = vld [vmem:[#allocation10 + $0x30] sm:$0xff]  }
 0x364   : > { %v1699_v25 = vpop.xlane.xlu1 %1698  ;;  %4531 = vmatprep.subr.bf16.mxu1 %v4843_v14 }
 0x365   : > { %4932 = vpow2.f32 %v1790_v50  ;;  %v1759_v54 = vsub.f32 %v6314_v8, %v1699_v25  ;;  %4532 = vmatpush3.bf16.msra.mxu1 %v4843_v14 }
 0x366   : > { %4934 = vpow2.f32 %v1792_v42 }
 0x367   : > { %v1794_v51 = vmul.f32 1.442695, %v1759_v54 }
 0x369   : > { %4936 = vpow2.f32 %v1794_v51 }
 0x36c   : > { %v1701_v15 = vpop.xlane.xlu0 %1700 }
 0x36d   : > { %v1760_v61 = vsub.f32 %v6318_v34, %v1701_v15 }
 0x36e   : > { %v4931_v11 = vpop.eup %4930 }
 0x36f   : > { %v1796_v21 = vmul.f32 1.442695, %v1760_v61  ;;  %1852 = vadd.xlane.f32.xlu0 %v4931_v11 }
 0x370   : > { %v1703_v4 = vpop.xlane.xlu1 %1702  ;;  %v1705_v37 = vpop.xlane.xlu0 %1704 }
 0x371   : > { %4938 = vpow2.f32 %v1796_v21  ;;  %v1761_v10 = vsub.f32 %v6326_v59, %v1703_v4  ;;  %v1762_v63 = vsub.f32 %v6323_v3, %v1705_v37 }
 0x372   : > { %v4933_v0 = vpop.eup %4932 }
 0x373   : > { %v4935_v30 = vpop.eup %4934  ;;  %v1798_v39 = vmul.f32 1.442695, %v1761_v10  ;;  %v1800_v8 = vmul.f32 1.442695, %v1762_v63  ;;  %1854 = vadd.xlane.f32.xlu1 %v4933_v0  ;;  %v1916_v53 = vpack.c.bf16 %v4933_v0, %v4931_v11  ;;  %v4844_v11 = vld [vmem:[#allocation10 + $0x28] sm:$0xff]  }
 0x374   : > { %1856 = vadd.xlane.f32.xlu0 %v4935_v30  ;;  %v1707_v55 = vpop.xlane.xlu1 %1706  ;;  %4533 = vmatprep.subr.bf16.mxu1 %v4844_v11 }
 0x375   : > { %4940 = vpow2.f32 %v1798_v39  ;;  %v1763_v34 = vsub.f32 %v6331_v20, %v1707_v55  ;;  %4497 = vmatprep.mubr.bf16.mxu0 %v1916_v53  ;;  %4534 = vmatpush3.bf16.msra.mxu1 %v4844_v11  ;;  %v4845_v39 = vld [vmem:[#allocation10 + $0x20] sm:$0xff]  }
 0x376   : > { %v4937_v44 = vpop.eup %4936  ;;  %4942 = vpow2.f32 %v1800_v8  ;;  %4535 = vmatprep.subr.bf16.mxu1 %v4845_v39 }
 0x377   : > { %v1802_v62 = vmul.f32 1.442695, %v1763_v34  ;;  %1858 = vadd.xlane.f32.xlu1 %v4937_v44  ;;  %v1917_v26 = vpack.c.bf16 %v4937_v44, %v4935_v30 }
 0x379   : > { %4944 = vpow2.f32 %v1802_v62  ;;  %4498 = vmatmul.mubr.bf16.vlgmr.msra.gmra.mxu0 %v1917_v26  ;;  %4536 = vmatpush3.bf16.msra.mxu1 %v4845_v39 }
 0x37c   : > { %v1709_v3 = vpop.xlane.xlu0 %1708 }
 0x37d   : > { %v1764_v59 = vsub.f32 %v6336_v33, %v1709_v3  ;;  %v4846_v3 = vld [vmem:[#allocation10 + $0x18] sm:$0xff]  }
 0x37e   : > { %v4939_v38 = vpop.eup %4938  ;;  %4537 = vmatprep.subr.bf16.mxu1 %v4846_v3 }
 0x37f   : > { %v1804_v60 = vmul.f32 1.442695, %v1764_v59  ;;  %1860 = vadd.xlane.f32.xlu0 %v4939_v38  ;;  %4538 = vmatpush3.bf16.msra.mxu1 %v4846_v3 }
 0x380   : > { %v1711_v1 = vpop.xlane.xlu1 %1710  ;;  %v1713_v47 = vpop.xlane.xlu0 %1712  ;;  %4539 = vmatprep.subr.bf16.mxu1 %v4847_v56 }
 0x381   : > { %4946 = vpow2.f32 %v1804_v60  ;;  %v1765_v17 = vsub.f32 %v6344_v35, %v1711_v1  ;;  %v1766_v20 = vsub.f32 %v6341_v36, %v1713_v47 }
 0x382   : > { %v4941_v57 = vpop.eup %4940 }
 0x383   : > { %v4943_v9 = vpop.eup %4942  ;;  %v1806_v24 = vmul.f32 1.442695, %v1765_v17  ;;  %v1808_v58 = vmul.f32 1.442695, %v1766_v20  ;;  %1862 = vadd.xlane.f32.xlu1 %v4941_v57  ;;  %v1918_v19 = vpack.c.bf16 %v4941_v57, %v4939_v38  ;;  %4540 = vmatpush3.bf16.msra.mxu1 %v4847_v56 }
 0x384   : > { %1864 = vadd.xlane.f32.xlu0 %v4943_v9  ;;  %v1715_v33 = vpop.xlane.xlu1 %1714 }
 0x385   : > { %4948 = vpow2.f32 %v1806_v24  ;;  %v1767_v46 = vsub.f32 %v6349_v52, %v1715_v33  ;;  %4501 = vmatprep.mubr.bf16.mxu0 %v1918_v19 }
 0x386   : > { %v4945_v16 = vpop.eup %4944  ;;  %4950 = vpow2.f32 %v1808_v58 }
 0x387   : > { %v1810_v35 = vmul.f32 1.442695, %v1767_v46  ;;  %1866 = vadd.xlane.f32.xlu1 %v4945_v16  ;;  %v1919_v36 = vpack.c.bf16 %v4945_v16, %v4943_v9  ;;  %v4848_v16 = vld [vmem:[#allocation10 + $0x8] sm:$0xff]  }
 0x388   : > { %4541 = vmatprep.subr.bf16.mxu1 %v4848_v16 }
 0x389   : > { %4952 = vpow2.f32 %v1810_v35  ;;  %4502 = vmatmul.mubr.bf16.gmra.mxu0 %v1919_v36  ;;  %4542 = vmatpush3.bf16.msra.mxu1 %v4848_v16 }
 0x38c   : > { %v1717_v50 = vpop.xlane.xlu0 %1716 }
 0x38d   : > { %v1768_v42 = vsub.f32 %v6353_v27, %v1717_v50 }
 0x38e   : > { %v4947_v25 = vpop.eup %4946 }
 0x38f   : > { %v1812_v54 = vmul.f32 1.442695, %v1768_v42  ;;  %1868 = vadd.xlane.f32.xlu0 %v4947_v25 }
 0x390   : > { %v1719_v51 = vpop.xlane.xlu1 %1718  ;;  %v1721_v15 = vpop.xlane.xlu0 %1720 }
 0x391   : > { %4954 = vpow2.f32 %v1812_v54  ;;  %v1769_v52 = vsub.f32 %v6360_v5, %v1719_v51  ;;  %v1770_v61 = vsub.f32 %v6357_v43, %v1721_v15 }
 0x392   : > { %v4949_v21 = vpop.eup %4948 }
 0x393   : > { %v4951_v4 = vpop.eup %4950  ;;  %v1814_v37 = vmul.f32 1.442695, %v1769_v52  ;;  %v1816_v10 = vmul.f32 1.442695, %v1770_v61  ;;  %1870 = vadd.xlane.f32.xlu1 %v4949_v21  ;;  %v1920_v63 = vpack.c.bf16 %v4949_v21, %v4947_v25  ;;  %v4849_v52 = vld [vmem:[#allocation10] sm:$0xff]  }
 0x394   : > { %1872 = vadd.xlane.f32.xlu0 %v4951_v4  ;;  %v1723_v27 = vpop.xlane.xlu1 %1722  ;;  %4543 = vmatprep.subr.bf16.mxu1 %v4849_v52 }
 0x395   : > { %4956 = vpow2.f32 %v1814_v37  ;;  %v1771_v0 = vsub.f32 %v6365_v13, %v1723_v27  ;;  %4505 = vmatprep.mubr.bf16.mxu0 %v1920_v63  ;;  %4544 = vmatpush3.bf16.msra.mxu1 %v4849_v52 }
 0x396   : > { %v4953_v30 = vpop.eup %4952  ;;  %4958 = vpow2.f32 %v1816_v10 }
 0x397   : > { %v1818_v5 = vmul.f32 1.442695, %v1771_v0  ;;  %1874 = vadd.xlane.f32.xlu1 %v4953_v30  ;;  %v1921_v43 = vpack.c.bf16 %v4953_v30, %v4951_v4 }
 0x399   : > { %4960 = vpow2.f32 %v1818_v5  ;;  %4506 = vmatmul.mubr.bf16.gmra.mxu0 %v1921_v43 }
 0x39c   : > { %v1725_v8 = vpop.xlane.xlu0 %1724 }
 0x39d   : > { %v1772_v53 = vsub.f32 %v6369_v6, %v1725_v8 }
 0x39e   : > { %v4955_v55 = vpop.eup %4954 }
 0x39f   : > { %v1820_v34 = vmul.f32 1.442695, %v1772_v53  ;;  %1876 = vadd.xlane.f32.xlu0 %v4955_v55 }
 0x3a0   : > { %v1727_v44 = vpop.xlane.xlu1 %1726  ;;  %v1729_v62 = vpop.xlane.xlu0 %1728 }
 0x3a1   : > { %4962 = vpow2.f32 %v1820_v34  ;;  %v1773_v13 = vsub.f32 %v6376_v2, %v1727_v44  ;;  %v1774_v26 = vsub.f32 %v6373_v7, %v1729_v62 }
 0x3a2   : > { %v4957_v59 = vpop.eup %4956 }
 0x3a3   : > { %v4959_v38 = vpop.eup %4958  ;;  %v1822_v60 = vmul.f32 1.442695, %v1773_v13  ;;  %v1824_v1 = vmul.f32 1.442695, %v1774_v26  ;;  %1878 = vadd.xlane.f32.xlu1 %v4957_v59  ;;  %v1922_v47 = vpack.c.bf16 %v4957_v59, %v4955_v55 }
 0x3a4   : > { %1880 = vadd.xlane.f32.xlu0 %v4959_v38  ;;  %v1731_v6 = vpop.xlane.xlu1 %1730 }
 0x3a5   : > { %4964 = vpow2.f32 %v1822_v60  ;;  %v1775_v17 = vsub.f32 %v6381_v45, %v1731_v6  ;;  %4509 = vmatprep.mubr.bf16.mxu0 %v1922_v47 }
 0x3a6   : > { %v4961_v20 = vpop.eup %4960  ;;  %4966 = vpow2.f32 %v1824_v1 }
 0x3a7   : > { %v1826_v2 = vmul.f32 1.442695, %v1775_v17  ;;  %1882 = vadd.xlane.f32.xlu1 %v4961_v20  ;;  %v1923_v7 = vpack.c.bf16 %v4961_v20, %v4959_v38 }
 0x3a9   : > { %4968 = vpow2.f32 %v1826_v2  ;;  %4510 = vmatmul.mubr.bf16.gmra.mxu0 %v1923_v7 }
 0x3ac   : > { %v1733_v57 = vpop.xlane.xlu0 %1732 }
 0x3ad   : > { %v1776_v9 = vsub.f32 %v6385_v22, %v1733_v57 }
 0x3ae   : > { %v4963_v24 = vpop.eup %4962 }
 0x3af   : > { %v1828_v58 = vmul.f32 1.442695, %v1776_v9  ;;  %1884 = vadd.xlane.f32.xlu0 %v4963_v24 }
 0x3b0   : > { %v1735_v19 = vpop.xlane.xlu1 %1734  ;;  %v1737_v33 = vpop.xlane.xlu0 %1736 }
 0x3b1   : > { %4970 = vpow2.f32 %v1828_v58  ;;  %v1777_v45 = vsub.f32 %v6392_v28, %v1735_v19  ;;  %v1778_v46 = vsub.f32 %v6389_v31, %v1737_v33 }
 0x3b2   : > { %v4965_v35 = vpop.eup %4964 }
 0x3b3   : > { %v4967_v36 = vpop.eup %4966  ;;  %v1830_v14 = vmul.f32 1.442695, %v1777_v45  ;;  %v1832_v50 = vmul.f32 1.442695, %v1778_v46  ;;  %1886 = vadd.xlane.f32.xlu1 %v4965_v35  ;;  %v1924_v42 = vpack.c.bf16 %v4965_v35, %v4963_v24 }
 0x3b4   : > { %1888 = vadd.xlane.f32.xlu0 %v4967_v36  ;;  %v1739_v22 = vpop.xlane.xlu1 %1738 }
 0x3b5   : > { %4972 = vpow2.f32 %v1830_v14  ;;  %v1779_v25 = vsub.f32 %v6397_v32, %v1739_v22  ;;  %4513 = vmatprep.mubr.bf16.mxu0 %v1924_v42 }
 0x3b6   : > { %v4969_v54 = vpop.eup %4968  ;;  %4974 = vpow2.f32 %v1832_v50 }
 0x3b7   : > { %v1834_v28 = vmul.f32 1.442695, %v1779_v25  ;;  %1890 = vadd.xlane.f32.xlu1 %v4969_v54  ;;  %v1925_v31 = vpack.c.bf16 %v4969_v54, %v4967_v36 }
 0x3b9   : > { %4976 = vpow2.f32 %v1834_v28  ;;  %4514 = vmatmul.mubr.bf16.gmra.mxu0 %v1925_v31 }
 0x3bc   : > { %v1741_v51 = vpop.xlane.xlu0 %1740 }
 0x3bd   : > { %v1780_v15 = vsub.f32 %v6401_v12, %v1741_v51 }
 0x3be   : > { %v4971_v11 = vpop.eup %4970 }
 0x3bf   : > { %v1836_v61 = vmul.f32 1.442695, %v1780_v15  ;;  %1892 = vadd.xlane.f32.xlu0 %v4971_v11 }
 0x3c0   : > { %v1743_v21 = vpop.xlane.xlu1 %1742  ;;  %v1745_v4 = vpop.xlane.xlu0 %1744 }
 0x3c1   : > { %4978 = vpow2.f32 %v1836_v61  ;;  %v1781_v32 = vsub.f32 %v6408_v40, %v1743_v21  ;;  %v1782_v37 = vsub.f32 %v6405_v23, %v1745_v4 }
 0x3c2   : > { %v4973_v27 = vpop.eup %4972 }
 0x3c3   : > { %v1838_v10 = vmul.f32 1.442695, %v1781_v32  ;;  %v1840_v63 = vmul.f32 1.442695, %v1782_v37  ;;  %v4975_v30 = vpop.eup %4974  ;;  %1894 = vadd.xlane.f32.xlu1 %v4973_v27  ;;  %v1926_v5 = vpack.c.bf16 %v4973_v27, %v4971_v11 }
 0x3c4   : > { %v1747_v0 = vpop.xlane.xlu1 %1746  ;;  %1896 = vadd.xlane.f32.xlu0 %v4975_v30 }
 0x3c5   : > { %4980 = vpow2.f32 %v1838_v10  ;;  %v1783_v12 = vsub.f32 %v6413_v41, %v1747_v0  ;;  %4517 = vmatprep.mubr.bf16.mxu0 %v1926_v5 }
 0x3c6   : > { %4982 = vpow2.f32 %v1840_v63  ;;  %v4977_v39 = vpop.eup %4976 }
 0x3c7   : > { %v1842_v43 = vmul.f32 1.442695, %v1783_v12  ;;  %1898 = vadd.xlane.f32.xlu1 %v4977_v39  ;;  %v1927_v40 = vpack.c.bf16 %v4977_v39, %v4975_v30 }
 0x3c9   : > { %4984 = vpow2.f32 %v1842_v43  ;;  %4518 = vmatmul.mubr.bf16.gmra.mxu0 %v1927_v40 }
 0x3cc   : > { %v1749_v23 = vpop.xlane.xlu0 %1748 }
 0x3cd   : > { %v1784_v8 = vsub.f32 %v6417_v48, %v1749_v23 }
 0x3ce   : > { %v4979_v53 = vpop.eup %4978 }
 0x3cf   : > { %v1844_v55 = vmul.f32 1.442695, %v1784_v8  ;;  %1900 = vadd.xlane.f32.xlu0 %v4979_v53 }
 0x3d0   : > { %v1751_v34 = vpop.xlane.xlu1 %1750  ;;  %v1753_v44 = vpop.xlane.xlu0 %1752 }
 0x3d1   : > { %4986 = vpow2.f32 %v1844_v55  ;;  %v1785_v41 = vsub.f32 %v6424_v49, %v1751_v34  ;;  %v1786_v62 = vsub.f32 %v6421_v18, %v1753_v44 }
 0x3d2   : > { %v4981_v13 = vpop.eup %4980 }
 0x3d3   : > { %v4983_v26 = vpop.eup %4982  ;;  %v1846_v3 = vmul.f32 1.442695, %v1785_v41  ;;  %v1848_v59 = vmul.f32 1.442695, %v1786_v62  ;;  %1902 = vadd.xlane.f32.xlu1 %v4981_v13  ;;  %v1928_v38 = vpack.c.bf16 %v4981_v13, %v4979_v53 }
 0x3d4   : > { %1904 = vadd.xlane.f32.xlu0 %v4983_v26  ;;  %v1755_v60 = vpop.xlane.xlu1 %1754 }
 0x3d5   : > { %4988 = vpow2.f32 %v1846_v3  ;;  %v1787_v48 = vsub.f32 %v6429_v29, %v1755_v60  ;;  %4521 = vmatprep.mubr.bf16.mxu0 %v1928_v38 }
 0x3d6   : > { %v4985_v1 = vpop.eup %4984  ;;  %4990 = vpow2.f32 %v1848_v59 }
 0x3d7   : > { %v1850_v47 = vmul.f32 1.442695, %v1787_v48  ;;  %1906 = vadd.xlane.f32.xlu1 %v4985_v1  ;;  %v1929_v6 = vpack.c.bf16 %v4985_v1, %v4983_v26 }
 0x3d9   : > { %4992 = vpow2.f32 %v1850_v47  ;;  %4522 = vmatmul.mubr.bf16.gmra.mxu0 %v1929_v6 }
 0x3de   : > { %v4987_v18 = vpop.eup %4986 }
 0x3df   : > { %1908 = vadd.xlane.f32.xlu0 %v4987_v18 }
 0x3e2   : > { %v4989_v49 = vpop.eup %4988 }
 0x3e3   : > { %v4991_v17 = vpop.eup %4990  ;;  %1910 = vadd.xlane.f32.xlu1 %v4989_v49  ;;  %v1930_v20 = vpack.c.bf16 %v4989_v49, %v4987_v18 }
 0x3e4   : > { %1912 = vadd.xlane.f32.xlu0 %v4991_v17 }
 0x3e5   : > { %4525 = vmatprep.mubr.bf16.mxu0 %v1930_v20 }
 0x3e6   : > { %v4993_v2 = vpop.eup %4992 }
 0x3e7   : > { %1914 = vadd.xlane.f32.xlu1 %v4993_v2  ;;  %v1931_v7 = vpack.c.bf16 %v4993_v2, %v4991_v17 }
 0x3e9   : > { %4526 = vmatmul.mubr.bf16.gmra.mxu0 %v1931_v7 }
 0x3f8   : > { %v1853_v56 = vpop.xlane.xlu0 %1852 }
 0x3f9   : > { %4994 = vrcp.f32 %v1853_v56 }
 0x3fc   : > { %v1855_v29 = vpop.xlane.xlu1 %1854 }
 0x3fd   : > { %v1857_v9 = vpop.xlane.xlu0 %1856 }
 0x400   : > { %v1859_v57 = vpop.xlane.xlu1 %1858 }
 0x401   : > { %4996 = vrcp.f32 %v1859_v57 }
 0x402   : > { %4998 = vrcp.f32 %v1855_v29 }
 0x403   : > { %5000 = vrcp.f32 %v1857_v9 }
 0x406   : > { %v4995_v45 = vpop.eup %4994 }
 0x408   : > { %v1861_v19 = vpop.xlane.xlu0 %1860 }
 0x409   : > { %5002 = vrcp.f32 %v1861_v19 }
 0x40c   : > { %v1863_v24 = vpop.xlane.xlu1 %1862 }
 0x40d   : > { %v1865_v22 = vpop.xlane.xlu0 %1864 }
 0x40e   : > { %v4997_v16 = vpop.eup %4996 }
 0x40f   : > { %v4999_v36 = vpop.eup %4998 }
 0x410   : > { %v1867_v35 = vpop.xlane.xlu1 %1866  ;;  %v5001_v42 = vpop.eup %5000 }
 0x411   : > { %5004 = vrcp.f32 %v1867_v35 }
 0x412   : > { %5006 = vrcp.f32 %v1863_v24 }
 0x413   : > { %5008 = vrcp.f32 %v1865_v22 }
 0x416   : > { %v5003_v21 = vpop.eup %5002 }
 0x418   : > { %v1869_v61 = vpop.xlane.xlu0 %1868 }
 0x419   : > { %5010 = vrcp.f32 %v1869_v61 }
 0x41c   : > { %v1871_v15 = vpop.xlane.xlu1 %1870 }
 0x41d   : > { %v1873_v30 = vpop.xlane.xlu0 %1872 }
 0x41e   : > { %v5005_v32 = vpop.eup %5004 }
 0x41f   : > { %v5007_v10 = vpop.eup %5006 }
 0x420   : > { %v1875_v37 = vpop.xlane.xlu1 %1874  ;;  %v5009_v0 = vpop.eup %5008 }
 0x421   : > { %5012 = vrcp.f32 %v1875_v37 }
 0x422   : > { %5014 = vrcp.f32 %v1871_v15 }
 0x423   : > { %5016 = vrcp.f32 %v1873_v30 }
 0x426   : > { %v5011_v34 = vpop.eup %5010 }
 0x428   : > { %v1877_v53 = vpop.xlane.xlu0 %1876 }
 0x429   : > { %5018 = vrcp.f32 %v1877_v53 }
 0x42c   : > { %v1879_v23 = vpop.xlane.xlu1 %1878 }
 0x42d   : > { %v1881_v38 = vpop.xlane.xlu0 %1880 }
 0x42e   : > { %v5013_v41 = vpop.eup %5012 }
 0x42f   : > { %v5015_v13 = vpop.eup %5014 }
 0x430   : > { %v1883_v62 = vpop.xlane.xlu1 %1882  ;;  %v5017_v59 = vpop.eup %5016 }
 0x431   : > { %5020 = vrcp.f32 %v1883_v62 }
 0x432   : > { %5022 = vrcp.f32 %v1879_v23 }
 0x433   : > { %5024 = vrcp.f32 %v1881_v38 }
 0x436   : > { %v5019_v2 = vpop.eup %5018 }
 0x438   : > { %v1885_v17 = vpop.xlane.xlu0 %1884 }
 0x439   : > { %v4499_v58 = vpop.f32.mrf.mxu0  ;;  %5026 = vrcp.f32 %v1885_v17 }
 0x43a   : > { %v2175_v28 = vmul.f32 %v5001_v42, %v4499_v58 }
 0x43b   : > { %v2014_v33 = vpop.f32.mrf.mxu0 }
 0x43c   : > { %v2173_v25 = vmul.f32 %v4995_v45, %v2014_v33  ;;  %v1887_v18 = vpop.xlane.xlu1 %1886 }
 0x43d   : > { %v4500_v46 = vpop.f32.mrf.mxu0  ;;  %v1889_v19 = vpop.xlane.xlu0 %1888 }
 0x43e   : > { %v2176_v14 = vmul.f32 %v4997_v16, %v4500_v46  ;;  %v5021_v29 = vpop.eup %5020 }
 0x43f   : > { %v2017_v50 = vpop.f32.mrf.mxu0  ;;  %v5023_v57 = vpop.eup %5022 }
 0x440   : > { %v2174_v54 = vmul.f32 %v4999_v36, %v2017_v50  ;;  %v2222_v51 = vpack.c.bf16 %v2176_v14, %v2175_v28  ;;  %v1891_v56 = vpop.xlane.xlu1 %1890  ;;  %v5025_v58 = vpop.eup %5024 }
 0x441   : > { %5028 = vrcp.f32 %v1891_v56 }
 0x442   : > { %v2221_v31 = vpack.c.bf16 %v2174_v54, %v2173_v25  ;;  %5030 = vrcp.f32 %v1887_v18 }
 0x443   : > { %5032 = vrcp.f32 %v1889_v19 }
 0x444   : > { %4545 = vmatprep.mubr.bf16.mxu1 %v2221_v31 }
 0x445   : > { %4546 = vmatmul.mubr.bf16.vlgmr.msra.gmra.mxu1 %v2222_v51 }
 0x446   : > { %v5027_v22 = vpop.eup %5026 }
 0x448   : > { %v1893_v50 = vpop.xlane.xlu0 %1892 }
 0x449   : > { %v4503_v52 = vpop.f32.mrf.mxu0  ;;  %5034 = vrcp.f32 %v1893_v50 }
 0x44a   : > { %v2179_v43 = vmul.f32 %v5009_v0, %v4503_v52 }
 0x44b   : > { %v2030_v11 = vpop.f32.mrf.mxu0 }
 0x44c   : > { %v2177_v12 = vmul.f32 %v5003_v21, %v2030_v11  ;;  %v1895_v36 = vpop.xlane.xlu1 %1894 }
 0x44d   : > { %v4504_v4 = vpop.f32.mrf.mxu0  ;;  %v1897_v61 = vpop.xlane.xlu0 %1896 }
 0x44e   : > { %v2180_v63 = vmul.f32 %v5005_v32, %v4504_v4  ;;  %v5029_v54 = vpop.eup %5028 }
 0x44f   : > { %v2033_v27 = vpop.f32.mrf.mxu0  ;;  %v5031_v31 = vpop.eup %5030 }
 0x450   : > { %v2178_v5 = vmul.f32 %v5007_v10, %v2033_v27  ;;  %v2224_v40 = vpack.c.bf16 %v2180_v63, %v2179_v43  ;;  %v1899_v28 = vpop.xlane.xlu1 %1898  ;;  %v5033_v52 = vpop.eup %5032 }
 0x451   : > { %5036 = vrcp.f32 %v1899_v28 }
 0x452   : > { %v2223_v39 = vpack.c.bf16 %v2178_v5, %v2177_v12  ;;  %5038 = vrcp.f32 %v1895_v36 }
 0x453   : > { %5040 = vrcp.f32 %v1897_v61 }
 0x454   : > { %4549 = vmatprep.mubr.bf16.mxu1 %v2223_v39 }
 0x455   : > { %4550 = vmatmul.mubr.bf16.gmra.mxu1 %v2224_v40 }
 0x456   : > { %v5035_v12 = vpop.eup %5034 }
 0x458   : > { %v1901_v63 = vpop.xlane.xlu0 %1900 }
 0x459   : > { %v4507_v8 = vpop.f32.mrf.mxu0  ;;  %5042 = vrcp.f32 %v1901_v63  ;;  %v5189_v63 = vld [vmem:[%s5771_s27 + $0x8] sm:$0xff] }
 0x45a   : > { %v2183_v1 = vmul.f32 %v5017_v59, %v4507_v8 }
 0x45b   : > { %v2046_v55 = vpop.f32.mrf.mxu0 }
 0x45c   : > { %v2181_v60 = vmul.f32 %v5011_v34, %v2046_v55  ;;  %v1903_v10 = vpop.xlane.xlu1 %1902 }
 0x45d   : > { %v4508_v44 = vpop.f32.mrf.mxu0  ;;  %v1905_v39 = vpop.xlane.xlu0 %1904 }
 0x45e   : > { %v2184_v26 = vmul.f32 %v5013_v41, %v4508_v44  ;;  %v5037_v43 = vpop.eup %5036 }
 0x45f   : > { %v2049_v3 = vpop.f32.mrf.mxu0  ;;  %v5039_v40 = vpop.eup %5038 }
 0x460   : > { %v2182_v48 = vmul.f32 %v5015_v13, %v2049_v3  ;;  %v2226_v6 = vpack.c.bf16 %v2184_v26, %v2183_v1  ;;  %v1907_v30 = vpop.xlane.xlu1 %1906  ;;  %v5041_v53 = vpop.eup %5040 }
 0x461   : > { %5044 = vrcp.f32 %v1907_v30 }
 0x462   : > { %v2225_v47 = vpack.c.bf16 %v2182_v48, %v2181_v60  ;;  %5046 = vrcp.f32 %v1903_v10 }
 0x463   : > { %5048 = vrcp.f32 %v1905_v39 }
 0x464   : > { %4553 = vmatprep.mubr.bf16.mxu1 %v2225_v47 }
 0x465   : > { %4554 = vmatmul.mubr.bf16.gmra.mxu1 %v2226_v6 }
 0x466   : > { %v5043_v38 = vpop.eup %5042 }
 0x468   : > { %v1909_v3 = vpop.xlane.xlu0 %1908 }
 0x469   : > { %v4511_v49 = vpop.f32.mrf.mxu0  ;;  %5050 = vrcp.f32 %v1909_v3 }
 0x46a   : > { %v2187_v46 = vmul.f32 %v5025_v58, %v4511_v49 }
 0x46b   : > { %v2062_v20 = vpop.f32.mrf.mxu0 }
 0x46c   : > { %v2185_v33 = vmul.f32 %v5019_v2, %v2062_v20  ;;  %v1911_v13 = vpop.xlane.xlu1 %1910 }
 0x46d   : > { %v4512_v7 = vpop.f32.mrf.mxu0  ;;  %v1913_v17 = vpop.xlane.xlu0 %1912 }
 0x46e   : > { %v2188_v9 = vmul.f32 %v5021_v29, %v4512_v7  ;;  %v5045_v48 = vpop.eup %5044 }
 0x46f   : > { %v2065_v24 = vpop.f32.mrf.mxu0  ;;  %v5047_v47 = vpop.eup %5046 }
 0x470   : > { %v2186_v45 = vmul.f32 %v5023_v57, %v2065_v24  ;;  %v2228_v35 = vpack.c.bf16 %v2188_v9, %v2187_v46  ;;  %v1915_v1 = vpop.xlane.xlu1 %1914  ;;  %v5049_v49 = vpop.eup %5048 }
 0x471   : > { %5052 = vrcp.f32 %v1915_v1 }
 0x472   : > { %v2227_v16 = vpack.c.bf16 %v2186_v45, %v2185_v33  ;;  %5054 = vrcp.f32 %v1911_v13  ;;  %v5192_v13 = vld [vmem:[%s5771_s27 + $0x38] sm:$0xff] }
 0x473   : > { %5056 = vrcp.f32 %v1913_v17 }
 0x474   : > { %4557 = vmatprep.mubr.bf16.mxu1 %v2227_v16 }
 0x475   : > { %4558 = vmatmul.mubr.bf16.gmra.mxu1 %v2228_v35 }
 0x476   : > { %v5051_v24 = vpop.eup %5050 }
 0x479   : > { %v4515_v14 = vpop.f32.mrf.mxu0 }
 0x47a   : > { %v2191_v4 = vmul.f32 %v5033_v52, %v4515_v14 }
 0x47b   : > { %v2078_v42 = vpop.f32.mrf.mxu0 }
 0x47c   : > { %v2189_v11 = vmul.f32 %v5027_v22, %v2078_v42  ;;  %v6467_v22 = vld [vmem:[%s7138_s9] ss:$0 sm:$0xff] }
 0x47d   : > { %v4516_v25 = vpop.f32.mrf.mxu0 }
 0x47e   : > { %v2192_v51 = vmul.f32 %v5029_v54, %v4516_v25  ;;  %v5053_v19 = vpop.eup %5052 }
 0x47f   : > { %v2081_v15 = vpop.f32.mrf.mxu0  ;;  %v5055_v33 = vpop.eup %5054 }
 0x480   : > { %v2190_v21 = vmul.f32 %v5031_v31, %v2081_v15  ;;  %v2230_v37 = vpack.c.bf16 %v2192_v51, %v2191_v4  ;;  %v5057_v16 = vpop.eup %5056  ;;  %v5186_v31 = vld [vmem:[%s5771_s27 + $0x10] sm:$0xff] }
 0x482   : > { %v2229_v32 = vpack.c.bf16 %v2190_v21, %v2189_v11  ;;  %v5187_v21 = vld [vmem:[%s5771_s27] sm:$0xff] }
 0x484   : > { %4561 = vmatprep.mubr.bf16.mxu1 %v2229_v32  ;;  %v5188_v32 = vld [vmem:[%s5771_s27 + $0x18] sm:$0xff] }
 0x485   : > { %4562 = vmatmul.mubr.bf16.gmra.mxu1 %v2230_v37 }
 0x489   : > { %v4519_v27 = vpop.f32.mrf.mxu0 }
 0x48a   : > { %v2195_v44 = vmul.f32 %v5041_v53, %v4519_v27 }
 0x48b   : > { %v2094_v0 = vpop.f32.mrf.mxu0 }
 0x48c   : > { %v2193_v55 = vmul.f32 %v5035_v12, %v2094_v0 }
 0x48d   : > { %v4520_v5 = vpop.f32.mrf.mxu0 }
 0x48e   : > { %v2196_v23 = vmul.f32 %v5037_v43, %v4520_v5 }
 0x48f   : > { %v2097_v8 = vpop.f32.mrf.mxu0 }
 0x490   : > { %v2194_v34 = vmul.f32 %v5039_v40, %v2097_v8  ;;  %v2232_v62 = vpack.c.bf16 %v2196_v23, %v2195_v44  ;;  %v5190_v40 = vld [vmem:[%s5771_s27 + $0x30] sm:$0xff] }
 0x492   : > { %v2231_v41 = vpack.c.bf16 %v2194_v34, %v2193_v55 }
 0x494   : > { %4565 = vmatprep.mubr.bf16.mxu1 %v2231_v41  ;;  %v5191_v41 = vld [vmem:[%s5771_s27 + $0x20] sm:$0xff] }
 0x495   : > { %4566 = vmatmul.mubr.bf16.gmra.mxu1 %v2232_v62 }
 0x499   : > { %v4523_v26 = vpop.f32.mrf.mxu0 }
 0x49a   : > { %v2199_v7 = vmul.f32 %v5049_v49, %v4523_v26 }
 0x49b   : > { %v2110_v59 = vpop.f32.mrf.mxu0 }
 0x49c   : > { %v2197_v20 = vmul.f32 %v5043_v38, %v2110_v59  ;;  %v5193_v59 = vld [vmem:[%s5771_s27 + $0x28] sm:$0xff] }
 0x49d   : > { %v4524_v60 = vpop.f32.mrf.mxu0 }
 0x49e   : > { %v2200_v6 = vmul.f32 %v5045_v48, %v4524_v60  ;;  %v4850_v48 = vld [vmem:[#allocation11 + $0x38] sm:$0xff]  }
 0x49f   : > { %v2113_v18 = vpop.f32.mrf.mxu0  ;;  %4577 = vmatprep.subr.bf16.mxu0 %v4850_v48 }
 0x4a0   : > { %v2198_v2 = vmul.f32 %v5047_v47, %v2113_v18  ;;  %v2234_v56 = vpack.c.bf16 %v2200_v6, %v2199_v7  ;;  %4578 = vmatpush3.bf16.msra.mxu0 %v4850_v48  ;;  %v4851_v6 = vld [vmem:[#allocation11 + $0x30] sm:$0xff]  }
 0x4a1   : > { %4579 = vmatprep.subr.bf16.mxu0 %v4851_v6 }
 0x4a2   : > { %v2233_v29 = vpack.c.bf16 %v2198_v2, %v2197_v20  ;;  %v5194_v20 = vld [vmem:[%s5771_s27 + $0x50] sm:$0xff] }
 0x4a4   : > { %4569 = vmatprep.mubr.bf16.mxu1 %v2233_v29  ;;  %4580 = vmatpush3.bf16.msra.mxu0 %v4851_v6 }
 0x4a5   : > { %4570 = vmatmul.mubr.bf16.gmra.mxu1 %v2234_v56  ;;  %v4852_v56 = vld [vmem:[#allocation11 + $0x28] sm:$0xff]  }
 0x4a6   : > { %4581 = vmatprep.subr.bf16.mxu0 %v4852_v56 }
 0x4a8   : > { %4582 = vmatpush3.bf16.msra.mxu0 %v4852_v56  ;;  %v5205_v56 = vld [vmem:[%s5771_s27 + $0x88] sm:$0xff] }
 0x4a9   : > { %v4527_v57 = vpop.f32.mrf.mxu0 }
 0x4aa   : > { %v2203_v14 = vmul.f32 %v5057_v16, %v4527_v57  ;;  %v4853_v16 = vld [vmem:[#allocation11 + $0x20] sm:$0xff]  }
 0x4ab   : > { %v2126_v9 = vpop.f32.mrf.mxu0  ;;  %4583 = vmatprep.subr.bf16.mxu0 %v4853_v16 }
 0x4ac   : > { %v2201_v35 = vmul.f32 %v5051_v24, %v2126_v9  ;;  %4584 = vmatpush3.bf16.msra.mxu0 %v4853_v16 }
 0x4ad   : > { %v4528_v58 = vpop.f32.mrf.mxu0 }
 0x4ae   : > { %v2204_v45 = vmul.f32 %v5053_v19, %v4528_v58  ;;  %v5195_v58 = vld [vmem:[%s5771_s27 + $0x40] sm:$0xff] }
 0x4af   : > { %v2129_v46 = vpop.f32.mrf.mxu0 }
 0x4b0   : > { %v2202_v36 = vmul.f32 %v5055_v33, %v2129_v46  ;;  %v2236_v42 = vpack.c.bf16 %v2204_v45, %v2203_v14  ;;  %v5196_v33 = vld [vmem:[%s5771_s27 + $0x58] sm:$0xff] }
 0x4b2   : > { %v2235_v50 = vpack.c.bf16 %v2202_v36, %v2201_v35  ;;  %v5197_v35 = vld [vmem:[%s5771_s27 + $0x48] sm:$0xff] }
 0x4b4   : > { %4573 = vmatprep.mubr.bf16.mxu1 %v2235_v50  ;;  %v4854_v50 = vld [vmem:[#allocation11 + $0x18] sm:$0xff]  }
 0x4b5   : > { %4574 = vmatmul.mubr.bf16.gmra.mxu1 %v2236_v42  ;;  %4585 = vmatprep.subr.bf16.mxu0 %v4854_v50 }
 0x4b6   : > { %4586 = vmatpush3.bf16.msra.mxu0 %v4854_v50 }
 0x505   : > { %v4547_v25 = vpop.f32.mrf.mxu1 }
 0x506   : > { %v2335_v54 = vadd.f32 %v4547_v25, %v6467_v22 }
 0x507   : > { %v2326_v28 = vpop.f32.mrf.mxu1 }
 0x508   : > { %v6471_v51 = vadd.f32 %v5186_v31, %v2335_v54  ;;  %v2327_v15 = vadd.f32 %v6467_v22, %v2326_v28  ;;  %v4855_v54 = vld [vmem:[#allocation11 + $0x10] sm:$0xff]  }
 0x509   : > { %v4548_v52 = vpop.f32.mrf.mxu1  ;;  %4587 = vmatprep.subr.bf16.mxu0 %v4855_v54 }
 0x50a   : > { %v2338_v61 = vadd.f32 %v4548_v52, %v6467_v22  ;;  %2491 = vadd.xlane.f32.xlu0 %v6471_v51  ;;  %v6477_v4 = vadd.f32 %v5187_v21, %v2327_v15  ;;  %v2585_v0 = vmul.f32 %v6471_v51, %v6471_v51  ;;  %v5198_v52 = vld [vmem:[%s5771_s27 + $0x70] sm:$0xff]  ;;  %4588 = vmatpush3.bf16.msra.mxu0 %v4855_v54 }
 0x50b   : > { %v2329_v11 = vpop.f32.mrf.mxu1 }
 0x50c   : > { %v6480_v37 = vadd.f32 %v5188_v32, %v2338_v61  ;;  %v2330_v10 = vadd.f32 %v6467_v22, %v2329_v11  ;;  %v2583_v12 = vmul.f32 %v6477_v4, %v6477_v4  ;;  %v4856_v32 = vld [vmem:[#allocation11 + $0x8] sm:$0xff]  }
 0x50d   : > { %4589 = vmatprep.subr.bf16.mxu0 %v4856_v32 }
 0x50e   : > { %2493 = vadd.xlane.f32.xlu1 %v6480_v37  ;;  %2487 = vadd.xlane.f32.xlu0 %v6477_v4  ;;  %v6486_v27 = vadd.f32 %v5189_v63, %v2330_v10  ;;  %v2586_v30 = vmul.f32 %v6480_v37, %v6480_v37 }
 0x50f   : > { %4590 = vmatpush3.bf16.msra.mxu0 %v4856_v32  ;;  %v5209_v32 = vld [vmem:[%s5771_s27 + $0xa8] sm:$0xff] }
 0x510   : > { %v2584_v53 = vmul.f32 %v6486_v27, %v6486_v27 }
 0x512   : > { %2489 = vadd.xlane.f32.xlu1 %v6486_v27  ;;  %2619 = vadd.xlane.f32.xlu0 %v2585_v0 }
 0x515   : > { %v4551_v5 = vpop.f32.mrf.mxu1 }
 0x516   : > { %v2351_v43 = vadd.f32 %v4551_v5, %v6467_v22  ;;  %2621 = vadd.xlane.f32.xlu1 %v2586_v30  ;;  %2615 = vadd.xlane.f32.xlu0 %v2583_v12  ;;  %v5199_v30 = vld [vmem:[%s5771_s27 + $0x60] sm:$0xff]  ;;  %v5200_v5 = vld [vmem:[%s5771_s27 + $0x78] sm:$0xff] }
 0x517   : > { %v2342_v39 = vpop.f32.mrf.mxu1 }
 0x518   : > { %v6497_v23 = vadd.f32 %v5190_v40, %v2351_v43  ;;  %v2343_v8 = vadd.f32 %v6467_v22, %v2342_v39  ;;  %v4857_v40 = vld [vmem:[#allocation11] sm:$0xff]  }
 0x519   : > { %v4552_v55 = vpop.f32.mrf.mxu1  ;;  %4591 = vmatprep.subr.bf16.mxu0 %v4857_v40 }
 0x51a   : > { %v2354_v34 = vadd.f32 %v4552_v55, %v6467_v22  ;;  %2617 = vadd.xlane.f32.xlu1 %v2584_v53  ;;  %2499 = vadd.xlane.f32.xlu0 %v6497_v23  ;;  %v6505_v62 = vadd.f32 %v5191_v41, %v2343_v8  ;;  %v2589_v60 = vmul.f32 %v6497_v23, %v6497_v23  ;;  %v5201_v8 = vld [vmem:[%s5771_s27 + $0x68] sm:$0xff] }
 0x51b   : > { %v2345_v44 = vpop.f32.mrf.mxu1  ;;  %4592 = vmatpush3.bf16.msra.mxu0 %v4857_v40 }
 0x51c   : > { %7182 = vst [vmem:[#allocation22_spill] sm:$0xff] %v6505_v62  ;;  %v6508_v26 = vadd.f32 %v5192_v13, %v2354_v34  ;;  %v2346_v3 = vadd.f32 %v6467_v22, %v2345_v44  ;;  %v2587_v47 = vmul.f32 %v6505_v62, %v6505_v62 }
 0x51e   : > { %2501 = vadd.xlane.f32.xlu1 %v6508_v26  ;;  %2495 = vadd.xlane.f32.xlu0 %v6505_v62  ;;  %v6514_v38 = vadd.f32 %v5193_v59, %v2346_v3  ;;  %v2590_v1 = vmul.f32 %v6508_v26, %v6508_v26  ;;  %v5202_v59 = vld [vmem:[%s5771_s27 + $0x90] sm:$0xff] }
 0x520   : > { %v2588_v29 = vmul.f32 %v6514_v38, %v6514_v38 }
 0x522   : > { %2497 = vadd.xlane.f32.xlu1 %v6514_v38  ;;  %2627 = vadd.xlane.f32.xlu0 %v2589_v60 }
 0x525   : > { %v4555_v18 = vpop.f32.mrf.mxu1 }
 0x526   : > { %v2367_v49 = vadd.f32 %v4555_v18, %v6467_v22  ;;  %2629 = vadd.xlane.f32.xlu1 %v2590_v1  ;;  %2623 = vadd.xlane.f32.xlu0 %v2587_v47 }
 0x527   : > { %v2358_v17 = vpop.f32.mrf.mxu1 }
 0x528   : > { %v6525_v2 = vadd.f32 %v5194_v20, %v2367_v49  ;;  %v2359_v7 = vadd.f32 %v6467_v22, %v2358_v17  ;;  %v5203_v49 = vld [vmem:[%s5771_s27 + $0x80] sm:$0xff]  ;;  %v5204_v20 = vld [vmem:[%s5771_s27 + $0x98] sm:$0xff] }
 0x529   : > { %v4556_v57 = vpop.f32.mrf.mxu1 }
 0x52a   : > { %v2370_v9 = vadd.f32 %v4556_v57, %v6467_v22  ;;  %2625 = vadd.xlane.f32.xlu1 %v2588_v29  ;;  %2507 = vadd.xlane.f32.xlu0 %v6525_v2  ;;  %v6533_v19 = vadd.f32 %v5195_v58, %v2359_v7  ;;  %v2593_v14 = vmul.f32 %v6525_v2, %v6525_v2 }
 0x52b   : > { %v2361_v24 = vpop.f32.mrf.mxu1 }
 0x52c   : > { %v6536_v45 = vadd.f32 %v5196_v33, %v2370_v9  ;;  %v2362_v46 = vadd.f32 %v6467_v22, %v2361_v24  ;;  %v2591_v25 = vmul.f32 %v6533_v19, %v6533_v19 }
 0x52e   : > { %2509 = vadd.xlane.f32.xlu1 %v6536_v45  ;;  %2503 = vadd.xlane.f32.xlu0 %v6533_v19  ;;  %v6542_v36 = vadd.f32 %v5197_v35, %v2362_v46  ;;  %v2594_v42 = vmul.f32 %v6536_v45, %v6536_v45  ;;  %v5206_v35 = vld [vmem:[%s5771_s27 + $0xb0] sm:$0xff] }
 0x530   : > { %v2592_v21 = vmul.f32 %v6542_v36, %v6542_v36 }
 0x532   : > { %2505 = vadd.xlane.f32.xlu1 %v6542_v36  ;;  %2635 = vadd.xlane.f32.xlu0 %v2593_v14 }
 0x535   : > { %v4559_v28 = vpop.f32.mrf.mxu1 }
 0x536   : > { %v2383_v31 = vadd.f32 %v4559_v28, %v6467_v22  ;;  %2637 = vadd.xlane.f32.xlu1 %v2594_v42  ;;  %2631 = vadd.xlane.f32.xlu0 %v2591_v25 }
 0x537   : > { %v2374_v15 = vpop.f32.mrf.mxu1 }
 0x538   : > { %v6553_v61 = vadd.f32 %v5198_v52, %v2383_v31  ;;  %v2375_v11 = vadd.f32 %v6467_v22, %v2374_v15  ;;  %v5207_v31 = vld [vmem:[%s5771_s27 + $0xa0] sm:$0xff]  ;;  %v5208_v52 = vld [vmem:[%s5771_s27 + $0xb8] sm:$0xff] }
 0x539   : > { %v4560_v10 = vpop.f32.mrf.mxu1 }
 0x53a   : > { %v2386_v63 = vadd.f32 %v4560_v10, %v6467_v22  ;;  %2633 = vadd.xlane.f32.xlu1 %v2592_v21  ;;  %2515 = vadd.xlane.f32.xlu0 %v6553_v61  ;;  %v6561_v12 = vadd.f32 %v5199_v30, %v2375_v11  ;;  %v2597_v55 = vmul.f32 %v6553_v61, %v6553_v61 }
 0x53b   : > { %v2377_v0 = vpop.f32.mrf.mxu1 }
 0x53c   : > { %v6564_v43 = vadd.f32 %v5200_v5, %v2386_v63  ;;  %v2378_v39 = vadd.f32 %v6467_v22, %v2377_v0  ;;  %v2595_v44 = vmul.f32 %v6561_v12, %v6561_v12 }
 0x53e   : > { %2517 = vadd.xlane.f32.xlu1 %v6564_v43  ;;  %2511 = vadd.xlane.f32.xlu0 %v6561_v12  ;;  %v6570_v53 = vadd.f32 %v5201_v8, %v2378_v39  ;;  %v2598_v34 = vmul.f32 %v6564_v43, %v6564_v43  ;;  %v5210_v8 = vld [vmem:[%s5771_s27 + $0xd0] sm:$0xff] }
 0x540   : > { %v2596_v1 = vmul.f32 %v6570_v53, %v6570_v53 }
 0x542   : > { %2513 = vadd.xlane.f32.xlu1 %v6570_v53  ;;  %2643 = vadd.xlane.f32.xlu0 %v2597_v55 }
 0x545   : > { %v4563_v41 = vpop.f32.mrf.mxu1 }
 0x546   : > { %v2399_v13 = vadd.f32 %v4563_v41, %v6467_v22  ;;  %2645 = vadd.xlane.f32.xlu1 %v2598_v34  ;;  %2639 = vadd.xlane.f32.xlu0 %v2595_v44 }
 0x547   : > { %v2390_v3 = vpop.f32.mrf.mxu1 }
 0x548   : > { %v6581_v60 = vadd.f32 %v5202_v59, %v2399_v13  ;;  %v2391_v48 = vadd.f32 %v6467_v22, %v2390_v3  ;;  %v5211_v59 = vld [vmem:[%s5771_s27 + $0xd8] sm:$0xff] }
 0x549   : > { %v4564_v47 = vpop.f32.mrf.mxu1 }
 0x54a   : > { %v2402_v6 = vadd.f32 %v4564_v47, %v6467_v22  ;;  %2641 = vadd.xlane.f32.xlu1 %v2596_v1  ;;  %2523 = vadd.xlane.f32.xlu0 %v6581_v60  ;;  %v6589_v17 = vadd.f32 %v5203_v49, %v2391_v48  ;;  %v2601_v9 = vmul.f32 %v6581_v60, %v6581_v60  ;;  %v5212_v1 = vld [vmem:[%s5771_s27 + $0xc0] sm:$0xff] }
 0x54b   : > { %v2393_v18 = vpop.f32.mrf.mxu1 }
 0x54c   : > { %v6592_v7 = vadd.f32 %v5204_v20, %v2402_v6  ;;  %v2394_v29 = vadd.f32 %v6467_v22, %v2393_v18  ;;  %v2599_v58 = vmul.f32 %v6589_v17, %v6589_v17  ;;  %v5213_v18 = vld [vmem:[%s5771_s27 + $0xc8] sm:$0xff] }
 0x54e   : > { %2525 = vadd.xlane.f32.xlu1 %v6592_v7  ;;  %2519 = vadd.xlane.f32.xlu0 %v6589_v17  ;;  %v6598_v57 = vadd.f32 %v5205_v56, %v2394_v29  ;;  %v2602_v24 = vmul.f32 %v6592_v7, %v6592_v7 }
 0x550   : > { %v2600_v42 = vmul.f32 %v6598_v57, %v6598_v57 }
 0x552   : > { %2521 = vadd.xlane.f32.xlu1 %v6598_v57  ;;  %2651 = vadd.xlane.f32.xlu0 %v2601_v9 }
 0x555   : > { %v4567_v33 = vpop.f32.mrf.mxu1 }
 0x556   : > { %v2415_v46 = vadd.f32 %v4567_v33, %v6467_v22  ;;  %2653 = vadd.xlane.f32.xlu1 %v2602_v24  ;;  %2647 = vadd.xlane.f32.xlu0 %v2599_v58  ;;  %v5214_v33 = vld [vmem:[%s5771_s27 + $0xf0] sm:$0xff] }
 0x557   : > { %v2406_v16 = vpop.f32.mrf.mxu1 }
 0x558   : > { %v6609_v14 = vadd.f32 %v5206_v35, %v2415_v46  ;;  %v2407_v50 = vadd.f32 %v6467_v22, %v2406_v16 }
 0x559   : > { %v4568_v25 = vpop.f32.mrf.mxu1 }
 0x55a   : > { %v2418_v54 = vadd.f32 %v4568_v25, %v6467_v22  ;;  %2649 = vadd.xlane.f32.xlu1 %v2600_v42  ;;  %2531 = vadd.xlane.f32.xlu0 %v6609_v14  ;;  %v6617_v15 = vadd.f32 %v5207_v31, %v2407_v50  ;;  %v2605_v63 = vmul.f32 %v6609_v14, %v6609_v14  ;;  %v5216_v31 = vld [vmem:[%s5771_s27 + $0xe0] sm:$0xff] }
 0x55b   : > { %v2409_v28 = vpop.f32.mrf.mxu1 }
 0x55c   : > { %v6620_v11 = vadd.f32 %v5208_v52, %v2418_v54  ;;  %v2410_v21 = vadd.f32 %v6467_v22, %v2409_v28  ;;  %v2603_v39 = vmul.f32 %v6617_v15, %v6617_v15  ;;  %v5215_v54 = vld [vmem:[%s5771_s27 + $0xf8] sm:$0xff] }
 0x55e   : > { %2533 = vadd.xlane.f32.xlu1 %v6620_v11  ;;  %2527 = vadd.xlane.f32.xlu0 %v6617_v15  ;;  %v6626_v10 = vadd.f32 %v5209_v32, %v2410_v21  ;;  %v2606_v5 = vmul.f32 %v6620_v11, %v6620_v11  ;;  %v5217_v32 = vld [vmem:[%s5771_s27 + $0xe8] sm:$0xff]  ;;  %s5402_s27 = scalar_lea.vmem %s7079_s2, 2048 }
 0x55f   : > { %p5403_p1 = scmp.ne.s32.totalorder %s7079_s2, %s5402_s27 }
 0x560   : > { %v2604_v13 = vmul.f32 %v6626_v10, %v6626_v10 }
 0x561   : > { %p5404_p3 = pnand %p5403_p1, %p5737_p11 }
 0x562   : > { %2529 = vadd.xlane.f32.xlu1 %v6626_v10  ;;  %2659 = vadd.xlane.f32.xlu0 %v2605_v63 }
 0x563   : > { %p5405_p5 = pneg %p5404_p3 }
 0x565   : > { %v4571_v0 = vpop.f32.mrf.mxu1 }
 0x566   : > { %v2431_v30 = vadd.f32 %v4571_v0, %v6467_v22  ;;  %2661 = vadd.xlane.f32.xlu1 %v2606_v5  ;;  %2655 = vadd.xlane.f32.xlu0 %v2603_v39 }
 0x567   : > { %v2422_v40 = vpop.f32.mrf.mxu1 }
 0x568   : > { %v6637_v55 = vadd.f32 %v5210_v8, %v2431_v30  ;;  %v2423_v44 = vadd.f32 %v6467_v22, %v2422_v40 }
 0x569   : > { %v4572_v34 = vpop.f32.mrf.mxu1 }
 0x56a   : > { %v2434_v41 = vadd.f32 %v4572_v34, %v6467_v22  ;;  %2657 = vadd.xlane.f32.xlu1 %v2604_v13  ;;  %2539 = vadd.xlane.f32.xlu0 %v6637_v55  ;;  %v6648_v47 = vadd.f32 %v5212_v1, %v2423_v44  ;;  %v2609_v20 = vmul.f32 %v6637_v55, %v6637_v55 }
 0x56b   : > { %v2425_v3 = vpop.f32.mrf.mxu1 }
 0x56c   : > { %v6644_v48 = vadd.f32 %v5211_v59, %v2434_v41  ;;  %v2426_v6 = vadd.f32 %v6467_v22, %v2425_v3  ;;  %v2607_v24 = vmul.f32 %v6648_v47, %v6648_v47 }
 0x56e   : > { %2541 = vadd.xlane.f32.xlu1 %v6644_v48  ;;  %2535 = vadd.xlane.f32.xlu0 %v6648_v47  ;;  %v6654_v49 = vadd.f32 %v5213_v18, %v2426_v6  ;;  %v2610_v9 = vmul.f32 %v6644_v48, %v6644_v48 }
 0x570   : > { %v2608_v42 = vmul.f32 %v6654_v49, %v6654_v49 }
 0x572   : > { %2537 = vadd.xlane.f32.xlu1 %v6654_v49  ;;  %2667 = vadd.xlane.f32.xlu0 %v2609_v20 }
 0x575   : > { %v4575_v29 = vpop.f32.mrf.mxu1 }
 0x576   : > { %v2447_v56 = vadd.f32 %v4575_v29, %v6467_v22  ;;  %2669 = vadd.xlane.f32.xlu1 %v2610_v9  ;;  %2663 = vadd.xlane.f32.xlu0 %v2607_v24 }
 0x577   : > { %v2438_v58 = vpop.f32.mrf.mxu1 }
 0x578   : > { %v6665_v46 = vadd.f32 %v5214_v33, %v2447_v56  ;;  %v2439_v35 = vadd.f32 %v6467_v22, %v2438_v58 }
 0x579   : > { %v4576_v16 = vpop.f32.mrf.mxu1 }
 0x57a   : > { %v2450_v50 = vadd.f32 %v4576_v16, %v6467_v22  ;;  %2665 = vadd.xlane.f32.xlu1 %v2608_v42  ;;  %2547 = vadd.xlane.f32.xlu0 %v6665_v46  ;;  %v6676_v52 = vadd.f32 %v5216_v31, %v2439_v35  ;;  %v2613_v5 = vmul.f32 %v6665_v46, %v6665_v46 }
 0x57b   : > { %v2441_v25 = vpop.f32.mrf.mxu1 }
 0x57c   : > { %v6672_v28 = vadd.f32 %v5215_v54, %v2450_v50  ;;  %v2442_v21 = vadd.f32 %v6467_v22, %v2441_v25  ;;  %v2611_v0 = vmul.f32 %v6676_v52, %v6676_v52 }
 0x57e   : > { %2549 = vadd.xlane.f32.xlu1 %v6672_v28  ;;  %2543 = vadd.xlane.f32.xlu0 %v6676_v52  ;;  %v6682_v63 = vadd.f32 %v5217_v32, %v2442_v21  ;;  %v2614_v22 = vmul.f32 %v6672_v28, %v6672_v28 }
 0x580   : > { %v2612_v30 = vmul.f32 %v6682_v63, %v6682_v63 }
 0x582   : > { %2545 = vadd.xlane.f32.xlu1 %v6682_v63  ;;  %2671 = vadd.xlane.f32.xlu0 %v2611_v0 }
 0x586   : > { %2673 = vadd.xlane.f32.xlu1 %v2612_v30  ;;  %2675 = vadd.xlane.f32.xlu0 %v2613_v5 }
 0x58a   : > { %2677 = vadd.xlane.f32.xlu1 %v2614_v22 }
 0x593   : > { %v2492_v39 = vpop.xlane.xlu0 %2491 }
 0x594   : > { %v6693_v34 = vmul.f32 0.0078125, %v2492_v39 }
 0x596   : > { %v2713_v3 = vmul.f32 %v6693_v34, %v6693_v34 }
 0x597   : > { %v2494_v40 = vpop.xlane.xlu1 %2493  ;;  %v2488_v8 = vpop.xlane.xlu0 %2487 }
 0x598   : > { %v2554_v44 = vmul.f32 0.0078125, %v2494_v40  ;;  %v2551_v59 = vmul.f32 0.0078125, %v2488_v8 }
 0x59a   : > { %v2714_v18 = vmul.f32 %v2554_v44, %v2554_v44  ;;  %v2711_v56 = vmul.f32 %v2551_v59, %v2551_v59 }
 0x59b   : > { %v2490_v41 = vpop.xlane.xlu1 %2489  ;;  %v2620_v13 = vpop.xlane.xlu0 %2619 }
 0x59c   : > { %v2681_v1 = vmul.f32 0.0078125, %v2620_v13  ;;  %v6697_v9 = vmul.f32 0.0078125, %v2490_v41 }
 0x59e   : > { %v2745_v6 = vsub.f32 %v2681_v1, %v2713_v3  ;;  %v2712_v25 = vmul.f32 %v6697_v9, %v6697_v9 }
 0x59f   : > { %v2622_v20 = vpop.xlane.xlu1 %2621  ;;  %v2616_v29 = vpop.xlane.xlu0 %2615 }
 0x5a0   : > { %v2682_v24 = vmul.f32 0.0078125, %v2622_v20  ;;  %v2679_v58 = vmul.f32 0.0078125, %v2616_v29  ;;  %v2809_v33 = vadd.f32 1e-05, %v2745_v6 }
 0x5a2   : > { %v2746_v16 = vsub.f32 %v2682_v24, %v2714_v18  ;;  %v2743_v35 = vsub.f32 %v2679_v58, %v2711_v56  ;;  %5058 = vrsqrt.f32 %v2809_v33 }
 0x5a3   : > { %v2618_v50 = vpop.xlane.xlu1 %2617  ;;  %v2500_v42 = vpop.xlane.xlu0 %2499 }
 0x5a4   : > { %v2810_v54 = vadd.f32 1e-05, %v2746_v16  ;;  %v2807_v31 = vadd.f32 1e-05, %v2743_v35  ;;  %v2680_v21 = vmul.f32 0.0078125, %v2618_v50  ;;  %v6701_v22 = vmul.f32 0.0078125, %v2500_v42 }
 0x5a5   : > { %v2778_v35 = vsub.f32 %v6480_v37, %v2554_v44 }
 0x5a6   : > { %5060 = vrsqrt.f32 %v2810_v54  ;;  %v2744_v32 = vsub.f32 %v2680_v21, %v2712_v25  ;;  %v2717_v8 = vmul.f32 %v6701_v22, %v6701_v22  ;;  %v2777_v54 = vsub.f32 %v6471_v51, %v6693_v34 }
 0x5a7   : > { %5062 = vrsqrt.f32 %v2807_v31  ;;  %v2502_v0 = vpop.xlane.xlu1 %2501  ;;  %v2496_v30 = vpop.xlane.xlu0 %2495  ;;  %v2775_v31 = vsub.f32 %v6477_v4, %v2551_v59 }
 0x5a8   : > { %v2808_v5 = vadd.f32 1e-05, %v2744_v32  ;;  %v6705_v41 = vmul.f32 0.0078125, %v2502_v0  ;;  %v6707_v13 = vmul.f32 0.0078125, %v2496_v30 }
 0x5aa   : > { %5064 = vrsqrt.f32 %v2808_v5  ;;  %v2718_v29 = vmul.f32 %v6705_v41, %v6705_v41  ;;  %v2715_v56 = vmul.f32 %v6707_v13, %v6707_v13 }
 0x5ab   : > { %v2498_v39 = vpop.xlane.xlu1 %2497  ;;  %v2628_v40 = vpop.xlane.xlu0 %2627 }
 0x5ac   : > { %v2685_v3 = vmul.f32 0.0078125, %v2628_v40  ;;  %v6709_v6 = vmul.f32 0.0078125, %v2498_v39 }
 0x5ae   : > { %v2749_v1 = vsub.f32 %v2685_v3, %v2717_v8  ;;  %v2716_v21 = vmul.f32 %v6709_v6, %v6709_v6  ;;  %v2776_v3 = vsub.f32 %v6486_v27, %v6697_v9 }
 0x5af   : > { %v2630_v18 = vpop.xlane.xlu1 %2629  ;;  %v2624_v20 = vpop.xlane.xlu0 %2623 }
 0x5b0   : > { %v2686_v24 = vmul.f32 0.0078125, %v2630_v18  ;;  %v2683_v58 = vmul.f32 0.0078125, %v2624_v20  ;;  %v2813_v33 = vadd.f32 1e-05, %v2749_v1  ;;  %v5059_v16 = vpop.eup %5058 }
 0x5b1   : > { %v2873_v1 = vmul.f32 %v5059_v16, %v2777_v54  ;;  %v6740_v54 = vld [vmem:[%s7184_s12] ss:$0 sm:$0xff]  ;;  %s5406_s12 = sshll.u32 %s5507_s6, 4  ;;  %s5407_s12 = int_to_ptr.vmem [resolvable:$false] %s5406_s12 }
 0x5b2   : > { %v2750_v50 = vsub.f32 %v2686_v24, %v2718_v29  ;;  %v2747_v42 = vsub.f32 %v2683_v58, %v2715_v56  ;;  %5066 = vrsqrt.f32 %v2813_v33  ;;  %v6726_v29 = vld [vmem:[%s7183_s25] ss:$0 sm:$0xff]  ;;  %s7077_s25 = scalar_lea.hbm %s7188_s17, %s4145_s13  ;;  %s5408_s14 = scalar_lea.vmem %s5407_s12, 4096 }
 0x5b3   : > { %v5061_v25 = vpop.eup %5060  ;;  %v2626_v32 = vpop.xlane.xlu1 %2625  ;;  %v2911_v16 = vmul.f32 %v6726_v29, %v2873_v1  ;;  %p5409_p10 = scmp.lt.s32.totalorder %s7079_s2, %s5407_s12  ;;  %p5410_p0 = scmp.lt.s32.totalorder %s5408_s14, %s5402_s27 }
 0x5b4   : > { %v2508_v0 = vpop.xlane.xlu0 %2507  ;;  %v5063_v30 = vpop.eup %5062  ;;  %v2874_v5 = vmul.f32 %v5061_v25, %v2778_v35  ;;  %v2814_v39 = vadd.f32 1e-05, %v2750_v50  ;;  %v2811_v40 = vadd.f32 1e-05, %v2747_v42  ;;  %v2684_v8 = vmul.f32 0.0078125, %v2626_v32 }
 0x5b5   : > { %v2871_v44 = vmul.f32 %v5063_v30, %v2775_v31  ;;  %v6728_v24 = vmul.f32 0.0078125, %v2508_v0  ;;  %p5411_p7 = por %p5410_p0, %p5409_p10 }
 0x5b6   : > { %5068 = vrsqrt.f32 %v2814_v39  ;;  %v2748_v34 = vsub.f32 %v2684_v8, %v2716_v21  ;;  %v2912_v33 = vmul.f32 %v6726_v29, %v2874_v5 }
 0x5b7   : > { %v5065_v18 = vpop.eup %5064  ;;  %5070 = vrsqrt.f32 %v2811_v40  ;;  %v2510_v59 = vpop.xlane.xlu1 %2509  ;;  %v2909_v9 = vmul.f32 %v6726_v29, %v2871_v44  ;;  %v2721_v21 = vmul.f32 %v6728_v24, %v6728_v24  ;;  %v2949_v40 = vadd.f32 %v6740_v54, %v2911_v16  ;;  %p5412_p13 = pnand %p5411_p7, %p5405_p5 }
 0x5b8   : > { %v2504_v20 = vpop.xlane.xlu0 %2503  ;;  %v2812_v56 = vadd.f32 1e-05, %v2748_v34  ;;  %v2872_v58 = vmul.f32 %v5065_v18, %v2776_v3  ;;  %v6733_v35 = vmul.f32 0.0078125, %v2510_v59  ;;  %v2950_v0 = vadd.f32 %v6740_v54, %v2912_v33 }
 0x5b9   : > { %v6735_v50 = vmul.f32 0.0078125, %v2504_v20  ;;  %v2947_v30 = vadd.f32 %v6740_v54, %v2909_v9 }
 0x5ba   : > { %5072 = vrsqrt.f32 %v2812_v56  ;;  %v2910_v31 = vmul.f32 %v6726_v29, %v2872_v58  ;;  %v2722_v8 = vmul.f32 %v6733_v35, %v6733_v35  ;;  %v2996_v56 = vpack.c.bf16 %v2950_v0, %v2949_v40 }
 0x5bb   : > { %v2506_v42 = vpop.xlane.xlu1 %2505  ;;  %v2719_v44 = vmul.f32 %v6735_v50, %v6735_v50 }
 0x5bc   : > { %v2636_v25 = vpop.xlane.xlu0 %2635  ;;  %v2948_v5 = vadd.f32 %v6740_v54, %v2910_v31  ;;  %v6753_v18 = vmul.f32 0.0078125, %v2506_v42  ;;  %v2781_v31 = vsub.f32 %v6497_v23, %v6701_v22  ;;  %v2779_v42 = vsub.f32 %v6505_v62, %v6707_v13 }
 0x5bd   : > { %v2689_v32 = vmul.f32 0.0078125, %v2636_v25  ;;  %v2780_v22 = vsub.f32 %v6514_v38, %v6709_v6 }
 0x5be   : > { %v2995_v34 = vpack.c.bf16 %v2948_v5, %v2947_v30  ;;  %v2720_v0 = vmul.f32 %v6753_v18, %v6753_v18 }
 0x5bf   : > { %v2753_v39 = vsub.f32 %v2689_v32, %v2721_v21  ;;  %v2638_v3 = vpop.xlane.xlu1 %2637  ;;  %v5067_v33 = vpop.eup %5066  ;;  %v2782_v21 = vsub.f32 %v6508_v26, %v6705_v41 }
 0x5c0   : > { %v2632_v1 = vpop.xlane.xlu0 %2631  ;;  %v2690_v59 = vmul.f32 0.0078125, %v2638_v3  ;;  %4593 = vmatprep.mubr.bf16.mxu0 %v2995_v34 }
 0x5c1   : > { %v2687_v20 = vmul.f32 0.0078125, %v2632_v1  ;;  %v2817_v58 = vadd.f32 1e-05, %v2753_v39  ;;  %4594 = vmatmul.mubr.bf16.vlgmr.msra.gmra.mxu0 %v2996_v56  ;;  %v2877_v1 = vmul.f32 %v5067_v33, %v2781_v31 }
 0x5c2   : > { %v2754_v9 = vsub.f32 %v2690_v59, %v2722_v8 }
 0x5c3   : > { %v2751_v25 = vsub.f32 %v2687_v20, %v2719_v44  ;;  %v5069_v16 = vpop.eup %5068  ;;  %v2634_v32 = vpop.xlane.xlu1 %2633  ;;  %5074 = vrsqrt.f32 %v2817_v58 }
 0x5c4   : > { %v2516_v30 = vpop.xlane.xlu0 %2515  ;;  %v5071_v5 = vpop.eup %5070  ;;  %v2818_v39 = vadd.f32 1e-05, %v2754_v9  ;;  %v2688_v8 = vmul.f32 0.0078125, %v2634_v32  ;;  %v2878_v3 = vmul.f32 %v5069_v16, %v2782_v21 }
 0x5c5   : > { %v2815_v40 = vadd.f32 1e-05, %v2751_v25  ;;  %v2875_v44 = vmul.f32 %v5071_v5, %v2779_v42  ;;  %v6765_v56 = vmul.f32 0.0078125, %v2516_v30  ;;  %v2915_v25 = vmul.f32 %v6726_v29, %v2877_v1 }
 0x5c6   : > { %5076 = vrsqrt.f32 %v2818_v39  ;;  %v2752_v41 = vsub.f32 %v2688_v8, %v2720_v0  ;;  %v2916_v9 = vmul.f32 %v6726_v29, %v2878_v3 }
 0x5c7   : > { %v5073_v34 = vpop.eup %5072  ;;  %5078 = vrsqrt.f32 %v2815_v40  ;;  %v2518_v13 = vpop.xlane.xlu1 %2517  ;;  %v2913_v58 = vmul.f32 %v6726_v29, %v2875_v44  ;;  %v2725_v42 = vmul.f32 %v6765_v56, %v6765_v56  ;;  %v2953_v40 = vadd.f32 %v6740_v54, %v2915_v25 }
 0x5c8   : > { %v2512_v59 = vpop.xlane.xlu0 %2511  ;;  %v2816_v20 = vadd.f32 1e-05, %v2752_v41  ;;  %v2876_v62 = vmul.f32 %v5073_v34, %v2780_v22  ;;  %v6770_v16 = vmul.f32 0.0078125, %v2518_v13  ;;  %v2954_v30 = vadd.f32 %v6740_v54, %v2916_v9 }
 0x5c9   : > { %v6772_v6 = vmul.f32 0.0078125, %v2512_v59  ;;  %v2951_v5 = vadd.f32 %v6740_v54, %v2913_v58 }
 0x5ca   : > { %5080 = vrsqrt.f32 %v2816_v20  ;;  %v2914_v21 = vmul.f32 %v6726_v29, %v2876_v62  ;;  %v2726_v8 = vmul.f32 %v6770_v16, %v6770_v16  ;;  %v2998_v13 = vpack.c.bf16 %v2954_v30, %v2953_v40 }
 0x5cb   : > { %v2514_v33 = vpop.xlane.xlu1 %2513  ;;  %v2723_v44 = vmul.f32 %v6772_v6, %v6772_v6 }
 0x5cc   : > { %v2644_v31 = vpop.xlane.xlu0 %2643  ;;  %v2952_v0 = vadd.f32 %v6740_v54, %v2914_v21  ;;  %v6785_v41 = vmul.f32 0.0078125, %v2514_v33  ;;  %v2786_v21 = vsub.f32 %v6536_v45, %v6733_v35  ;;  %v2783_v33 = vsub.f32 %v6533_v19, %v6735_v50 }
 0x5cd   : > { %v2693_v32 = vmul.f32 0.0078125, %v2644_v31  ;;  %v2785_v31 = vsub.f32 %v6525_v2, %v6728_v24  ;;  %v2784_v24 = vsub.f32 %v6542_v36, %v6753_v18 }
 0x5ce   : > { %v2997_v22 = vpack.c.bf16 %v2952_v0, %v2951_v5  ;;  %v2724_v30 = vmul.f32 %v6785_v41, %v6785_v41 }
 0x5cf   : > { %v2757_v39 = vsub.f32 %v2693_v32, %v2725_v42  ;;  %v2646_v62 = vpop.xlane.xlu1 %2645 }
 0x5d0   : > { %v2640_v3 = vpop.xlane.xlu0 %2639  ;;  %v2694_v1 = vmul.f32 0.0078125, %v2646_v62  ;;  %4597 = vmatprep.mubr.bf16.mxu0 %v2997_v22  ;;  %v5075_v20 = vpop.eup %5074 }
 0x5d1   : > { %v2691_v34 = vmul.f32 0.0078125, %v2640_v3  ;;  %v2821_v59 = vadd.f32 1e-05, %v2757_v39  ;;  %4598 = vmatmul.mubr.bf16.gmra.mxu0 %v2998_v13  ;;  %v2881_v62 = vmul.f32 %v5075_v20, %v2785_v31 }
 0x5d2   : > { %v2758_v9 = vsub.f32 %v2694_v1, %v2726_v8 }
 0x5d3   : > { %v2755_v58 = vsub.f32 %v2691_v34, %v2723_v44  ;;  %v5077_v25 = vpop.eup %5076  ;;  %v2642_v42 = vpop.xlane.xlu1 %2641  ;;  %5082 = vrsqrt.f32 %v2821_v59 }
 0x5d4   : > { %v2524_v32 = vpop.xlane.xlu0 %2523  ;;  %v5079_v5 = vpop.eup %5078  ;;  %v2822_v0 = vadd.f32 1e-05, %v2758_v9  ;;  %v2692_v40 = vmul.f32 0.0078125, %v2642_v42  ;;  %v2882_v44 = vmul.f32 %v5077_v25, %v2786_v21 }
 0x5d5   : > { %v2819_v39 = vadd.f32 1e-05, %v2755_v58  ;;  %v2879_v8 = vmul.f32 %v5079_v5, %v2783_v33  ;;  %v6797_v34 = vmul.f32 0.0078125, %v2524_v32  ;;  %v2919_v58 = vmul.f32 %v6726_v29, %v2881_v62 }
 0x5d6   : > { %5084 = vrsqrt.f32 %v2822_v0  ;;  %v2756_v35 = vsub.f32 %v2692_v40, %v2724_v30  ;;  %v2920_v9 = vmul.f32 %v6726_v29, %v2882_v44 }
 0x5d7   : > { %v5081_v3 = vpop.eup %5080  ;;  %5086 = vrsqrt.f32 %v2819_v39  ;;  %v2526_v50 = vpop.xlane.xlu1 %2525  ;;  %v2917_v59 = vmul.f32 %v6726_v29, %v2879_v8  ;;  %v2729_v33 = vmul.f32 %v6797_v34, %v6797_v34  ;;  %v2957_v39 = vadd.f32 %v6740_v54, %v2919_v58 }
 0x5d8   : > { %v2520_v22 = vpop.xlane.xlu0 %2519  ;;  %v2820_v1 = vadd.f32 1e-05, %v2756_v35  ;;  %v2880_v13 = vmul.f32 %v5081_v3, %v2784_v24  ;;  %v6802_v25 = vmul.f32 0.0078125, %v2526_v50  ;;  %v2958_v32 = vadd.f32 %v6740_v54, %v2920_v9 }
 0x5d9   : > { %v6804_v18 = vmul.f32 0.0078125, %v2520_v22  ;;  %v2955_v5 = vadd.f32 %v6740_v54, %v2917_v59 }
 0x5da   : > { %5088 = vrsqrt.f32 %v2820_v1  ;;  %v2918_v21 = vmul.f32 %v6726_v29, %v2880_v13  ;;  %v2730_v40 = vmul.f32 %v6802_v25, %v6802_v25  ;;  %v3000_v22 = vpack.c.bf16 %v2958_v32, %v2957_v39 }
 0x5db   : > { %v2522_v20 = vpop.xlane.xlu1 %2521  ;;  %v2727_v8 = vmul.f32 %v6804_v18, %v6804_v18 }
 0x5dc   : > { %v2652_v31 = vpop.xlane.xlu0 %2651  ;;  %v2956_v30 = vadd.f32 %v6740_v54, %v2918_v21  ;;  %v6817_v62 = vmul.f32 0.0078125, %v2522_v20  ;;  %v2790_v21 = vsub.f32 %v6564_v43, %v6770_v16  ;;  %v2787_v20 = vsub.f32 %v6561_v12, %v6772_v6 }
 0x5dd   : > { %v2697_v42 = vmul.f32 0.0078125, %v2652_v31  ;;  %v2789_v31 = vsub.f32 %v6553_v61, %v6765_v56  ;;  %v2788_v56 = vsub.f32 %v6570_v53, %v6785_v41 }
 0x5de   : > { %v2999_v35 = vpack.c.bf16 %v2956_v30, %v2955_v5  ;;  %v2728_v32 = vmul.f32 %v6817_v62, %v6817_v62 }
 0x5df   : > { %v2761_v0 = vsub.f32 %v2697_v42, %v2729_v33  ;;  %v2654_v44 = vpop.xlane.xlu1 %2653 }
 0x5e0   : > { %v2648_v24 = vpop.xlane.xlu0 %2647  ;;  %v2698_v3 = vmul.f32 0.0078125, %v2654_v44  ;;  %4601 = vmatprep.mubr.bf16.mxu0 %v2999_v35  ;;  %v5083_v13 = vpop.eup %5082 }
 0x5e1   : > { %v2695_v50 = vmul.f32 0.0078125, %v2648_v24  ;;  %v2825_v1 = vadd.f32 1e-05, %v2761_v0  ;;  %4602 = vmatmul.mubr.bf16.gmra.mxu0 %v3000_v22  ;;  %v2885_v44 = vmul.f32 %v5083_v13, %v2789_v31 }
 0x5e2   : > { %v2762_v9 = vsub.f32 %v2698_v3, %v2730_v40 }
 0x5e3   : > { %v2759_v59 = vsub.f32 %v2695_v50, %v2727_v8  ;;  %v5085_v58 = vpop.eup %5084  ;;  %v2650_v33 = vpop.xlane.xlu1 %2649  ;;  %5090 = vrsqrt.f32 %v2825_v1 }
 0x5e4   : > { %v2532_v42 = vpop.xlane.xlu0 %2531  ;;  %v5087_v5 = vpop.eup %5086  ;;  %v2826_v30 = vadd.f32 1e-05, %v2762_v9  ;;  %v2696_v39 = vmul.f32 0.0078125, %v2650_v33  ;;  %v2886_v8 = vmul.f32 %v5085_v58, %v2790_v21 }
 0x5e5   : > { %v2823_v0 = vadd.f32 1e-05, %v2759_v59  ;;  %v2883_v40 = vmul.f32 %v5087_v5, %v2787_v20  ;;  %v6829_v50 = vmul.f32 0.0078125, %v2532_v42  ;;  %v2923_v59 = vmul.f32 %v6726_v29, %v2885_v44 }
 0x5e6   : > { %5092 = vrsqrt.f32 %v2826_v30  ;;  %v2760_v16 = vsub.f32 %v2696_v39, %v2728_v32  ;;  %v2924_v9 = vmul.f32 %v6726_v29, %v2886_v8 }
 0x5e7   : > { %v5089_v24 = vpop.eup %5088  ;;  %5094 = vrsqrt.f32 %v2823_v0  ;;  %v2534_v6 = vpop.xlane.xlu1 %2533  ;;  %v2921_v1 = vmul.f32 %v6726_v29, %v2883_v40  ;;  %v2733_v20 = vmul.f32 %v6829_v50, %v6829_v50  ;;  %v2961_v0 = vadd.f32 %v6740_v54, %v2923_v59 }
 0x5e8   : > { %v2528_v35 = vpop.xlane.xlu0 %2527  ;;  %v2824_v3 = vadd.f32 1e-05, %v2760_v16  ;;  %v2884_v22 = vmul.f32 %v5089_v24, %v2788_v56  ;;  %v6834_v58 = vmul.f32 0.0078125, %v2534_v6  ;;  %v2962_v42 = vadd.f32 %v6740_v54, %v2924_v9 }
 0x5e9   : > { %v6836_v41 = vmul.f32 0.0078125, %v2528_v35  ;;  %v2959_v5 = vadd.f32 %v6740_v54, %v2921_v1 }
 0x5ea   : > { %5096 = vrsqrt.f32 %v2824_v3  ;;  %v2922_v21 = vmul.f32 %v6726_v29, %v2884_v22  ;;  %v2734_v39 = vmul.f32 %v6834_v58, %v6834_v58  ;;  %v3002_v35 = vpack.c.bf16 %v2962_v42, %v2961_v0 }
 0x5eb   : > { %v2530_v13 = vpop.xlane.xlu1 %2529  ;;  %v2731_v40 = vmul.f32 %v6836_v41, %v6836_v41 }
 0x5ec   : > { %v2660_v31 = vpop.xlane.xlu0 %2659  ;;  %v2960_v32 = vadd.f32 %v6740_v54, %v2922_v21  ;;  %v6849_v44 = vmul.f32 0.0078125, %v2530_v13  ;;  %v2794_v21 = vsub.f32 %v6592_v7, %v6802_v25  ;;  %v2791_v13 = vsub.f32 %v6589_v17, %v6804_v18 }
 0x5ed   : > { %v2701_v33 = vmul.f32 0.0078125, %v2660_v31  ;;  %v2793_v31 = vsub.f32 %v6581_v60, %v6797_v34  ;;  %v2792_v34 = vsub.f32 %v6598_v57, %v6817_v62 }
 0x5ee   : > { %v3001_v16 = vpack.c.bf16 %v2960_v32, %v2959_v5  ;;  %v2732_v42 = vmul.f32 %v6849_v44, %v6849_v44 }
 0x5ef   : > { %v2765_v30 = vsub.f32 %v2701_v33, %v2733_v20  ;;  %v2662_v8 = vpop.xlane.xlu1 %2661 }
 0x5f0   : > { %v2656_v56 = vpop.xlane.xlu0 %2655  ;;  %v2702_v24 = vmul.f32 0.0078125, %v2662_v8  ;;  %4605 = vmatprep.mubr.bf16.mxu0 %v3001_v16  ;;  %v5091_v22 = vpop.eup %5090 }
 0x5f1   : > { %v2699_v6 = vmul.f32 0.0078125, %v2656_v56  ;;  %v2829_v3 = vadd.f32 1e-05, %v2765_v30  ;;  %4606 = vmatmul.mubr.bf16.gmra.mxu0 %v3002_v35  ;;  %v2889_v8 = vmul.f32 %v5091_v22, %v2793_v31 }
 0x5f2   : > { %v2766_v9 = vsub.f32 %v2702_v24, %v2734_v39 }
 0x5f3   : > { %v2763_v1 = vsub.f32 %v2699_v6, %v2731_v40  ;;  %v5093_v59 = vpop.eup %5092  ;;  %v2658_v20 = vpop.xlane.xlu1 %2657  ;;  %5098 = vrsqrt.f32 %v2829_v3 }
 0x5f4   : > { %v2540_v33 = vpop.xlane.xlu0 %2539  ;;  %v5095_v5 = vpop.eup %5094  ;;  %v2830_v32 = vadd.f32 1e-05, %v2766_v9  ;;  %v2700_v0 = vmul.f32 0.0078125, %v2658_v20  ;;  %v2890_v40 = vmul.f32 %v5093_v59, %v2794_v21 }
 0x5f5   : > { %v2827_v30 = vadd.f32 1e-05, %v2763_v1  ;;  %v2887_v39 = vmul.f32 %v5095_v5, %v2791_v13  ;;  %v6861_v6 = vmul.f32 0.0078125, %v2540_v33  ;;  %v2927_v1 = vmul.f32 %v6726_v29, %v2889_v8 }
 0x5f6   : > { %5100 = vrsqrt.f32 %v2830_v32  ;;  %v2764_v25 = vsub.f32 %v2700_v0, %v2732_v42  ;;  %v2928_v9 = vmul.f32 %v6726_v29, %v2890_v40 }
 0x5f7   : > { %v5097_v56 = vpop.eup %5096  ;;  %5102 = vrsqrt.f32 %v2827_v30  ;;  %v2542_v18 = vpop.xlane.xlu1 %2541  ;;  %v2925_v3 = vmul.f32 %v6726_v29, %v2887_v39  ;;  %v2737_v13 = vmul.f32 %v6861_v6, %v6861_v6  ;;  %v2965_v30 = vadd.f32 %v6740_v54, %v2927_v1 }
 0x5f8   : > { %v2536_v16 = vpop.xlane.xlu0 %2535  ;;  %v2828_v24 = vadd.f32 1e-05, %v2764_v25  ;;  %v2888_v35 = vmul.f32 %v5097_v56, %v2792_v34  ;;  %v6866_v59 = vmul.f32 0.0078125, %v2542_v18  ;;  %v2966_v33 = vadd.f32 %v6740_v54, %v2928_v9 }
 0x5f9   : > { %v6868_v62 = vmul.f32 0.0078125, %v2536_v16  ;;  %v2963_v5 = vadd.f32 %v6740_v54, %v2925_v3 }
 0x5fa   : > { %5104 = vrsqrt.f32 %v2828_v24  ;;  %v2926_v21 = vmul.f32 %v6726_v29, %v2888_v35  ;;  %v2738_v0 = vmul.f32 %v6866_v59, %v6866_v59  ;;  %v3004_v16 = vpack.c.bf16 %v2966_v33, %v2965_v30  ;;  %v4858_v24 = vld [vmem:[#allocation13 + $0x38] sm:$0xff]  }
 0x5fb   : > { %v2538_v22 = vpop.xlane.xlu1 %2537  ;;  %v2735_v39 = vmul.f32 %v6868_v62, %v6868_v62  ;;  %4625 = vmatprep.subr.bf16.mxu0 %v4858_v24  ;;  %4673 = vmatprep.subr.bf16.mxu1 %v4858_v24 }
 0x5fc   : > { %v2668_v31 = vpop.xlane.xlu0 %2667  ;;  %v2964_v42 = vadd.f32 %v6740_v54, %v2926_v21  ;;  %v6881_v8 = vmul.f32 0.0078125, %v2538_v22  ;;  %v2797_v21 = vsub.f32 %v6609_v14, %v6829_v50  ;;  %v2795_v22 = vsub.f32 %v6617_v15, %v6836_v41  ;;  %4626 = vmatpush3.bf16.msra.mxu0 %v4858_v24  ;;  %4681 = vmatpush3.bf16.msra.mxu1 %v4858_v24 }
 0x5fd   : > { %v2705_v20 = vmul.f32 0.0078125, %v2668_v31  ;;  %v2796_v41 = vsub.f32 %v6626_v10, %v6849_v44 }
 0x5fe   : > { %v3003_v25 = vpack.c.bf16 %v2964_v42, %v2963_v5  ;;  %v2736_v42 = vmul.f32 %v6881_v8, %v6881_v8 }
 0x5ff   : > { %v2769_v32 = vsub.f32 %v2705_v20, %v2737_v13  ;;  %v2670_v40 = vpop.xlane.xlu1 %2669  ;;  %v2798_v13 = vsub.f32 %v6620_v11, %v6834_v58  ;;  %v4859_v58 = vld [vmem:[#allocation13 + $0x30] sm:$0xff]  }
 0x600   : > { %v2664_v34 = vpop.xlane.xlu0 %2663  ;;  %v2706_v56 = vmul.f32 0.0078125, %v2670_v40  ;;  %4609 = vmatprep.mubr.bf16.mxu0 %v3003_v25  ;;  %v5099_v9 = vpop.eup %5098  ;;  %4627 = vmatprep.subr.bf16.mxu0 %v4859_v58 }
 0x601   : > { %v2703_v18 = vmul.f32 0.0078125, %v2664_v34  ;;  %v2833_v35 = vadd.f32 1e-05, %v2769_v32  ;;  %4610 = vmatmul.mubr.bf16.gmra.mxu0 %v3004_v16  ;;  %4674 = vmatprep.subr.bf16.mxu1 %v4859_v58 }
 0x602   : > { %v2770_v3 = vsub.f32 %v2706_v56, %v2738_v0  ;;  %4628 = vmatpush3.bf16.msra.mxu0 %v4859_v58  ;;  %4682 = vmatpush3.bf16.msra.mxu1 %v4859_v58 }
 0x603   : > { %v2767_v1 = vsub.f32 %v2703_v18, %v2735_v39  ;;  %v5101_v31 = vpop.eup %5100  ;;  %v2666_v20 = vpop.xlane.xlu1 %2665  ;;  %5106 = vrsqrt.f32 %v2833_v35  ;;  %v2893_v39 = vmul.f32 %v5099_v9, %v2797_v21  ;;  %v4860_v9 = vld [vmem:[#allocation13 + $0x28] sm:$0xff]  }
 0x604   : > { %v2548_v33 = vpop.xlane.xlu0 %2547  ;;  %v5103_v5 = vpop.eup %5102  ;;  %v2834_v32 = vadd.f32 1e-05, %v2770_v3  ;;  %v2704_v0 = vmul.f32 0.0078125, %v2666_v20  ;;  %v2894_v40 = vmul.f32 %v5101_v31, %v2798_v13  ;;  %4629 = vmatprep.subr.bf16.mxu0 %v4860_v9  ;;  %4675 = vmatprep.subr.bf16.mxu1 %v4860_v9 }
 0x605   : > { %v2831_v30 = vadd.f32 1e-05, %v2767_v1  ;;  %v2891_v50 = vmul.f32 %v5103_v5, %v2795_v22  ;;  %v2931_v44 = vmul.f32 %v6726_v29, %v2893_v39  ;;  %v6898_v31 = vmul.f32 0.0078125, %v2548_v33 }
 0x606   : > { %5108 = vrsqrt.f32 %v2834_v32  ;;  %v2768_v34 = vsub.f32 %v2704_v0, %v2736_v42  ;;  %v2932_v16 = vmul.f32 %v6726_v29, %v2894_v40  ;;  %4630 = vmatpush3.bf16.msra.mxu0 %v4860_v9  ;;  %4683 = vmatpush3.bf16.msra.mxu1 %v4860_v9 }
 0x607   : > { %v5105_v25 = vpop.eup %5104  ;;  %5110 = vrsqrt.f32 %v2831_v30  ;;  %v2550_v56 = vpop.xlane.xlu1 %2549  ;;  %v2929_v1 = vmul.f32 %v6726_v29, %v2891_v50  ;;  %v4861_v30 = vld [vmem:[#allocation13 + $0x20] sm:$0xff]   ;;  %v2969_v50 = vadd.f32 %v6740_v54, %v2931_v44  ;;  %v2741_v40 = vmul.f32 %v6898_v31, %v6898_v31 }
 0x608   : > { %v2544_v18 = vpop.xlane.xlu0 %2543  ;;  %v2832_v3 = vadd.f32 1e-05, %v2768_v34  ;;  %v2892_v35 = vmul.f32 %v5105_v25, %v2796_v41  ;;  %v2970_v20 = vadd.f32 %v6740_v54, %v2932_v16  ;;  %4631 = vmatprep.subr.bf16.mxu0 %v4861_v30  ;;  %4676 = vmatprep.subr.bf16.mxu1 %v4861_v30  ;;  %v6911_v58 = vmul.f32 0.0078125, %v2550_v56 }
 0x609   : > { %v6894_v24 = vmul.f32 0.0078125, %v2544_v18  ;;  %v2967_v0 = vadd.f32 %v6740_v54, %v2929_v1  ;;  %v4862_v1 = vld [vmem:[#allocation13 + $0x18] sm:$0xff]  }
 0x60a   : > { %5112 = vrsqrt.f32 %v2832_v3  ;;  %v2930_v22 = vmul.f32 %v6726_v29, %v2892_v35  ;;  %v3006_v18 = vpack.c.bf16 %v2970_v20, %v2969_v50  ;;  %4632 = vmatpush3.bf16.msra.mxu0 %v4861_v30  ;;  %4684 = vmatpush3.bf16.msra.mxu1 %v4861_v30  ;;  %v2801_v20 = vsub.f32 %v6637_v55, %v6861_v6 }
 0x60b   : > { %v2546_v21 = vpop.xlane.xlu1 %2545  ;;  %v2739_v5 = vmul.f32 %v6894_v24, %v6894_v24  ;;  %4633 = vmatprep.subr.bf16.mxu0 %v4862_v1  ;;  %4677 = vmatprep.subr.bf16.mxu1 %v4862_v1  ;;  %v2800_v6 = vsub.f32 %v6654_v49, %v6881_v8 }
 0x60c   : > { %v2672_v13 = vpop.xlane.xlu0 %2671  ;;  %v6904_v42 = vmul.f32 0.0078125, %v2546_v21  ;;  %v2968_v33 = vadd.f32 %v6740_v54, %v2930_v22  ;;  %v2802_v21 = vsub.f32 %v6644_v48, %v6866_v59 }
 0x60d   : > { %v2707_v32 = vmul.f32 0.0078125, %v2672_v13 }
 0x60e   : > { %v3005_v25 = vpack.c.bf16 %v2968_v33, %v2967_v0  ;;  %v2740_v16 = vmul.f32 %v6904_v42, %v6904_v42  ;;  %4634 = vmatpush3.bf16.msra.mxu0 %v4862_v1  ;;  %4685 = vmatpush3.bf16.msra.mxu1 %v4862_v1  ;;  %v4864_v1 = vld [vmem:[#allocation13 + $0x8] sm:$0xff]  }
 0x60f   : > { %v2771_v39 = vsub.f32 %v2707_v32, %v2739_v5  ;;  %v2674_v41 = vpop.xlane.xlu1 %2673  ;;  %v2799_v5 = vsub.f32 %v6648_v47, %v6868_v62  ;;  %v2742_v32 = vmul.f32 %v6911_v58, %v6911_v58 }
 0x610   : > { %v2676_v34 = vpop.xlane.xlu0 %2675  ;;  %v2708_v35 = vmul.f32 0.0078125, %v2674_v41  ;;  %4613 = vmatprep.mubr.bf16.mxu0 %v3005_v25  ;;  %v5107_v44 = vpop.eup %5106 }
 0x611   : > { %v2835_v3 = vadd.f32 1e-05, %v2771_v39  ;;  %v2709_v9 = vmul.f32 0.0078125, %v2676_v34  ;;  %4614 = vmatmul.mubr.bf16.gmra.mxu0 %v3006_v18  ;;  %v2897_v41 = vmul.f32 %v5107_v44, %v2801_v20  ;;  %v4863_v34 = vld [vmem:[#allocation13 + $0x10] sm:$0xff]   ;;  %v2803_v20 = vsub.f32 %v6676_v52, %v6894_v24 }
 0x612   : > { %v2772_v56 = vsub.f32 %v2708_v35, %v2740_v16  ;;  %4635 = vmatprep.subr.bf16.mxu0 %v4863_v34  ;;  %4678 = vmatprep.subr.bf16.mxu1 %v4863_v34 }
 0x613   : > { %5114 = vrsqrt.f32 %v2835_v3  ;;  %v2773_v13 = vsub.f32 %v2709_v9, %v2741_v40  ;;  %v5109_v22 = vpop.eup %5108  ;;  %v2678_v30 = vpop.xlane.xlu1 %2677  ;;  %4636 = vmatpush3.bf16.msra.mxu0 %v4863_v34  ;;  %4686 = vmatpush3.bf16.msra.mxu1 %v4863_v34  ;;  %v2935_v9 = vmul.f32 %v6726_v29, %v2897_v41  ;;  %v2806_v34 = vsub.f32 %v6672_v28, %v6911_v58  ;;  %v6952_v58 = vld [vmem:[%s7185_s29] ss:$0 sm:$0xff] }
 0x614   : > { %v5111_v0 = vpop.eup %5110  ;;  %v2836_v33 = vadd.f32 1e-05, %v2772_v56  ;;  %v2710_v50 = vmul.f32 0.0078125, %v2678_v30  ;;  %v2898_v39 = vmul.f32 %v5109_v22, %v2802_v21  ;;  %4637 = vmatprep.subr.bf16.mxu0 %v4864_v1  ;;  %4679 = vmatprep.subr.bf16.mxu1 %v4864_v1  ;;  %v4865_v22 = vld [vmem:[#allocation13] sm:$0xff]  }
 0x615   : > { %v2837_v59 = vadd.f32 1e-05, %v2773_v13  ;;  %v2895_v40 = vmul.f32 %v5111_v0, %v2799_v5  ;;  %v2973_v13 = vadd.f32 %v6740_v54, %v2935_v9 }
 0x616   : > { %5116 = vrsqrt.f32 %v2836_v33  ;;  %v2774_v62 = vsub.f32 %v2710_v50, %v2742_v32  ;;  %v2936_v18 = vmul.f32 %v6726_v29, %v2898_v39  ;;  %v2804_v33 = vsub.f32 %v6682_v63, %v6904_v42 }
 0x617   : > { %v5113_v25 = vpop.eup %5112  ;;  %5118 = vrsqrt.f32 %v2837_v59  ;;  %v2933_v35 = vmul.f32 %v6726_v29, %v2895_v40  ;;  %4638 = vmatpush3.bf16.msra.mxu0 %v4864_v1  ;;  %4687 = vmatpush3.bf16.msra.mxu1 %v4864_v1  ;;  %v2805_v50 = vsub.f32 %v6665_v46, %v6898_v31 }
 0x618   : > { %v2838_v16 = vadd.f32 1e-05, %v2774_v62  ;;  %v2896_v3 = vmul.f32 %v5113_v25, %v2800_v6  ;;  %v2974_v44 = vadd.f32 %v6740_v54, %v2936_v18  ;;  %4639 = vmatprep.subr.bf16.mxu0 %v4865_v22  ;;  %4680 = vmatprep.subr.bf16.mxu1 %v4865_v22 }
 0x619   : > { %v2971_v21 = vadd.f32 %v6740_v54, %v2933_v35 }
 0x61a   : > { %5120 = vrsqrt.f32 %v2838_v16  ;;  %v2934_v8 = vmul.f32 %v6726_v29, %v2896_v3  ;;  %v3008_v30 = vpack.c.bf16 %v2974_v44, %v2973_v13 }
 0x61b   : > { %4640 = vmatpush3.bf16.msra.mxu0 %v4865_v22  ;;  %4688 = vmatpush3.bf16.msra.mxu1 %v4865_v22 }
 0x61c   : > { %v2972_v56 = vadd.f32 %v6740_v54, %v2934_v8 }
 0x61e   : > { %v3007_v5 = vpack.c.bf16 %v2972_v56, %v2971_v21 }
 0x620   : > { %v5115_v32 = vpop.eup %5114  ;;  %4617 = vmatprep.mubr.bf16.mxu0 %v3007_v5 }
 0x621   : > { %v2899_v0 = vmul.f32 %v5115_v32, %v2803_v20  ;;  %4618 = vmatmul.mubr.bf16.gmra.mxu0 %v3008_v30 }
 0x623   : > { %v5117_v59 = vpop.eup %5116  ;;  %v2937_v24 = vmul.f32 %v6726_v29, %v2899_v0 }
 0x624   : > { %v5119_v39 = vpop.eup %5118  ;;  %v2900_v40 = vmul.f32 %v5117_v59, %v2804_v33 }
 0x625   : > { %v2901_v41 = vmul.f32 %v5119_v39, %v2805_v50  ;;  %v2975_v25 = vadd.f32 %v6740_v54, %v2937_v24 }
 0x626   : > { %v2938_v6 = vmul.f32 %v6726_v29, %v2900_v40 }
 0x627   : > { %v5121_v62 = vpop.eup %5120  ;;  %v2939_v16 = vmul.f32 %v6726_v29, %v2901_v41 }
 0x628   : > { %v2976_v18 = vadd.f32 %v6740_v54, %v2938_v6  ;;  %v2902_v42 = vmul.f32 %v5121_v62, %v2806_v34 }
 0x629   : > { %v2977_v35 = vadd.f32 %v6740_v54, %v2939_v16 }
 0x62a   : > { %v3009_v3 = vpack.c.bf16 %v2976_v18, %v2975_v25  ;;  %v2940_v31 = vmul.f32 %v6726_v29, %v2902_v42 }
 0x62c   : > { %4621 = vmatprep.mubr.bf16.mxu0 %v3009_v3  ;;  %v2978_v9 = vadd.f32 %v6740_v54, %v2940_v31 }
 0x62e   : > { %v3010_v1 = vpack.c.bf16 %v2978_v9, %v2977_v35 }
 0x630   : > { %4622 = vmatmul.mubr.bf16.gmra.mxu0 %v3010_v1 }
 0x681   : > { %v4595_v8 = vpop.f32.mrf.mxu0 }
 0x682   : > { %v3109_v44 = vadd.f32 %v4595_v8, %v6952_v58 }
 0x683   : > { %v3100_v21 = vpop.f32.mrf.mxu0 }
 0x684   : > { %v3101_v56 = vadd.f32 %v6952_v58, %v3100_v21  ;;  %v3261_v13 = vmul.f32 0.70710677, %v3109_v44 }
 0x685   : > { %v4596_v29 = vpop.f32.mrf.mxu0 }
 0x686   : > { %v3259_v22 = vmul.f32 0.70710677, %v3101_v56  ;;  %v3112_v20 = vadd.f32 %v4596_v29, %v6952_v58  ;;  %v3227_v1 = vmul.f32 0.5, %v3101_v56  ;;  %v3229_v29 = vmul.f32 0.5, %v3109_v44 }
 0x687   : > { %v3103_v5 = vpop.f32.mrf.mxu0 }
 0x688   : > { %5122 = verf.f32 %v3259_v22  ;;  %v3262_v54 = vmul.f32 0.70710677, %v3112_v20  ;;  %v3104_v32 = vadd.f32 %v6952_v58, %v3103_v5  ;;  %v3230_v35 = vmul.f32 0.5, %v3112_v20 }
 0x689   : > { %5124 = verf.f32 %v3261_v13 }
 0x68a   : > { %5126 = verf.f32 %v3262_v54  ;;  %v3260_v30 = vmul.f32 0.70710677, %v3104_v32  ;;  %v3228_v8 = vmul.f32 0.5, %v3104_v32 }
 0x68c   : > { %5128 = verf.f32 %v3260_v30 }
 0x691   : > { %v4599_v0 = vpop.f32.mrf.mxu0 }
 0x692   : > { %v3125_v33 = vadd.f32 %v4599_v0, %v6952_v58 }
 0x693   : > { %v3116_v59 = vpop.f32.mrf.mxu0 }
 0x694   : > { %v3265_v50 = vmul.f32 0.70710677, %v3125_v33  ;;  %v3117_v39 = vadd.f32 %v6952_v58, %v3116_v59 }
 0x695   : > { %v5123_v40 = vpop.eup %5122  ;;  %v4600_v24 = vpop.f32.mrf.mxu0 }
 0x696   : > { %v5125_v41 = vpop.eup %5124  ;;  %v3263_v6 = vmul.f32 0.70710677, %v3117_v39  ;;  %v3128_v62 = vadd.f32 %v4600_v24, %v6952_v58  ;;  %v3323_v18 = vadd.f32 1.0, %v5123_v40  ;;  %5130 = verf.f32 %v3265_v50 }
 0x697   : > { %v5127_v34 = vpop.eup %5126  ;;  %v3119_v25 = vpop.f32.mrf.mxu0  ;;  %v3325_v31 = vadd.f32 1.0, %v5125_v41 }
 0x698   : > { %v3326_v42 = vadd.f32 1.0, %v5127_v34  ;;  %v3120_v16 = vadd.f32 %v6952_v58, %v3119_v25  ;;  %5132 = verf.f32 %v3263_v6  ;;  %v3266_v9 = vmul.f32 0.70710677, %v3128_v62 }
 0x699   : > { %v5129_v3 = vpop.eup %5128  ;;  %v3355_v5 = vmul.f32 %v3323_v18, %v3227_v1  ;;  %v3357_v30 = vmul.f32 %v3325_v31, %v3229_v29 }
 0x69a   : > { %v3324_v21 = vadd.f32 1.0, %v5129_v3  ;;  %v3264_v13 = vmul.f32 0.70710677, %v3120_v16  ;;  %v3358_v22 = vmul.f32 %v3326_v42, %v3230_v35  ;;  %5134 = verf.f32 %v3266_v9 }
 0x69b   : > { %v3234_v3 = vmul.f32 0.5, %v3128_v62 }
 0x69c   : > { %v3356_v54 = vmul.f32 %v3324_v21, %v3228_v8  ;;  %5136 = verf.f32 %v3264_v13  ;;  %v3404_v59 = vpack.c.bf16 %v3358_v22, %v3357_v30  ;;  %v3231_v21 = vmul.f32 0.5, %v3117_v39 }
 0x69d   : > { %v3232_v13 = vmul.f32 0.5, %v3120_v16 }
 0x69e   : > { %v3403_v0 = vpack.c.bf16 %v3356_v54, %v3355_v5  ;;  %v3233_v5 = vmul.f32 0.5, %v3125_v33 }
 0x6a0   : > { %4641 = vmatprep.mubr.bf16.mxu0 %v3403_v0 }
 0x6a1   : > { %v4603_v50 = vpop.f32.mrf.mxu0  ;;  %4642 = vmatmul.mubr.bf16.vlgmr.msra.gmra.mxu0 %v3404_v59 }
 0x6a2   : > { %v3141_v20 = vadd.f32 %v4603_v50, %v6952_v58 }
 0x6a3   : > { %v3132_v40 = vpop.f32.mrf.mxu0  ;;  %v5131_v32 = vpop.eup %5130 }
 0x6a4   : > { %v3133_v56 = vadd.f32 %v6952_v58, %v3132_v40  ;;  %v3269_v24 = vmul.f32 0.70710677, %v3141_v20  ;;  %v3329_v9 = vadd.f32 1.0, %v5131_v32 }
 0x6a5   : > { %v4604_v41 = vpop.f32.mrf.mxu0  ;;  %v5133_v44 = vpop.eup %5132 }
 0x6a6   : > { %v3267_v34 = vmul.f32 0.70710677, %v3133_v56  ;;  %v3144_v6 = vadd.f32 %v4604_v41, %v6952_v58  ;;  %v3327_v42 = vadd.f32 1.0, %v5133_v44  ;;  %v3361_v59 = vmul.f32 %v3329_v9, %v3233_v5 }
 0x6a7   : > { %v3135_v25 = vpop.f32.mrf.mxu0  ;;  %v5135_v18 = vpop.eup %5134 }
 0x6a8   : > { %5138 = verf.f32 %v3267_v34  ;;  %v3136_v31 = vadd.f32 %v6952_v58, %v3135_v25  ;;  %v3330_v1 = vadd.f32 1.0, %v5135_v18  ;;  %v3270_v8 = vmul.f32 0.70710677, %v3144_v6 }
 0x6a9   : > { %v5137_v35 = vpop.eup %5136  ;;  %5140 = verf.f32 %v3269_v24  ;;  %v3359_v30 = vmul.f32 %v3327_v42, %v3231_v21 }
 0x6aa   : > { %v3328_v29 = vadd.f32 1.0, %v5137_v35  ;;  %v3268_v22 = vmul.f32 0.70710677, %v3136_v31  ;;  %v3362_v54 = vmul.f32 %v3330_v1, %v3234_v3  ;;  %5142 = verf.f32 %v3270_v8 }
 0x6ab   : > { %v3238_v35 = vmul.f32 0.5, %v3144_v6 }
 0x6ac   : > { %v3360_v0 = vmul.f32 %v3328_v29, %v3232_v13  ;;  %5144 = verf.f32 %v3268_v22  ;;  %v3406_v50 = vpack.c.bf16 %v3362_v54, %v3361_v59  ;;  %v3235_v29 = vmul.f32 0.5, %v3133_v56 }
 0x6ad   : > { %v3236_v22 = vmul.f32 0.5, %v3136_v31 }
 0x6ae   : > { %v3405_v62 = vpack.c.bf16 %v3360_v0, %v3359_v30  ;;  %v3237_v30 = vmul.f32 0.5, %v3141_v20 }
 0x6b0   : > { %4645 = vmatprep.mubr.bf16.mxu0 %v3405_v62 }
 0x6b1   : > { %v4607_v40 = vpop.f32.mrf.mxu0  ;;  %4646 = vmatmul.mubr.bf16.gmra.mxu0 %v3406_v50 }
 0x6b2   : > { %v3157_v32 = vadd.f32 %v4607_v40, %v6952_v58 }
 0x6b3   : > { %v3148_v24 = vpop.f32.mrf.mxu0 }
 0x6b4   : > { %v3273_v41 = vmul.f32 0.70710677, %v3157_v32  ;;  %v3149_v39 = vadd.f32 %v6952_v58, %v3148_v24 }
 0x6b5   : > { %v5139_v16 = vpop.eup %5138  ;;  %v4608_v44 = vpop.f32.mrf.mxu0 }
 0x6b6   : > { %v5141_v33 = vpop.eup %5140  ;;  %v3271_v34 = vmul.f32 0.70710677, %v3149_v39  ;;  %v3160_v25 = vadd.f32 %v4608_v44, %v6952_v58  ;;  %v3331_v3 = vadd.f32 1.0, %v5139_v16  ;;  %5146 = verf.f32 %v3273_v41 }
 0x6b7   : > { %v3151_v18 = vpop.f32.mrf.mxu0  ;;  %v5143_v42 = vpop.eup %5142  ;;  %v3333_v8 = vadd.f32 1.0, %v5141_v33 }
 0x6b8   : > { %v3152_v9 = vadd.f32 %v6952_v58, %v3151_v18  ;;  %v3334_v21 = vadd.f32 1.0, %v5143_v42  ;;  %5148 = verf.f32 %v3271_v34  ;;  %v3274_v13 = vmul.f32 0.70710677, %v3160_v25 }
 0x6b9   : > { %v5145_v1 = vpop.eup %5144  ;;  %v3363_v59 = vmul.f32 %v3331_v3, %v3235_v29  ;;  %v3365_v50 = vmul.f32 %v3333_v8, %v3237_v30 }
 0x6ba   : > { %v3332_v5 = vadd.f32 1.0, %v5145_v1  ;;  %v3272_v54 = vmul.f32 0.70710677, %v3152_v9  ;;  %v3366_v0 = vmul.f32 %v3334_v21, %v3238_v35  ;;  %5150 = verf.f32 %v3274_v13 }
 0x6bb   : > { %v3242_v1 = vmul.f32 0.5, %v3160_v25 }
 0x6bc   : > { %v3364_v62 = vmul.f32 %v3332_v5, %v3236_v22  ;;  %5152 = verf.f32 %v3272_v54  ;;  %v3408_v40 = vpack.c.bf16 %v3366_v0, %v3365_v50  ;;  %v3239_v5 = vmul.f32 0.5, %v3149_v39 }
 0x6bd   : > { %v3240_v54 = vmul.f32 0.5, %v3152_v9 }
 0x6be   : > { %v3407_v6 = vpack.c.bf16 %v3364_v62, %v3363_v59  ;;  %v3241_v59 = vmul.f32 0.5, %v3157_v32 }
 0x6c0   : > { %4649 = vmatprep.mubr.bf16.mxu1 %v3407_v6 }
 0x6c1   : > { %v4611_v24 = vpop.f32.mrf.mxu0  ;;  %4650 = vmatmul.mubr.bf16.vlgmr.msra.gmra.mxu1 %v3408_v40 }
 0x6c2   : > { %v3173_v41 = vadd.f32 %v4611_v24, %v6952_v58 }
 0x6c3   : > { %v3164_v16 = vpop.f32.mrf.mxu0  ;;  %v5147_v31 = vpop.eup %5146 }
 0x6c4   : > { %v3165_v56 = vadd.f32 %v6952_v58, %v3164_v16  ;;  %v3277_v44 = vmul.f32 0.70710677, %v3173_v41  ;;  %v3337_v13 = vadd.f32 1.0, %v5147_v31 }
 0x6c5   : > { %v4612_v33 = vpop.f32.mrf.mxu0  ;;  %v5149_v20 = vpop.eup %5148 }
 0x6c6   : > { %v3275_v34 = vmul.f32 0.70710677, %v3165_v56  ;;  %v3176_v18 = vadd.f32 %v4612_v33, %v6952_v58  ;;  %v3335_v35 = vadd.f32 1.0, %v5149_v20  ;;  %v3369_v40 = vmul.f32 %v3337_v13, %v3241_v59 }
 0x6c7   : > { %v3167_v42 = vpop.f32.mrf.mxu0  ;;  %v5151_v3 = vpop.eup %5150 }
 0x6c8   : > { %5154 = verf.f32 %v3275_v34  ;;  %v3168_v8 = vadd.f32 %v6952_v58, %v3167_v42  ;;  %v3338_v29 = vadd.f32 1.0, %v5151_v3  ;;  %v3278_v22 = vmul.f32 0.70710677, %v3176_v18 }
 0x6c9   : > { %v5153_v21 = vpop.eup %5152  ;;  %5156 = verf.f32 %v3277_v44  ;;  %v3367_v50 = vmul.f32 %v3335_v35, %v3239_v5 }
 0x6ca   : > { %v3336_v30 = vadd.f32 1.0, %v5153_v21  ;;  %v3276_v0 = vmul.f32 0.70710677, %v3168_v8  ;;  %v3370_v62 = vmul.f32 %v3338_v29, %v3242_v1  ;;  %5158 = verf.f32 %v3278_v22 }
 0x6cb   : > { %v3246_v21 = vmul.f32 0.5, %v3176_v18 }
 0x6cc   : > { %v3368_v6 = vmul.f32 %v3336_v30, %v3240_v54  ;;  %5160 = verf.f32 %v3276_v0  ;;  %v3410_v24 = vpack.c.bf16 %v3370_v62, %v3369_v40  ;;  %v3243_v30 = vmul.f32 0.5, %v3165_v56 }
 0x6cd   : > { %v3244_v0 = vmul.f32 0.5, %v3168_v8 }
 0x6ce   : > { %v3409_v25 = vpack.c.bf16 %v3368_v6, %v3367_v50  ;;  %v3245_v50 = vmul.f32 0.5, %v3173_v41 }
 0x6d0   : > { %4653 = vmatprep.mubr.bf16.mxu1 %v3409_v25 }
 0x6d1   : > { %v4615_v16 = vpop.f32.mrf.mxu0  ;;  %4654 = vmatmul.mubr.bf16.gmra.mxu1 %v3410_v24 }
 0x6d2   : > { %v3189_v31 = vadd.f32 %v4615_v16, %v6952_v58 }
 0x6d3   : > { %v3180_v44 = vpop.f32.mrf.mxu0 }
 0x6d4   : > { %v3281_v33 = vmul.f32 0.70710677, %v3189_v31  ;;  %v3181_v39 = vadd.f32 %v6952_v58, %v3180_v44 }
 0x6d5   : > { %v5155_v9 = vpop.eup %5154  ;;  %v4616_v20 = vpop.f32.mrf.mxu0 }
 0x6d6   : > { %v5157_v32 = vpop.eup %5156  ;;  %v3279_v34 = vmul.f32 0.70710677, %v3181_v39  ;;  %v3192_v42 = vadd.f32 %v4616_v20, %v6952_v58  ;;  %v3339_v1 = vadd.f32 1.0, %v5155_v9  ;;  %5162 = verf.f32 %v3281_v33 }
 0x6d7   : > { %v3183_v3 = vpop.f32.mrf.mxu0  ;;  %v5159_v35 = vpop.eup %5158  ;;  %v3341_v22 = vadd.f32 1.0, %v5157_v32 }
 0x6d8   : > { %v3184_v13 = vadd.f32 %v6952_v58, %v3183_v3  ;;  %v3342_v5 = vadd.f32 1.0, %v5159_v35  ;;  %5164 = verf.f32 %v3279_v34  ;;  %v3282_v54 = vmul.f32 0.70710677, %v3192_v42 }
 0x6d9   : > { %v5161_v29 = vpop.eup %5160  ;;  %v3371_v40 = vmul.f32 %v3339_v1, %v3243_v30  ;;  %v3373_v24 = vmul.f32 %v3341_v22, %v3245_v50  ;;  %v3250_v30 = vmul.f32 0.5, %v3192_v42 }
 0x6da   : > { %v3340_v59 = vadd.f32 1.0, %v5161_v29  ;;  %v3280_v62 = vmul.f32 0.70710677, %v3184_v13  ;;  %v3374_v6 = vmul.f32 %v3342_v5, %v3246_v21  ;;  %5166 = verf.f32 %v3282_v54 }
 0x6dc   : > { %v3372_v25 = vmul.f32 %v3340_v59, %v3244_v0  ;;  %5168 = verf.f32 %v3280_v62  ;;  %v3412_v16 = vpack.c.bf16 %v3374_v6, %v3373_v24  ;;  %v3247_v59 = vmul.f32 0.5, %v3181_v39 }
 0x6dd   : > { %v3248_v62 = vmul.f32 0.5, %v3184_v13 }
 0x6de   : > { %v3411_v18 = vpack.c.bf16 %v3372_v25, %v3371_v40  ;;  %v3249_v40 = vmul.f32 0.5, %v3189_v31 }
 0x6e0   : > { %4657 = vmatprep.mubr.bf16.mxu1 %v3411_v18 }
 0x6e1   : > { %v4619_v44 = vpop.f32.mrf.mxu0  ;;  %4658 = vmatmul.mubr.bf16.gmra.mxu1 %v3412_v16 }
 0x6e2   : > { %v3205_v33 = vadd.f32 %v4619_v44, %v6952_v58 }
 0x6e3   : > { %v3196_v9 = vpop.f32.mrf.mxu0  ;;  %v5163_v32 = vpop.eup %5162 }
 0x6e4   : > { %v3285_v20 = vmul.f32 0.70710677, %v3205_v33  ;;  %v3197_v56 = vadd.f32 %v6952_v58, %v3196_v9  ;;  %v3345_v54 = vadd.f32 1.0, %v5163_v32 }
 0x6e5   : > { %v4620_v8 = vpop.f32.mrf.mxu0  ;;  %v5165_v3 = vpop.eup %5164 }
 0x6e6   : > { %v3283_v41 = vmul.f32 0.70710677, %v3197_v56  ;;  %v3208_v34 = vadd.f32 %v4620_v8, %v6952_v58  ;;  %5170 = verf.f32 %v3285_v20  ;;  %v3343_v29 = vadd.f32 1.0, %v5165_v3 }
 0x6e7   : > { %v3199_v35 = vpop.f32.mrf.mxu0  ;;  %v5167_v21 = vpop.eup %5166  ;;  %v3377_v16 = vmul.f32 %v3345_v54, %v3249_v40 }
 0x6e8   : > { %v3286_v1 = vmul.f32 0.70710677, %v3208_v34  ;;  %5172 = verf.f32 %v3283_v41  ;;  %v3200_v22 = vadd.f32 %v6952_v58, %v3199_v35  ;;  %v3346_v0 = vadd.f32 1.0, %v5167_v21 }
 0x6e9   : > { %v5169_v5 = vpop.eup %5168  ;;  %v3375_v24 = vmul.f32 %v3343_v29, %v3247_v59 }
 0x6ea   : > { %5174 = verf.f32 %v3286_v1  ;;  %v3344_v50 = vadd.f32 1.0, %v5169_v5  ;;  %v3284_v6 = vmul.f32 0.70710677, %v3200_v22  ;;  %v3378_v25 = vmul.f32 %v3346_v0, %v3250_v30 }
 0x6eb   : > { %v3252_v40 = vmul.f32 0.5, %v3200_v22 }
 0x6ec   : > { %v3376_v18 = vmul.f32 %v3344_v50, %v3248_v62  ;;  %5176 = verf.f32 %v3284_v6  ;;  %v3414_v20 = vpack.c.bf16 %v3378_v25, %v3377_v16  ;;  %v3254_v50 = vmul.f32 0.5, %v3208_v34 }
 0x6ed   : > { %v3251_v6 = vmul.f32 0.5, %v3197_v56 }
 0x6ee   : > { %v3413_v44 = vpack.c.bf16 %v3376_v18, %v3375_v24  ;;  %v3253_v24 = vmul.f32 0.5, %v3205_v33 }
 0x6f0   : > { %v4623_v9 = vpop.f32.mrf.mxu0  ;;  %4661 = vmatprep.mubr.bf16.mxu1 %v3413_v44 }
 0x6f1   : > { %v3221_v8 = vadd.f32 %v4623_v9, %v6952_v58  ;;  %4662 = vmatmul.mubr.bf16.gmra.mxu1 %v3414_v20 }
 0x6f2   : > { %v3212_v42 = vpop.f32.mrf.mxu0 }
 0x6f3   : > { %v3213_v32 = vadd.f32 %v6952_v58, %v3212_v42  ;;  %v3289_v39 = vmul.f32 0.70710677, %v3221_v8  ;;  %v5171_v41 = vpop.eup %5170  ;;  %v3257_v33 = vmul.f32 0.5, %v3221_v8 }
 0x6f4   : > { %v4624_v13 = vpop.f32.mrf.mxu0  ;;  %v3349_v62 = vadd.f32 1.0, %v5171_v41 }
 0x6f5   : > { %v3287_v3 = vmul.f32 0.70710677, %v3213_v32  ;;  %v3224_v31 = vadd.f32 %v4624_v13, %v6952_v58  ;;  %v5173_v35 = vpop.eup %5172  ;;  %v3255_v22 = vmul.f32 0.5, %v3213_v32 }
 0x6f6   : > { %v3215_v1 = vpop.f32.mrf.mxu0  ;;  %v3347_v30 = vadd.f32 1.0, %v5173_v35  ;;  %v3381_v9 = vmul.f32 %v3349_v62, %v3253_v24 }
 0x6f7   : > { %v5175_v21 = vpop.eup %5174  ;;  %5178 = verf.f32 %v3287_v3  ;;  %v3290_v29 = vmul.f32 0.70710677, %v3224_v31  ;;  %v3216_v5 = vadd.f32 %v6952_v58, %v3215_v1  ;;  %v3258_v56 = vmul.f32 0.5, %v3224_v31 }
 0x6f8   : > { %v3350_v54 = vadd.f32 1.0, %v5175_v21  ;;  %5180 = verf.f32 %v3289_v39  ;;  %v3379_v16 = vmul.f32 %v3347_v30, %v3251_v6  ;;  %v6989_v6 = vld [vmem:[%s7186_s18] ss:$0 sm:$0xff] }
 0x6f9   : > { %5182 = verf.f32 %v3290_v29  ;;  %v3288_v0 = vmul.f32 0.70710677, %v3216_v5  ;;  %v5177_v59 = vpop.eup %5176  ;;  %v3256_v1 = vmul.f32 0.5, %v3216_v5 }
 0x6fa   : > { %v3348_v25 = vadd.f32 1.0, %v5177_v59  ;;  %v3382_v18 = vmul.f32 %v3350_v54, %v3254_v50 }
 0x6fb   : > { %5184 = verf.f32 %v3288_v0 }
 0x6fc   : > { %v3380_v44 = vmul.f32 %v3348_v25, %v3252_v40  ;;  %v3416_v42 = vpack.c.bf16 %v3382_v18, %v3381_v9 }
 0x6fe   : > { %v3415_v20 = vpack.c.bf16 %v3380_v44, %v3379_v16 }
 0x700   : > { %4665 = vmatprep.mubr.bf16.mxu1 %v3415_v20 }
 0x701   : > { %4666 = vmatmul.mubr.bf16.gmra.mxu1 %v3416_v42 }
 0x704   : > { %v5179_v58 = vpop.eup %5178 }
 0x705   : > { %v5181_v39 = vpop.eup %5180  ;;  %v3351_v3 = vadd.f32 1.0, %v5179_v58 }
 0x706   : > { %v5183_v13 = vpop.eup %5182  ;;  %v3353_v34 = vadd.f32 1.0, %v5181_v39 }
 0x707   : > { %v3354_v35 = vadd.f32 1.0, %v5183_v13  ;;  %v3383_v54 = vmul.f32 %v3351_v3, %v3255_v22 }
 0x708   : > { %v5185_v41 = vpop.eup %5184  ;;  %v3385_v0 = vmul.f32 %v3353_v34, %v3257_v33  ;;  %v7187_v34 = vld [vmem:[#allocation22_spill] sm:$0xff] }
 0x709   : > { %v3352_v21 = vadd.f32 1.0, %v5185_v41  ;;  %v3386_v29 = vmul.f32 %v3354_v35, %v3258_v56 }
 0x70b   : > { %v3384_v30 = vmul.f32 %v3352_v21, %v3256_v1  ;;  %v3418_v62 = vpack.c.bf16 %v3386_v29, %v3385_v0 }
 0x70d   : > { %v3417_v59 = vpack.c.bf16 %v3384_v30, %v3383_v54 }
 0x70f   : > { %4669 = vmatprep.mubr.bf16.mxu1 %v3417_v59 }
 0x710   : > { %4670 = vmatmul.mubr.bf16.gmra.mxu1 %v3418_v62 }
 0x761   : > { %v4643_v50 = vpop.f32.mrf.mxu0 }
 0x762   : > { %v3517_v32 = vadd.f32 %v4643_v50, %v6989_v6 }
 0x763   : > { %v3508_v31 = vpop.f32.mrf.mxu0 }
 0x764   : > { %v3509_v8 = vadd.f32 %v6989_v6, %v3508_v31  ;;  %v3637_v24 = vadd.f32 %v3517_v32, %v6471_v51 }
 0x765   : > { %v4644_v5 = vpop.f32.mrf.mxu0 }
 0x766   : > { %v3520_v40 = vadd.f32 %v4644_v5, %v6989_v6  ;;  %v3635_v44 = vadd.f32 %v3509_v8, %v6477_v4 }
 0x767   : > { %v3511_v25 = vpop.f32.mrf.mxu0 }
 0x768   : > { %v3638_v18 = vadd.f32 %v3520_v40, %v6480_v37  ;;  %v3512_v16 = vadd.f32 %v6989_v6, %v3511_v25 }
 0x76a   : > { %v4154_v9 = vpack.c.bf16 %v3638_v18, %v3637_v24  ;;  %v3636_v20 = vadd.f32 %v3512_v16, %v6486_v27 }
 0x76c   : > { %4226 = vst [vmem:[%s7000_s16 + $0x8] sm:$0xff] %v4154_v9   ;;  %v4149_v42 = vpack.c.bf16 %v3636_v20, %v3635_v44 }
 0x76e   : > { %4150 = vst [vmem:[%s7000_s16] sm:$0xff] %v4149_v42  }
 0x771   : > { %v4647_v58 = vpop.f32.mrf.mxu0 }
 0x772   : > { %v3533_v37 = vadd.f32 %v4647_v58, %v6989_v6 }
 0x773   : > { %v3524_v51 = vpop.f32.mrf.mxu0 }
 0x774   : > { %v3525_v13 = vadd.f32 %v6989_v6, %v3524_v51  ;;  %v3641_v27 = vadd.f32 %v3533_v37, %v6497_v23 }
 0x775   : > { %v4648_v39 = vpop.f32.mrf.mxu0 }
 0x776   : > { %v3536_v4 = vadd.f32 %v4648_v39, %v6989_v6  ;;  %v3639_v56 = vadd.f32 %v3525_v13, %v7187_v34 }
 0x777   : > { %v3527_v3 = vpop.f32.mrf.mxu0 }
 0x778   : > { %v3642_v35 = vadd.f32 %v3536_v4, %v6508_v26  ;;  %v3528_v41 = vadd.f32 %v6989_v6, %v3527_v3 }
 0x77a   : > { %v4164_v22 = vpack.c.bf16 %v3642_v35, %v3641_v27  ;;  %v3640_v1 = vadd.f32 %v3528_v41, %v6514_v38 }
 0x77c   : > { %4228 = vst [vmem:[%s7000_s16 + $0x18] sm:$0xff] %v4164_v22   ;;  %v4159_v21 = vpack.c.bf16 %v3640_v1, %v3639_v56 }
 0x77e   : > { %4227 = vst [vmem:[%s7000_s16 + $0x10] sm:$0xff] %v4159_v21  }
 0x781   : > { %v4651_v33 = vpop.f32.mrf.mxu1 }
 0x782   : > { %v3549_v54 = vadd.f32 %v4651_v33, %v6989_v6 }
 0x783   : > { %v3540_v29 = vpop.f32.mrf.mxu1 }
 0x784   : > { %v3541_v23 = vadd.f32 %v6989_v6, %v3540_v29  ;;  %v3645_v59 = vadd.f32 %v3549_v54, %v6525_v2 }
 0x785   : > { %v4652_v30 = vpop.f32.mrf.mxu1 }
 0x786   : > { %v3552_v26 = vadd.f32 %v4652_v30, %v6989_v6  ;;  %v3643_v50 = vadd.f32 %v3541_v23, %v6533_v19 }
 0x787   : > { %v3543_v0 = vpop.f32.mrf.mxu1 }
 0x788   : > { %v3646_v62 = vadd.f32 %v3552_v26, %v6536_v45  ;;  %v3544_v38 = vadd.f32 %v6989_v6, %v3543_v0 }
 0x78a   : > { %v4174_v31 = vpack.c.bf16 %v3646_v62, %v3645_v59  ;;  %v3644_v32 = vadd.f32 %v3544_v38, %v6542_v36 }
 0x78c   : > { %4230 = vst [vmem:[%s7000_s16 + $0x28] sm:$0xff] %v4174_v31   ;;  %v4169_v5 = vpack.c.bf16 %v3644_v32, %v3643_v50 }
 0x78e   : > { %4229 = vst [vmem:[%s7000_s16 + $0x20] sm:$0xff] %v4169_v5  }
 0x791   : > { %v4655_v8 = vpop.f32.mrf.mxu1 }
 0x792   : > { %v3565_v25 = vadd.f32 %v4655_v8, %v6989_v6 }
 0x793   : > { %v3556_v40 = vpop.f32.mrf.mxu1 }
 0x794   : > { %v3557_v2 = vadd.f32 %v6989_v6, %v3556_v40  ;;  %v3649_v19 = vadd.f32 %v3565_v25, %v6553_v61 }
 0x795   : > { %v4656_v24 = vpop.f32.mrf.mxu1 }
 0x796   : > { %v3568_v45 = vadd.f32 %v4656_v24, %v6989_v6  ;;  %v3647_v44 = vadd.f32 %v3557_v2, %v6561_v12 }
 0x797   : > { %v3559_v18 = vpop.f32.mrf.mxu1 }
 0x798   : > { %v3650_v16 = vadd.f32 %v3568_v45, %v6564_v43  ;;  %v3560_v36 = vadd.f32 %v6989_v6, %v3559_v18 }
 0x79a   : > { %v4184_v9 = vpack.c.bf16 %v3650_v16, %v3649_v19  ;;  %v3648_v20 = vadd.f32 %v3560_v36, %v6570_v53 }
 0x79c   : > { %4232 = vst [vmem:[%s7000_s16 + $0x38] sm:$0xff] %v4184_v9   ;;  %v4179_v42 = vpack.c.bf16 %v3648_v20, %v3647_v44 }
 0x79e   : > { %4231 = vst [vmem:[%s7000_s16 + $0x30] sm:$0xff] %v4179_v42  }
 0x7a1   : > { %v4659_v58 = vpop.f32.mrf.mxu1 }
 0x7a2   : > { %v3581_v37 = vadd.f32 %v4659_v58, %v6989_v6 }
 0x7a3   : > { %v3572_v51 = vpop.f32.mrf.mxu1 }
 0x7a4   : > { %v3573_v61 = vadd.f32 %v6989_v6, %v3572_v51  ;;  %v3653_v12 = vadd.f32 %v3581_v37, %v6581_v60 }
 0x7a5   : > { %v4660_v39 = vpop.f32.mrf.mxu1 }
 0x7a6   : > { %v3584_v43 = vadd.f32 %v4660_v39, %v6989_v6  ;;  %v3651_v3 = vadd.f32 %v3573_v61, %v6589_v17 }
 0x7a7   : > { %v3575_v13 = vpop.f32.mrf.mxu1 }
 0x7a8   : > { %v3654_v4 = vadd.f32 %v3584_v43, %v6592_v7  ;;  %v3576_v53 = vadd.f32 %v6989_v6, %v3575_v13 }
 0x7aa   : > { %v4194_v27 = vpack.c.bf16 %v3654_v4, %v3653_v12  ;;  %v3652_v35 = vadd.f32 %v3576_v53, %v6598_v57 }
 0x7ac   : > { %4234 = vst [vmem:[%s7000_s16 + $0x48] sm:$0xff] %v4194_v27   ;;  %v4189_v41 = vpack.c.bf16 %v3652_v35, %v3651_v3 }
 0x7ae   : > { %4233 = vst [vmem:[%s7000_s16 + $0x40] sm:$0xff] %v4189_v41  }
 0x7b1   : > { %v4663_v34 = vpop.f32.mrf.mxu1 }
 0x7b2   : > { %v3597_v22 = vadd.f32 %v4663_v34, %v6989_v6 }
 0x7b3   : > { %v3588_v56 = vpop.f32.mrf.mxu1 }
 0x7b4   : > { %v3589_v60 = vadd.f32 %v6989_v6, %v3588_v56  ;;  %v3657_v17 = vadd.f32 %v3597_v22, %v6609_v14 }
 0x7b5   : > { %v4664_v1 = vpop.f32.mrf.mxu1 }
 0x7b6   : > { %v3600_v7 = vadd.f32 %v4664_v1, %v6989_v6  ;;  %v3655_v29 = vadd.f32 %v3589_v60, %v6617_v15 }
 0x7b7   : > { %v3591_v21 = vpop.f32.mrf.mxu1 }
 0x7b8   : > { %v3658_v33 = vadd.f32 %v3600_v7, %v6620_v11  ;;  %v3592_v57 = vadd.f32 %v6989_v6, %v3591_v21 }
 0x7ba   : > { %v4204_v54 = vpack.c.bf16 %v3658_v33, %v3657_v17  ;;  %v3656_v30 = vadd.f32 %v3592_v57, %v6626_v10 }
 0x7bc   : > { %4236 = vst [vmem:[%s7000_s16 + $0x58] sm:$0xff] %v4204_v54   ;;  %v4199_v23 = vpack.c.bf16 %v3656_v30, %v3655_v29 }
 0x7be   : > { %4235 = vst [vmem:[%s7000_s16 + $0x50] sm:$0xff] %v4199_v23  }
 0x7c1   : > { %v4667_v26 = vpop.f32.mrf.mxu1 }
 0x7c2   : > { %v3613_v59 = vadd.f32 %v4667_v26, %v6989_v6 }
 0x7c3   : > { %v3604_v0 = vpop.f32.mrf.mxu1 }
 0x7c4   : > { %v3605_v14 = vadd.f32 %v6989_v6, %v3604_v0  ;;  %v3661_v15 = vadd.f32 %v3613_v59, %v6637_v55 }
 0x7c5   : > { %v4668_v62 = vpop.f32.mrf.mxu1 }
 0x7c6   : > { %v3616_v11 = vadd.f32 %v4668_v62, %v6989_v6  ;;  %v3659_v31 = vadd.f32 %v3605_v14, %v6648_v47 }
 0x7c7   : > { %v3607_v38 = vpop.f32.mrf.mxu1 }
 0x7c8   : > { %v3662_v50 = vadd.f32 %v3616_v11, %v6644_v48  ;;  %v3608_v10 = vadd.f32 %v6989_v6, %v3607_v38 }
 0x7ca   : > { %v4214_v32 = vpack.c.bf16 %v3662_v50, %v3661_v15  ;;  %v3660_v5 = vadd.f32 %v3608_v10, %v6654_v49 }
 0x7cc   : > { %4238 = vst [vmem:[%s7000_s16 + $0x68] sm:$0xff] %v4214_v32   ;;  %v4209_v8 = vpack.c.bf16 %v3660_v5, %v3659_v31 }
 0x7ce   : > { %4237 = vst [vmem:[%s7000_s16 + $0x60] sm:$0xff] %v4209_v8  }
 0x7d0   : > { %v4671_v40 = vpop.f32.mrf.mxu1 }
 0x7d1   : > { %v3629_v24 = vadd.f32 %v4671_v40, %v6989_v6 }
 0x7d2   : > { %v3620_v25 = vpop.f32.mrf.mxu1 }
 0x7d3   : > { %v3621_v48 = vadd.f32 %v6989_v6, %v3620_v25  ;;  %v3665_v45 = vadd.f32 %v3629_v24, %v6665_v46 }
 0x7d4   : > { %v4672_v55 = vpop.f32.mrf.mxu1 }
 0x7d5   : > { %v3632_v47 = vadd.f32 %v4672_v55, %v6989_v6  ;;  %v3663_v19 = vadd.f32 %v3621_v48, %v6676_v52 }
 0x7d6   : > { %v3623_v2 = vpop.f32.mrf.mxu1 }
 0x7d7   : > { %v3666_v49 = vadd.f32 %v3632_v47, %v6672_v28  ;;  %v3624_v18 = vadd.f32 %v6989_v6, %v3623_v2 }
 0x7d9   : > { %v4224_v16 = vpack.c.bf16 %v3666_v49, %v3665_v45  ;;  %v3664_v36 = vadd.f32 %v3624_v18, %v6682_v63 }
 0x7db   : > { %4240 = vst [vmem:[%s7000_s16 + $0x78] sm:$0xff] %v4224_v16   ;;  %v4219_v46 = vpack.c.bf16 %v3664_v36, %v3663_v19 }
 0x7dd   : > { %4239 = vst [vmem:[%s7000_s16 + $0x70] sm:$0xff] %v4219_v46  }
 0x7de   : > { %5415 = shalt.err (!%p5412_p13)
}
 0x7df   : > { %s5416_s28 = scalar_lea.hbm %s7077_s25, 2048  ;;  %s5420_s30 = scalar_lea.hbm %s7188_s17, 4096 }
 0x7e0   : > { %p5417_p2 = scmp.ne.s32.totalorder %s7077_s25, %s5416_s28  ;;  %p5421_p8 = scmp.lt.s32.totalorder %s7077_s25, %s7188_s17 }
 0x7e1   : > { %p5422_p12 = scmp.lt.s32.totalorder %s5420_s30, %s5416_s28 }
 0x7e2   : > { %p5418_p9 = pnand %p5417_p2, %p5737_p11 }
 0x7e3   : > { %p5423_p4 = por %p5422_p12, %p5421_p8 }
 0x7e4   : > { %p5419_p6 = pneg %p5418_p9 }
 0x7e6   : > { %p5424_p1 = pnand %p5423_p4, %p5419_p6 }
 0x7e8   : > { %5427 = shalt.err (!%p5424_p1)
}
 0x7e9   : > { %s5508_s16 = smov 64   ;;  %s5509_s13 = smov 4  }
 0x7ea   : > { %4715 = dma.vmem_to_hbm [thread:$0]  (%p5737_p11), %s7079_s2, 2048, %s7077_s25, %s3828_s24, %s5508_s16, %s5508_s16, %s5509_s13  }
 0x7eb PF: > { %s3858_s8 = sand.u32 1, %s5474_s21   ;;  %p7189_p3 = scmp.ne.s32.totalorder %s7179_s0, 0 }
 0x7ec   : > { %p7190_p5 = scmp.ge.s32.totalorder %s5494_s26, 2  ;;  %s3859_s11 = scalar_lea.sflag [#allocation4], %s3858_s8 }
 0x7ee   : > { %p4741_p10 = pnand %p7190_p5, %p7189_p3 }
 0x7f0   : > { %p4742_p0 = pneg %p4741_p10 }
 0x7f2   : > { %5469 = dma.done.wait (%p4742_p0), %s3859_s11, 2048  }
 0x7f3   : > { %5471 = vsyncadd (%p4742_p0), %s3859_s11, 4294965248  ;;  %s35_s26 = sadd.s32 1, %s5494_s26   ;;  %s7191_s24 = sld [smem:[#allocation20_spill]] }
 0x7f4   : > { %p32_p7 = scmp.ge.s32.totalorder %s35_s26, 4   ;;  %s7192_s25 = sld [smem:[#allocation21_spill]] }
 0x7f5   : > { %s7193_s21 = smov %s5478_s22  ;;  %s7194_s22 = smov %s5482_s23 }
 0x7f6   : > { %s7195_s23 = smov %s5742_s15  ;;  %34 = sbr.rel (!%p32_p7) target bundleno = 22 (0x16), region = 155 }
 0x7fb   :  { %3864 = vsyncpa [#allocation3], 1 }
 0x7fc   :  { %3866 = vsyncpa [#allocation3 + $0x1], 1 }
 0x7fd   :  { %3867 = vsyncpa [#allocation6], 1 }
 0x7fe   :  { %3868 = vsyncpa [#allocation9], 1 }
 0x7ff   :  { %3869 = vsyncpa [#allocation12], 1 }
 0x800   :  { %3870 = vsyncpa [#allocation4], 1 }
 0x801   :  { %3872 = vsyncpa [#allocation4 + $0x1], 1 }

// kernel: tpu_custom_call.1
= control target key start
LH: loop header
LB: loop body
LE: loop exit
PB: predicated region body
PF: predicated region fallthrough
CT: control target
= control target key end

     0   :  { %s7129_s0 = inlined_call_operand.hbm [shape: f32[2,256,128], index: 0, kind: input, shape index: {}]   ;;  %s7130_s1 = inlined_call_operand.hbm [shape: bf16[2,128,128], index: 1, kind: input, shape index: {}]   ;;  %s7131_s2 = inlined_call_operand.hbm [shape: bf16[2,128,128], index: 2, kind: input, shape index: {}]   ;;  %s7132_s3 = inlined_call_operand.vmem [shape: f32[1,128], index: 3, kind: input, shape index: {}]   ;;  %s7133_s4 = inlined_call_operand.vmem [shape: f32[1,128], index: 4, kind: input, shape index: {}]   ;;  %s7134_s5 = inlined_call_operand.vmem [shape: f32[1,128], index: 5, kind: input, shape index: {}]   ;;  %s7135_s6 = inlined_call_operand.hbm [shape: bf16[128,128], index: 6, kind: input, shape index: {}]   ;;  %s7136_s7 = inlined_call_operand.vmem [shape: f32[1,128], index: 7, kind: input, shape index: {}]   ;;  %s7137_s8 = inlined_call_operand.hbm [shape: bf16[128,128], index: 8, kind: input, shape index: {}]   ;;  %s7138_s9 = inlined_call_operand.vmem [shape: f32[1,128], index: 9, kind: input, shape index: {}]   ;;  %s7139_s10 = inlined_call_operand.vmem [shape: f32[1,128], index: 10, kind: input, shape index: {}]   ;;  %s7140_s11 = inlined_call_operand.vmem [shape: f32[1,128], index: 11, kind: input, shape index: {}]   ;;  %s7141_s12 = inlined_call_operand.hbm [shape: bf16[128,128], index: 12, kind: input, shape index: {}]   ;;  %s7142_s13 = inlined_call_operand.vmem [shape: f32[1,128], index: 13, kind: input, shape index: {}]   ;;  %s7143_s14 = inlined_call_operand.hbm [shape: bf16[128,128], index: 14, kind: input, shape index: {}]   ;;  %s7144_s15 = inlined_call_operand.vmem [shape: f32[1,128], index: 15, kind: input, shape index: {}]   ;;  %s7145_s16 = inlined_call_operand.hbm [shape: bf16[2,256,128], index: 16, kind: output, shape index: {}]  }
   0x1   :  { %7151 = sst [smem:[#allocation23_spill]] %s7129_s0 }
   0x2   :  { %7152 = sst [smem:[#allocation24_spill]] %s7130_s1 }
   0x3   :  { %7153 = sst [smem:[#allocation25_spill]] %s7131_s2 }
   0x4   :  { %7154 = sst [smem:[#allocation26_spill]] %s7135_s6 }
   0x5   :  { %7155 = sst [smem:[#allocation27_spill]] %s7137_s8 }
   0x6   :  { %7156 = sst [smem:[#allocation28_spill]] %s7139_s10 }
   0x7   :  { %7157 = sst [smem:[#allocation29_spill]] %s7140_s11 }
   0x8   :  { %7158 = sst [smem:[#allocation30_spill]] %s7141_s12 }
   0x9   :  { %7159 = sst [smem:[#allocation31_spill]] %s7142_s13 }
   0xa   :  { %7160 = sst [smem:[#allocation32_spill]] %s7143_s14 }
   0xb   :  { %7161 = sst [smem:[#allocation33_spill]] %s7144_s15 }
   0xc   :  { %7162 = sst [smem:[#allocation34_spill]] %s7145_s16 }
   0xd   :  { %21 = vsyncpa [#allocation3], 0 }
   0xe   :  { %23 = vsyncpa [#allocation3 + $0x1], 0 }
   0xf   :  { %24 = vsyncpa [#allocation6], 0 }
  0x10   :  { %25 = vsyncpa [#allocation9], 0 }
  0x11   :  { %26 = vsyncpa [#allocation12], 0 }
  0x12   :  { %27 = vsyncpa [#allocation4], 0 }
  0x13   :  { %29 = vsyncpa [#allocation4 + $0x1], 0  ;;  %s5595_s21 = smov 0   ;;  %s5597_s22 = smov 0  }
  0x14   :  { %s5599_s23 = smov 0   ;;  %s5601_s24 = smov 0  }
  0x15   :  { %s5603_s25 = smov 0   ;;  %s5605_s26 = smov 0  }
  0x16 LB: > { %7163 = sst [smem:[#allocation20_spill]] %s5490_s25  ;;  %s7146_s27 = sadd.s32 4294967295, %s5494_s26   ;;  %s5494_s26 = sphi %s5605_s26, %s35_s26   ;;  %s5490_s25 = sphi %s5603_s25, %s7192_s25   ;;  %s5486_s24 = sphi %s5601_s24, %s7191_s24   ;;  %s5482_s23 = sphi %s5599_s23, %s7195_s23   ;;  %s5478_s22 = sphi %s5597_s22, %s7194_s22   ;;  %s5474_s21 = sphi %s5595_s21, %s7193_s21  }
  0x17   : > { %p3993_p0 = scmp.ge.s32.totalorder %s5494_s26, 1  ;;  %p5629_p1 = scmp.eq.s32.totalorder %s7146_s27, 0 }
  0x18   : > { %p423_p2 = scmp.lt.s32.totalorder %s5494_s26, 3  ;;  %s5496_s30 = smov [#allocation5]  }
  0x19   : > { %s435_s0 = sshll.u32 %s5496_s30, 4  ;;  %s5497_s18 = smov [#allocation8]   ;;  %s436_s0 = int_to_ptr.vmem [resolvable:$true] %s435_s0 }
  0x1a   : > { %p5634_p3 = pnand %p3993_p0, %p423_p2  ;;  %s470_s19 = sshll.u32 %s5497_s18, 4  ;;  %s471_s19 = int_to_ptr.vmem [resolvable:$true] %s470_s19 }
  0x1b   : > { %s5498_s20 = smov [#allocation11]   ;;  %s5229_s30 = scalar_lea.vmem %s436_s0, 2048 }
  0x1c   : > { %p4717_p4 = pneg %p5634_p3  ;;  %s508_s27 = sshll.u32 %s5498_s20, 4  ;;  %s509_s27 = int_to_ptr.vmem [resolvable:$true] %s508_s27 }
  0x1d   : > { %p5230_p8 = scmp.ne.s32.totalorder %s436_s0, %s5229_s30  ;;  %p5237_p11 = scmp.lt.s32.totalorder %s436_s0, %s436_s0 }
  0x1e   : > { %p5643_p6 = pnand %p4717_p4, %p5629_p1  ;;  %p5238_p12 = scmp.lt.s32.totalorder %s5229_s30, %s5229_s30 }
  0x20   : > { %p5649_p7 = pneg %p5643_p6  ;;  %p5239_p13 = por %p5238_p12, %p5237_p11 }
  0x22   : > { %p5232_p9 = pnand %p5230_p8, %p5649_p7 }
  0x24   : > { %p5233_p10 = pneg %p5232_p9 }
  0x26   : > { %p5240_p0 = pnand %p5239_p13, %p5233_p10 }
  0x28   : > { %5243 = shalt.err (!%p5240_p0)
}
  0x29   : > { %s5499_s18 = smov 64   ;;  %s5500_s20 = smov 4  }
  0x2a   : > { %s7168_s1 = sld [smem:[#allocation24_spill]]  ;;  %s5255_s11 = scalar_lea.vmem %s471_s19, 1024 }
  0x2b   : > { %p5256_p2 = scmp.ne.s32.totalorder %s471_s19, %s5255_s11  ;;  %p5263_p9 = scmp.lt.s32.totalorder %s471_s19, %s471_s19 }
  0x2c   : > { %p5264_p10 = scmp.lt.s32.totalorder %s5255_s11, %s5255_s11 }
  0x2d   : > { %p5258_p4 = pnand %p5256_p2, %p5649_p7 }
  0x2e   : > { %p5265_p11 = por %p5264_p10, %p5263_p9 }
  0x2f   : > { %p5259_p8 = pneg %p5258_p4 }
  0x30   : > { %4720 = dma.hbm_to_vmem [thread:$0]  (!%p5643_p6), %s7168_s1, 2048, %s436_s0, [#allocation6], %s5499_s18, %s5499_s18, %s5500_s20  }
  0x31   : > { %p5266_p12 = pnand %p5265_p11, %p5259_p8 }
  0x33   : > { %5269 = shalt.err (!%p5266_p12)
}
  0x34   : > { %s7169_s6 = sld [smem:[#allocation26_spill]]  ;;  %s5281_s13 = scalar_lea.vmem %s509_s27, 1024 }
  0x35   : > { %p5282_p13 = scmp.ne.s32.totalorder %s509_s27, %s5281_s13  ;;  %p5289_p4 = scmp.lt.s32.totalorder %s509_s27, %s509_s27 }
  0x36   : > { %p5290_p9 = scmp.lt.s32.totalorder %s5281_s13, %s5281_s13 }
  0x37   : > { %p5284_p0 = pnand %p5282_p13, %p5649_p7 }
  0x38   : > { %p5291_p8 = por %p5290_p9, %p5289_p4 }
  0x39   : > { %p5285_p2 = pneg %p5284_p0 }
  0x3a   : > { %4726 = dma.hbm_to_vmem [thread:$0]  (!%p5643_p6), %s7169_s6, 1024, %s471_s19, [#allocation9], %s5499_s18, %s5499_s18, %s5500_s20  }
  0x3b   : > { %p5292_p10 = pnand %p5291_p8, %p5285_p2 }
  0x3d   : > { %5295 = shalt.err (!%p5292_p10)
}
  0x3e   : > { %s7170_s12 = sld [smem:[#allocation30_spill]]  ;;  %s5501_s15 = smov [#allocation7]  }
  0x3f   : > { %s448_s0 = sshll.u32 %s5501_s15, 4  ;;  %s5502_s19 = smov [#allocation10]   ;;  %s449_s0 = int_to_ptr.vmem [resolvable:$true] %s448_s0 }
  0x40   : > { %s486_s30 = sshll.u32 %s5502_s19, 4  ;;  %s5307_s1 = scalar_lea.vmem %s449_s0, 2048  ;;  %s487_s30 = int_to_ptr.vmem [resolvable:$true] %s486_s30 }
  0x41   : > { %p5308_p11 = scmp.ne.s32.totalorder %s449_s0, %s5307_s1  ;;  %p5315_p0 = scmp.lt.s32.totalorder %s449_s0, %s449_s0 }
  0x42   : > { %p5316_p2 = scmp.lt.s32.totalorder %s5307_s1, %s5307_s1 }
  0x43   : > { %p5310_p12 = pnand %p5308_p11, %p5649_p7 }
  0x44   : > { %4732 = dma.hbm_to_vmem [thread:$0]  (!%p5643_p6), %s7170_s12, 1024, %s509_s27, [#allocation12], %s5499_s18, %s5499_s18, %s5500_s20  }
  0x45   : > { %p5311_p13 = pneg %p5310_p12  ;;  %p5317_p4 = por %p5316_p2, %p5315_p0 }
  0x47   : > { %p5318_p9 = pnand %p5317_p4, %p5311_p13 }
  0x49   : > { %5321 = shalt.err (!%p5318_p9)
}
  0x4a   : > { %s7171_s2 = sld [smem:[#allocation25_spill]]  ;;  %s5333_s11 = scalar_lea.vmem %s487_s30, 1024 }
  0x4b   : > { %p5334_p8 = scmp.ne.s32.totalorder %s487_s30, %s5333_s11  ;;  %p5341_p12 = scmp.lt.s32.totalorder %s487_s30, %s487_s30 }
  0x4c   : > { %p5342_p0 = scmp.lt.s32.totalorder %s5333_s11, %s5333_s11 }
  0x4d   : > { %p5336_p10 = pnand %p5334_p8, %p5649_p7 }
  0x4e   : > { %p5343_p13 = por %p5342_p0, %p5341_p12 }
  0x4f   : > { %p5337_p11 = pneg %p5336_p10 }
  0x50   : > { %4723 = dma.hbm_to_vmem [thread:$0]  (!%p5643_p6), %s7171_s2, 2048, %s449_s0, [#allocation6], %s5499_s18, %s5499_s18, %s5500_s20  }
  0x51   : > { %p5344_p2 = pnand %p5343_p13, %p5337_p11 }
  0x53   : > { %5347 = shalt.err (!%p5344_p2)
}
  0x54   : > { %s7172_s8 = sld [smem:[#allocation27_spill]]  ;;  %s5503_s15 = smov [#allocation13]  }
  0x55   : > { %s524_s0 = sshll.u32 %s5503_s15, 4  ;;  %s525_s0 = int_to_ptr.vmem [resolvable:$true] %s524_s0 }
  0x56   : > { %s5359_s19 = scalar_lea.vmem %s525_s0, 1024  ;;  %p5367_p10 = scmp.lt.s32.totalorder %s525_s0, %s525_s0 }
  0x57   : > { %p5360_p4 = scmp.ne.s32.totalorder %s525_s0, %s5359_s19  ;;  %p5368_p11 = scmp.lt.s32.totalorder %s5359_s19, %s5359_s19 }
  0x59   : > { %p5362_p9 = pnand %p5360_p4, %p5649_p7  ;;  %p5369_p12 = por %p5368_p11, %p5367_p10 }
  0x5a   : > { %4729 = dma.hbm_to_vmem [thread:$0]  (!%p5643_p6), %s7172_s8, 1024, %s487_s30, [#allocation9], %s5499_s18, %s5499_s18, %s5500_s20  }
  0x5b   : > { %p5363_p8 = pneg %p5362_p9 }
  0x5d   : > { %p5370_p0 = pnand %p5369_p12, %p5363_p8 }
  0x5f   : > { %5373 = shalt.err (!%p5370_p0)
}
  0x60   : > { %s7173_s14 = sld [smem:[#allocation32_spill]]  ;;  %s3992_s16 = sadd.s32 4294967294, %s5494_s26  }
  0x61   : > { %s47_s17 = sadd.s32 1, %s5490_s25  ;;  %s56_s13 = sadd.s32 1, %s5482_s23 }
  0x62   : > { %p49_p7 = scmp.ge.s32.totalorder %s47_s17, 2  ;;  %p63_p13 = scmp.ne.s32.totalorder %s5482_s23, %s5478_s22 }
  0x63   : > { %p64_p2 = scmp.eq.s32.totalorder %s5494_s26, 0  ;;  %p69_p9 = scmp.ne.s32.totalorder %s5478_s22, %s5474_s21 }
  0x64   : > { %s7197_s17 = smov (%p49_p7, %s47_s17), 0  ;;  %p416_p12 = scmp.eq.s32.totalorder %s3992_s16, 1 }
  0x65   : > { %7174 = sst [smem:[#allocation21_spill]] %s7197_s17  ;;  %p5721_p4 = por %p64_p2, %p63_p13 }
  0x66   : > { %4735 = dma.hbm_to_vmem [thread:$0]  (!%p5643_p6), %s7173_s14, 1024, %s525_s0, [#allocation12], %s5499_s18, %s5499_s18, %s5500_s20  }
  0x67   : > { %s51_s18 = ssub.s32 %s5490_s25, %s7197_s17  ;;  %s7176_s20 = sadd.s32 4294967295, %s5494_s26  }
  0x68   : > { %p410_p6 = scmp.eq.s32.totalorder %s7176_s20, 1  ;;  %p54_p8 = scmp.eq.s32.totalorder %s51_s18, 0 }
  0x69   : > { %p5733_p10 = por %p5629_p1, %p69_p9  ;;  %p5744_p0 = por %p416_p12, %p69_p9 }
  0x6a   : > { %p5737_p11 = por %p410_p6, %p63_p13  ;;  %p4750_p7 = scmp.lt.s32.totalorder %s5494_s26, 2 }
  0x6b   : > { %s5742_s15 = scalar_select %p54_p8, %s5482_s23, %s56_s13  }
  0x6c   : > { %s7179_s0 = scalar_select %p5744_p0, 1, 0 }
  0x6d   : > { %s541_s19 = sand.u32 1, %s5482_s23   ;;  %s4110_s27 = sshll.u32 %s5490_s25, 12 }
  0x6e   : > { %s4001_s30 = sshll.u32 %s541_s19, 8  ;;  %s7180_s2 = sld [smem:[#allocation23_spill]] }
  0x6f   : > { %s545_s8 = scalar_lea.vmem [#allocation2], %s4001_s30  ;;  %p5756_p13 = pnand %p4750_p7, %p5721_p4 }
  0x70   : > { %s554_s12 = sshll.u32 %s545_s8, 4  ;;  %s542_s16 = scalar_lea.sflag [#allocation3], %s541_s19  ;;  %s555_s12 = int_to_ptr.vmem [resolvable:$true] %s554_s12 }
  0x71   : > { %p5376_p2 = pneg %p5756_p13  ;;  %s5387_s13 = scalar_lea.vmem %s555_s12, 4096 }
  0x72   : > { %p5388_p9 = scmp.ne.s32.totalorder %s555_s12, %s5387_s13  ;;  %s5504_s17 = smov [#allocation2]  }
  0x73   : > { %s5392_s25 = sshll.u32 %s5504_s17, 4  ;;  %s5393_s25 = int_to_ptr.vmem [resolvable:$false] %s5392_s25 }
  0x74   : > { %s553_s6 = scalar_lea.hbm %s7180_s2, %s4110_s27  ;;  %p5390_p6 = pnand %p5388_p9, %p5376_p2 }
  0x75   : > { %s5394_s2 = scalar_lea.vmem %s5393_s25, 8192  ;;  %p5395_p12 = scmp.lt.s32.totalorder %s555_s12, %s5393_s25 }
  0x76   : > { %p5391_p8 = pneg %p5390_p6  ;;  %p5396_p5 = scmp.lt.s32.totalorder %s5394_s2, %s5387_s13 }
  0x78   : > { %p5397_p0 = por %p5396_p5, %p5395_p12 }
  0x7a   : > { %p5398_p4 = pnand %p5397_p0, %p5391_p8 }
  0x7c   : > { %5401 = shalt.err (!%p5398_p4)
}
  0x7d   : > { %s5505_s8 = smov 128   ;;  %s5506_s11 = smov 8  }
  0x7e   : > { %4739 = dma.hbm_to_vmem [thread:$0]  (!%p5756_p13), %s553_s6, 4096, %s555_s12, %s542_s16, %s5505_s8, %s5505_s8, %s5506_s11  }
  0x7f   : > { %566 = sbr.rel (%p5634_p3) target bundleno = 2027 (0x7eb), region = 84 }
  0x84   : > { %s5767_s19 = sand.u32 1, %s5478_s22  }
  0x85   : > { %s4005_s17 = sshll.u32 %s5767_s19, 8  ;;  %s569_s25 = scalar_lea.sflag [#allocation3], %s5767_s19 }
  0x86   : > { %s5771_s27 = scalar_lea.vmem [#allocation2], %s4005_s17 }
  0x87   : > { %5453 = dma.done.wait (%p5733_p10), %s569_s25, 4096  }
  0x88   : > { %5455 = vsyncadd (%p5733_p10), %s569_s25, 4294963200 }
  0x89   : > { %5457 = dma.done.wait (%p5629_p1), [#allocation6], 4096  }
  0x8a   : > { %5459 = vsyncadd (%p5629_p1), [#allocation6], 4294963200 }
  0x8b   : > { %5461 = dma.done.wait (%p5629_p1), [#allocation9], 2048  }
  0x8c   : > { %5463 = vsyncadd (%p5629_p1), [#allocation9], 4294965248 }
  0x8d   : > { %5465 = dma.done.wait (%p5629_p1), [#allocation12], 2048  }
  0x8e   : > { %5467 = vsyncadd (%p5629_p1), [#allocation12], 4294965248  ;;  %v5790_v0 = vld [vmem:[%s5771_s27 + $0x10] sm:$0xff]  ;;  %v5793_v1 = vld [vmem:[%s5771_s27] sm:$0xff]  ;;  %s4111_s6 = sshll.u32 %s5486_s24, 6  ;;  %s7183_s25 = sld [smem:[#allocation28_spill]] }
  0x8f   : > { %686 = vadd.xlane.f32.xlu1 %v5790_v0  ;;  %682 = vadd.xlane.f32.xlu0 %v5793_v1  ;;  %v5798_v2 = vld [vmem:[%s5771_s27 + $0x18] sm:$0xff]  ;;  %v5801_v3 = vld [vmem:[%s5771_s27 + $0x8] sm:$0xff]  ;;  %v779_v5 = vmul.f32 %v5793_v1, %v5793_v1  ;;  %v781_v7 = vmul.f32 %v5790_v0, %v5790_v0  ;;  %v5817_v9 = vld [vmem:[%s5771_s27 + $0x20] sm:$0xff]  ;;  %s6015_s28 = scalar_lea.vmem [#allocation5], %s4111_s6  ;;  %s6046_s30 = scalar_lea.vmem [#allocation7], %s4111_s6 }
  0x90   : > { %v780_v4 = vmul.f32 %v5801_v3, %v5801_v3  ;;  %v782_v6 = vmul.f32 %v5798_v2, %v5798_v2  ;;  %v5814_v8 = vld [vmem:[%s5771_s27 + $0x28] sm:$0xff]  ;;  %v5820_v10 = vld [vmem:[%s5771_s27 + $0x38] sm:$0xff]  ;;  %v5823_v11 = vld [vmem:[%s5771_s27 + $0x30] sm:$0xff]  ;;  %v783_v14 = vmul.f32 %v5817_v9, %v5817_v9  ;;  %s7184_s12 = sld [smem:[#allocation29_spill]]  ;;  %s4012_s20 = sshll.u32 %s5767_s19, 7 }
  0x91   : > { %v4818_v12 = vld [vmem:[#allocation8 + $0x38] sm:$0xff]   ;;  %v784_v13 = vmul.f32 %v5814_v8, %v5814_v8  ;;  %v4819_v15 = vld [vmem:[#allocation8 + $0x30] sm:$0xff]   ;;  %v786_v16 = vmul.f32 %v5820_v10, %v5820_v10  ;;  %v785_v17 = vmul.f32 %v5823_v11, %v5823_v11  ;;  %v4820_v18 = vld [vmem:[#allocation8 + $0x28] sm:$0xff]   ;;  %s7185_s29 = sld [smem:[#allocation31_spill]]  ;;  %s7000_s16 = scalar_lea.vmem [#allocation14], %s4012_s20 }
  0x92   : > { %4385 = vmatprep.subr.bf16.mxu0 %v4818_v12  ;;  %v5838_v19 = vld [vmem:[%s5771_s27 + $0x48] sm:$0xff]  ;;  %v5841_v20 = vld [vmem:[%s5771_s27 + $0x40] sm:$0xff]  ;;  %v5846_v22 = vld [vmem:[%s5771_s27 + $0x58] sm:$0xff]  ;;  %s7186_s18 = sld [smem:[#allocation33_spill]]  ;;  %s4145_s13 = sshll.u32 %s5486_s24, 11 }
  0x93   : > { %688 = vadd.xlane.f32.xlu1 %v5798_v2  ;;  %684 = vadd.xlane.f32.xlu0 %v5801_v3  ;;  %v4821_v21 = vld [vmem:[#allocation8 + $0x20] sm:$0xff]   ;;  %v5849_v23 = vld [vmem:[%s5771_s27 + $0x50] sm:$0xff]  ;;  %v4822_v24 = vld [vmem:[#allocation8 + $0x18] sm:$0xff]   ;;  %v788_v25 = vmul.f32 %v5838_v19, %v5838_v19  ;;  %v787_v26 = vmul.f32 %v5841_v20, %v5841_v20  ;;  %v790_v28 = vmul.f32 %v5846_v22, %v5846_v22  ;;  %s3843_s2 = sshll.u32 %s7000_s16, 4  ;;  %s7188_s17 = sld [smem:[#allocation34_spill]]  ;;  %s7079_s2 = int_to_ptr.vmem [resolvable:$true] %s3843_s2 }
  0x94   : > { %4386 = vmatpush3.bf16.msra.mxu0 %v4818_v12  ;;  %v4823_v27 = vld [vmem:[#allocation8 + $0x10] sm:$0xff]   ;;  %v789_v29 = vmul.f32 %v5849_v23, %v5849_v23  ;;  %v4824_v30 = vld [vmem:[#allocation8 + $0x8] sm:$0xff]   ;;  %v5865_v32 = vld [vmem:[%s5771_s27 + $0x60] sm:$0xff]  ;;  %s3828_s24 = scalar_lea.sflag [#allocation4], %s5767_s19  ;;  %s5507_s6 = smov [#allocation14]  }
  0x95   : > { %4387 = vmatprep.subr.bf16.mxu0 %v4819_v15  ;;  %v5862_v31 = vld [vmem:[%s5771_s27 + $0x68] sm:$0xff]  ;;  %v4825_v33 = vld [vmem:[#allocation8] sm:$0xff]   ;;  %v5870_v34 = vld [vmem:[%s5771_s27 + $0x78] sm:$0xff]  ;;  %v791_v37 = vmul.f32 %v5865_v32, %v5865_v32 }
  0x96   : > { %v5873_v35 = vld [vmem:[%s5771_s27 + $0x70] sm:$0xff]  ;;  %v792_v36 = vmul.f32 %v5862_v31, %v5862_v31  ;;  %v794_v38 = vmul.f32 %v5870_v34, %v5870_v34  ;;  %v5886_v40 = vld [vmem:[%s5771_s27 + $0x88] sm:$0xff]  ;;  %v5889_v41 = vld [vmem:[%s5771_s27 + $0x80] sm:$0xff] }
  0x97   : > { %813 = vadd.xlane.f32.xlu1 %v780_v4  ;;  %811 = vadd.xlane.f32.xlu0 %v779_v5  ;;  %v793_v39 = vmul.f32 %v5873_v35, %v5873_v35  ;;  %v5894_v42 = vld [vmem:[%s5771_s27 + $0x98] sm:$0xff]  ;;  %v5897_v43 = vld [vmem:[%s5771_s27 + $0x90] sm:$0xff]  ;;  %v796_v44 = vmul.f32 %v5886_v40, %v5886_v40  ;;  %v795_v45 = vmul.f32 %v5889_v41, %v5889_v41  ;;  %v5910_v48 = vld [vmem:[%s5771_s27 + $0xa8] sm:$0xff] }
  0x98   : > { %4388 = vmatpush3.bf16.msra.mxu0 %v4819_v15  ;;  %v798_v46 = vmul.f32 %v5894_v42, %v5894_v42  ;;  %v797_v47 = vmul.f32 %v5897_v43, %v5897_v43  ;;  %v5913_v49 = vld [vmem:[%s5771_s27 + $0xa0] sm:$0xff]  ;;  %v5918_v50 = vld [vmem:[%s5771_s27 + $0xb8] sm:$0xff]  ;;  %v5921_v51 = vld [vmem:[%s5771_s27 + $0xb0] sm:$0xff]  ;;  %v800_v52 = vmul.f32 %v5910_v48, %v5910_v48 }
  0x99   : > { %4389 = vmatprep.subr.bf16.mxu0 %v4820_v18  ;;  %v799_v53 = vmul.f32 %v5913_v49, %v5913_v49  ;;  %v802_v54 = vmul.f32 %v5918_v50, %v5918_v50  ;;  %v801_v55 = vmul.f32 %v5921_v51, %v5921_v51  ;;  %v5934_v56 = vld [vmem:[%s5771_s27 + $0xc8] sm:$0xff]  ;;  %v5937_v57 = vld [vmem:[%s5771_s27 + $0xc0] sm:$0xff]  ;;  %v5942_v58 = vld [vmem:[%s5771_s27 + $0xd8] sm:$0xff] }
  0x9a   : > { %v5945_v59 = vld [vmem:[%s5771_s27 + $0xd0] sm:$0xff]  ;;  %v804_v60 = vmul.f32 %v5934_v56, %v5934_v56  ;;  %v803_v61 = vmul.f32 %v5937_v57, %v5937_v57  ;;  %v806_v62 = vmul.f32 %v5942_v58, %v5942_v58  ;;  %v5958_v4 = vld [vmem:[%s5771_s27 + $0xe8] sm:$0xff]  ;;  %v5961_v5 = vld [vmem:[%s5771_s27 + $0xe0] sm:$0xff] }
  0x9b   : > { %817 = vadd.xlane.f32.xlu1 %v782_v6  ;;  %815 = vadd.xlane.f32.xlu0 %v781_v7  ;;  %v805_v63 = vmul.f32 %v5945_v59, %v5945_v59  ;;  %v5966_v6 = vld [vmem:[%s5771_s27 + $0xf8] sm:$0xff]  ;;  %v5969_v7 = vld [vmem:[%s5771_s27 + $0xf0] sm:$0xff]  ;;  %v808_v12 = vmul.f32 %v5958_v4, %v5958_v4 }
  0x9c   : > { %4390 = vmatpush3.bf16.msra.mxu0 %v4820_v18  ;;  %v809_v15 = vmul.f32 %v5969_v7, %v5969_v7 }
  0x9d   : > { %4391 = vmatprep.subr.bf16.mxu0 %v4821_v21 }
  0x9f   : > { %692 = vadd.xlane.f32.xlu1 %v5814_v8  ;;  %690 = vadd.xlane.f32.xlu0 %v5817_v9 }
  0xa0   : > { %4392 = vmatpush3.bf16.msra.mxu0 %v4821_v21 }
  0xa1   : > { %4393 = vmatprep.subr.bf16.mxu0 %v4822_v24 }
  0xa3   : > { %696 = vadd.xlane.f32.xlu1 %v5820_v10  ;;  %694 = vadd.xlane.f32.xlu0 %v5823_v11 }
  0xa4   : > { %4394 = vmatpush3.bf16.msra.mxu0 %v4822_v24 }
  0xa5   : > { %4395 = vmatprep.subr.bf16.mxu0 %v4823_v27 }
  0xa7   : > { %821 = vadd.xlane.f32.xlu1 %v784_v13  ;;  %819 = vadd.xlane.f32.xlu0 %v783_v14  ;;  %v807_v13 = vmul.f32 %v5961_v5, %v5961_v5  ;;  %v810_v14 = vmul.f32 %v5966_v6, %v5966_v6 }
  0xa8   : > { %4396 = vmatpush3.bf16.msra.mxu0 %v4823_v27 }
  0xa9   : > { %4397 = vmatprep.subr.bf16.mxu0 %v4824_v30 }
  0xab   : > { %825 = vadd.xlane.f32.xlu1 %v786_v16  ;;  %823 = vadd.xlane.f32.xlu0 %v785_v17 }
  0xac   : > { %4398 = vmatpush3.bf16.msra.mxu0 %v4824_v30 }
  0xad   : > { %4399 = vmatprep.subr.bf16.mxu0 %v4825_v33 }
  0xaf   : > { %700 = vadd.xlane.f32.xlu1 %v5838_v19  ;;  %698 = vadd.xlane.f32.xlu0 %v5841_v20 }
  0xb0   : > { %4400 = vmatpush3.bf16.msra.mxu0 %v4825_v33 }
  0xb3   : > { %704 = vadd.xlane.f32.xlu1 %v5846_v22  ;;  %702 = vadd.xlane.f32.xlu0 %v5849_v23 }
  0xb7   : > { %829 = vadd.xlane.f32.xlu1 %v788_v25  ;;  %827 = vadd.xlane.f32.xlu0 %v787_v26 }
  0xbb   : > { %833 = vadd.xlane.f32.xlu1 %v790_v28  ;;  %831 = vadd.xlane.f32.xlu0 %v789_v29 }
  0xbf   : > { %708 = vadd.xlane.f32.xlu1 %v5862_v31  ;;  %706 = vadd.xlane.f32.xlu0 %v5865_v32 }
  0xc3   : > { %712 = vadd.xlane.f32.xlu1 %v5870_v34  ;;  %710 = vadd.xlane.f32.xlu0 %v5873_v35 }
  0xc7   : > { %837 = vadd.xlane.f32.xlu1 %v792_v36  ;;  %835 = vadd.xlane.f32.xlu0 %v791_v37 }
  0xcb   : > { %841 = vadd.xlane.f32.xlu1 %v794_v38  ;;  %839 = vadd.xlane.f32.xlu0 %v793_v39 }
  0xcf   : > { %716 = vadd.xlane.f32.xlu1 %v5886_v40  ;;  %714 = vadd.xlane.f32.xlu0 %v5889_v41 }
  0xd3   : > { %720 = vadd.xlane.f32.xlu1 %v5894_v42  ;;  %718 = vadd.xlane.f32.xlu0 %v5897_v43 }
  0xd7   : > { %845 = vadd.xlane.f32.xlu1 %v796_v44  ;;  %843 = vadd.xlane.f32.xlu0 %v795_v45 }
  0xdb   : > { %849 = vadd.xlane.f32.xlu1 %v798_v46  ;;  %847 = vadd.xlane.f32.xlu0 %v797_v47 }
  0xdf   : > { %724 = vadd.xlane.f32.xlu1 %v5910_v48  ;;  %722 = vadd.xlane.f32.xlu0 %v5913_v49 }
  0xe3   : > { %728 = vadd.xlane.f32.xlu1 %v5918_v50  ;;  %726 = vadd.xlane.f32.xlu0 %v5921_v51 }
  0xe7   : > { %853 = vadd.xlane.f32.xlu1 %v800_v52  ;;  %851 = vadd.xlane.f32.xlu0 %v799_v53 }
  0xeb   : > { %857 = vadd.xlane.f32.xlu1 %v802_v54  ;;  %855 = vadd.xlane.f32.xlu0 %v801_v55 }
  0xef   : > { %732 = vadd.xlane.f32.xlu1 %v5934_v56  ;;  %730 = vadd.xlane.f32.xlu0 %v5937_v57 }
  0xf3   : > { %736 = vadd.xlane.f32.xlu1 %v5942_v58  ;;  %734 = vadd.xlane.f32.xlu0 %v5945_v59 }
  0xf7   : > { %861 = vadd.xlane.f32.xlu1 %v804_v60  ;;  %859 = vadd.xlane.f32.xlu0 %v803_v61 }
  0xfb   : > { %865 = vadd.xlane.f32.xlu1 %v806_v62  ;;  %863 = vadd.xlane.f32.xlu0 %v805_v63 }
  0xff   : > { %740 = vadd.xlane.f32.xlu1 %v5958_v4  ;;  %738 = vadd.xlane.f32.xlu0 %v5961_v5 }
 0x103   : > { %744 = vadd.xlane.f32.xlu1 %v5966_v6  ;;  %742 = vadd.xlane.f32.xlu0 %v5969_v7 }
 0x107   : > { %869 = vadd.xlane.f32.xlu1 %v808_v12  ;;  %867 = vadd.xlane.f32.xlu0 %v807_v13 }
 0x10b   : > { %873 = vadd.xlane.f32.xlu1 %v810_v14  ;;  %871 = vadd.xlane.f32.xlu0 %v809_v15 }
 0x118   : > { %v687_v16 = vpop.xlane.xlu1 %686  ;;  %v683_v17 = vpop.xlane.xlu0 %682 }
 0x119   : > { %v747_v24 = vmul.f32 0.0078125, %v683_v17  ;;  %v5981_v26 = vmul.f32 0.0078125, %v687_v16 }
 0x11b   : > { %v907_v30 = vmul.f32 %v747_v24, %v747_v24  ;;  %v909_v44 = vmul.f32 %v5981_v26, %v5981_v26 }
 0x11c   : > { %v689_v18 = vpop.xlane.xlu1 %688  ;;  %v685_v21 = vpop.xlane.xlu0 %684 }
 0x11d   : > { %v748_v25 = vmul.f32 0.0078125, %v685_v21  ;;  %v5983_v27 = vmul.f32 0.0078125, %v689_v18 }
 0x11f   : > { %v908_v33 = vmul.f32 %v748_v25, %v748_v25  ;;  %v910_v45 = vmul.f32 %v5983_v27, %v5983_v27 }
 0x120   : > { %v814_v28 = vpop.xlane.xlu1 %813  ;;  %v812_v29 = vpop.xlane.xlu0 %811 }
 0x121   : > { %v876_v36 = vmul.f32 0.0078125, %v814_v28  ;;  %v875_v37 = vmul.f32 0.0078125, %v812_v29 }
 0x123   : > { %v940_v38 = vsub.f32 %v876_v36, %v908_v33  ;;  %v939_v39 = vsub.f32 %v875_v37, %v907_v30 }
 0x124   : > { %v818_v46 = vpop.xlane.xlu1 %817  ;;  %v816_v47 = vpop.xlane.xlu0 %815 }
 0x125   : > { %v1004_v52 = vadd.f32 1e-05, %v940_v38  ;;  %v1003_v53 = vadd.f32 1e-05, %v939_v39  ;;  %v878_v54 = vmul.f32 0.0078125, %v818_v46  ;;  %v877_v55 = vmul.f32 0.0078125, %v816_v47 }
 0x126   : > { %v971_v46 = vsub.f32 %v5793_v1, %v747_v24  ;;  %v972_v47 = vsub.f32 %v5801_v3, %v748_v25 }
 0x127   : > { %4866 = vrsqrt.f32 %v1004_v52  ;;  %v942_v60 = vsub.f32 %v878_v54, %v910_v45  ;;  %v941_v61 = vsub.f32 %v877_v55, %v909_v44  ;;  %v6005_v44 = vld [vmem:[%s7133_s4] ss:$0 sm:$0xff] }
 0x128   : > { %4868 = vrsqrt.f32 %v1003_v53  ;;  %v693_v62 = vpop.xlane.xlu1 %692  ;;  %v691_v63 = vpop.xlane.xlu0 %690 }
 0x129   : > { %v1006_v12 = vadd.f32 1e-05, %v942_v60  ;;  %v1005_v13 = vadd.f32 1e-05, %v941_v61  ;;  %v5989_v16 = vmul.f32 0.0078125, %v693_v62  ;;  %v5991_v17 = vmul.f32 0.0078125, %v691_v63 }
 0x12a   : > { %v4826_v60 = vld [vmem:[%s6015_s28 + $0x38] sm:$0xff]  }
 0x12b   : > { %4870 = vrsqrt.f32 %v1006_v12  ;;  %v912_v30 = vmul.f32 %v5989_v16, %v5989_v16  ;;  %v911_v33 = vmul.f32 %v5991_v17, %v5991_v17  ;;  %4433 = vmatprep.subr.bf16.mxu1 %v4826_v60  ;;  %v4827_v12 = vld [vmem:[%s6015_s28 + $0x30] sm:$0xff]  }
 0x12c   : > { %4872 = vrsqrt.f32 %v1005_v13  ;;  %v697_v14 = vpop.xlane.xlu1 %696  ;;  %v695_v15 = vpop.xlane.xlu0 %694  ;;  %v973_v13 = vsub.f32 %v5790_v0, %v5981_v26  ;;  %4434 = vmatpush3.bf16.xpose.msra.mxu1 %v4826_v60 }
 0x12d   : > { %v5993_v18 = vmul.f32 0.0078125, %v697_v14  ;;  %v5995_v21 = vmul.f32 0.0078125, %v695_v15  ;;  %4435 = vmatprep.subr.bf16.mxu1 %v4827_v12 }
 0x12f   : > { %v914_v52 = vmul.f32 %v5993_v18, %v5993_v18  ;;  %v913_v53 = vmul.f32 %v5995_v21, %v5995_v21 }
 0x130   : > { %v822_v28 = vpop.xlane.xlu1 %821  ;;  %v820_v29 = vpop.xlane.xlu0 %819 }
 0x131   : > { %v880_v36 = vmul.f32 0.0078125, %v822_v28  ;;  %v879_v37 = vmul.f32 0.0078125, %v820_v29  ;;  %v6024_v28 = vld [vmem:[%s7134_s5] ss:$0 sm:$0xff] }
 0x133   : > { %v944_v38 = vsub.f32 %v880_v36, %v912_v30  ;;  %v943_v39 = vsub.f32 %v879_v37, %v911_v33  ;;  %v974_v30 = vsub.f32 %v5798_v2, %v5983_v27 }
 0x134   : > { %v4867_v45 = vpop.eup %4866  ;;  %v826_v54 = vpop.xlane.xlu1 %825  ;;  %4436 = vmatpush3.bf16.xpose.msra.mxu1 %v4827_v12  ;;  %v976_v12 = vsub.f32 %v5814_v8, %v5989_v16 }
 0x135   : > { %v824_v55 = vpop.xlane.xlu0 %823  ;;  %v4869_v61 = vpop.eup %4868  ;;  %v1008_v62 = vadd.f32 1e-05, %v944_v38  ;;  %v1007_v63 = vadd.f32 1e-05, %v943_v39  ;;  %v882_v1 = vmul.f32 0.0078125, %v826_v54  ;;  %v1068_v25 = vmul.f32 %v4867_v45, %v972_v47 }
 0x136   : > { %v881_v24 = vmul.f32 0.0078125, %v824_v55  ;;  %v1067_v3 = vmul.f32 %v4869_v61, %v971_v46  ;;  %v4828_v61 = vld [vmem:[%s6015_s28 + $0x28] sm:$0xff]  }
 0x137   : > { %4874 = vrsqrt.f32 %v1008_v62  ;;  %v946_v14 = vsub.f32 %v882_v1, %v914_v52  ;;  %v1106_v0 = vmul.f32 %v6005_v44, %v1068_v25  ;;  %4437 = vmatprep.subr.bf16.mxu1 %v4828_v61 }
 0x138   : > { %v945_v15 = vsub.f32 %v881_v24, %v913_v53  ;;  %v4871_v29 = vpop.eup %4870  ;;  %4876 = vrsqrt.f32 %v1007_v63  ;;  %v701_v33 = vpop.xlane.xlu1 %700  ;;  %v1105_v37 = vmul.f32 %v6005_v44, %v1067_v3 }
 0x139   : > { %v699_v36 = vpop.xlane.xlu0 %698  ;;  %v4873_v26 = vpop.eup %4872  ;;  %v1010_v38 = vadd.f32 1e-05, %v946_v14  ;;  %v1144_v46 = vadd.f32 %v6024_v28, %v1106_v0  ;;  %v1070_v52 = vmul.f32 %v4871_v29, %v974_v30  ;;  %v6032_v2 = vmul.f32 0.0078125, %v701_v33 }
 0x13a   : > { %v1009_v39 = vadd.f32 1e-05, %v945_v15  ;;  %v1143_v45 = vadd.f32 %v6024_v28, %v1105_v37  ;;  %v1069_v47 = vmul.f32 %v4873_v26, %v973_v13  ;;  %v6034_v27 = vmul.f32 0.0078125, %v699_v36 }
 0x13b   : > { %4878 = vrsqrt.f32 %v1010_v38  ;;  %v1108_v1 = vmul.f32 %v6005_v44, %v1070_v52  ;;  %v916_v14 = vmul.f32 %v6032_v2, %v6032_v2  ;;  %v975_v26 = vsub.f32 %v5817_v9, %v5991_v17 }
 0x13c   : > { %4880 = vrsqrt.f32 %v1009_v39  ;;  %v705_v53 = vpop.xlane.xlu1 %704  ;;  %v1191_v55 = vpack.c.bf16 %v1144_v46, %v1143_v45  ;;  %v1107_v60 = vmul.f32 %v6005_v44, %v1069_v47  ;;  %v915_v15 = vmul.f32 %v6034_v27, %v6034_v27  ;;  %v4829_v47 = vld [vmem:[%s6015_s28 + $0x20] sm:$0xff]   ;;  %4438 = vmatpush3.bf16.xpose.msra.mxu1 %v4828_v61 }
 0x13d   : > { %v703_v54 = vpop.xlane.xlu0 %702  ;;  %v6038_v62 = vmul.f32 0.0078125, %v705_v53  ;;  %v1146_v13 = vadd.f32 %v6024_v28, %v1108_v1  ;;  %v978_v9 = vsub.f32 %v5820_v10, %v5993_v18  ;;  %4439 = vmatprep.subr.bf16.mxu1 %v4829_v47 }
 0x13e   : > { %v6040_v63 = vmul.f32 0.0078125, %v703_v54  ;;  %4401 = vmatprep.mubr.bf16.mxu0 %v1191_v55  ;;  %v1145_v24 = vadd.f32 %v6024_v28, %v1107_v60 }
 0x13f   : > { %v918_v38 = vmul.f32 %v6038_v62, %v6038_v62 }
 0x140   : > { %v830_v3 = vpop.xlane.xlu1 %829  ;;  %v1192_v33 = vpack.c.bf16 %v1146_v13, %v1145_v24  ;;  %v917_v39 = vmul.f32 %v6040_v63, %v6040_v63 }
 0x141   : > { %v828_v25 = vpop.xlane.xlu0 %827  ;;  %v884_v29 = vmul.f32 0.0078125, %v830_v3  ;;  %v977_v3 = vsub.f32 %v5823_v11, %v5995_v21 }
 0x142   : > { %v883_v30 = vmul.f32 0.0078125, %v828_v25  ;;  %4402 = vmatmul.mubr.bf16.vlgmr.msra.gmra.mxu0 %v1192_v33 }
 0x143   : > { %v948_v36 = vsub.f32 %v884_v29, %v916_v14 }
 0x144   : > { %v947_v37 = vsub.f32 %v883_v30, %v915_v15  ;;  %v4875_v0 = vpop.eup %4874  ;;  %v834_v45 = vpop.xlane.xlu1 %833  ;;  %4440 = vmatpush3.bf16.xpose.msra.mxu1 %v4829_v47 }
 0x145   : > { %v832_v46 = vpop.xlane.xlu0 %831  ;;  %v4877_v52 = vpop.eup %4876  ;;  %v1012_v53 = vadd.f32 1e-05, %v948_v36  ;;  %v886_v55 = vmul.f32 0.0078125, %v834_v45  ;;  %v1072_v8 = vmul.f32 %v4875_v0, %v976_v12  ;;  %v4830_v12 = vld [vmem:[%s6015_s28 + $0x18] sm:$0xff]  }
 0x146   : > { %v1011_v54 = vadd.f32 1e-05, %v947_v37  ;;  %v885_v60 = vmul.f32 0.0078125, %v832_v46  ;;  %v1071_v1 = vmul.f32 %v4877_v52, %v975_v26  ;;  %4441 = vmatprep.subr.bf16.mxu1 %v4830_v12 }
 0x147   : > { %4882 = vrsqrt.f32 %v1012_v53  ;;  %v950_v16 = vsub.f32 %v886_v55, %v918_v38  ;;  %v1110_v15 = vmul.f32 %v6005_v44, %v1072_v8 }
 0x148   : > { %v949_v17 = vsub.f32 %v885_v60, %v917_v39  ;;  %v4879_v24 = vpop.eup %4878  ;;  %4884 = vrsqrt.f32 %v1011_v54  ;;  %v709_v25 = vpop.xlane.xlu1 %708  ;;  %v1109_v14 = vmul.f32 %v6005_v44, %v1071_v1 }
 0x149   : > { %v707_v13 = vpop.xlane.xlu0 %706  ;;  %v4881_v29 = vpop.eup %4880  ;;  %v1014_v30 = vadd.f32 1e-05, %v950_v16  ;;  %v1148_v61 = vadd.f32 %v6024_v28, %v1110_v15  ;;  %v1074_v36 = vmul.f32 %v4879_v24, %v978_v9  ;;  %v6072_v26 = vmul.f32 0.0078125, %v709_v25 }
 0x14a   : > { %v1013_v10 = vadd.f32 1e-05, %v949_v17  ;;  %v1147_v18 = vadd.f32 %v6024_v28, %v1109_v14  ;;  %v1073_v33 = vmul.f32 %v4881_v29, %v977_v3  ;;  %v6074_v38 = vmul.f32 0.0078125, %v707_v13 }
 0x14b   : > { %4886 = vrsqrt.f32 %v1014_v30  ;;  %v1112_v39 = vmul.f32 %v6005_v44, %v1074_v36  ;;  %v920_v60 = vmul.f32 %v6072_v26, %v6072_v26  ;;  %v980_v3 = vsub.f32 %v5838_v19, %v6032_v2  ;;  %v4831_v30 = vld [vmem:[%s6015_s28 + $0x10] sm:$0xff]  }
 0x14c   : > { %4888 = vrsqrt.f32 %v1013_v10  ;;  %v713_v11 = vpop.xlane.xlu1 %712  ;;  %v1193_v37 = vpack.c.bf16 %v1148_v61, %v1147_v18  ;;  %v1111_v0 = vmul.f32 %v6005_v44, %v1073_v33  ;;  %v919_v1 = vmul.f32 %v6074_v38, %v6074_v38  ;;  %4442 = vmatpush3.bf16.xpose.msra.mxu1 %v4830_v12 }
 0x14d   : > { %v711_v21 = vpop.xlane.xlu0 %710  ;;  %v6078_v46 = vmul.f32 0.0078125, %v713_v11  ;;  %v1150_v55 = vadd.f32 %v6024_v28, %v1112_v39  ;;  %v979_v25 = vsub.f32 %v5841_v20, %v6034_v27  ;;  %v982_v20 = vsub.f32 %v5846_v22, %v6038_v62  ;;  %4443 = vmatprep.subr.bf16.mxu1 %v4831_v30 }
 0x14e   : > { %4405 = vmatprep.mubr.bf16.mxu0 %v1193_v37  ;;  %v1149_v45 = vadd.f32 %v6024_v28, %v1111_v0  ;;  %v6080_v52 = vmul.f32 0.0078125, %v711_v21  ;;  %v981_v37 = vsub.f32 %v5849_v23, %v6040_v63 }
 0x14f   : > { %v922_v13 = vmul.f32 %v6078_v46, %v6078_v46 }
 0x150   : > { %v838_v53 = vpop.xlane.xlu1 %837  ;;  %v1194_v16 = vpack.c.bf16 %v1150_v55, %v1149_v45  ;;  %v921_v14 = vmul.f32 %v6080_v52, %v6080_v52 }
 0x151   : > { %v836_v54 = vpop.xlane.xlu0 %835  ;;  %v888_v8 = vmul.f32 0.0078125, %v838_v53 }
 0x152   : > { %v887_v9 = vmul.f32 0.0078125, %v836_v54  ;;  %4406 = vmatmul.mubr.bf16.gmra.mxu0 %v1194_v16  ;;  %v4832_v16 = vld [vmem:[%s6015_s28 + $0x8] sm:$0xff]  }
 0x153   : > { %v952_v47 = vsub.f32 %v888_v8, %v920_v60 }
 0x154   : > { %v951_v17 = vsub.f32 %v887_v9, %v919_v1  ;;  %v4883_v24 = vpop.eup %4882  ;;  %v842_v15 = vpop.xlane.xlu1 %841  ;;  %4444 = vmatpush3.bf16.xpose.msra.mxu1 %v4831_v30 }
 0x155   : > { %v840_v29 = vpop.xlane.xlu0 %839  ;;  %v4885_v10 = vpop.eup %4884  ;;  %v1016_v18 = vadd.f32 1e-05, %v952_v47  ;;  %v890_v33 = vmul.f32 0.0078125, %v842_v15  ;;  %v1076_v19 = vmul.f32 %v4883_v24, %v980_v3  ;;  %4445 = vmatprep.subr.bf16.mxu1 %v4832_v16 }
 0x156   : > { %v1015_v61 = vadd.f32 1e-05, %v951_v17  ;;  %v889_v36 = vmul.f32 0.0078125, %v840_v29  ;;  %v1075_v11 = vmul.f32 %v4885_v10, %v979_v25 }
 0x157   : > { %4890 = vrsqrt.f32 %v1016_v18  ;;  %v954_v2 = vsub.f32 %v890_v33, %v922_v13  ;;  %v1114_v53 = vmul.f32 %v6005_v44, %v1076_v19 }
 0x158   : > { %v953_v27 = vsub.f32 %v889_v36, %v921_v14  ;;  %v4887_v21 = vpop.eup %4886  ;;  %4892 = vrsqrt.f32 %v1015_v61  ;;  %v717_v0 = vpop.xlane.xlu1 %716  ;;  %v1113_v45 = vmul.f32 %v6005_v44, %v1075_v11 }
 0x159   : > { %v715_v39 = vpop.xlane.xlu0 %714  ;;  %v4889_v54 = vpop.eup %4888  ;;  %v1018_v55 = vadd.f32 1e-05, %v954_v2  ;;  %v1152_v12 = vadd.f32 %v6024_v28, %v1114_v53  ;;  %v1078_v1 = vmul.f32 %v4887_v21, %v982_v20  ;;  %v6106_v47 = vmul.f32 0.0078125, %v717_v0 }
 0x15a   : > { %v1017_v22 = vadd.f32 1e-05, %v953_v27  ;;  %v1151_v62 = vadd.f32 %v6024_v28, %v1113_v45  ;;  %v1077_v60 = vmul.f32 %v4889_v54, %v981_v37  ;;  %v6108_v17 = vmul.f32 0.0078125, %v715_v39 }
 0x15b   : > { %4894 = vrsqrt.f32 %v1018_v55  ;;  %v1116_v24 = vmul.f32 %v6005_v44, %v1078_v1  ;;  %v924_v10 = vmul.f32 %v6106_v47, %v6106_v47  ;;  %v984_v20 = vsub.f32 %v5862_v31, %v6072_v26 }
 0x15c   : > { %4896 = vrsqrt.f32 %v1017_v22  ;;  %v721_v23 = vpop.xlane.xlu1 %720  ;;  %v1195_v8 = vpack.c.bf16 %v1152_v12, %v1151_v62  ;;  %v1115_v9 = vmul.f32 %v6005_v44, %v1077_v60  ;;  %v923_v18 = vmul.f32 %v6108_v17, %v6108_v17  ;;  %4446 = vmatpush3.bf16.xpose.msra.mxu1 %v4832_v16 }
 0x15d   : > { %v719_v63 = vpop.xlane.xlu0 %718  ;;  %v6112_v25 = vmul.f32 0.0078125, %v721_v23  ;;  %v1154_v29 = vadd.f32 %v6024_v28, %v1116_v24  ;;  %v983_v2 = vsub.f32 %v5865_v32, %v6074_v38  ;;  %v986_v31 = vsub.f32 %v5870_v34, %v6078_v46 }
 0x15e   : > { %4409 = vmatprep.mubr.bf16.mxu0 %v1195_v8  ;;  %v1153_v3 = vadd.f32 %v6024_v28, %v1115_v9  ;;  %v6114_v13 = vmul.f32 0.0078125, %v719_v63  ;;  %v985_v12 = vsub.f32 %v5873_v35, %v6080_v52 }
 0x15f   : > { %v926_v27 = vmul.f32 %v6112_v25, %v6112_v25 }
 0x160   : > { %v846_v14 = vpop.xlane.xlu1 %845  ;;  %v1196_v36 = vpack.c.bf16 %v1154_v29, %v1153_v3  ;;  %v925_v21 = vmul.f32 %v6114_v13, %v6114_v13 }
 0x161   : > { %v844_v15 = vpop.xlane.xlu0 %843  ;;  %v892_v61 = vmul.f32 0.0078125, %v846_v14 }
 0x162   : > { %v891_v33 = vmul.f32 0.0078125, %v844_v15  ;;  %4410 = vmatmul.mubr.bf16.gmra.mxu0 %v1196_v36 }
 0x163   : > { %v956_v11 = vsub.f32 %v892_v61, %v924_v10 }
 0x164   : > { %v955_v30 = vsub.f32 %v891_v33, %v923_v18  ;;  %v4891_v19 = vpop.eup %4890  ;;  %v850_v37 = vpop.xlane.xlu1 %849 }
 0x165   : > { %v848_v0 = vpop.xlane.xlu0 %847  ;;  %v4893_v39 = vpop.eup %4892  ;;  %v1020_v45 = vadd.f32 1e-05, %v956_v11  ;;  %v894_v54 = vmul.f32 0.0078125, %v850_v37  ;;  %v1080_v62 = vmul.f32 %v4891_v19, %v984_v20 }
 0x166   : > { %v1019_v53 = vadd.f32 1e-05, %v955_v30  ;;  %v893_v55 = vmul.f32 0.0078125, %v848_v0  ;;  %v1079_v22 = vmul.f32 %v4893_v39, %v983_v2 }
 0x167   : > { %4898 = vrsqrt.f32 %v1020_v45  ;;  %v958_v32 = vsub.f32 %v894_v54, %v926_v27  ;;  %v1118_v63 = vmul.f32 %v6005_v44, %v1080_v62  ;;  %v987_v54 = vsub.f32 %v5889_v41, %v6108_v17 }
 0x168   : > { %v957_v26 = vsub.f32 %v893_v55, %v925_v21  ;;  %v4895_v38 = vpop.eup %4894  ;;  %4900 = vrsqrt.f32 %v1019_v53  ;;  %v725_v60 = vpop.xlane.xlu1 %724  ;;  %v1117_v23 = vmul.f32 %v6005_v44, %v1079_v22  ;;  %v988_v53 = vsub.f32 %v5886_v40, %v6106_v47 }
 0x169   : > { %v723_v1 = vpop.xlane.xlu0 %722  ;;  %v4897_v8 = vpop.eup %4896  ;;  %v1022_v9 = vadd.f32 1e-05, %v958_v32  ;;  %v1156_v46 = vadd.f32 %v6024_v28, %v1118_v63  ;;  %v1082_v16 = vmul.f32 %v4895_v38, %v986_v31  ;;  %v6138_v29 = vmul.f32 0.0078125, %v725_v60 }
 0x16a   : > { %v1021_v24 = vadd.f32 1e-05, %v957_v26  ;;  %v1155_v34 = vadd.f32 %v6024_v28, %v1117_v23  ;;  %v1081_v3 = vmul.f32 %v4897_v8, %v985_v12  ;;  %v6140_v10 = vmul.f32 0.0078125, %v723_v1 }
 0x16b   : > { %4902 = vrsqrt.f32 %v1022_v9  ;;  %v1120_v18 = vmul.f32 %v6005_v44, %v1082_v16  ;;  %v928_v20 = vmul.f32 %v6138_v29, %v6138_v29  ;;  %v990_v40 = vsub.f32 %v5894_v42, %v6112_v25 }
 0x16c   : > { %4904 = vrsqrt.f32 %v1021_v24  ;;  %v729_v14 = vpop.xlane.xlu1 %728  ;;  %v1197_v52 = vpack.c.bf16 %v1156_v46, %v1155_v34  ;;  %v1119_v15 = vmul.f32 %v6005_v44, %v1081_v3  ;;  %v927_v2 = vmul.f32 %v6140_v10, %v6140_v10 }
 0x16d   : > { %v727_v35 = vpop.xlane.xlu0 %726  ;;  %v6144_v33 = vmul.f32 0.0078125, %v729_v14  ;;  %v1158_v19 = vadd.f32 %v6024_v28, %v1120_v18  ;;  %v989_v63 = vsub.f32 %v5897_v43, %v6114_v13 }
 0x16e   : > { %4413 = vmatprep.mubr.bf16.mxu0 %v1197_v52  ;;  %v1157_v61 = vadd.f32 %v6024_v28, %v1119_v15  ;;  %v6146_v36 = vmul.f32 0.0078125, %v727_v35 }
 0x16f   : > { %v930_v55 = vmul.f32 %v6144_v33, %v6144_v33 }
 0x170   : > { %v854_v11 = vpop.xlane.xlu1 %853  ;;  %v1198_v37 = vpack.c.bf16 %v1158_v19, %v1157_v61  ;;  %v929_v22 = vmul.f32 %v6146_v36, %v6146_v36 }
 0x171   : > { %v852_v30 = vpop.xlane.xlu0 %851  ;;  %v896_v27 = vmul.f32 0.0078125, %v854_v11 }
 0x172   : > { %v895_v21 = vmul.f32 0.0078125, %v852_v30  ;;  %4414 = vmatmul.mubr.bf16.gmra.mxu0 %v1198_v37 }
 0x173   : > { %v960_v0 = vsub.f32 %v896_v27, %v928_v20 }
 0x174   : > { %v959_v39 = vsub.f32 %v895_v21, %v927_v2  ;;  %v4899_v45 = vpop.eup %4898  ;;  %v858_v62 = vpop.xlane.xlu1 %857 }
 0x175   : > { %v856_v31 = vpop.xlane.xlu0 %855  ;;  %v4901_v32 = vpop.eup %4900  ;;  %v1024_v26 = vadd.f32 1e-05, %v960_v0  ;;  %v898_v12 = vmul.f32 0.0078125, %v858_v62  ;;  %v1084_v23 = vmul.f32 %v4899_v45, %v988_v53  ;;  %v992_v62 = vsub.f32 %v5910_v48, %v6138_v29  ;;  %v4833_v48 = vld [vmem:[%s6015_s28] sm:$0xff]  }
 0x176   : > { %v1023_v38 = vadd.f32 1e-05, %v959_v39  ;;  %v897_v60 = vmul.f32 0.0078125, %v856_v31  ;;  %v1083_v1 = vmul.f32 %v4901_v32, %v987_v54  ;;  %v991_v31 = vsub.f32 %v5913_v49, %v6140_v10  ;;  %4447 = vmatprep.subr.bf16.mxu1 %v4833_v48 }
 0x177   : > { %4906 = vrsqrt.f32 %v1024_v26  ;;  %v962_v41 = vsub.f32 %v898_v12, %v930_v55  ;;  %v1122_v34 = vmul.f32 %v6005_v44, %v1084_v23  ;;  %v994_v49 = vsub.f32 %v5918_v50, %v6144_v33  ;;  %4448 = vmatpush3.bf16.xpose.msra.mxu1 %v4833_v48 }
 0x178   : > { %v961_v47 = vsub.f32 %v897_v60, %v929_v22  ;;  %v4903_v17 = vpop.eup %4902  ;;  %4908 = vrsqrt.f32 %v1023_v38  ;;  %v733_v8 = vpop.xlane.xlu1 %732  ;;  %v1121_v24 = vmul.f32 %v6005_v44, %v1083_v1 }
 0x179   : > { %v731_v9 = vpop.xlane.xlu0 %730  ;;  %v4905_v46 = vpop.eup %4904  ;;  %v1026_v3 = vadd.f32 1e-05, %v962_v41  ;;  %v1160_v42 = vadd.f32 %v6024_v28, %v1122_v34  ;;  %v1086_v35 = vmul.f32 %v4903_v17, %v990_v40  ;;  %v6170_v18 = vmul.f32 0.0078125, %v733_v8 }
 0x17a   : > { %v1025_v16 = vadd.f32 1e-05, %v961_v47  ;;  %v1159_v14 = vadd.f32 %v6024_v28, %v1121_v24  ;;  %v1085_v25 = vmul.f32 %v4905_v46, %v989_v63  ;;  %v6172_v61 = vmul.f32 0.0078125, %v731_v9 }
 0x17b   : > { %4910 = vrsqrt.f32 %v1026_v3  ;;  %v1124_v11 = vmul.f32 %v6005_v44, %v1086_v35  ;;  %v932_v37 = vmul.f32 %v6170_v18, %v6170_v18  ;;  %v993_v8 = vsub.f32 %v5921_v51, %v6146_v36 }
 0x17c   : > { %4912 = vrsqrt.f32 %v1025_v16  ;;  %v737_v52 = vpop.xlane.xlu1 %736  ;;  %v1199_v13 = vpack.c.bf16 %v1160_v42, %v1159_v14  ;;  %v1123_v15 = vmul.f32 %v6005_v44, %v1085_v25  ;;  %v931_v0 = vmul.f32 %v6172_v61, %v6172_v61 }
 0x17d   : > { %v735_v43 = vpop.xlane.xlu0 %734  ;;  %v6176_v19 = vmul.f32 0.0078125, %v737_v52  ;;  %v1162_v21 = vadd.f32 %v6024_v28, %v1124_v11 }
 0x17e   : > { %4417 = vmatprep.mubr.bf16.mxu0 %v1199_v13  ;;  %v1161_v30 = vadd.f32 %v6024_v28, %v1123_v15  ;;  %v6178_v20 = vmul.f32 0.0078125, %v735_v43 }
 0x17f   : > { %v934_v32 = vmul.f32 %v6176_v19, %v6176_v19 }
 0x180   : > { %v862_v2 = vpop.xlane.xlu1 %861  ;;  %v1200_v53 = vpack.c.bf16 %v1162_v21, %v1161_v30  ;;  %v933_v26 = vmul.f32 %v6178_v20, %v6178_v20 }
 0x181   : > { %v860_v27 = vpop.xlane.xlu0 %859  ;;  %v900_v39 = vmul.f32 0.0078125, %v862_v2 }
 0x182   : > { %v899_v45 = vmul.f32 0.0078125, %v860_v27  ;;  %4418 = vmatmul.mubr.bf16.gmra.mxu0 %v1200_v53 }
 0x183   : > { %v964_v54 = vsub.f32 %v900_v39, %v932_v37 }
 0x184   : > { %v963_v55 = vsub.f32 %v899_v45, %v931_v0  ;;  %v4907_v22 = vpop.eup %4906  ;;  %v866_v38 = vpop.xlane.xlu1 %865 }
 0x185   : > { %v864_v12 = vpop.xlane.xlu0 %863  ;;  %v4909_v60 = vpop.eup %4908  ;;  %v1028_v1 = vadd.f32 1e-05, %v964_v54  ;;  %v902_v40 = vmul.f32 0.0078125, %v866_v38  ;;  %v1088_v17 = vmul.f32 %v4907_v22, %v992_v62 }
 0x186   : > { %v1027_v23 = vadd.f32 1e-05, %v963_v55  ;;  %v901_v41 = vmul.f32 0.0078125, %v864_v12  ;;  %v1087_v47 = vmul.f32 %v4909_v60, %v991_v31  ;;  %v996_v31 = vsub.f32 %v5934_v56, %v6170_v18 }
 0x187   : > { %4914 = vrsqrt.f32 %v1028_v1  ;;  %v966_v29 = vsub.f32 %v902_v40, %v934_v32  ;;  %v1126_v46 = vmul.f32 %v6005_v44, %v1088_v17  ;;  %v995_v32 = vsub.f32 %v5937_v57, %v6172_v61 }
 0x188   : > { %v965_v10 = vsub.f32 %v901_v41, %v933_v26  ;;  %v4911_v63 = vpop.eup %4910  ;;  %4916 = vrsqrt.f32 %v1027_v23  ;;  %v741_v9 = vpop.xlane.xlu1 %740  ;;  %v1125_v34 = vmul.f32 %v6005_v44, %v1087_v47  ;;  %v998_v56 = vsub.f32 %v5942_v58, %v6176_v19 }
 0x189   : > { %v739_v24 = vpop.xlane.xlu0 %738  ;;  %v4913_v3 = vpop.eup %4912  ;;  %v1030_v16 = vadd.f32 1e-05, %v966_v29  ;;  %v1164_v33 = vadd.f32 %v6024_v28, %v1126_v46  ;;  %v1090_v25 = vmul.f32 %v4911_v63, %v994_v49  ;;  %v6203_v43 = vmul.f32 0.0078125, %v741_v9 }
 0x18a   : > { %v1029_v14 = vadd.f32 1e-05, %v965_v10  ;;  %v1163_v50 = vadd.f32 %v6024_v28, %v1125_v34  ;;  %v1089_v42 = vmul.f32 %v4913_v3, %v993_v8  ;;  %v6205_v13 = vmul.f32 0.0078125, %v739_v24 }
 0x18b   : > { %4918 = vrsqrt.f32 %v1030_v16  ;;  %v1128_v15 = vmul.f32 %v6005_v44, %v1090_v25  ;;  %v936_v0 = vmul.f32 %v6203_v43, %v6203_v43  ;;  %v997_v49 = vsub.f32 %v5945_v59, %v6178_v20 }
 0x18c   : > { %4920 = vrsqrt.f32 %v1029_v14  ;;  %v745_v51 = vpop.xlane.xlu1 %744  ;;  %v1201_v35 = vpack.c.bf16 %v1164_v33, %v1163_v50  ;;  %v1127_v52 = vmul.f32 %v6005_v44, %v1089_v42  ;;  %v935_v39 = vmul.f32 %v6205_v13, %v6205_v13 }
 0x18d   : > { %v743_v36 = vpop.xlane.xlu0 %742  ;;  %v6209_v30 = vmul.f32 0.0078125, %v745_v51  ;;  %v1166_v37 = vadd.f32 %v6024_v28, %v1128_v15  ;;  %v1000_v50 = vsub.f32 %v5958_v4, %v6203_v43  ;;  %v999_v42 = vsub.f32 %v5961_v5, %v6205_v13 }
 0x18e   : > { %4421 = vmatprep.mubr.bf16.mxu0 %v1201_v35  ;;  %v1165_v11 = vadd.f32 %v6024_v28, %v1127_v52  ;;  %v6211_v2 = vmul.f32 0.0078125, %v743_v36 }
 0x18f   : > { %v938_v26 = vmul.f32 %v6209_v30, %v6209_v30  ;;  %v1002_v35 = vsub.f32 %v5966_v6, %v6209_v30 }
 0x190   : > { %v870_v27 = vpop.xlane.xlu1 %869  ;;  %v1202_v54 = vpack.c.bf16 %v1166_v37, %v1165_v11  ;;  %v937_v38 = vmul.f32 %v6211_v2, %v6211_v2  ;;  %v1001_v11 = vsub.f32 %v5969_v7, %v6211_v2 }
 0x191   : > { %v868_v21 = vpop.xlane.xlu0 %867  ;;  %v904_v45 = vmul.f32 0.0078125, %v870_v27 }
 0x192   : > { %v903_v53 = vmul.f32 0.0078125, %v868_v21  ;;  %4422 = vmatmul.mubr.bf16.gmra.mxu0 %v1202_v54  ;;  %v6257_v54 = vld [vmem:[%s7136_s7] ss:$0 sm:$0xff] }
 0x193   : > { %v968_v55 = vsub.f32 %v904_v45, %v936_v0 }
 0x194   : > { %v967_v22 = vsub.f32 %v903_v53, %v935_v39  ;;  %v4915_v62 = vpop.eup %4914  ;;  %v874_v12 = vpop.xlane.xlu1 %873 }
 0x195   : > { %v872_v60 = vpop.xlane.xlu0 %871  ;;  %v4917_v1 = vpop.eup %4916  ;;  %v1032_v23 = vadd.f32 1e-05, %v968_v55  ;;  %v906_v41 = vmul.f32 0.0078125, %v874_v12  ;;  %v1092_v48 = vmul.f32 %v4915_v62, %v996_v31 }
 0x196   : > { %v1031_v40 = vadd.f32 1e-05, %v967_v22  ;;  %v905_v47 = vmul.f32 0.0078125, %v872_v60  ;;  %v1091_v17 = vmul.f32 %v4917_v1, %v995_v32 }
 0x197   : > { %4922 = vrsqrt.f32 %v1032_v23  ;;  %v970_v57 = vsub.f32 %v906_v41, %v938_v26  ;;  %v1130_v10 = vmul.f32 %v6005_v44, %v1092_v48 }
 0x198   : > { %v969_v18 = vsub.f32 %v905_v47, %v937_v38  ;;  %v4919_v61 = vpop.eup %4918  ;;  %4924 = vrsqrt.f32 %v1031_v40  ;;  %v1129_v29 = vmul.f32 %v6005_v44, %v1091_v17 }
 0x199   : > { %v4921_v63 = vpop.eup %4920  ;;  %v1034_v8 = vadd.f32 1e-05, %v970_v57  ;;  %v1094_v24 = vmul.f32 %v4919_v61, %v998_v56  ;;  %v1168_v58 = vadd.f32 %v6024_v28, %v1130_v10 }
 0x19a   : > { %v1033_v9 = vadd.f32 1e-05, %v969_v18  ;;  %v1167_v34 = vadd.f32 %v6024_v28, %v1129_v29  ;;  %v1093_v19 = vmul.f32 %v4921_v63, %v997_v49 }
 0x19b   : > { %4926 = vrsqrt.f32 %v1034_v8  ;;  %v1132_v46 = vmul.f32 %v6005_v44, %v1094_v24 }
 0x19c   : > { %4928 = vrsqrt.f32 %v1033_v9  ;;  %v1203_v3 = vpack.c.bf16 %v1168_v58, %v1167_v34  ;;  %v1131_v59 = vmul.f32 %v6005_v44, %v1093_v19 }
 0x19d   : > { %v1170_v20 = vadd.f32 %v6024_v28, %v1132_v46 }
 0x19e   : > { %4425 = vmatprep.mubr.bf16.mxu0 %v1203_v3  ;;  %v1169_v16 = vadd.f32 %v6024_v28, %v1131_v59 }
 0x1a0   : > { %v1204_v14 = vpack.c.bf16 %v1170_v20, %v1169_v16 }
 0x1a2   : > { %4426 = vmatmul.mubr.bf16.gmra.mxu0 %v1204_v14 }
 0x1a4   : > { %v4923_v33 = vpop.eup %4922 }
 0x1a5   : > { %v4925_v25 = vpop.eup %4924  ;;  %v1096_v51 = vmul.f32 %v4923_v33, %v1000_v50 }
 0x1a6   : > { %v1095_v36 = vmul.f32 %v4925_v25, %v999_v42 }
 0x1a7   : > { %v1134_v52 = vmul.f32 %v6005_v44, %v1096_v51 }
 0x1a8   : > { %v4927_v15 = vpop.eup %4926  ;;  %v1133_v27 = vmul.f32 %v6005_v44, %v1095_v36 }
 0x1a9   : > { %v4929_v21 = vpop.eup %4928  ;;  %v1172_v4 = vadd.f32 %v6024_v28, %v1134_v52  ;;  %v1098_v43 = vmul.f32 %v4927_v15, %v1002_v35 }
 0x1aa   : > { %v1171_v5 = vadd.f32 %v6024_v28, %v1133_v27  ;;  %v1097_v13 = vmul.f32 %v4929_v21, %v1001_v11 }
 0x1ab   : > { %v1136_v37 = vmul.f32 %v6005_v44, %v1098_v43 }
 0x1ac   : > { %v1205_v0 = vpack.c.bf16 %v1172_v4, %v1171_v5  ;;  %v1135_v6 = vmul.f32 %v6005_v44, %v1097_v13 }
 0x1ad   : > { %v1174_v30 = vadd.f32 %v6024_v28, %v1136_v37 }
 0x1ae   : > { %4429 = vmatprep.mubr.bf16.mxu0 %v1205_v0  ;;  %v1173_v39 = vadd.f32 %v6024_v28, %v1135_v6 }
 0x1b0   : > { %v1206_v7 = vpack.c.bf16 %v1174_v30, %v1173_v39 }
 0x1b2   : > { %4430 = vmatmul.mubr.bf16.gmra.mxu0 %v1206_v7 }
 0x202   : > { %v4403_v2 = vpop.f32.mrf.mxu0 }
 0x203   : > { %v1305_v31 = vadd.f32 %v4403_v2, %v6257_v54 }
 0x204   : > { %v1296_v45 = vpop.f32.mrf.mxu0 }
 0x205   : > { %v1297_v44 = vadd.f32 %v6257_v54, %v1296_v45 }
 0x206   : > { %v4404_v53 = vpop.f32.mrf.mxu0 }
 0x207   : > { %v1308_v55 = vadd.f32 %v4404_v53, %v6257_v54 }
 0x208   : > { %v1299_v22 = vpop.f32.mrf.mxu0 }
 0x209   : > { %v1300_v62 = vadd.f32 %v6257_v54, %v1299_v22  ;;  %v1461_v32 = vpack.c.bf16 %v1308_v55, %v1305_v31 }
 0x20b   : > { %v1460_v28 = vpack.c.bf16 %v1300_v62, %v1297_v44 }
 0x20d   : > { %4449 = vmatprep.mubr.bf16.mxu1 %v1460_v28 }
 0x20e   : > { %4450 = vmatmul.mubr.bf16.vlgmr.msra.gmra.mxu1 %v1461_v32 }
 0x212   : > { %v4407_v26 = vpop.f32.mrf.mxu0 }
 0x213   : > { %v1321_v41 = vadd.f32 %v4407_v26, %v6257_v54 }
 0x214   : > { %v1312_v38 = vpop.f32.mrf.mxu0 }
 0x215   : > { %v1313_v23 = vadd.f32 %v6257_v54, %v1312_v38 }
 0x216   : > { %v4408_v12 = vpop.f32.mrf.mxu0 }
 0x217   : > { %v1324_v60 = vadd.f32 %v4408_v12, %v6257_v54 }
 0x218   : > { %v1315_v1 = vpop.f32.mrf.mxu0 }
 0x219   : > { %v1316_v40 = vadd.f32 %v6257_v54, %v1315_v1  ;;  %v1463_v17 = vpack.c.bf16 %v1324_v60, %v1321_v41  ;;  %v4834_v41 = vld [vmem:[%s6046_s30 + $0x38] sm:$0xff]  }
 0x21a   : > { %4481 = vmatprep.subr.bf16.mxu0 %v4834_v41 }
 0x21b   : > { %v1462_v47 = vpack.c.bf16 %v1316_v40, %v1313_v23  ;;  %4482 = vmatpush3.bf16.msra.mxu0 %v4834_v41 }
 0x21d   : > { %4453 = vmatprep.mubr.bf16.mxu1 %v1462_v47  ;;  %v4835_v47 = vld [vmem:[%s6046_s30 + $0x30] sm:$0xff]  }
 0x21e   : > { %4454 = vmatmul.mubr.bf16.gmra.mxu1 %v1463_v17  ;;  %4483 = vmatprep.subr.bf16.mxu0 %v4835_v47  ;;  %v4836_v17 = vld [vmem:[%s6046_s30 + $0x28] sm:$0xff]  }
 0x21f   : > { %4484 = vmatpush3.bf16.msra.mxu0 %v4835_v47 }
 0x220   : > { %4485 = vmatprep.subr.bf16.mxu0 %v4836_v17 }
 0x222   : > { %v4411_v48 = vpop.f32.mrf.mxu0 }
 0x223   : > { %v1337_v10 = vadd.f32 %v4411_v48, %v6257_v54  ;;  %4486 = vmatpush3.bf16.msra.mxu0 %v4836_v17  ;;  %v4837_v48 = vld [vmem:[%s6046_s30 + $0x20] sm:$0xff]  }
 0x224   : > { %v1328_v56 = vpop.f32.mrf.mxu0  ;;  %4487 = vmatprep.subr.bf16.mxu0 %v4837_v48 }
 0x225   : > { %v1329_v49 = vadd.f32 %v6257_v54, %v1328_v56  ;;  %v4838_v56 = vld [vmem:[%s6046_s30 + $0x18] sm:$0xff]  }
 0x226   : > { %v4412_v57 = vpop.f32.mrf.mxu0 }
 0x227   : > { %v1340_v18 = vadd.f32 %v4412_v57, %v6257_v54  ;;  %4488 = vmatpush3.bf16.msra.mxu0 %v4837_v48 }
 0x228   : > { %v1331_v61 = vpop.f32.mrf.mxu0  ;;  %4489 = vmatprep.subr.bf16.mxu0 %v4838_v56 }
 0x229   : > { %v1332_v29 = vadd.f32 %v6257_v54, %v1331_v61  ;;  %v1465_v8 = vpack.c.bf16 %v1340_v18, %v1337_v10 }
 0x22b   : > { %v1464_v63 = vpack.c.bf16 %v1332_v29, %v1329_v49  ;;  %4490 = vmatpush3.bf16.msra.mxu0 %v4838_v56 }
 0x22d   : > { %4457 = vmatprep.mubr.bf16.mxu1 %v1464_v63 }
 0x22e   : > { %4458 = vmatmul.mubr.bf16.gmra.mxu1 %v1465_v8 }
 0x232   : > { %v4415_v9 = vpop.f32.mrf.mxu0 }
 0x233   : > { %v1353_v59 = vadd.f32 %v4415_v9, %v6257_v54 }
 0x234   : > { %v1344_v24 = vpop.f32.mrf.mxu0 }
 0x235   : > { %v1345_v46 = vadd.f32 %v6257_v54, %v1344_v24 }
 0x236   : > { %v4416_v34 = vpop.f32.mrf.mxu0 }
 0x237   : > { %v1356_v58 = vadd.f32 %v4416_v34, %v6257_v54 }
 0x238   : > { %v1347_v19 = vpop.f32.mrf.mxu0 }
 0x239   : > { %v1348_v3 = vadd.f32 %v6257_v54, %v1347_v19  ;;  %v1467_v16 = vpack.c.bf16 %v1356_v58, %v1353_v59  ;;  %v4839_v58 = vld [vmem:[%s6046_s30 + $0x10] sm:$0xff]  }
 0x23a   : > { %4491 = vmatprep.subr.bf16.mxu0 %v4839_v58 }
 0x23b   : > { %v1466_v20 = vpack.c.bf16 %v1348_v3, %v1345_v46  ;;  %4492 = vmatpush3.bf16.msra.mxu0 %v4839_v58 }
 0x23d   : > { %4461 = vmatprep.mubr.bf16.mxu1 %v1466_v20 }
 0x23e   : > { %4462 = vmatmul.mubr.bf16.gmra.mxu1 %v1467_v16  ;;  %v4840_v16 = vld [vmem:[%s6046_s30 + $0x8] sm:$0xff]  }
 0x23f   : > { %4493 = vmatprep.subr.bf16.mxu0 %v4840_v16 }
 0x240   : > { %4494 = vmatpush3.bf16.msra.mxu0 %v4840_v16 }
 0x242   : > { %v4419_v14 = vpop.f32.mrf.mxu0 }
 0x243   : > { %v1369_v35 = vadd.f32 %v4419_v14, %v6257_v54 }
 0x244   : > { %v1360_v50 = vpop.f32.mrf.mxu0 }
 0x245   : > { %v1361_v51 = vadd.f32 %v6257_v54, %v1360_v50 }
 0x246   : > { %v4420_v33 = vpop.f32.mrf.mxu0 }
 0x247   : > { %v1372_v42 = vadd.f32 %v4420_v33, %v6257_v54 }
 0x248   : > { %v1363_v25 = vpop.f32.mrf.mxu0 }
 0x249   : > { %v1364_v36 = vadd.f32 %v6257_v54, %v1363_v25  ;;  %v1469_v15 = vpack.c.bf16 %v1372_v42, %v1369_v35  ;;  %v4841_v42 = vld [vmem:[%s6046_s30] sm:$0xff]  }
 0x24a   : > { %4495 = vmatprep.subr.bf16.mxu0 %v4841_v42 }
 0x24b   : > { %v1468_v52 = vpack.c.bf16 %v1364_v36, %v1361_v51  ;;  %4496 = vmatpush3.bf16.msra.mxu0 %v4841_v42 }
 0x24d   : > { %4465 = vmatprep.mubr.bf16.mxu1 %v1468_v52 }
 0x24e   : > { %4466 = vmatmul.mubr.bf16.gmra.mxu1 %v1469_v15 }
 0x252   : > { %v4423_v11 = vpop.f32.mrf.mxu0 }
 0x253   : > { %v1385_v37 = vadd.f32 %v4423_v11, %v6257_v54 }
 0x254   : > { %v1376_v27 = vpop.f32.mrf.mxu0 }
 0x255   : > { %v1377_v5 = vadd.f32 %v6257_v54, %v1376_v27 }
 0x256   : > { %v4424_v21 = vpop.f32.mrf.mxu0 }
 0x257   : > { %v1388_v4 = vadd.f32 %v4424_v21, %v6257_v54 }
 0x258   : > { %v1379_v43 = vpop.f32.mrf.mxu0 }
 0x259   : > { %v1380_v13 = vadd.f32 %v6257_v54, %v1379_v43  ;;  %v1471_v6 = vpack.c.bf16 %v1388_v4, %v1385_v37 }
 0x25b   : > { %v1470_v0 = vpack.c.bf16 %v1380_v13, %v1377_v5 }
 0x25d   : > { %4469 = vmatprep.mubr.bf16.mxu1 %v1470_v0 }
 0x25e   : > { %4470 = vmatmul.mubr.bf16.gmra.mxu1 %v1471_v6 }
 0x262   : > { %v4427_v30 = vpop.f32.mrf.mxu0 }
 0x263   : > { %v1401_v22 = vadd.f32 %v4427_v30, %v6257_v54 }
 0x264   : > { %v1392_v39 = vpop.f32.mrf.mxu0 }
 0x265   : > { %v1393_v53 = vadd.f32 %v6257_v54, %v1392_v39 }
 0x266   : > { %v4428_v7 = vpop.f32.mrf.mxu0 }
 0x267   : > { %v1404_v2 = vadd.f32 %v4428_v7, %v6257_v54 }
 0x268   : > { %v1395_v45 = vpop.f32.mrf.mxu0 }
 0x269   : > { %v1396_v55 = vadd.f32 %v6257_v54, %v1395_v45  ;;  %v1473_v62 = vpack.c.bf16 %v1404_v2, %v1401_v22 }
 0x26b   : > { %v1472_v44 = vpack.c.bf16 %v1396_v55, %v1393_v53 }
 0x26d   : > { %4473 = vmatprep.mubr.bf16.mxu1 %v1472_v44 }
 0x26e   : > { %4474 = vmatmul.mubr.bf16.gmra.mxu1 %v1473_v62 }
 0x272   : > { %v4431_v31 = vpop.f32.mrf.mxu0 }
 0x273   : > { %v1417_v1 = vadd.f32 %v4431_v31, %v6257_v54 }
 0x274   : > { %v1408_v28 = vpop.f32.mrf.mxu0 }
 0x275   : > { %v1409_v12 = vadd.f32 %v6257_v54, %v1408_v28 }
 0x276   : > { %v4432_v32 = vpop.f32.mrf.mxu0 }
 0x277   : > { %v1420_v26 = vadd.f32 %v4432_v32, %v6257_v54 }
 0x278   : > { %v1411_v38 = vpop.f32.mrf.mxu0 }
 0x279   : > { %v1412_v60 = vadd.f32 %v6257_v54, %v1411_v38  ;;  %v1475_v40 = vpack.c.bf16 %v1420_v26, %v1417_v1  ;;  %v6299_v54 = vld [vmem:[%s7132_s3] ss:$0 sm:$0xff] }
 0x27b   : > { %v1474_v23 = vpack.c.bf16 %v1412_v60, %v1409_v12 }
 0x27d   : > { %4477 = vmatprep.mubr.bf16.mxu1 %v1474_v23 }
 0x27e   : > { %4478 = vmatmul.mubr.bf16.gmra.mxu1 %v1475_v40 }
 0x2ce   : > { %v4451_v57 = vpop.f32.mrf.mxu1 }
 0x2cf   : > { %v6306_v10 = vadd.f32 %v4451_v57, %v6299_v54 }
 0x2d0   : > { %v1565_v18 = vpop.f32.mrf.mxu1 }
 0x2d1   : > { %v6302_v61 = vadd.f32 %v6299_v54, %v1565_v18 }
 0x2d2   : > { %v4452_v49 = vpop.f32.mrf.mxu1 }
 0x2d3   : > { %1692 = vmax.xlane.f32.xlu0 %v6302_v61  ;;  %v6314_v8 = vadd.f32 %v4452_v49, %v6299_v54 }
 0x2d4   : > { %v1568_v29 = vpop.f32.mrf.mxu1 }
 0x2d5   : > { %v6309_v63 = vadd.f32 %v6299_v54, %v1568_v29 }
 0x2d7   : > { %1694 = vmax.xlane.f32.xlu1 %v6309_v63  ;;  %1696 = vmax.xlane.f32.xlu0 %v6306_v10 }
 0x2db   : > { %1698 = vmax.xlane.f32.xlu1 %v6314_v8 }
 0x2de   : > { %v4455_v9 = vpop.f32.mrf.mxu1 }
 0x2df   : > { %v6323_v3 = vadd.f32 %v4455_v9, %v6299_v54 }
 0x2e0   : > { %v1581_v24 = vpop.f32.mrf.mxu1 }
 0x2e1   : > { %v6318_v34 = vadd.f32 %v6299_v54, %v1581_v24 }
 0x2e2   : > { %v4456_v19 = vpop.f32.mrf.mxu1 }
 0x2e3   : > { %1700 = vmax.xlane.f32.xlu0 %v6318_v34  ;;  %v6331_v20 = vadd.f32 %v4456_v19, %v6299_v54 }
 0x2e4   : > { %v1584_v46 = vpop.f32.mrf.mxu1 }
 0x2e5   : > { %v6326_v59 = vadd.f32 %v6299_v54, %v1584_v46 }
 0x2e7   : > { %1702 = vmax.xlane.f32.xlu1 %v6326_v59  ;;  %1704 = vmax.xlane.f32.xlu0 %v6323_v3 }
 0x2eb   : > { %1706 = vmax.xlane.f32.xlu1 %v6331_v20 }
 0x2ee   : > { %v4459_v14 = vpop.f32.mrf.mxu1 }
 0x2ef   : > { %v6341_v36 = vadd.f32 %v4459_v14, %v6299_v54 }
 0x2f0   : > { %v1597_v50 = vpop.f32.mrf.mxu1 }
 0x2f1   : > { %v6336_v33 = vadd.f32 %v6299_v54, %v1597_v50 }
 0x2f2   : > { %v4460_v25 = vpop.f32.mrf.mxu1 }
 0x2f3   : > { %1708 = vmax.xlane.f32.xlu0 %v6336_v33  ;;  %v6349_v52 = vadd.f32 %v4460_v25, %v6299_v54 }
 0x2f4   : > { %v1600_v51 = vpop.f32.mrf.mxu1 }
 0x2f5   : > { %v6344_v35 = vadd.f32 %v6299_v54, %v1600_v51 }
 0x2f7   : > { %1710 = vmax.xlane.f32.xlu1 %v6344_v35  ;;  %1712 = vmax.xlane.f32.xlu0 %v6341_v36 }
 0x2fb   : > { %1714 = vmax.xlane.f32.xlu1 %v6349_v52 }
 0x2fe   : > { %v4463_v15 = vpop.f32.mrf.mxu1 }
 0x2ff   : > { %v6357_v43 = vadd.f32 %v4463_v15, %v6299_v54 }
 0x300   : > { %v1613_v11 = vpop.f32.mrf.mxu1 }
 0x301   : > { %v6353_v27 = vadd.f32 %v6299_v54, %v1613_v11 }
 0x302   : > { %v4464_v21 = vpop.f32.mrf.mxu1 }
 0x303   : > { %1716 = vmax.xlane.f32.xlu0 %v6353_v27  ;;  %v6365_v13 = vadd.f32 %v4464_v21, %v6299_v54 }
 0x304   : > { %v1616_v4 = vpop.f32.mrf.mxu1 }
 0x305   : > { %v6360_v5 = vadd.f32 %v6299_v54, %v1616_v4 }
 0x307   : > { %1718 = vmax.xlane.f32.xlu1 %v6360_v5  ;;  %1720 = vmax.xlane.f32.xlu0 %v6357_v43 }
 0x30b   : > { %1722 = vmax.xlane.f32.xlu1 %v6365_v13 }
 0x30e   : > { %v4467_v37 = vpop.f32.mrf.mxu1 }
 0x30f   : > { %v6373_v7 = vadd.f32 %v4467_v37, %v6299_v54 }
 0x310   : > { %v1629_v0 = vpop.f32.mrf.mxu1 }
 0x311   : > { %v6369_v6 = vadd.f32 %v6299_v54, %v1629_v0 }
 0x312   : > { %v4468_v30 = vpop.f32.mrf.mxu1 }
 0x313   : > { %1724 = vmax.xlane.f32.xlu0 %v6369_v6  ;;  %v6381_v45 = vadd.f32 %v4468_v30, %v6299_v54 }
 0x314   : > { %v1632_v39 = vpop.f32.mrf.mxu1 }
 0x315   : > { %v6376_v2 = vadd.f32 %v6299_v54, %v1632_v39 }
 0x317   : > { %1726 = vmax.xlane.f32.xlu1 %v6376_v2  ;;  %1728 = vmax.xlane.f32.xlu0 %v6373_v7 }
 0x31b   : > { %1730 = vmax.xlane.f32.xlu1 %v6381_v45 }
 0x31e   : > { %v4471_v53 = vpop.f32.mrf.mxu1 }
 0x31f   : > { %v6389_v31 = vadd.f32 %v4471_v53, %v6299_v54 }
 0x320   : > { %v1645_v55 = vpop.f32.mrf.mxu1 }
 0x321   : > { %v6385_v22 = vadd.f32 %v6299_v54, %v1645_v55 }
 0x322   : > { %v4472_v44 = vpop.f32.mrf.mxu1 }
 0x323   : > { %1732 = vmax.xlane.f32.xlu0 %v6385_v22  ;;  %v6397_v32 = vadd.f32 %v4472_v44, %v6299_v54 }
 0x324   : > { %v1648_v62 = vpop.f32.mrf.mxu1 }
 0x325   : > { %v6392_v28 = vadd.f32 %v6299_v54, %v1648_v62 }
 0x327   : > { %1734 = vmax.xlane.f32.xlu1 %v6392_v28  ;;  %1736 = vmax.xlane.f32.xlu0 %v6389_v31 }
 0x32b   : > { %1738 = vmax.xlane.f32.xlu1 %v6397_v32 }
 0x32e   : > { %v4475_v26 = vpop.f32.mrf.mxu1 }
 0x32f   : > { %v6405_v23 = vadd.f32 %v4475_v26, %v6299_v54 }
 0x330   : > { %v1661_v38 = vpop.f32.mrf.mxu1 }
 0x331   : > { %v6401_v12 = vadd.f32 %v6299_v54, %v1661_v38 }
 0x332   : > { %v4476_v60 = vpop.f32.mrf.mxu1 }
 0x333   : > { %1740 = vmax.xlane.f32.xlu0 %v6401_v12  ;;  %v6413_v41 = vadd.f32 %v4476_v60, %v6299_v54 }
 0x334   : > { %v1664_v1 = vpop.f32.mrf.mxu1 }
 0x335   : > { %v6408_v40 = vadd.f32 %v6299_v54, %v1664_v1 }
 0x337   : > { %1742 = vmax.xlane.f32.xlu1 %v6408_v40  ;;  %1744 = vmax.xlane.f32.xlu0 %v6405_v23 }
 0x33b   : > { %1746 = vmax.xlane.f32.xlu1 %v6413_v41 }
 0x33e   : > { %v4479_v47 = vpop.f32.mrf.mxu1 }
 0x33f   : > { %v6421_v18 = vadd.f32 %v4479_v47, %v6299_v54 }
 0x340   : > { %v1677_v17 = vpop.f32.mrf.mxu1 }
 0x341   : > { %v6417_v48 = vadd.f32 %v6299_v54, %v1677_v17 }
 0x342   : > { %v4480_v56 = vpop.f32.mrf.mxu1 }
 0x343   : > { %1748 = vmax.xlane.f32.xlu0 %v6417_v48  ;;  %v6429_v29 = vadd.f32 %v4480_v56, %v6299_v54  ;;  %v4842_v56 = vld [vmem:[#allocation10 + $0x38] sm:$0xff]  }
 0x344   : > { %v1680_v57 = vpop.f32.mrf.mxu1  ;;  %4529 = vmatprep.subr.bf16.mxu1 %v4842_v56 }
 0x345   : > { %v6424_v49 = vadd.f32 %v6299_v54, %v1680_v57  ;;  %4530 = vmatpush3.bf16.msra.mxu1 %v4842_v56  ;;  %v4847_v56 = vld [vmem:[#allocation10 + $0x10] sm:$0xff]  }
 0x347   : > { %1750 = vmax.xlane.f32.xlu1 %v6424_v49  ;;  %1752 = vmax.xlane.f32.xlu0 %v6421_v18 }
 0x34b   : > { %1754 = vmax.xlane.f32.xlu1 %v6429_v29 }
 0x35c   : > { %v1693_v9 = vpop.xlane.xlu0 %1692 }
 0x35d   : > { %v1756_v24 = vsub.f32 %v6302_v61, %v1693_v9 }
 0x35f   : > { %v1788_v58 = vmul.f32 1.442695, %v1756_v24 }
 0x360   : > { %v1695_v19 = vpop.xlane.xlu1 %1694  ;;  %v1697_v46 = vpop.xlane.xlu0 %1696 }
 0x361   : > { %4930 = vpow2.f32 %v1788_v58  ;;  %v1757_v16 = vsub.f32 %v6309_v63, %v1695_v19  ;;  %v1758_v14 = vsub.f32 %v6306_v10, %v1697_v46 }
 0x363   : > { %v1790_v50 = vmul.f32 1.442695, %v1757_v16  ;;  %v1792_v42 = vmul.f32 1.442695, %v1758_v14  ;;  %v4843_v14 = vld [vmem:[#allocation10 + $0x30] sm:$0xff]  }
 0x364   : > { %v1699_v25 = vpop.xlane.xlu1 %1698  ;;  %4531 = vmatprep.subr.bf16.mxu1 %v4843_v14 }
 0x365   : > { %4932 = vpow2.f32 %v1790_v50  ;;  %v1759_v54 = vsub.f32 %v6314_v8, %v1699_v25  ;;  %4532 = vmatpush3.bf16.msra.mxu1 %v4843_v14 }
 0x366   : > { %4934 = vpow2.f32 %v1792_v42 }
 0x367   : > { %v1794_v51 = vmul.f32 1.442695, %v1759_v54 }
 0x369   : > { %4936 = vpow2.f32 %v1794_v51 }
 0x36c   : > { %v1701_v15 = vpop.xlane.xlu0 %1700 }
 0x36d   : > { %v1760_v61 = vsub.f32 %v6318_v34, %v1701_v15 }
 0x36e   : > { %v4931_v11 = vpop.eup %4930 }
 0x36f   : > { %v1796_v21 = vmul.f32 1.442695, %v1760_v61  ;;  %1852 = vadd.xlane.f32.xlu0 %v4931_v11 }
 0x370   : > { %v1703_v4 = vpop.xlane.xlu1 %1702  ;;  %v1705_v37 = vpop.xlane.xlu0 %1704 }
 0x371   : > { %4938 = vpow2.f32 %v1796_v21  ;;  %v1761_v10 = vsub.f32 %v6326_v59, %v1703_v4  ;;  %v1762_v63 = vsub.f32 %v6323_v3, %v1705_v37 }
 0x372   : > { %v4933_v0 = vpop.eup %4932 }
 0x373   : > { %v4935_v30 = vpop.eup %4934  ;;  %v1798_v39 = vmul.f32 1.442695, %v1761_v10  ;;  %v1800_v8 = vmul.f32 1.442695, %v1762_v63  ;;  %1854 = vadd.xlane.f32.xlu1 %v4933_v0  ;;  %v1916_v53 = vpack.c.bf16 %v4933_v0, %v4931_v11  ;;  %v4844_v11 = vld [vmem:[#allocation10 + $0x28] sm:$0xff]  }
 0x374   : > { %1856 = vadd.xlane.f32.xlu0 %v4935_v30  ;;  %v1707_v55 = vpop.xlane.xlu1 %1706  ;;  %4533 = vmatprep.subr.bf16.mxu1 %v4844_v11 }
 0x375   : > { %4940 = vpow2.f32 %v1798_v39  ;;  %v1763_v34 = vsub.f32 %v6331_v20, %v1707_v55  ;;  %4497 = vmatprep.mubr.bf16.mxu0 %v1916_v53  ;;  %4534 = vmatpush3.bf16.msra.mxu1 %v4844_v11  ;;  %v4845_v39 = vld [vmem:[#allocation10 + $0x20] sm:$0xff]  }
 0x376   : > { %v4937_v44 = vpop.eup %4936  ;;  %4942 = vpow2.f32 %v1800_v8  ;;  %4535 = vmatprep.subr.bf16.mxu1 %v4845_v39 }
 0x377   : > { %v1802_v62 = vmul.f32 1.442695, %v1763_v34  ;;  %1858 = vadd.xlane.f32.xlu1 %v4937_v44  ;;  %v1917_v26 = vpack.c.bf16 %v4937_v44, %v4935_v30 }
 0x379   : > { %4944 = vpow2.f32 %v1802_v62  ;;  %4498 = vmatmul.mubr.bf16.vlgmr.msra.gmra.mxu0 %v1917_v26  ;;  %4536 = vmatpush3.bf16.msra.mxu1 %v4845_v39 }
 0x37c   : > { %v1709_v3 = vpop.xlane.xlu0 %1708 }
 0x37d   : > { %v1764_v59 = vsub.f32 %v6336_v33, %v1709_v3  ;;  %v4846_v3 = vld [vmem:[#allocation10 + $0x18] sm:$0xff]  }
 0x37e   : > { %v4939_v38 = vpop.eup %4938  ;;  %4537 = vmatprep.subr.bf16.mxu1 %v4846_v3 }
 0x37f   : > { %v1804_v60 = vmul.f32 1.442695, %v1764_v59  ;;  %1860 = vadd.xlane.f32.xlu0 %v4939_v38  ;;  %4538 = vmatpush3.bf16.msra.mxu1 %v4846_v3 }
 0x380   : > { %v1711_v1 = vpop.xlane.xlu1 %1710  ;;  %v1713_v47 = vpop.xlane.xlu0 %1712  ;;  %4539 = vmatprep.subr.bf16.mxu1 %v4847_v56 }
 0x381   : > { %4946 = vpow2.f32 %v1804_v60  ;;  %v1765_v17 = vsub.f32 %v6344_v35, %v1711_v1  ;;  %v1766_v20 = vsub.f32 %v6341_v36, %v1713_v47 }
 0x382   : > { %v4941_v57 = vpop.eup %4940 }
 0x383   : > { %v4943_v9 = vpop.eup %4942  ;;  %v1806_v24 = vmul.f32 1.442695, %v1765_v17  ;;  %v1808_v58 = vmul.f32 1.442695, %v1766_v20  ;;  %1862 = vadd.xlane.f32.xlu1 %v4941_v57  ;;  %v1918_v19 = vpack.c.bf16 %v4941_v57, %v4939_v38  ;;  %4540 = vmatpush3.bf16.msra.mxu1 %v4847_v56 }
 0x384   : > { %1864 = vadd.xlane.f32.xlu0 %v4943_v9  ;;  %v1715_v33 = vpop.xlane.xlu1 %1714 }
 0x385   : > { %4948 = vpow2.f32 %v1806_v24  ;;  %v1767_v46 = vsub.f32 %v6349_v52, %v1715_v33  ;;  %4501 = vmatprep.mubr.bf16.mxu0 %v1918_v19 }
 0x386   : > { %v4945_v16 = vpop.eup %4944  ;;  %4950 = vpow2.f32 %v1808_v58 }
 0x387   : > { %v1810_v35 = vmul.f32 1.442695, %v1767_v46  ;;  %1866 = vadd.xlane.f32.xlu1 %v4945_v16  ;;  %v1919_v36 = vpack.c.bf16 %v4945_v16, %v4943_v9  ;;  %v4848_v16 = vld [vmem:[#allocation10 + $0x8] sm:$0xff]  }
 0x388   : > { %4541 = vmatprep.subr.bf16.mxu1 %v4848_v16 }
 0x389   : > { %4952 = vpow2.f32 %v1810_v35  ;;  %4502 = vmatmul.mubr.bf16.gmra.mxu0 %v1919_v36  ;;  %4542 = vmatpush3.bf16.msra.mxu1 %v4848_v16 }
 0x38c   : > { %v1717_v50 = vpop.xlane.xlu0 %1716 }
 0x38d   : > { %v1768_v42 = vsub.f32 %v6353_v27, %v1717_v50 }
 0x38e   : > { %v4947_v25 = vpop.eup %4946 }
 0x38f   : > { %v1812_v54 = vmul.f32 1.442695, %v1768_v42  ;;  %1868 = vadd.xlane.f32.xlu0 %v4947_v25 }
 0x390   : > { %v1719_v51 = vpop.xlane.xlu1 %1718  ;;  %v1721_v15 = vpop.xlane.xlu0 %1720 }
 0x391   : > { %4954 = vpow2.f32 %v1812_v54  ;;  %v1769_v52 = vsub.f32 %v6360_v5, %v1719_v51  ;;  %v1770_v61 = vsub.f32 %v6357_v43, %v1721_v15 }
 0x392   : > { %v4949_v21 = vpop.eup %4948 }
 0x393   : > { %v4951_v4 = vpop.eup %4950  ;;  %v1814_v37 = vmul.f32 1.442695, %v1769_v52  ;;  %v1816_v10 = vmul.f32 1.442695, %v1770_v61  ;;  %1870 = vadd.xlane.f32.xlu1 %v4949_v21  ;;  %v1920_v63 = vpack.c.bf16 %v4949_v21, %v4947_v25  ;;  %v4849_v52 = vld [vmem:[#allocation10] sm:$0xff]  }
 0x394   : > { %1872 = vadd.xlane.f32.xlu0 %v4951_v4  ;;  %v1723_v27 = vpop.xlane.xlu1 %1722  ;;  %4543 = vmatprep.subr.bf16.mxu1 %v4849_v52 }
 0x395   : > { %4956 = vpow2.f32 %v1814_v37  ;;  %v1771_v0 = vsub.f32 %v6365_v13, %v1723_v27  ;;  %4505 = vmatprep.mubr.bf16.mxu0 %v1920_v63  ;;  %4544 = vmatpush3.bf16.msra.mxu1 %v4849_v52 }
 0x396   : > { %v4953_v30 = vpop.eup %4952  ;;  %4958 = vpow2.f32 %v1816_v10 }
 0x397   : > { %v1818_v5 = vmul.f32 1.442695, %v1771_v0  ;;  %1874 = vadd.xlane.f32.xlu1 %v4953_v30  ;;  %v1921_v43 = vpack.c.bf16 %v4953_v30, %v4951_v4 }
 0x399   : > { %4960 = vpow2.f32 %v1818_v5  ;;  %4506 = vmatmul.mubr.bf16.gmra.mxu0 %v1921_v43 }
 0x39c   : > { %v1725_v8 = vpop.xlane.xlu0 %1724 }
 0x39d   : > { %v1772_v53 = vsub.f32 %v6369_v6, %v1725_v8 }
 0x39e   : > { %v4955_v55 = vpop.eup %4954 }
 0x39f   : > { %v1820_v34 = vmul.f32 1.442695, %v1772_v53  ;;  %1876 = vadd.xlane.f32.xlu0 %v4955_v55 }
 0x3a0   : > { %v1727_v44 = vpop.xlane.xlu1 %1726  ;;  %v1729_v62 = vpop.xlane.xlu0 %1728 }
 0x3a1   : > { %4962 = vpow2.f32 %v1820_v34  ;;  %v1773_v13 = vsub.f32 %v6376_v2, %v1727_v44  ;;  %v1774_v26 = vsub.f32 %v6373_v7, %v1729_v62 }
 0x3a2   : > { %v4957_v59 = vpop.eup %4956 }
 0x3a3   : > { %v4959_v38 = vpop.eup %4958  ;;  %v1822_v60 = vmul.f32 1.442695, %v1773_v13  ;;  %v1824_v1 = vmul.f32 1.442695, %v1774_v26  ;;  %1878 = vadd.xlane.f32.xlu1 %v4957_v59  ;;  %v1922_v47 = vpack.c.bf16 %v4957_v59, %v4955_v55 }
 0x3a4   : > { %1880 = vadd.xlane.f32.xlu0 %v4959_v38  ;;  %v1731_v6 = vpop.xlane.xlu1 %1730 }
 0x3a5   : > { %4964 = vpow2.f32 %v1822_v60  ;;  %v1775_v17 = vsub.f32 %v6381_v45, %v1731_v6  ;;  %4509 = vmatprep.mubr.bf16.mxu0 %v1922_v47 }
 0x3a6   : > { %v4961_v20 = vpop.eup %4960  ;;  %4966 = vpow2.f32 %v1824_v1 }
 0x3a7   : > { %v1826_v2 = vmul.f32 1.442695, %v1775_v17  ;;  %1882 = vadd.xlane.f32.xlu1 %v4961_v20  ;;  %v1923_v7 = vpack.c.bf16 %v4961_v20, %v4959_v38 }
 0x3a9   : > { %4968 = vpow2.f32 %v1826_v2  ;;  %4510 = vmatmul.mubr.bf16.gmra.mxu0 %v1923_v7 }
 0x3ac   : > { %v1733_v57 = vpop.xlane.xlu0 %1732 }
 0x3ad   : > { %v1776_v9 = vsub.f32 %v6385_v22, %v1733_v57 }
 0x3ae   : > { %v4963_v24 = vpop.eup %4962 }
 0x3af   : > { %v1828_v58 = vmul.f32 1.442695, %v1776_v9  ;;  %1884 = vadd.xlane.f32.xlu0 %v4963_v24 }
 0x3b0   : > { %v1735_v19 = vpop.xlane.xlu1 %1734  ;;  %v1737_v33 = vpop.xlane.xlu0 %1736 }
 0x3b1   : > { %4970 = vpow2.f32 %v1828_v58  ;;  %v1777_v45 = vsub.f32 %v6392_v28, %v1735_v19  ;;  %v1778_v46 = vsub.f32 %v6389_v31, %v1737_v33 }
 0x3b2   : > { %v4965_v35 = vpop.eup %4964 }
 0x3b3   : > { %v4967_v36 = vpop.eup %4966  ;;  %v1830_v14 = vmul.f32 1.442695, %v1777_v45  ;;  %v1832_v50 = vmul.f32 1.442695, %v1778_v46  ;;  %1886 = vadd.xlane.f32.xlu1 %v4965_v35  ;;  %v1924_v42 = vpack.c.bf16 %v4965_v35, %v4963_v24 }
 0x3b4   : > { %1888 = vadd.xlane.f32.xlu0 %v4967_v36  ;;  %v1739_v22 = vpop.xlane.xlu1 %1738 }
 0x3b5   : > { %4972 = vpow2.f32 %v1830_v14  ;;  %v1779_v25 = vsub.f32 %v6397_v32, %v1739_v22  ;;  %4513 = vmatprep.mubr.bf16.mxu0 %v1924_v42 }
 0x3b6   : > { %v4969_v54 = vpop.eup %4968  ;;  %4974 = vpow2.f32 %v1832_v50 }
 0x3b7   : > { %v1834_v28 = vmul.f32 1.442695, %v1779_v25  ;;  %1890 = vadd.xlane.f32.xlu1 %v4969_v54  ;;  %v1925_v31 = vpack.c.bf16 %v4969_v54, %v4967_v36 }
 0x3b9   : > { %4976 = vpow2.f32 %v1834_v28  ;;  %4514 = vmatmul.mubr.bf16.gmra.mxu0 %v1925_v31 }
 0x3bc   : > { %v1741_v51 = vpop.xlane.xlu0 %1740 }
 0x3bd   : > { %v1780_v15 = vsub.f32 %v6401_v12, %v1741_v51 }
 0x3be   : > { %v4971_v11 = vpop.eup %4970 }
 0x3bf   : > { %v1836_v61 = vmul.f32 1.442695, %v1780_v15  ;;  %1892 = vadd.xlane.f32.xlu0 %v4971_v11 }
 0x3c0   : > { %v1743_v21 = vpop.xlane.xlu1 %1742  ;;  %v1745_v4 = vpop.xlane.xlu0 %1744 }
 0x3c1   : > { %4978 = vpow2.f32 %v1836_v61  ;;  %v1781_v32 = vsub.f32 %v6408_v40, %v1743_v21  ;;  %v1782_v37 = vsub.f32 %v6405_v23, %v1745_v4 }
 0x3c2   : > { %v4973_v27 = vpop.eup %4972 }
 0x3c3   : > { %v1838_v10 = vmul.f32 1.442695, %v1781_v32  ;;  %v1840_v63 = vmul.f32 1.442695, %v1782_v37  ;;  %v4975_v30 = vpop.eup %4974  ;;  %1894 = vadd.xlane.f32.xlu1 %v4973_v27  ;;  %v1926_v5 = vpack.c.bf16 %v4973_v27, %v4971_v11 }
 0x3c4   : > { %v1747_v0 = vpop.xlane.xlu1 %1746  ;;  %1896 = vadd.xlane.f32.xlu0 %v4975_v30 }
 0x3c5   : > { %4980 = vpow2.f32 %v1838_v10  ;;  %v1783_v12 = vsub.f32 %v6413_v41, %v1747_v0  ;;  %4517 = vmatprep.mubr.bf16.mxu0 %v1926_v5 }
 0x3c6   : > { %4982 = vpow2.f32 %v1840_v63  ;;  %v4977_v39 = vpop.eup %4976 }
 0x3c7   : > { %v1842_v43 = vmul.f32 1.442695, %v1783_v12  ;;  %1898 = vadd.xlane.f32.xlu1 %v4977_v39  ;;  %v1927_v40 = vpack.c.bf16 %v4977_v39, %v4975_v30 }
 0x3c9   : > { %4984 = vpow2.f32 %v1842_v43  ;;  %4518 = vmatmul.mubr.bf16.gmra.mxu0 %v1927_v40 }
 0x3cc   : > { %v1749_v23 = vpop.xlane.xlu0 %1748 }
 0x3cd   : > { %v1784_v8 = vsub.f32 %v6417_v48, %v1749_v23 }
 0x3ce   : > { %v4979_v53 = vpop.eup %4978 }
 0x3cf   : > { %v1844_v55 = vmul.f32 1.442695, %v1784_v8  ;;  %1900 = vadd.xlane.f32.xlu0 %v4979_v53 }
 0x3d0   : > { %v1751_v34 = vpop.xlane.xlu1 %1750  ;;  %v1753_v44 = vpop.xlane.xlu0 %1752 }
 0x3d1   : > { %4986 = vpow2.f32 %v1844_v55  ;;  %v1785_v41 = vsub.f32 %v6424_v49, %v1751_v34  ;;  %v1786_v62 = vsub.f32 %v6421_v18, %v1753_v44 }
 0x3d2   : > { %v4981_v13 = vpop.eup %4980 }
 0x3d3   : > { %v4983_v26 = vpop.eup %4982  ;;  %v1846_v3 = vmul.f32 1.442695, %v1785_v41  ;;  %v1848_v59 = vmul.f32 1.442695, %v1786_v62  ;;  %1902 = vadd.xlane.f32.xlu1 %v4981_v13  ;;  %v1928_v38 = vpack.c.bf16 %v4981_v13, %v4979_v53 }
 0x3d4   : > { %1904 = vadd.xlane.f32.xlu0 %v4983_v26  ;;  %v1755_v60 = vpop.xlane.xlu1 %1754 }
 0x3d5   : > { %4988 = vpow2.f32 %v1846_v3  ;;  %v1787_v48 = vsub.f32 %v6429_v29, %v1755_v60  ;;  %4521 = vmatprep.mubr.bf16.mxu0 %v1928_v38 }
 0x3d6   : > { %v4985_v1 = vpop.eup %4984  ;;  %4990 = vpow2.f32 %v1848_v59 }
 0x3d7   : > { %v1850_v47 = vmul.f32 1.442695, %v1787_v48  ;;  %1906 = vadd.xlane.f32.xlu1 %v4985_v1  ;;  %v1929_v6 = vpack.c.bf16 %v4985_v1, %v4983_v26 }
 0x3d9   : > { %4992 = vpow2.f32 %v1850_v47  ;;  %4522 = vmatmul.mubr.bf16.gmra.mxu0 %v1929_v6 }
 0x3de   : > { %v4987_v18 = vpop.eup %4986 }
 0x3df   : > { %1908 = vadd.xlane.f32.xlu0 %v4987_v18 }
 0x3e2   : > { %v4989_v49 = vpop.eup %4988 }
 0x3e3   : > { %v4991_v17 = vpop.eup %4990  ;;  %1910 = vadd.xlane.f32.xlu1 %v4989_v49  ;;  %v1930_v20 = vpack.c.bf16 %v4989_v49, %v4987_v18 }
 0x3e4   : > { %1912 = vadd.xlane.f32.xlu0 %v4991_v17 }
 0x3e5   : > { %4525 = vmatprep.mubr.bf16.mxu0 %v1930_v20 }
 0x3e6   : > { %v4993_v2 = vpop.eup %4992 }
 0x3e7   : > { %1914 = vadd.xlane.f32.xlu1 %v4993_v2  ;;  %v1931_v7 = vpack.c.bf16 %v4993_v2, %v4991_v17 }
 0x3e9   : > { %4526 = vmatmul.mubr.bf16.gmra.mxu0 %v1931_v7 }
 0x3f8   : > { %v1853_v56 = vpop.xlane.xlu0 %1852 }
 0x3f9   : > { %4994 = vrcp.f32 %v1853_v56 }
 0x3fc   : > { %v1855_v29 = vpop.xlane.xlu1 %1854 }
 0x3fd   : > { %v1857_v9 = vpop.xlane.xlu0 %1856 }
 0x400   : > { %v1859_v57 = vpop.xlane.xlu1 %1858 }
 0x401   : > { %4996 = vrcp.f32 %v1859_v57 }
 0x402   : > { %4998 = vrcp.f32 %v1855_v29 }
 0x403   : > { %5000 = vrcp.f32 %v1857_v9 }
 0x406   : > { %v4995_v45 = vpop.eup %4994 }
 0x408   : > { %v1861_v19 = vpop.xlane.xlu0 %1860 }
 0x409   : > { %5002 = vrcp.f32 %v1861_v19 }
 0x40c   : > { %v1863_v24 = vpop.xlane.xlu1 %1862 }
 0x40d   : > { %v1865_v22 = vpop.xlane.xlu0 %1864 }
 0x40e   : > { %v4997_v16 = vpop.eup %4996 }
 0x40f   : > { %v4999_v36 = vpop.eup %4998 }
 0x410   : > { %v1867_v35 = vpop.xlane.xlu1 %1866  ;;  %v5001_v42 = vpop.eup %5000 }
 0x411   : > { %5004 = vrcp.f32 %v1867_v35 }
 0x412   : > { %5006 = vrcp.f32 %v1863_v24 }
 0x413   : > { %5008 = vrcp.f32 %v1865_v22 }
 0x416   : > { %v5003_v21 = vpop.eup %5002 }
 0x418   : > { %v1869_v61 = vpop.xlane.xlu0 %1868 }
 0x419   : > { %5010 = vrcp.f32 %v1869_v61 }
 0x41c   : > { %v1871_v15 = vpop.xlane.xlu1 %1870 }
 0x41d   : > { %v1873_v30 = vpop.xlane.xlu0 %1872 }
 0x41e   : > { %v5005_v32 = vpop.eup %5004 }
 0x41f   : > { %v5007_v10 = vpop.eup %5006 }
 0x420   : > { %v1875_v37 = vpop.xlane.xlu1 %1874  ;;  %v5009_v0 = vpop.eup %5008 }
 0x421   : > { %5012 = vrcp.f32 %v1875_v37 }
 0x422   : > { %5014 = vrcp.f32 %v1871_v15 }
 0x423   : > { %5016 = vrcp.f32 %v1873_v30 }
 0x426   : > { %v5011_v34 = vpop.eup %5010 }
 0x428   : > { %v1877_v53 = vpop.xlane.xlu0 %1876 }
 0x429   : > { %5018 = vrcp.f32 %v1877_v53 }
 0x42c   : > { %v1879_v23 = vpop.xlane.xlu1 %1878 }
 0x42d   : > { %v1881_v38 = vpop.xlane.xlu0 %1880 }
 0x42e   : > { %v5013_v41 = vpop.eup %5012 }
 0x42f   : > { %v5015_v13 = vpop.eup %5014 }
 0x430   : > { %v1883_v62 = vpop.xlane.xlu1 %1882  ;;  %v5017_v59 = vpop.eup %5016 }
 0x431   : > { %5020 = vrcp.f32 %v1883_v62 }
 0x432   : > { %5022 = vrcp.f32 %v1879_v23 }
 0x433   : > { %5024 = vrcp.f32 %v1881_v38 }
 0x436   : > { %v5019_v2 = vpop.eup %5018 }
 0x438   : > { %v1885_v17 = vpop.xlane.xlu0 %1884 }
 0x439   : > { %v4499_v58 = vpop.f32.mrf.mxu0  ;;  %5026 = vrcp.f32 %v1885_v17 }
 0x43a   : > { %v2175_v28 = vmul.f32 %v5001_v42, %v4499_v58 }
 0x43b   : > { %v2014_v33 = vpop.f32.mrf.mxu0 }
 0x43c   : > { %v2173_v25 = vmul.f32 %v4995_v45, %v2014_v33  ;;  %v1887_v18 = vpop.xlane.xlu1 %1886 }
 0x43d   : > { %v4500_v46 = vpop.f32.mrf.mxu0  ;;  %v1889_v19 = vpop.xlane.xlu0 %1888 }
 0x43e   : > { %v2176_v14 = vmul.f32 %v4997_v16, %v4500_v46  ;;  %v5021_v29 = vpop.eup %5020 }
 0x43f   : > { %v2017_v50 = vpop.f32.mrf.mxu0  ;;  %v5023_v57 = vpop.eup %5022 }
 0x440   : > { %v2174_v54 = vmul.f32 %v4999_v36, %v2017_v50  ;;  %v2222_v51 = vpack.c.bf16 %v2176_v14, %v2175_v28  ;;  %v1891_v56 = vpop.xlane.xlu1 %1890  ;;  %v5025_v58 = vpop.eup %5024 }
 0x441   : > { %5028 = vrcp.f32 %v1891_v56 }
 0x442   : > { %v2221_v31 = vpack.c.bf16 %v2174_v54, %v2173_v25  ;;  %5030 = vrcp.f32 %v1887_v18 }
 0x443   : > { %5032 = vrcp.f32 %v1889_v19 }
 0x444   : > { %4545 = vmatprep.mubr.bf16.mxu1 %v2221_v31 }
 0x445   : > { %4546 = vmatmul.mubr.bf16.vlgmr.msra.gmra.mxu1 %v2222_v51 }
 0x446   : > { %v5027_v22 = vpop.eup %5026 }
 0x448   : > { %v1893_v50 = vpop.xlane.xlu0 %1892 }
 0x449   : > { %v4503_v52 = vpop.f32.mrf.mxu0  ;;  %5034 = vrcp.f32 %v1893_v50 }
 0x44a   : > { %v2179_v43 = vmul.f32 %v5009_v0, %v4503_v52 }
 0x44b   : > { %v2030_v11 = vpop.f32.mrf.mxu0 }
 0x44c   : > { %v2177_v12 = vmul.f32 %v5003_v21, %v2030_v11  ;;  %v1895_v36 = vpop.xlane.xlu1 %1894 }
 0x44d   : > { %v4504_v4 = vpop.f32.mrf.mxu0  ;;  %v1897_v61 = vpop.xlane.xlu0 %1896 }
 0x44e   : > { %v2180_v63 = vmul.f32 %v5005_v32, %v4504_v4  ;;  %v5029_v54 = vpop.eup %5028 }
 0x44f   : > { %v2033_v27 = vpop.f32.mrf.mxu0  ;;  %v5031_v31 = vpop.eup %5030 }
 0x450   : > { %v2178_v5 = vmul.f32 %v5007_v10, %v2033_v27  ;;  %v2224_v40 = vpack.c.bf16 %v2180_v63, %v2179_v43  ;;  %v1899_v28 = vpop.xlane.xlu1 %1898  ;;  %v5033_v52 = vpop.eup %5032 }
 0x451   : > { %5036 = vrcp.f32 %v1899_v28 }
 0x452   : > { %v2223_v39 = vpack.c.bf16 %v2178_v5, %v2177_v12  ;;  %5038 = vrcp.f32 %v1895_v36 }
 0x453   : > { %5040 = vrcp.f32 %v1897_v61 }
 0x454   : > { %4549 = vmatprep.mubr.bf16.mxu1 %v2223_v39 }
 0x455   : > { %4550 = vmatmul.mubr.bf16.gmra.mxu1 %v2224_v40 }
 0x456   : > { %v5035_v12 = vpop.eup %5034 }
 0x458   : > { %v1901_v63 = vpop.xlane.xlu0 %1900 }
 0x459   : > { %v4507_v8 = vpop.f32.mrf.mxu0  ;;  %5042 = vrcp.f32 %v1901_v63  ;;  %v5189_v63 = vld [vmem:[%s5771_s27 + $0x8] sm:$0xff] }
 0x45a   : > { %v2183_v1 = vmul.f32 %v5017_v59, %v4507_v8 }
 0x45b   : > { %v2046_v55 = vpop.f32.mrf.mxu0 }
 0x45c   : > { %v2181_v60 = vmul.f32 %v5011_v34, %v2046_v55  ;;  %v1903_v10 = vpop.xlane.xlu1 %1902 }
 0x45d   : > { %v4508_v44 = vpop.f32.mrf.mxu0  ;;  %v1905_v39 = vpop.xlane.xlu0 %1904 }
 0x45e   : > { %v2184_v26 = vmul.f32 %v5013_v41, %v4508_v44  ;;  %v5037_v43 = vpop.eup %5036 }
 0x45f   : > { %v2049_v3 = vpop.f32.mrf.mxu0  ;;  %v5039_v40 = vpop.eup %5038 }
 0x460   : > { %v2182_v48 = vmul.f32 %v5015_v13, %v2049_v3  ;;  %v2226_v6 = vpack.c.bf16 %v2184_v26, %v2183_v1  ;;  %v1907_v30 = vpop.xlane.xlu1 %1906  ;;  %v5041_v53 = vpop.eup %5040 }
 0x461   : > { %5044 = vrcp.f32 %v1907_v30 }
 0x462   : > { %v2225_v47 = vpack.c.bf16 %v2182_v48, %v2181_v60  ;;  %5046 = vrcp.f32 %v1903_v10 }
 0x463   : > { %5048 = vrcp.f32 %v1905_v39 }
 0x464   : > { %4553 = vmatprep.mubr.bf16.mxu1 %v2225_v47 }
 0x465   : > { %4554 = vmatmul.mubr.bf16.gmra.mxu1 %v2226_v6 }
 0x466   : > { %v5043_v38 = vpop.eup %5042 }
 0x468   : > { %v1909_v3 = vpop.xlane.xlu0 %1908 }
 0x469   : > { %v4511_v49 = vpop.f32.mrf.mxu0  ;;  %5050 = vrcp.f32 %v1909_v3 }
 0x46a   : > { %v2187_v46 = vmul.f32 %v5025_v58, %v4511_v49 }
 0x46b   : > { %v2062_v20 = vpop.f32.mrf.mxu0 }
 0x46c   : > { %v2185_v33 = vmul.f32 %v5019_v2, %v2062_v20  ;;  %v1911_v13 = vpop.xlane.xlu1 %1910 }
 0x46d   : > { %v4512_v7 = vpop.f32.mrf.mxu0  ;;  %v1913_v17 = vpop.xlane.xlu0 %1912 }
 0x46e   : > { %v2188_v9 = vmul.f32 %v5021_v29, %v4512_v7  ;;  %v5045_v48 = vpop.eup %5044 }
 0x46f   : > { %v2065_v24 = vpop.f32.mrf.mxu0  ;;  %v5047_v47 = vpop.eup %5046 }
 0x470   : > { %v2186_v45 = vmul.f32 %v5023_v57, %v2065_v24  ;;  %v2228_v35 = vpack.c.bf16 %v2188_v9, %v2187_v46  ;;  %v1915_v1 = vpop.xlane.xlu1 %1914  ;;  %v5049_v49 = vpop.eup %5048 }
 0x471   : > { %5052 = vrcp.f32 %v1915_v1 }
 0x472   : > { %v2227_v16 = vpack.c.bf16 %v2186_v45, %v2185_v33  ;;  %5054 = vrcp.f32 %v1911_v13  ;;  %v5192_v13 = vld [vmem:[%s5771_s27 + $0x38] sm:$0xff] }
 0x473   : > { %5056 = vrcp.f32 %v1913_v17 }
 0x474   : > { %4557 = vmatprep.mubr.bf16.mxu1 %v2227_v16 }
 0x475   : > { %4558 = vmatmul.mubr.bf16.gmra.mxu1 %v2228_v35 }
 0x476   : > { %v5051_v24 = vpop.eup %5050 }
 0x479   : > { %v4515_v14 = vpop.f32.mrf.mxu0 }
 0x47a   : > { %v2191_v4 = vmul.f32 %v5033_v52, %v4515_v14 }
 0x47b   : > { %v2078_v42 = vpop.f32.mrf.mxu0 }
 0x47c   : > { %v2189_v11 = vmul.f32 %v5027_v22, %v2078_v42  ;;  %v6467_v22 = vld [vmem:[%s7138_s9] ss:$0 sm:$0xff] }
 0x47d   : > { %v4516_v25 = vpop.f32.mrf.mxu0 }
 0x47e   : > { %v2192_v51 = vmul.f32 %v5029_v54, %v4516_v25  ;;  %v5053_v19 = vpop.eup %5052 }
 0x47f   : > { %v2081_v15 = vpop.f32.mrf.mxu0  ;;  %v5055_v33 = vpop.eup %5054 }
 0x480   : > { %v2190_v21 = vmul.f32 %v5031_v31, %v2081_v15  ;;  %v2230_v37 = vpack.c.bf16 %v2192_v51, %v2191_v4  ;;  %v5057_v16 = vpop.eup %5056  ;;  %v5186_v31 = vld [vmem:[%s5771_s27 + $0x10] sm:$0xff] }
 0x482   : > { %v2229_v32 = vpack.c.bf16 %v2190_v21, %v2189_v11  ;;  %v5187_v21 = vld [vmem:[%s5771_s27] sm:$0xff] }
 0x484   : > { %4561 = vmatprep.mubr.bf16.mxu1 %v2229_v32  ;;  %v5188_v32 = vld [vmem:[%s5771_s27 + $0x18] sm:$0xff] }
 0x485   : > { %4562 = vmatmul.mubr.bf16.gmra.mxu1 %v2230_v37 }
 0x489   : > { %v4519_v27 = vpop.f32.mrf.mxu0 }
 0x48a   : > { %v2195_v44 = vmul.f32 %v5041_v53, %v4519_v27 }
 0x48b   : > { %v2094_v0 = vpop.f32.mrf.mxu0 }
 0x48c   : > { %v2193_v55 = vmul.f32 %v5035_v12, %v2094_v0 }
 0x48d   : > { %v4520_v5 = vpop.f32.mrf.mxu0 }
 0x48e   : > { %v2196_v23 = vmul.f32 %v5037_v43, %v4520_v5 }
 0x48f   : > { %v2097_v8 = vpop.f32.mrf.mxu0 }
 0x490   : > { %v2194_v34 = vmul.f32 %v5039_v40, %v2097_v8  ;;  %v2232_v62 = vpack.c.bf16 %v2196_v23, %v2195_v44  ;;  %v5190_v40 = vld [vmem:[%s5771_s27 + $0x30] sm:$0xff] }
 0x492   : > { %v2231_v41 = vpack.c.bf16 %v2194_v34, %v2193_v55 }
 0x494   : > { %4565 = vmatprep.mubr.bf16.mxu1 %v2231_v41  ;;  %v5191_v41 = vld [vmem:[%s5771_s27 + $0x20] sm:$0xff] }
 0x495   : > { %4566 = vmatmul.mubr.bf16.gmra.mxu1 %v2232_v62 }
 0x499   : > { %v4523_v26 = vpop.f32.mrf.mxu0 }
 0x49a   : > { %v2199_v7 = vmul.f32 %v5049_v49, %v4523_v26 }
 0x49b   : > { %v2110_v59 = vpop.f32.mrf.mxu0 }
 0x49c   : > { %v2197_v20 = vmul.f32 %v5043_v38, %v2110_v59  ;;  %v5193_v59 = vld [vmem:[%s5771_s27 + $0x28] sm:$0xff] }
 0x49d   : > { %v4524_v60 = vpop.f32.mrf.mxu0 }
 0x49e   : > { %v2200_v6 = vmul.f32 %v5045_v48, %v4524_v60  ;;  %v4850_v48 = vld [vmem:[#allocation11 + $0x38] sm:$0xff]  }
 0x49f   : > { %v2113_v18 = vpop.f32.mrf.mxu0  ;;  %4577 = vmatprep.subr.bf16.mxu0 %v4850_v48 }
 0x4a0   : > { %v2198_v2 = vmul.f32 %v5047_v47, %v2113_v18  ;;  %v2234_v56 = vpack.c.bf16 %v2200_v6, %v2199_v7  ;;  %4578 = vmatpush3.bf16.msra.mxu0 %v4850_v48  ;;  %v4851_v6 = vld [vmem:[#allocation11 + $0x30] sm:$0xff]  }
 0x4a1   : > { %4579 = vmatprep.subr.bf16.mxu0 %v4851_v6 }
 0x4a2   : > { %v2233_v29 = vpack.c.bf16 %v2198_v2, %v2197_v20  ;;  %v5194_v20 = vld [vmem:[%s5771_s27 + $0x50] sm:$0xff] }
 0x4a4   : > { %4569 = vmatprep.mubr.bf16.mxu1 %v2233_v29  ;;  %4580 = vmatpush3.bf16.msra.mxu0 %v4851_v6 }
 0x4a5   : > { %4570 = vmatmul.mubr.bf16.gmra.mxu1 %v2234_v56  ;;  %v4852_v56 = vld [vmem:[#allocation11 + $0x28] sm:$0xff]  }
 0x4a6   : > { %4581 = vmatprep.subr.bf16.mxu0 %v4852_v56 }
 0x4a8   : > { %4582 = vmatpush3.bf16.msra.mxu0 %v4852_v56  ;;  %v5205_v56 = vld [vmem:[%s5771_s27 + $0x88] sm:$0xff] }
 0x4a9   : > { %v4527_v57 = vpop.f32.mrf.mxu0 }
 0x4aa   : > { %v2203_v14 = vmul.f32 %v5057_v16, %v4527_v57  ;;  %v4853_v16 = vld [vmem:[#allocation11 + $0x20] sm:$0xff]  }
 0x4ab   : > { %v2126_v9 = vpop.f32.mrf.mxu0  ;;  %4583 = vmatprep.subr.bf16.mxu0 %v4853_v16 }
 0x4ac   : > { %v2201_v35 = vmul.f32 %v5051_v24, %v2126_v9  ;;  %4584 = vmatpush3.bf16.msra.mxu0 %v4853_v16 }
 0x4ad   : > { %v4528_v58 = vpop.f32.mrf.mxu0 }
 0x4ae   : > { %v2204_v45 = vmul.f32 %v5053_v19, %v4528_v58  ;;  %v5195_v58 = vld [vmem:[%s5771_s27 + $0x40] sm:$0xff] }
 0x4af   : > { %v2129_v46 = vpop.f32.mrf.mxu0 }
 0x4b0   : > { %v2202_v36 = vmul.f32 %v5055_v33, %v2129_v46  ;;  %v2236_v42 = vpack.c.bf16 %v2204_v45, %v2203_v14  ;;  %v5196_v33 = vld [vmem:[%s5771_s27 + $0x58] sm:$0xff] }
 0x4b2   : > { %v2235_v50 = vpack.c.bf16 %v2202_v36, %v2201_v35  ;;  %v5197_v35 = vld [vmem:[%s5771_s27 + $0x48] sm:$0xff] }
 0x4b4   : > { %4573 = vmatprep.mubr.bf16.mxu1 %v2235_v50  ;;  %v4854_v50 = vld [vmem:[#allocation11 + $0x18] sm:$0xff]  }
 0x4b5   : > { %4574 = vmatmul.mubr.bf16.gmra.mxu1 %v2236_v42  ;;  %4585 = vmatprep.subr.bf16.mxu0 %v4854_v50 }
 0x4b6   : > { %4586 = vmatpush3.bf16.msra.mxu0 %v4854_v50 }
 0x505   : > { %v4547_v25 = vpop.f32.mrf.mxu1 }
 0x506   : > { %v2335_v54 = vadd.f32 %v4547_v25, %v6467_v22 }
 0x507   : > { %v2326_v28 = vpop.f32.mrf.mxu1 }
 0x508   : > { %v6471_v51 = vadd.f32 %v5186_v31, %v2335_v54  ;;  %v2327_v15 = vadd.f32 %v6467_v22, %v2326_v28  ;;  %v4855_v54 = vld [vmem:[#allocation11 + $0x10] sm:$0xff]  }
 0x509   : > { %v4548_v52 = vpop.f32.mrf.mxu1  ;;  %4587 = vmatprep.subr.bf16.mxu0 %v4855_v54 }
 0x50a   : > { %v2338_v61 = vadd.f32 %v4548_v52, %v6467_v22  ;;  %2491 = vadd.xlane.f32.xlu0 %v6471_v51  ;;  %v6477_v4 = vadd.f32 %v5187_v21, %v2327_v15  ;;  %v2585_v0 = vmul.f32 %v6471_v51, %v6471_v51  ;;  %v5198_v52 = vld [vmem:[%s5771_s27 + $0x70] sm:$0xff]  ;;  %4588 = vmatpush3.bf16.msra.mxu0 %v4855_v54 }
 0x50b   : > { %v2329_v11 = vpop.f32.mrf.mxu1 }
 0x50c   : > { %v6480_v37 = vadd.f32 %v5188_v32, %v2338_v61  ;;  %v2330_v10 = vadd.f32 %v6467_v22, %v2329_v11  ;;  %v2583_v12 = vmul.f32 %v6477_v4, %v6477_v4  ;;  %v4856_v32 = vld [vmem:[#allocation11 + $0x8] sm:$0xff]  }
 0x50d   : > { %4589 = vmatprep.subr.bf16.mxu0 %v4856_v32 }
 0x50e   : > { %2493 = vadd.xlane.f32.xlu1 %v6480_v37  ;;  %2487 = vadd.xlane.f32.xlu0 %v6477_v4  ;;  %v6486_v27 = vadd.f32 %v5189_v63, %v2330_v10  ;;  %v2586_v30 = vmul.f32 %v6480_v37, %v6480_v37 }
 0x50f   : > { %4590 = vmatpush3.bf16.msra.mxu0 %v4856_v32  ;;  %v5209_v32 = vld [vmem:[%s5771_s27 + $0xa8] sm:$0xff] }
 0x510   : > { %v2584_v53 = vmul.f32 %v6486_v27, %v6486_v27 }
 0x512   : > { %2489 = vadd.xlane.f32.xlu1 %v6486_v27  ;;  %2619 = vadd.xlane.f32.xlu0 %v2585_v0 }
 0x515   : > { %v4551_v5 = vpop.f32.mrf.mxu1 }
 0x516   : > { %v2351_v43 = vadd.f32 %v4551_v5, %v6467_v22  ;;  %2621 = vadd.xlane.f32.xlu1 %v2586_v30  ;;  %2615 = vadd.xlane.f32.xlu0 %v2583_v12  ;;  %v5199_v30 = vld [vmem:[%s5771_s27 + $0x60] sm:$0xff]  ;;  %v5200_v5 = vld [vmem:[%s5771_s27 + $0x78] sm:$0xff] }
 0x517   : > { %v2342_v39 = vpop.f32.mrf.mxu1 }
 0x518   : > { %v6497_v23 = vadd.f32 %v5190_v40, %v2351_v43  ;;  %v2343_v8 = vadd.f32 %v6467_v22, %v2342_v39  ;;  %v4857_v40 = vld [vmem:[#allocation11] sm:$0xff]  }
 0x519   : > { %v4552_v55 = vpop.f32.mrf.mxu1  ;;  %4591 = vmatprep.subr.bf16.mxu0 %v4857_v40 }
 0x51a   : > { %v2354_v34 = vadd.f32 %v4552_v55, %v6467_v22  ;;  %2617 = vadd.xlane.f32.xlu1 %v2584_v53  ;;  %2499 = vadd.xlane.f32.xlu0 %v6497_v23  ;;  %v6505_v62 = vadd.f32 %v5191_v41, %v2343_v8  ;;  %v2589_v60 = vmul.f32 %v6497_v23, %v6497_v23  ;;  %v5201_v8 = vld [vmem:[%s5771_s27 + $0x68] sm:$0xff] }
 0x51b   : > { %v2345_v44 = vpop.f32.mrf.mxu1  ;;  %4592 = vmatpush3.bf16.msra.mxu0 %v4857_v40 }
 0x51c   : > { %7182 = vst [vmem:[#allocation22_spill] sm:$0xff] %v6505_v62  ;;  %v6508_v26 = vadd.f32 %v5192_v13, %v2354_v34  ;;  %v2346_v3 = vadd.f32 %v6467_v22, %v2345_v44  ;;  %v2587_v47 = vmul.f32 %v6505_v62, %v6505_v62 }
 0x51e   : > { %2501 = vadd.xlane.f32.xlu1 %v6508_v26  ;;  %2495 = vadd.xlane.f32.xlu0 %v6505_v62  ;;  %v6514_v38 = vadd.f32 %v5193_v59, %v2346_v3  ;;  %v2590_v1 = vmul.f32 %v6508_v26, %v6508_v26  ;;  %v5202_v59 = vld [vmem:[%s5771_s27 + $0x90] sm:$0xff] }
 0x520   : > { %v2588_v29 = vmul.f32 %v6514_v38, %v6514_v38 }
 0x522   : > { %2497 = vadd.xlane.f32.xlu1 %v6514_v38  ;;  %2627 = vadd.xlane.f32.xlu0 %v2589_v60 }
 0x525   : > { %v4555_v18 = vpop.f32.mrf.mxu1 }
 0x526   : > { %v2367_v49 = vadd.f32 %v4555_v18, %v6467_v22  ;;  %2629 = vadd.xlane.f32.xlu1 %v2590_v1  ;;  %2623 = vadd.xlane.f32.xlu0 %v2587_v47 }
 0x527   : > { %v2358_v17 = vpop.f32.mrf.mxu1 }
 0x528   : > { %v6525_v2 = vadd.f32 %v5194_v20, %v2367_v49  ;;  %v2359_v7 = vadd.f32 %v6467_v22, %v2358_v17  ;;  %v5203_v49 = vld [vmem:[%s5771_s27 + $0x80] sm:$0xff]  ;;  %v5204_v20 = vld [vmem:[%s5771_s27 + $0x98] sm:$0xff] }
 0x529   : > { %v4556_v57 = vpop.f32.mrf.mxu1 }
 0x52a   : > { %v2370_v9 = vadd.f32 %v4556_v57, %v6467_v22  ;;  %2625 = vadd.xlane.f32.xlu1 %v2588_v29  ;;  %2507 = vadd.xlane.f32.xlu0 %v6525_v2  ;;  %v6533_v19 = vadd.f32 %v5195_v58, %v2359_v7  ;;  %v2593_v14 = vmul.f32 %v6525_v2, %v6525_v2 }
 0x52b   : > { %v2361_v24 = vpop.f32.mrf.mxu1 }
 0x52c   : > { %v6536_v45 = vadd.f32 %v5196_v33, %v2370_v9  ;;  %v2362_v46 = vadd.f32 %v6467_v22, %v2361_v24  ;;  %v2591_v25 = vmul.f32 %v6533_v19, %v6533_v19 }
 0x52e   : > { %2509 = vadd.xlane.f32.xlu1 %v6536_v45  ;;  %2503 = vadd.xlane.f32.xlu0 %v6533_v19  ;;  %v6542_v36 = vadd.f32 %v5197_v35, %v2362_v46  ;;  %v2594_v42 = vmul.f32 %v6536_v45, %v6536_v45  ;;  %v5206_v35 = vld [vmem:[%s5771_s27 + $0xb0] sm:$0xff] }
 0x530   : > { %v2592_v21 = vmul.f32 %v6542_v36, %v6542_v36 }
 0x532   : > { %2505 = vadd.xlane.f32.xlu1 %v6542_v36  ;;  %2635 = vadd.xlane.f32.xlu0 %v2593_v14 }
 0x535   : > { %v4559_v28 = vpop.f32.mrf.mxu1 }
 0x536   : > { %v2383_v31 = vadd.f32 %v4559_v28, %v6467_v22  ;;  %2637 = vadd.xlane.f32.xlu1 %v2594_v42  ;;  %2631 = vadd.xlane.f32.xlu0 %v2591_v25 }
 0x537   : > { %v2374_v15 = vpop.f32.mrf.mxu1 }
 0x538   : > { %v6553_v61 = vadd.f32 %v5198_v52, %v2383_v31  ;;  %v2375_v11 = vadd.f32 %v6467_v22, %v2374_v15  ;;  %v5207_v31 = vld [vmem:[%s5771_s27 + $0xa0] sm:$0xff]  ;;  %v5208_v52 = vld [vmem:[%s5771_s27 + $0xb8] sm:$0xff] }
 0x539   : > { %v4560_v10 = vpop.f32.mrf.mxu1 }
 0x53a   : > { %v2386_v63 = vadd.f32 %v4560_v10, %v6467_v22  ;;  %2633 = vadd.xlane.f32.xlu1 %v2592_v21  ;;  %2515 = vadd.xlane.f32.xlu0 %v6553_v61  ;;  %v6561_v12 = vadd.f32 %v5199_v30, %v2375_v11  ;;  %v2597_v55 = vmul.f32 %v6553_v61, %v6553_v61 }
 0x53b   : > { %v2377_v0 = vpop.f32.mrf.mxu1 }
 0x53c   : > { %v6564_v43 = vadd.f32 %v5200_v5, %v2386_v63  ;;  %v2378_v39 = vadd.f32 %v6467_v22, %v2377_v0  ;;  %v2595_v44 = vmul.f32 %v6561_v12, %v6561_v12 }
 0x53e   : > { %2517 = vadd.xlane.f32.xlu1 %v6564_v43  ;;  %2511 = vadd.xlane.f32.xlu0 %v6561_v12  ;;  %v6570_v53 = vadd.f32 %v5201_v8, %v2378_v39  ;;  %v2598_v34 = vmul.f32 %v6564_v43, %v6564_v43  ;;  %v5210_v8 = vld [vmem:[%s5771_s27 + $0xd0] sm:$0xff] }
 0x540   : > { %v2596_v1 = vmul.f32 %v6570_v53, %v6570_v53 }
 0x542   : > { %2513 = vadd.xlane.f32.xlu1 %v6570_v53  ;;  %2643 = vadd.xlane.f32.xlu0 %v2597_v55 }
 0x545   : > { %v4563_v41 = vpop.f32.mrf.mxu1 }
 0x546   : > { %v2399_v13 = vadd.f32 %v4563_v41, %v6467_v22  ;;  %2645 = vadd.xlane.f32.xlu1 %v2598_v34  ;;  %2639 = vadd.xlane.f32.xlu0 %v2595_v44 }
 0x547   : > { %v2390_v3 = vpop.f32.mrf.mxu1 }
 0x548   : > { %v6581_v60 = vadd.f32 %v5202_v59, %v2399_v13  ;;  %v2391_v48 = vadd.f32 %v6467_v22, %v2390_v3  ;;  %v5211_v59 = vld [vmem:[%s5771_s27 + $0xd8] sm:$0xff] }
 0x549   : > { %v4564_v47 = vpop.f32.mrf.mxu1 }
 0x54a   : > { %v2402_v6 = vadd.f32 %v4564_v47, %v6467_v22  ;;  %2641 = vadd.xlane.f32.xlu1 %v2596_v1  ;;  %2523 = vadd.xlane.f32.xlu0 %v6581_v60  ;;  %v6589_v17 = vadd.f32 %v5203_v49, %v2391_v48  ;;  %v2601_v9 = vmul.f32 %v6581_v60, %v6581_v60  ;;  %v5212_v1 = vld [vmem:[%s5771_s27 + $0xc0] sm:$0xff] }
 0x54b   : > { %v2393_v18 = vpop.f32.mrf.mxu1 }
 0x54c   : > { %v6592_v7 = vadd.f32 %v5204_v20, %v2402_v6  ;;  %v2394_v29 = vadd.f32 %v6467_v22, %v2393_v18  ;;  %v2599_v58 = vmul.f32 %v6589_v17, %v6589_v17  ;;  %v5213_v18 = vld [vmem:[%s5771_s27 + $0xc8] sm:$0xff] }
 0x54e   : > { %2525 = vadd.xlane.f32.xlu1 %v6592_v7  ;;  %2519 = vadd.xlane.f32.xlu0 %v6589_v17  ;;  %v6598_v57 = vadd.f32 %v5205_v56, %v2394_v29  ;;  %v2602_v24 = vmul.f32 %v6592_v7, %v6592_v7 }
 0x550   : > { %v2600_v42 = vmul.f32 %v6598_v57, %v6598_v57 }
 0x552   : > { %2521 = vadd.xlane.f32.xlu1 %v6598_v57  ;;  %2651 = vadd.xlane.f32.xlu0 %v2601_v9 }
 0x555   : > { %v4567_v33 = vpop.f32.mrf.mxu1 }
 0x556   : > { %v2415_v46 = vadd.f32 %v4567_v33, %v6467_v22  ;;  %2653 = vadd.xlane.f32.xlu1 %v2602_v24  ;;  %2647 = vadd.xlane.f32.xlu0 %v2599_v58  ;;  %v5214_v33 = vld [vmem:[%s5771_s27 + $0xf0] sm:$0xff] }
 0x557   : > { %v2406_v16 = vpop.f32.mrf.mxu1 }
 0x558   : > { %v6609_v14 = vadd.f32 %v5206_v35, %v2415_v46  ;;  %v2407_v50 = vadd.f32 %v6467_v22, %v2406_v16 }
 0x559   : > { %v4568_v25 = vpop.f32.mrf.mxu1 }
 0x55a   : > { %v2418_v54 = vadd.f32 %v4568_v25, %v6467_v22  ;;  %2649 = vadd.xlane.f32.xlu1 %v2600_v42  ;;  %2531 = vadd.xlane.f32.xlu0 %v6609_v14  ;;  %v6617_v15 = vadd.f32 %v5207_v31, %v2407_v50  ;;  %v2605_v63 = vmul.f32 %v6609_v14, %v6609_v14  ;;  %v5216_v31 = vld [vmem:[%s5771_s27 + $0xe0] sm:$0xff] }
 0x55b   : > { %v2409_v28 = vpop.f32.mrf.mxu1 }
 0x55c   : > { %v6620_v11 = vadd.f32 %v5208_v52, %v2418_v54  ;;  %v2410_v21 = vadd.f32 %v6467_v22, %v2409_v28  ;;  %v2603_v39 = vmul.f32 %v6617_v15, %v6617_v15  ;;  %v5215_v54 = vld [vmem:[%s5771_s27 + $0xf8] sm:$0xff] }
 0x55e   : > { %2533 = vadd.xlane.f32.xlu1 %v6620_v11  ;;  %2527 = vadd.xlane.f32.xlu0 %v6617_v15  ;;  %v6626_v10 = vadd.f32 %v5209_v32, %v2410_v21  ;;  %v2606_v5 = vmul.f32 %v6620_v11, %v6620_v11  ;;  %v5217_v32 = vld [vmem:[%s5771_s27 + $0xe8] sm:$0xff]  ;;  %s5402_s27 = scalar_lea.vmem %s7079_s2, 2048 }
 0x55f   : > { %p5403_p1 = scmp.ne.s32.totalorder %s7079_s2, %s5402_s27 }
 0x560   : > { %v2604_v13 = vmul.f32 %v6626_v10, %v6626_v10 }
 0x561   : > { %p5404_p3 = pnand %p5403_p1, %p5737_p11 }
 0x562   : > { %2529 = vadd.xlane.f32.xlu1 %v6626_v10  ;;  %2659 = vadd.xlane.f32.xlu0 %v2605_v63 }
 0x563   : > { %p5405_p5 = pneg %p5404_p3 }
 0x565   : > { %v4571_v0 = vpop.f32.mrf.mxu1 }
 0x566   : > { %v2431_v30 = vadd.f32 %v4571_v0, %v6467_v22  ;;  %2661 = vadd.xlane.f32.xlu1 %v2606_v5  ;;  %2655 = vadd.xlane.f32.xlu0 %v2603_v39 }
 0x567   : > { %v2422_v40 = vpop.f32.mrf.mxu1 }
 0x568   : > { %v6637_v55 = vadd.f32 %v5210_v8, %v2431_v30  ;;  %v2423_v44 = vadd.f32 %v6467_v22, %v2422_v40 }
 0x569   : > { %v4572_v34 = vpop.f32.mrf.mxu1 }
 0x56a   : > { %v2434_v41 = vadd.f32 %v4572_v34, %v6467_v22  ;;  %2657 = vadd.xlane.f32.xlu1 %v2604_v13  ;;  %2539 = vadd.xlane.f32.xlu0 %v6637_v55  ;;  %v6648_v47 = vadd.f32 %v5212_v1, %v2423_v44  ;;  %v2609_v20 = vmul.f32 %v6637_v55, %v6637_v55 }
 0x56b   : > { %v2425_v3 = vpop.f32.mrf.mxu1 }
 0x56c   : > { %v6644_v48 = vadd.f32 %v5211_v59, %v2434_v41  ;;  %v2426_v6 = vadd.f32 %v6467_v22, %v2425_v3  ;;  %v2607_v24 = vmul.f32 %v6648_v47, %v6648_v47 }
 0x56e   : > { %2541 = vadd.xlane.f32.xlu1 %v6644_v48  ;;  %2535 = vadd.xlane.f32.xlu0 %v6648_v47  ;;  %v6654_v49 = vadd.f32 %v5213_v18, %v2426_v6  ;;  %v2610_v9 = vmul.f32 %v6644_v48, %v6644_v48 }
 0x570   : > { %v2608_v42 = vmul.f32 %v6654_v49, %v6654_v49 }
 0x572   : > { %2537 = vadd.xlane.f32.xlu1 %v6654_v49  ;;  %2667 = vadd.xlane.f32.xlu0 %v2609_v20 }
 0x575   : > { %v4575_v29 = vpop.f32.mrf.mxu1 }
 0x576   : > { %v2447_v56 = vadd.f32 %v4575_v29, %v6467_v22  ;;  %2669 = vadd.xlane.f32.xlu1 %v2610_v9  ;;  %2663 = vadd.xlane.f32.xlu0 %v2607_v24 }
 0x577   : > { %v2438_v58 = vpop.f32.mrf.mxu1 }
 0x578   : > { %v6665_v46 = vadd.f32 %v5214_v33, %v2447_v56  ;;  %v2439_v35 = vadd.f32 %v6467_v22, %v2438_v58 }
 0x579   : > { %v4576_v16 = vpop.f32.mrf.mxu1 }
 0x57a   : > { %v2450_v50 = vadd.f32 %v4576_v16, %v6467_v22  ;;  %2665 = vadd.xlane.f32.xlu1 %v2608_v42  ;;  %2547 = vadd.xlane.f32.xlu0 %v6665_v46  ;;  %v6676_v52 = vadd.f32 %v5216_v31, %v2439_v35  ;;  %v2613_v5 = vmul.f32 %v6665_v46, %v6665_v46 }
 0x57b   : > { %v2441_v25 = vpop.f32.mrf.mxu1 }
 0x57c   : > { %v6672_v28 = vadd.f32 %v5215_v54, %v2450_v50  ;;  %v2442_v21 = vadd.f32 %v6467_v22, %v2441_v25  ;;  %v2611_v0 = vmul.f32 %v6676_v52, %v6676_v52 }
 0x57e   : > { %2549 = vadd.xlane.f32.xlu1 %v6672_v28  ;;  %2543 = vadd.xlane.f32.xlu0 %v6676_v52  ;;  %v6682_v63 = vadd.f32 %v5217_v32, %v2442_v21  ;;  %v2614_v22 = vmul.f32 %v6672_v28, %v6672_v28 }
 0x580   : > { %v2612_v30 = vmul.f32 %v6682_v63, %v6682_v63 }
 0x582   : > { %2545 = vadd.xlane.f32.xlu1 %v6682_v63  ;;  %2671 = vadd.xlane.f32.xlu0 %v2611_v0 }
 0x586   : > { %2673 = vadd.xlane.f32.xlu1 %v2612_v30  ;;  %2675 = vadd.xlane.f32.xlu0 %v2613_v5 }
 0x58a   : > { %2677 = vadd.xlane.f32.xlu1 %v2614_v22 }
 0x593   : > { %v2492_v39 = vpop.xlane.xlu0 %2491 }
 0x594   : > { %v6693_v34 = vmul.f32 0.0078125, %v2492_v39 }
 0x596   : > { %v2713_v3 = vmul.f32 %v6693_v34, %v6693_v34 }
 0x597   : > { %v2494_v40 = vpop.xlane.xlu1 %2493  ;;  %v2488_v8 = vpop.xlane.xlu0 %2487 }
 0x598   : > { %v2554_v44 = vmul.f32 0.0078125, %v2494_v40  ;;  %v2551_v59 = vmul.f32 0.0078125, %v2488_v8 }
 0x59a   : > { %v2714_v18 = vmul.f32 %v2554_v44, %v2554_v44  ;;  %v2711_v56 = vmul.f32 %v2551_v59, %v2551_v59 }
 0x59b   : > { %v2490_v41 = vpop.xlane.xlu1 %2489  ;;  %v2620_v13 = vpop.xlane.xlu0 %2619 }
 0x59c   : > { %v2681_v1 = vmul.f32 0.0078125, %v2620_v13  ;;  %v6697_v9 = vmul.f32 0.0078125, %v2490_v41 }
 0x59e   : > { %v2745_v6 = vsub.f32 %v2681_v1, %v2713_v3  ;;  %v2712_v25 = vmul.f32 %v6697_v9, %v6697_v9 }
 0x59f   : > { %v2622_v20 = vpop.xlane.xlu1 %2621  ;;  %v2616_v29 = vpop.xlane.xlu0 %2615 }
 0x5a0   : > { %v2682_v24 = vmul.f32 0.0078125, %v2622_v20  ;;  %v2679_v58 = vmul.f32 0.0078125, %v2616_v29  ;;  %v2809_v33 = vadd.f32 1e-05, %v2745_v6 }
 0x5a2   : > { %v2746_v16 = vsub.f32 %v2682_v24, %v2714_v18  ;;  %v2743_v35 = vsub.f32 %v2679_v58, %v2711_v56  ;;  %5058 = vrsqrt.f32 %v2809_v33 }
 0x5a3   : > { %v2618_v50 = vpop.xlane.xlu1 %2617  ;;  %v2500_v42 = vpop.xlane.xlu0 %2499 }
 0x5a4   : > { %v2810_v54 = vadd.f32 1e-05, %v2746_v16  ;;  %v2807_v31 = vadd.f32 1e-05, %v2743_v35  ;;  %v2680_v21 = vmul.f32 0.0078125, %v2618_v50  ;;  %v6701_v22 = vmul.f32 0.0078125, %v2500_v42 }
 0x5a5   : > { %v2778_v35 = vsub.f32 %v6480_v37, %v2554_v44 }
 0x5a6   : > { %5060 = vrsqrt.f32 %v2810_v54  ;;  %v2744_v32 = vsub.f32 %v2680_v21, %v2712_v25  ;;  %v2717_v8 = vmul.f32 %v6701_v22, %v6701_v22  ;;  %v2777_v54 = vsub.f32 %v6471_v51, %v6693_v34 }
 0x5a7   : > { %5062 = vrsqrt.f32 %v2807_v31  ;;  %v2502_v0 = vpop.xlane.xlu1 %2501  ;;  %v2496_v30 = vpop.xlane.xlu0 %2495  ;;  %v2775_v31 = vsub.f32 %v6477_v4, %v2551_v59 }
 0x5a8   : > { %v2808_v5 = vadd.f32 1e-05, %v2744_v32  ;;  %v6705_v41 = vmul.f32 0.0078125, %v2502_v0  ;;  %v6707_v13 = vmul.f32 0.0078125, %v2496_v30 }
 0x5aa   : > { %5064 = vrsqrt.f32 %v2808_v5  ;;  %v2718_v29 = vmul.f32 %v6705_v41, %v6705_v41  ;;  %v2715_v56 = vmul.f32 %v6707_v13, %v6707_v13 }
 0x5ab   : > { %v2498_v39 = vpop.xlane.xlu1 %2497  ;;  %v2628_v40 = vpop.xlane.xlu0 %2627 }
 0x5ac   : > { %v2685_v3 = vmul.f32 0.0078125, %v2628_v40  ;;  %v6709_v6 = vmul.f32 0.0078125, %v2498_v39 }
 0x5ae   : > { %v2749_v1 = vsub.f32 %v2685_v3, %v2717_v8  ;;  %v2716_v21 = vmul.f32 %v6709_v6, %v6709_v6  ;;  %v2776_v3 = vsub.f32 %v6486_v27, %v6697_v9 }
 0x5af   : > { %v2630_v18 = vpop.xlane.xlu1 %2629  ;;  %v2624_v20 = vpop.xlane.xlu0 %2623 }
 0x5b0   : > { %v2686_v24 = vmul.f32 0.0078125, %v2630_v18  ;;  %v2683_v58 = vmul.f32 0.0078125, %v2624_v20  ;;  %v2813_v33 = vadd.f32 1e-05, %v2749_v1  ;;  %v5059_v16 = vpop.eup %5058 }
 0x5b1   : > { %v2873_v1 = vmul.f32 %v5059_v16, %v2777_v54  ;;  %v6740_v54 = vld [vmem:[%s7184_s12] ss:$0 sm:$0xff]  ;;  %s5406_s12 = sshll.u32 %s5507_s6, 4  ;;  %s5407_s12 = int_to_ptr.vmem [resolvable:$false] %s5406_s12 }
 0x5b2   : > { %v2750_v50 = vsub.f32 %v2686_v24, %v2718_v29  ;;  %v2747_v42 = vsub.f32 %v2683_v58, %v2715_v56  ;;  %5066 = vrsqrt.f32 %v2813_v33  ;;  %v6726_v29 = vld [vmem:[%s7183_s25] ss:$0 sm:$0xff]  ;;  %s7077_s25 = scalar_lea.hbm %s7188_s17, %s4145_s13  ;;  %s5408_s14 = scalar_lea.vmem %s5407_s12, 4096 }
 0x5b3   : > { %v5061_v25 = vpop.eup %5060  ;;  %v2626_v32 = vpop.xlane.xlu1 %2625  ;;  %v2911_v16 = vmul.f32 %v6726_v29, %v2873_v1  ;;  %p5409_p10 = scmp.lt.s32.totalorder %s7079_s2, %s5407_s12  ;;  %p5410_p0 = scmp.lt.s32.totalorder %s5408_s14, %s5402_s27 }
 0x5b4   : > { %v2508_v0 = vpop.xlane.xlu0 %2507  ;;  %v5063_v30 = vpop.eup %5062  ;;  %v2874_v5 = vmul.f32 %v5061_v25, %v2778_v35  ;;  %v2814_v39 = vadd.f32 1e-05, %v2750_v50  ;;  %v2811_v40 = vadd.f32 1e-05, %v2747_v42  ;;  %v2684_v8 = vmul.f32 0.0078125, %v2626_v32 }
 0x5b5   : > { %v2871_v44 = vmul.f32 %v5063_v30, %v2775_v31  ;;  %v6728_v24 = vmul.f32 0.0078125, %v2508_v0  ;;  %p5411_p7 = por %p5410_p0, %p5409_p10 }
 0x5b6   : > { %5068 = vrsqrt.f32 %v2814_v39  ;;  %v2748_v34 = vsub.f32 %v2684_v8, %v2716_v21  ;;  %v2912_v33 = vmul.f32 %v6726_v29, %v2874_v5 }
 0x5b7   : > { %v5065_v18 = vpop.eup %5064  ;;  %5070 = vrsqrt.f32 %v2811_v40  ;;  %v2510_v59 = vpop.xlane.xlu1 %2509  ;;  %v2909_v9 = vmul.f32 %v6726_v29, %v2871_v44  ;;  %v2721_v21 = vmul.f32 %v6728_v24, %v6728_v24  ;;  %v2949_v40 = vadd.f32 %v6740_v54, %v2911_v16  ;;  %p5412_p13 = pnand %p5411_p7, %p5405_p5 }
 0x5b8   : > { %v2504_v20 = vpop.xlane.xlu0 %2503  ;;  %v2812_v56 = vadd.f32 1e-05, %v2748_v34  ;;  %v2872_v58 = vmul.f32 %v5065_v18, %v2776_v3  ;;  %v6733_v35 = vmul.f32 0.0078125, %v2510_v59  ;;  %v2950_v0 = vadd.f32 %v6740_v54, %v2912_v33 }
 0x5b9   : > { %v6735_v50 = vmul.f32 0.0078125, %v2504_v20  ;;  %v2947_v30 = vadd.f32 %v6740_v54, %v2909_v9 }
 0x5ba   : > { %5072 = vrsqrt.f32 %v2812_v56  ;;  %v2910_v31 = vmul.f32 %v6726_v29, %v2872_v58  ;;  %v2722_v8 = vmul.f32 %v6733_v35, %v6733_v35  ;;  %v2996_v56 = vpack.c.bf16 %v2950_v0, %v2949_v40 }
 0x5bb   : > { %v2506_v42 = vpop.xlane.xlu1 %2505  ;;  %v2719_v44 = vmul.f32 %v6735_v50, %v6735_v50 }
 0x5bc   : > { %v2636_v25 = vpop.xlane.xlu0 %2635  ;;  %v2948_v5 = vadd.f32 %v6740_v54, %v2910_v31  ;;  %v6753_v18 = vmul.f32 0.0078125, %v2506_v42  ;;  %v2781_v31 = vsub.f32 %v6497_v23, %v6701_v22  ;;  %v2779_v42 = vsub.f32 %v6505_v62, %v6707_v13 }
 0x5bd   : > { %v2689_v32 = vmul.f32 0.0078125, %v2636_v25  ;;  %v2780_v22 = vsub.f32 %v6514_v38, %v6709_v6 }
 0x5be   : > { %v2995_v34 = vpack.c.bf16 %v2948_v5, %v2947_v30  ;;  %v2720_v0 = vmul.f32 %v6753_v18, %v6753_v18 }
 0x5bf   : > { %v2753_v39 = vsub.f32 %v2689_v32, %v2721_v21  ;;  %v2638_v3 = vpop.xlane.xlu1 %2637  ;;  %v5067_v33 = vpop.eup %5066  ;;  %v2782_v21 = vsub.f32 %v6508_v26, %v6705_v41 }
 0x5c0   : > { %v2632_v1 = vpop.xlane.xlu0 %2631  ;;  %v2690_v59 = vmul.f32 0.0078125, %v2638_v3  ;;  %4593 = vmatprep.mubr.bf16.mxu0 %v2995_v34 }
 0x5c1   : > { %v2687_v20 = vmul.f32 0.0078125, %v2632_v1  ;;  %v2817_v58 = vadd.f32 1e-05, %v2753_v39  ;;  %4594 = vmatmul.mubr.bf16.vlgmr.msra.gmra.mxu0 %v2996_v56  ;;  %v2877_v1 = vmul.f32 %v5067_v33, %v2781_v31 }
 0x5c2   : > { %v2754_v9 = vsub.f32 %v2690_v59, %v2722_v8 }
 0x5c3   : > { %v2751_v25 = vsub.f32 %v2687_v20, %v2719_v44  ;;  %v5069_v16 = vpop.eup %5068  ;;  %v2634_v32 = vpop.xlane.xlu1 %2633  ;;  %5074 = vrsqrt.f32 %v2817_v58 }
 0x5c4   : > { %v2516_v30 = vpop.xlane.xlu0 %2515  ;;  %v5071_v5 = vpop.eup %5070  ;;  %v2818_v39 = vadd.f32 1e-05, %v2754_v9  ;;  %v2688_v8 = vmul.f32 0.0078125, %v2634_v32  ;;  %v2878_v3 = vmul.f32 %v5069_v16, %v2782_v21 }
 0x5c5   : > { %v2815_v40 = vadd.f32 1e-05, %v2751_v25  ;;  %v2875_v44 = vmul.f32 %v5071_v5, %v2779_v42  ;;  %v6765_v56 = vmul.f32 0.0078125, %v2516_v30  ;;  %v2915_v25 = vmul.f32 %v6726_v29, %v2877_v1 }
 0x5c6   : > { %5076 = vrsqrt.f32 %v2818_v39  ;;  %v2752_v41 = vsub.f32 %v2688_v8, %v2720_v0  ;;  %v2916_v9 = vmul.f32 %v6726_v29, %v2878_v3 }
 0x5c7   : > { %v5073_v34 = vpop.eup %5072  ;;  %5078 = vrsqrt.f32 %v2815_v40  ;;  %v2518_v13 = vpop.xlane.xlu1 %2517  ;;  %v2913_v58 = vmul.f32 %v6726_v29, %v2875_v44  ;;  %v2725_v42 = vmul.f32 %v6765_v56, %v6765_v56  ;;  %v2953_v40 = vadd.f32 %v6740_v54, %v2915_v25 }
 0x5c8   : > { %v2512_v59 = vpop.xlane.xlu0 %2511  ;;  %v2816_v20 = vadd.f32 1e-05, %v2752_v41  ;;  %v2876_v62 = vmul.f32 %v5073_v34, %v2780_v22  ;;  %v6770_v16 = vmul.f32 0.0078125, %v2518_v13  ;;  %v2954_v30 = vadd.f32 %v6740_v54, %v2916_v9 }
 0x5c9   : > { %v6772_v6 = vmul.f32 0.0078125, %v2512_v59  ;;  %v2951_v5 = vadd.f32 %v6740_v54, %v2913_v58 }
 0x5ca   : > { %5080 = vrsqrt.f32 %v2816_v20  ;;  %v2914_v21 = vmul.f32 %v6726_v29, %v2876_v62  ;;  %v2726_v8 = vmul.f32 %v6770_v16, %v6770_v16  ;;  %v2998_v13 = vpack.c.bf16 %v2954_v30, %v2953_v40 }
 0x5cb   : > { %v2514_v33 = vpop.xlane.xlu1 %2513  ;;  %v2723_v44 = vmul.f32 %v6772_v6, %v6772_v6 }
 0x5cc   : > { %v2644_v31 = vpop.xlane.xlu0 %2643  ;;  %v2952_v0 = vadd.f32 %v6740_v54, %v2914_v21  ;;  %v6785_v41 = vmul.f32 0.0078125, %v2514_v33  ;;  %v2786_v21 = vsub.f32 %v6536_v45, %v6733_v35  ;;  %v2783_v33 = vsub.f32 %v6533_v19, %v6735_v50 }
 0x5cd   : > { %v2693_v32 = vmul.f32 0.0078125, %v2644_v31  ;;  %v2785_v31 = vsub.f32 %v6525_v2, %v6728_v24  ;;  %v2784_v24 = vsub.f32 %v6542_v36, %v6753_v18 }
 0x5ce   : > { %v2997_v22 = vpack.c.bf16 %v2952_v0, %v2951_v5  ;;  %v2724_v30 = vmul.f32 %v6785_v41, %v6785_v41 }
 0x5cf   : > { %v2757_v39 = vsub.f32 %v2693_v32, %v2725_v42  ;;  %v2646_v62 = vpop.xlane.xlu1 %2645 }
 0x5d0   : > { %v2640_v3 = vpop.xlane.xlu0 %2639  ;;  %v2694_v1 = vmul.f32 0.0078125, %v2646_v62  ;;  %4597 = vmatprep.mubr.bf16.mxu0 %v2997_v22  ;;  %v5075_v20 = vpop.eup %5074 }
 0x5d1   : > { %v2691_v34 = vmul.f32 0.0078125, %v2640_v3  ;;  %v2821_v59 = vadd.f32 1e-05, %v2757_v39  ;;  %4598 = vmatmul.mubr.bf16.gmra.mxu0 %v2998_v13  ;;  %v2881_v62 = vmul.f32 %v5075_v20, %v2785_v31 }
 0x5d2   : > { %v2758_v9 = vsub.f32 %v2694_v1, %v2726_v8 }
 0x5d3   : > { %v2755_v58 = vsub.f32 %v2691_v34, %v2723_v44  ;;  %v5077_v25 = vpop.eup %5076  ;;  %v2642_v42 = vpop.xlane.xlu1 %2641  ;;  %5082 = vrsqrt.f32 %v2821_v59 }
 0x5d4   : > { %v2524_v32 = vpop.xlane.xlu0 %2523  ;;  %v5079_v5 = vpop.eup %5078  ;;  %v2822_v0 = vadd.f32 1e-05, %v2758_v9  ;;  %v2692_v40 = vmul.f32 0.0078125, %v2642_v42  ;;  %v2882_v44 = vmul.f32 %v5077_v25, %v2786_v21 }
 0x5d5   : > { %v2819_v39 = vadd.f32 1e-05, %v2755_v58  ;;  %v2879_v8 = vmul.f32 %v5079_v5, %v2783_v33  ;;  %v6797_v34 = vmul.f32 0.0078125, %v2524_v32  ;;  %v2919_v58 = vmul.f32 %v6726_v29, %v2881_v62 }
 0x5d6   : > { %5084 = vrsqrt.f32 %v2822_v0  ;;  %v2756_v35 = vsub.f32 %v2692_v40, %v2724_v30  ;;  %v2920_v9 = vmul.f32 %v6726_v29, %v2882_v44 }
 0x5d7   : > { %v5081_v3 = vpop.eup %5080  ;;  %5086 = vrsqrt.f32 %v2819_v39  ;;  %v2526_v50 = vpop.xlane.xlu1 %2525  ;;  %v2917_v59 = vmul.f32 %v6726_v29, %v2879_v8  ;;  %v2729_v33 = vmul.f32 %v6797_v34, %v6797_v34  ;;  %v2957_v39 = vadd.f32 %v6740_v54, %v2919_v58 }
 0x5d8   : > { %v2520_v22 = vpop.xlane.xlu0 %2519  ;;  %v2820_v1 = vadd.f32 1e-05, %v2756_v35  ;;  %v2880_v13 = vmul.f32 %v5081_v3, %v2784_v24  ;;  %v6802_v25 = vmul.f32 0.0078125, %v2526_v50  ;;  %v2958_v32 = vadd.f32 %v6740_v54, %v2920_v9 }
 0x5d9   : > { %v6804_v18 = vmul.f32 0.0078125, %v2520_v22  ;;  %v2955_v5 = vadd.f32 %v6740_v54, %v2917_v59 }
 0x5da   : > { %5088 = vrsqrt.f32 %v2820_v1  ;;  %v2918_v21 = vmul.f32 %v6726_v29, %v2880_v13  ;;  %v2730_v40 = vmul.f32 %v6802_v25, %v6802_v25  ;;  %v3000_v22 = vpack.c.bf16 %v2958_v32, %v2957_v39 }
 0x5db   : > { %v2522_v20 = vpop.xlane.xlu1 %2521  ;;  %v2727_v8 = vmul.f32 %v6804_v18, %v6804_v18 }
 0x5dc   : > { %v2652_v31 = vpop.xlane.xlu0 %2651  ;;  %v2956_v30 = vadd.f32 %v6740_v54, %v2918_v21  ;;  %v6817_v62 = vmul.f32 0.0078125, %v2522_v20  ;;  %v2790_v21 = vsub.f32 %v6564_v43, %v6770_v16  ;;  %v2787_v20 = vsub.f32 %v6561_v12, %v6772_v6 }
 0x5dd   : > { %v2697_v42 = vmul.f32 0.0078125, %v2652_v31  ;;  %v2789_v31 = vsub.f32 %v6553_v61, %v6765_v56  ;;  %v2788_v56 = vsub.f32 %v6570_v53, %v6785_v41 }
 0x5de   : > { %v2999_v35 = vpack.c.bf16 %v2956_v30, %v2955_v5  ;;  %v2728_v32 = vmul.f32 %v6817_v62, %v6817_v62 }
 0x5df   : > { %v2761_v0 = vsub.f32 %v2697_v42, %v2729_v33  ;;  %v2654_v44 = vpop.xlane.xlu1 %2653 }
 0x5e0   : > { %v2648_v24 = vpop.xlane.xlu0 %2647  ;;  %v2698_v3 = vmul.f32 0.0078125, %v2654_v44  ;;  %4601 = vmatprep.mubr.bf16.mxu0 %v2999_v35  ;;  %v5083_v13 = vpop.eup %5082 }
 0x5e1   : > { %v2695_v50 = vmul.f32 0.0078125, %v2648_v24  ;;  %v2825_v1 = vadd.f32 1e-05, %v2761_v0  ;;  %4602 = vmatmul.mubr.bf16.gmra.mxu0 %v3000_v22  ;;  %v2885_v44 = vmul.f32 %v5083_v13, %v2789_v31 }
 0x5e2   : > { %v2762_v9 = vsub.f32 %v2698_v3, %v2730_v40 }
 0x5e3   : > { %v2759_v59 = vsub.f32 %v2695_v50, %v2727_v8  ;;  %v5085_v58 = vpop.eup %5084  ;;  %v2650_v33 = vpop.xlane.xlu1 %2649  ;;  %5090 = vrsqrt.f32 %v2825_v1 }
 0x5e4   : > { %v2532_v42 = vpop.xlane.xlu0 %2531  ;;  %v5087_v5 = vpop.eup %5086  ;;  %v2826_v30 = vadd.f32 1e-05, %v2762_v9  ;;  %v2696_v39 = vmul.f32 0.0078125, %v2650_v33  ;;  %v2886_v8 = vmul.f32 %v5085_v58, %v2790_v21 }
 0x5e5   : > { %v2823_v0 = vadd.f32 1e-05, %v2759_v59  ;;  %v2883_v40 = vmul.f32 %v5087_v5, %v2787_v20  ;;  %v6829_v50 = vmul.f32 0.0078125, %v2532_v42  ;;  %v2923_v59 = vmul.f32 %v6726_v29, %v2885_v44 }
 0x5e6   : > { %5092 = vrsqrt.f32 %v2826_v30  ;;  %v2760_v16 = vsub.f32 %v2696_v39, %v2728_v32  ;;  %v2924_v9 = vmul.f32 %v6726_v29, %v2886_v8 }
 0x5e7   : > { %v5089_v24 = vpop.eup %5088  ;;  %5094 = vrsqrt.f32 %v2823_v0  ;;  %v2534_v6 = vpop.xlane.xlu1 %2533  ;;  %v2921_v1 = vmul.f32 %v6726_v29, %v2883_v40  ;;  %v2733_v20 = vmul.f32 %v6829_v50, %v6829_v50  ;;  %v2961_v0 = vadd.f32 %v6740_v54, %v2923_v59 }
 0x5e8   : > { %v2528_v35 = vpop.xlane.xlu0 %2527  ;;  %v2824_v3 = vadd.f32 1e-05, %v2760_v16  ;;  %v2884_v22 = vmul.f32 %v5089_v24, %v2788_v56  ;;  %v6834_v58 = vmul.f32 0.0078125, %v2534_v6  ;;  %v2962_v42 = vadd.f32 %v6740_v54, %v2924_v9 }
 0x5e9   : > { %v6836_v41 = vmul.f32 0.0078125, %v2528_v35  ;;  %v2959_v5 = vadd.f32 %v6740_v54, %v2921_v1 }
 0x5ea   : > { %5096 = vrsqrt.f32 %v2824_v3  ;;  %v2922_v21 = vmul.f32 %v6726_v29, %v2884_v22  ;;  %v2734_v39 = vmul.f32 %v6834_v58, %v6834_v58  ;;  %v3002_v35 = vpack.c.bf16 %v2962_v42, %v2961_v0 }
 0x5eb   : > { %v2530_v13 = vpop.xlane.xlu1 %2529  ;;  %v2731_v40 = vmul.f32 %v6836_v41, %v6836_v41 }
 0x5ec   : > { %v2660_v31 = vpop.xlane.xlu0 %2659  ;;  %v2960_v32 = vadd.f32 %v6740_v54, %v2922_v21  ;;  %v6849_v44 = vmul.f32 0.0078125, %v2530_v13  ;;  %v2794_v21 = vsub.f32 %v6592_v7, %v6802_v25  ;;  %v2791_v13 = vsub.f32 %v6589_v17, %v6804_v18 }
 0x5ed   : > { %v2701_v33 = vmul.f32 0.0078125, %v2660_v31  ;;  %v2793_v31 = vsub.f32 %v6581_v60, %v6797_v34  ;;  %v2792_v34 = vsub.f32 %v6598_v57, %v6817_v62 }
 0x5ee   : > { %v3001_v16 = vpack.c.bf16 %v2960_v32, %v2959_v5  ;;  %v2732_v42 = vmul.f32 %v6849_v44, %v6849_v44 }
 0x5ef   : > { %v2765_v30 = vsub.f32 %v2701_v33, %v2733_v20  ;;  %v2662_v8 = vpop.xlane.xlu1 %2661 }
 0x5f0   : > { %v2656_v56 = vpop.xlane.xlu0 %2655  ;;  %v2702_v24 = vmul.f32 0.0078125, %v2662_v8  ;;  %4605 = vmatprep.mubr.bf16.mxu0 %v3001_v16  ;;  %v5091_v22 = vpop.eup %5090 }
 0x5f1   : > { %v2699_v6 = vmul.f32 0.0078125, %v2656_v56  ;;  %v2829_v3 = vadd.f32 1e-05, %v2765_v30  ;;  %4606 = vmatmul.mubr.bf16.gmra.mxu0 %v3002_v35  ;;  %v2889_v8 = vmul.f32 %v5091_v22, %v2793_v31 }
 0x5f2   : > { %v2766_v9 = vsub.f32 %v2702_v24, %v2734_v39 }
 0x5f3   : > { %v2763_v1 = vsub.f32 %v2699_v6, %v2731_v40  ;;  %v5093_v59 = vpop.eup %5092  ;;  %v2658_v20 = vpop.xlane.xlu1 %2657  ;;  %5098 = vrsqrt.f32 %v2829_v3 }
 0x5f4   : > { %v2540_v33 = vpop.xlane.xlu0 %2539  ;;  %v5095_v5 = vpop.eup %5094  ;;  %v2830_v32 = vadd.f32 1e-05, %v2766_v9  ;;  %v2700_v0 = vmul.f32 0.0078125, %v2658_v20  ;;  %v2890_v40 = vmul.f32 %v5093_v59, %v2794_v21 }
 0x5f5   : > { %v2827_v30 = vadd.f32 1e-05, %v2763_v1  ;;  %v2887_v39 = vmul.f32 %v5095_v5, %v2791_v13  ;;  %v6861_v6 = vmul.f32 0.0078125, %v2540_v33  ;;  %v2927_v1 = vmul.f32 %v6726_v29, %v2889_v8 }
 0x5f6   : > { %5100 = vrsqrt.f32 %v2830_v32  ;;  %v2764_v25 = vsub.f32 %v2700_v0, %v2732_v42  ;;  %v2928_v9 = vmul.f32 %v6726_v29, %v2890_v40 }
 0x5f7   : > { %v5097_v56 = vpop.eup %5096  ;;  %5102 = vrsqrt.f32 %v2827_v30  ;;  %v2542_v18 = vpop.xlane.xlu1 %2541  ;;  %v2925_v3 = vmul.f32 %v6726_v29, %v2887_v39  ;;  %v2737_v13 = vmul.f32 %v6861_v6, %v6861_v6  ;;  %v2965_v30 = vadd.f32 %v6740_v54, %v2927_v1 }
 0x5f8   : > { %v2536_v16 = vpop.xlane.xlu0 %2535  ;;  %v2828_v24 = vadd.f32 1e-05, %v2764_v25  ;;  %v2888_v35 = vmul.f32 %v5097_v56, %v2792_v34  ;;  %v6866_v59 = vmul.f32 0.0078125, %v2542_v18  ;;  %v2966_v33 = vadd.f32 %v6740_v54, %v2928_v9 }
 0x5f9   : > { %v6868_v62 = vmul.f32 0.0078125, %v2536_v16  ;;  %v2963_v5 = vadd.f32 %v6740_v54, %v2925_v3 }
 0x5fa   : > { %5104 = vrsqrt.f32 %v2828_v24  ;;  %v2926_v21 = vmul.f32 %v6726_v29, %v2888_v35  ;;  %v2738_v0 = vmul.f32 %v6866_v59, %v6866_v59  ;;  %v3004_v16 = vpack.c.bf16 %v2966_v33, %v2965_v30  ;;  %v4858_v24 = vld [vmem:[#allocation13 + $0x38] sm:$0xff]  }
 0x5fb   : > { %v2538_v22 = vpop.xlane.xlu1 %2537  ;;  %v2735_v39 = vmul.f32 %v6868_v62, %v6868_v62  ;;  %4625 = vmatprep.subr.bf16.mxu0 %v4858_v24  ;;  %4673 = vmatprep.subr.bf16.mxu1 %v4858_v24 }
 0x5fc   : > { %v2668_v31 = vpop.xlane.xlu0 %2667  ;;  %v2964_v42 = vadd.f32 %v6740_v54, %v2926_v21  ;;  %v6881_v8 = vmul.f32 0.0078125, %v2538_v22  ;;  %v2797_v21 = vsub.f32 %v6609_v14, %v6829_v50  ;;  %v2795_v22 = vsub.f32 %v6617_v15, %v6836_v41  ;;  %4626 = vmatpush3.bf16.msra.mxu0 %v4858_v24  ;;  %4681 = vmatpush3.bf16.msra.mxu1 %v4858_v24 }
 0x5fd   : > { %v2705_v20 = vmul.f32 0.0078125, %v2668_v31  ;;  %v2796_v41 = vsub.f32 %v6626_v10, %v6849_v44 }
 0x5fe   : > { %v3003_v25 = vpack.c.bf16 %v2964_v42, %v2963_v5  ;;  %v2736_v42 = vmul.f32 %v6881_v8, %v6881_v8 }
 0x5ff   : > { %v2769_v32 = vsub.f32 %v2705_v20, %v2737_v13  ;;  %v2670_v40 = vpop.xlane.xlu1 %2669  ;;  %v2798_v13 = vsub.f32 %v6620_v11, %v6834_v58  ;;  %v4859_v58 = vld [vmem:[#allocation13 + $0x30] sm:$0xff]  }
 0x600   : > { %v2664_v34 = vpop.xlane.xlu0 %2663  ;;  %v2706_v56 = vmul.f32 0.0078125, %v2670_v40  ;;  %4609 = vmatprep.mubr.bf16.mxu0 %v3003_v25  ;;  %v5099_v9 = vpop.eup %5098  ;;  %4627 = vmatprep.subr.bf16.mxu0 %v4859_v58 }
 0x601   : > { %v2703_v18 = vmul.f32 0.0078125, %v2664_v34  ;;  %v2833_v35 = vadd.f32 1e-05, %v2769_v32  ;;  %4610 = vmatmul.mubr.bf16.gmra.mxu0 %v3004_v16  ;;  %4674 = vmatprep.subr.bf16.mxu1 %v4859_v58 }
 0x602   : > { %v2770_v3 = vsub.f32 %v2706_v56, %v2738_v0  ;;  %4628 = vmatpush3.bf16.msra.mxu0 %v4859_v58  ;;  %4682 = vmatpush3.bf16.msra.mxu1 %v4859_v58 }
 0x603   : > { %v2767_v1 = vsub.f32 %v2703_v18, %v2735_v39  ;;  %v5101_v31 = vpop.eup %5100  ;;  %v2666_v20 = vpop.xlane.xlu1 %2665  ;;  %5106 = vrsqrt.f32 %v2833_v35  ;;  %v2893_v39 = vmul.f32 %v5099_v9, %v2797_v21  ;;  %v4860_v9 = vld [vmem:[#allocation13 + $0x28] sm:$0xff]  }
 0x604   : > { %v2548_v33 = vpop.xlane.xlu0 %2547  ;;  %v5103_v5 = vpop.eup %5102  ;;  %v2834_v32 = vadd.f32 1e-05, %v2770_v3  ;;  %v2704_v0 = vmul.f32 0.0078125, %v2666_v20  ;;  %v2894_v40 = vmul.f32 %v5101_v31, %v2798_v13  ;;  %4629 = vmatprep.subr.bf16.mxu0 %v4860_v9  ;;  %4675 = vmatprep.subr.bf16.mxu1 %v4860_v9 }
 0x605   : > { %v2831_v30 = vadd.f32 1e-05, %v2767_v1  ;;  %v2891_v50 = vmul.f32 %v5103_v5, %v2795_v22  ;;  %v2931_v44 = vmul.f32 %v6726_v29, %v2893_v39  ;;  %v6898_v31 = vmul.f32 0.0078125, %v2548_v33 }
 0x606   : > { %5108 = vrsqrt.f32 %v2834_v32  ;;  %v2768_v34 = vsub.f32 %v2704_v0, %v2736_v42  ;;  %v2932_v16 = vmul.f32 %v6726_v29, %v2894_v40  ;;  %4630 = vmatpush3.bf16.msra.mxu0 %v4860_v9  ;;  %4683 = vmatpush3.bf16.msra.mxu1 %v4860_v9 }
 0x607   : > { %v5105_v25 = vpop.eup %5104  ;;  %5110 = vrsqrt.f32 %v2831_v30  ;;  %v2550_v56 = vpop.xlane.xlu1 %2549  ;;  %v2929_v1 = vmul.f32 %v6726_v29, %v2891_v50  ;;  %v4861_v30 = vld [vmem:[#allocation13 + $0x20] sm:$0xff]   ;;  %v2969_v50 = vadd.f32 %v6740_v54, %v2931_v44  ;;  %v2741_v40 = vmul.f32 %v6898_v31, %v6898_v31 }
 0x608   : > { %v2544_v18 = vpop.xlane.xlu0 %2543  ;;  %v2832_v3 = vadd.f32 1e-05, %v2768_v34  ;;  %v2892_v35 = vmul.f32 %v5105_v25, %v2796_v41  ;;  %v2970_v20 = vadd.f32 %v6740_v54, %v2932_v16  ;;  %4631 = vmatprep.subr.bf16.mxu0 %v4861_v30  ;;  %4676 = vmatprep.subr.bf16.mxu1 %v4861_v30  ;;  %v6911_v58 = vmul.f32 0.0078125, %v2550_v56 }
 0x609   : > { %v6894_v24 = vmul.f32 0.0078125, %v2544_v18  ;;  %v2967_v0 = vadd.f32 %v6740_v54, %v2929_v1  ;;  %v4862_v1 = vld [vmem:[#allocation13 + $0x18] sm:$0xff]  }
 0x60a   : > { %5112 = vrsqrt.f32 %v2832_v3  ;;  %v2930_v22 = vmul.f32 %v6726_v29, %v2892_v35  ;;  %v3006_v18 = vpack.c.bf16 %v2970_v20, %v2969_v50  ;;  %4632 = vmatpush3.bf16.msra.mxu0 %v4861_v30  ;;  %4684 = vmatpush3.bf16.msra.mxu1 %v4861_v30  ;;  %v2801_v20 = vsub.f32 %v6637_v55, %v6861_v6 }
 0x60b   : > { %v2546_v21 = vpop.xlane.xlu1 %2545  ;;  %v2739_v5 = vmul.f32 %v6894_v24, %v6894_v24  ;;  %4633 = vmatprep.subr.bf16.mxu0 %v4862_v1  ;;  %4677 = vmatprep.subr.bf16.mxu1 %v4862_v1  ;;  %v2800_v6 = vsub.f32 %v6654_v49, %v6881_v8 }
 0x60c   : > { %v2672_v13 = vpop.xlane.xlu0 %2671  ;;  %v6904_v42 = vmul.f32 0.0078125, %v2546_v21  ;;  %v2968_v33 = vadd.f32 %v6740_v54, %v2930_v22  ;;  %v2802_v21 = vsub.f32 %v6644_v48, %v6866_v59 }
 0x60d   : > { %v2707_v32 = vmul.f32 0.0078125, %v2672_v13 }
 0x60e   : > { %v3005_v25 = vpack.c.bf16 %v2968_v33, %v2967_v0  ;;  %v2740_v16 = vmul.f32 %v6904_v42, %v6904_v42  ;;  %4634 = vmatpush3.bf16.msra.mxu0 %v4862_v1  ;;  %4685 = vmatpush3.bf16.msra.mxu1 %v4862_v1  ;;  %v4864_v1 = vld [vmem:[#allocation13 + $0x8] sm:$0xff]  }
 0x60f   : > { %v2771_v39 = vsub.f32 %v2707_v32, %v2739_v5  ;;  %v2674_v41 = vpop.xlane.xlu1 %2673  ;;  %v2799_v5 = vsub.f32 %v6648_v47, %v6868_v62  ;;  %v2742_v32 = vmul.f32 %v6911_v58, %v6911_v58 }
 0x610   : > { %v2676_v34 = vpop.xlane.xlu0 %2675  ;;  %v2708_v35 = vmul.f32 0.0078125, %v2674_v41  ;;  %4613 = vmatprep.mubr.bf16.mxu0 %v3005_v25  ;;  %v5107_v44 = vpop.eup %5106 }
 0x611   : > { %v2835_v3 = vadd.f32 1e-05, %v2771_v39  ;;  %v2709_v9 = vmul.f32 0.0078125, %v2676_v34  ;;  %4614 = vmatmul.mubr.bf16.gmra.mxu0 %v3006_v18  ;;  %v2897_v41 = vmul.f32 %v5107_v44, %v2801_v20  ;;  %v4863_v34 = vld [vmem:[#allocation13 + $0x10] sm:$0xff]   ;;  %v2803_v20 = vsub.f32 %v6676_v52, %v6894_v24 }
 0x612   : > { %v2772_v56 = vsub.f32 %v2708_v35, %v2740_v16  ;;  %4635 = vmatprep.subr.bf16.mxu0 %v4863_v34  ;;  %4678 = vmatprep.subr.bf16.mxu1 %v4863_v34 }
 0x613   : > { %5114 = vrsqrt.f32 %v2835_v3  ;;  %v2773_v13 = vsub.f32 %v2709_v9, %v2741_v40  ;;  %v5109_v22 = vpop.eup %5108  ;;  %v2678_v30 = vpop.xlane.xlu1 %2677  ;;  %4636 = vmatpush3.bf16.msra.mxu0 %v4863_v34  ;;  %4686 = vmatpush3.bf16.msra.mxu1 %v4863_v34  ;;  %v2935_v9 = vmul.f32 %v6726_v29, %v2897_v41  ;;  %v2806_v34 = vsub.f32 %v6672_v28, %v6911_v58  ;;  %v6952_v58 = vld [vmem:[%s7185_s29] ss:$0 sm:$0xff] }
 0x614   : > { %v5111_v0 = vpop.eup %5110  ;;  %v2836_v33 = vadd.f32 1e-05, %v2772_v56  ;;  %v2710_v50 = vmul.f32 0.0078125, %v2678_v30  ;;  %v2898_v39 = vmul.f32 %v5109_v22, %v2802_v21  ;;  %4637 = vmatprep.subr.bf16.mxu0 %v4864_v1  ;;  %4679 = vmatprep.subr.bf16.mxu1 %v4864_v1  ;;  %v4865_v22 = vld [vmem:[#allocation13] sm:$0xff]  }
 0x615   : > { %v2837_v59 = vadd.f32 1e-05, %v2773_v13  ;;  %v2895_v40 = vmul.f32 %v5111_v0, %v2799_v5  ;;  %v2973_v13 = vadd.f32 %v6740_v54, %v2935_v9 }
 0x616   : > { %5116 = vrsqrt.f32 %v2836_v33  ;;  %v2774_v62 = vsub.f32 %v2710_v50, %v2742_v32  ;;  %v2936_v18 = vmul.f32 %v6726_v29, %v2898_v39  ;;  %v2804_v33 = vsub.f32 %v6682_v63, %v6904_v42 }
 0x617   : > { %v5113_v25 = vpop.eup %5112  ;;  %5118 = vrsqrt.f32 %v2837_v59  ;;  %v2933_v35 = vmul.f32 %v6726_v29, %v2895_v40  ;;  %4638 = vmatpush3.bf16.msra.mxu0 %v4864_v1  ;;  %4687 = vmatpush3.bf16.msra.mxu1 %v4864_v1  ;;  %v2805_v50 = vsub.f32 %v6665_v46, %v6898_v31 }
 0x618   : > { %v2838_v16 = vadd.f32 1e-05, %v2774_v62  ;;  %v2896_v3 = vmul.f32 %v5113_v25, %v2800_v6  ;;  %v2974_v44 = vadd.f32 %v6740_v54, %v2936_v18  ;;  %4639 = vmatprep.subr.bf16.mxu0 %v4865_v22  ;;  %4680 = vmatprep.subr.bf16.mxu1 %v4865_v22 }
 0x619   : > { %v2971_v21 = vadd.f32 %v6740_v54, %v2933_v35 }
 0x61a   : > { %5120 = vrsqrt.f32 %v2838_v16  ;;  %v2934_v8 = vmul.f32 %v6726_v29, %v2896_v3  ;;  %v3008_v30 = vpack.c.bf16 %v2974_v44, %v2973_v13 }
 0x61b   : > { %4640 = vmatpush3.bf16.msra.mxu0 %v4865_v22  ;;  %4688 = vmatpush3.bf16.msra.mxu1 %v4865_v22 }
 0x61c   : > { %v2972_v56 = vadd.f32 %v6740_v54, %v2934_v8 }
 0x61e   : > { %v3007_v5 = vpack.c.bf16 %v2972_v56, %v2971_v21 }
 0x620   : > { %v5115_v32 = vpop.eup %5114  ;;  %4617 = vmatprep.mubr.bf16.mxu0 %v3007_v5 }
 0x621   : > { %v2899_v0 = vmul.f32 %v5115_v32, %v2803_v20  ;;  %4618 = vmatmul.mubr.bf16.gmra.mxu0 %v3008_v30 }
 0x623   : > { %v5117_v59 = vpop.eup %5116  ;;  %v2937_v24 = vmul.f32 %v6726_v29, %v2899_v0 }
 0x624   : > { %v5119_v39 = vpop.eup %5118  ;;  %v2900_v40 = vmul.f32 %v5117_v59, %v2804_v33 }
 0x625   : > { %v2901_v41 = vmul.f32 %v5119_v39, %v2805_v50  ;;  %v2975_v25 = vadd.f32 %v6740_v54, %v2937_v24 }
 0x626   : > { %v2938_v6 = vmul.f32 %v6726_v29, %v2900_v40 }
 0x627   : > { %v5121_v62 = vpop.eup %5120  ;;  %v2939_v16 = vmul.f32 %v6726_v29, %v2901_v41 }
 0x628   : > { %v2976_v18 = vadd.f32 %v6740_v54, %v2938_v6  ;;  %v2902_v42 = vmul.f32 %v5121_v62, %v2806_v34 }
 0x629   : > { %v2977_v35 = vadd.f32 %v6740_v54, %v2939_v16 }
 0x62a   : > { %v3009_v3 = vpack.c.bf16 %v2976_v18, %v2975_v25  ;;  %v2940_v31 = vmul.f32 %v6726_v29, %v2902_v42 }
 0x62c   : > { %4621 = vmatprep.mubr.bf16.mxu0 %v3009_v3  ;;  %v2978_v9 = vadd.f32 %v6740_v54, %v2940_v31 }
 0x62e   : > { %v3010_v1 = vpack.c.bf16 %v2978_v9, %v2977_v35 }
 0x630   : > { %4622 = vmatmul.mubr.bf16.gmra.mxu0 %v3010_v1 }
 0x681   : > { %v4595_v8 = vpop.f32.mrf.mxu0 }
 0x682   : > { %v3109_v44 = vadd.f32 %v4595_v8, %v6952_v58 }
 0x683   : > { %v3100_v21 = vpop.f32.mrf.mxu0 }
 0x684   : > { %v3101_v56 = vadd.f32 %v6952_v58, %v3100_v21  ;;  %v3261_v13 = vmul.f32 0.70710677, %v3109_v44 }
 0x685   : > { %v4596_v29 = vpop.f32.mrf.mxu0 }
 0x686   : > { %v3259_v22 = vmul.f32 0.70710677, %v3101_v56  ;;  %v3112_v20 = vadd.f32 %v4596_v29, %v6952_v58  ;;  %v3227_v1 = vmul.f32 0.5, %v3101_v56  ;;  %v3229_v29 = vmul.f32 0.5, %v3109_v44 }
 0x687   : > { %v3103_v5 = vpop.f32.mrf.mxu0 }
 0x688   : > { %5122 = verf.f32 %v3259_v22  ;;  %v3262_v54 = vmul.f32 0.70710677, %v3112_v20  ;;  %v3104_v32 = vadd.f32 %v6952_v58, %v3103_v5  ;;  %v3230_v35 = vmul.f32 0.5, %v3112_v20 }
 0x689   : > { %5124 = verf.f32 %v3261_v13 }
 0x68a   : > { %5126 = verf.f32 %v3262_v54  ;;  %v3260_v30 = vmul.f32 0.70710677, %v3104_v32  ;;  %v3228_v8 = vmul.f32 0.5, %v3104_v32 }
 0x68c   : > { %5128 = verf.f32 %v3260_v30 }
 0x691   : > { %v4599_v0 = vpop.f32.mrf.mxu0 }
 0x692   : > { %v3125_v33 = vadd.f32 %v4599_v0, %v6952_v58 }
 0x693   : > { %v3116_v59 = vpop.f32.mrf.mxu0 }
 0x694   : > { %v3265_v50 = vmul.f32 0.70710677, %v3125_v33  ;;  %v3117_v39 = vadd.f32 %v6952_v58, %v3116_v59 }
 0x695   : > { %v5123_v40 = vpop.eup %5122  ;;  %v4600_v24 = vpop.f32.mrf.mxu0 }
 0x696   : > { %v5125_v41 = vpop.eup %5124  ;;  %v3263_v6 = vmul.f32 0.70710677, %v3117_v39  ;;  %v3128_v62 = vadd.f32 %v4600_v24, %v6952_v58  ;;  %v3323_v18 = vadd.f32 1.0, %v5123_v40  ;;  %5130 = verf.f32 %v3265_v50 }
 0x697   : > { %v5127_v34 = vpop.eup %5126  ;;  %v3119_v25 = vpop.f32.mrf.mxu0  ;;  %v3325_v31 = vadd.f32 1.0, %v5125_v41 }
 0x698   : > { %v3326_v42 = vadd.f32 1.0, %v5127_v34  ;;  %v3120_v16 = vadd.f32 %v6952_v58, %v3119_v25  ;;  %5132 = verf.f32 %v3263_v6  ;;  %v3266_v9 = vmul.f32 0.70710677, %v3128_v62 }
 0x699   : > { %v5129_v3 = vpop.eup %5128  ;;  %v3355_v5 = vmul.f32 %v3323_v18, %v3227_v1  ;;  %v3357_v30 = vmul.f32 %v3325_v31, %v3229_v29 }
 0x69a   : > { %v3324_v21 = vadd.f32 1.0, %v5129_v3  ;;  %v3264_v13 = vmul.f32 0.70710677, %v3120_v16  ;;  %v3358_v22 = vmul.f32 %v3326_v42, %v3230_v35  ;;  %5134 = verf.f32 %v3266_v9 }
 0x69b   : > { %v3234_v3 = vmul.f32 0.5, %v3128_v62 }
 0x69c   : > { %v3356_v54 = vmul.f32 %v3324_v21, %v3228_v8  ;;  %5136 = verf.f32 %v3264_v13  ;;  %v3404_v59 = vpack.c.bf16 %v3358_v22, %v3357_v30  ;;  %v3231_v21 = vmul.f32 0.5, %v3117_v39 }
 0x69d   : > { %v3232_v13 = vmul.f32 0.5, %v3120_v16 }
 0x69e   : > { %v3403_v0 = vpack.c.bf16 %v3356_v54, %v3355_v5  ;;  %v3233_v5 = vmul.f32 0.5, %v3125_v33 }
 0x6a0   : > { %4641 = vmatprep.mubr.bf16.mxu0 %v3403_v0 }
 0x6a1   : > { %v4603_v50 = vpop.f32.mrf.mxu0  ;;  %4642 = vmatmul.mubr.bf16.vlgmr.msra.gmra.mxu0 %v3404_v59 }
 0x6a2   : > { %v3141_v20 = vadd.f32 %v4603_v50, %v6952_v58 }
 0x6a3   : > { %v3132_v40 = vpop.f32.mrf.mxu0  ;;  %v5131_v32 = vpop.eup %5130 }
 0x6a4   : > { %v3133_v56 = vadd.f32 %v6952_v58, %v3132_v40  ;;  %v3269_v24 = vmul.f32 0.70710677, %v3141_v20  ;;  %v3329_v9 = vadd.f32 1.0, %v5131_v32 }
 0x6a5   : > { %v4604_v41 = vpop.f32.mrf.mxu0  ;;  %v5133_v44 = vpop.eup %5132 }
 0x6a6   : > { %v3267_v34 = vmul.f32 0.70710677, %v3133_v56  ;;  %v3144_v6 = vadd.f32 %v4604_v41, %v6952_v58  ;;  %v3327_v42 = vadd.f32 1.0, %v5133_v44  ;;  %v3361_v59 = vmul.f32 %v3329_v9, %v3233_v5 }
 0x6a7   : > { %v3135_v25 = vpop.f32.mrf.mxu0  ;;  %v5135_v18 = vpop.eup %5134 }
 0x6a8   : > { %5138 = verf.f32 %v3267_v34  ;;  %v3136_v31 = vadd.f32 %v6952_v58, %v3135_v25  ;;  %v3330_v1 = vadd.f32 1.0, %v5135_v18  ;;  %v3270_v8 = vmul.f32 0.70710677, %v3144_v6 }
 0x6a9   : > { %v5137_v35 = vpop.eup %5136  ;;  %5140 = verf.f32 %v3269_v24  ;;  %v3359_v30 = vmul.f32 %v3327_v42, %v3231_v21 }
 0x6aa   : > { %v3328_v29 = vadd.f32 1.0, %v5137_v35  ;;  %v3268_v22 = vmul.f32 0.70710677, %v3136_v31  ;;  %v3362_v54 = vmul.f32 %v3330_v1, %v3234_v3  ;;  %5142 = verf.f32 %v3270_v8 }
 0x6ab   : > { %v3238_v35 = vmul.f32 0.5, %v3144_v6 }
 0x6ac   : > { %v3360_v0 = vmul.f32 %v3328_v29, %v3232_v13  ;;  %5144 = verf.f32 %v3268_v22  ;;  %v3406_v50 = vpack.c.bf16 %v3362_v54, %v3361_v59  ;;  %v3235_v29 = vmul.f32 0.5, %v3133_v56 }
 0x6ad   : > { %v3236_v22 = vmul.f32 0.5, %v3136_v31 }
 0x6ae   : > { %v3405_v62 = vpack.c.bf16 %v3360_v0, %v3359_v30  ;;  %v3237_v30 = vmul.f32 0.5, %v3141_v20 }
 0x6b0   : > { %4645 = vmatprep.mubr.bf16.mxu0 %v3405_v62 }
 0x6b1   : > { %v4607_v40 = vpop.f32.mrf.mxu0  ;;  %4646 = vmatmul.mubr.bf16.gmra.mxu0 %v3406_v50 }
 0x6b2   : > { %v3157_v32 = vadd.f32 %v4607_v40, %v6952_v58 }
 0x6b3   : > { %v3148_v24 = vpop.f32.mrf.mxu0 }
 0x6b4   : > { %v3273_v41 = vmul.f32 0.70710677, %v3157_v32  ;;  %v3149_v39 = vadd.f32 %v6952_v58, %v3148_v24 }
 0x6b5   : > { %v5139_v16 = vpop.eup %5138  ;;  %v4608_v44 = vpop.f32.mrf.mxu0 }
 0x6b6   : > { %v5141_v33 = vpop.eup %5140  ;;  %v3271_v34 = vmul.f32 0.70710677, %v3149_v39  ;;  %v3160_v25 = vadd.f32 %v4608_v44, %v6952_v58  ;;  %v3331_v3 = vadd.f32 1.0, %v5139_v16  ;;  %5146 = verf.f32 %v3273_v41 }
 0x6b7   : > { %v3151_v18 = vpop.f32.mrf.mxu0  ;;  %v5143_v42 = vpop.eup %5142  ;;  %v3333_v8 = vadd.f32 1.0, %v5141_v33 }
 0x6b8   : > { %v3152_v9 = vadd.f32 %v6952_v58, %v3151_v18  ;;  %v3334_v21 = vadd.f32 1.0, %v5143_v42  ;;  %5148 = verf.f32 %v3271_v34  ;;  %v3274_v13 = vmul.f32 0.70710677, %v3160_v25 }
 0x6b9   : > { %v5145_v1 = vpop.eup %5144  ;;  %v3363_v59 = vmul.f32 %v3331_v3, %v3235_v29  ;;  %v3365_v50 = vmul.f32 %v3333_v8, %v3237_v30 }
 0x6ba   : > { %v3332_v5 = vadd.f32 1.0, %v5145_v1  ;;  %v3272_v54 = vmul.f32 0.70710677, %v3152_v9  ;;  %v3366_v0 = vmul.f32 %v3334_v21, %v3238_v35  ;;  %5150 = verf.f32 %v3274_v13 }
 0x6bb   : > { %v3242_v1 = vmul.f32 0.5, %v3160_v25 }
 0x6bc   : > { %v3364_v62 = vmul.f32 %v3332_v5, %v3236_v22  ;;  %5152 = verf.f32 %v3272_v54  ;;  %v3408_v40 = vpack.c.bf16 %v3366_v0, %v3365_v50  ;;  %v3239_v5 = vmul.f32 0.5, %v3149_v39 }
 0x6bd   : > { %v3240_v54 = vmul.f32 0.5, %v3152_v9 }
 0x6be   : > { %v3407_v6 = vpack.c.bf16 %v3364_v62, %v3363_v59  ;;  %v3241_v59 = vmul.f32 0.5, %v3157_v32 }
 0x6c0   : > { %4649 = vmatprep.mubr.bf16.mxu1 %v3407_v6 }
 0x6c1   : > { %v4611_v24 = vpop.f32.mrf.mxu0  ;;  %4650 = vmatmul.mubr.bf16.vlgmr.msra.gmra.mxu1 %v3408_v40 }
 0x6c2   : > { %v3173_v41 = vadd.f32 %v4611_v24, %v6952_v58 }
 0x6c3   : > { %v3164_v16 = vpop.f32.mrf.mxu0  ;;  %v5147_v31 = vpop.eup %5146 }
 0x6c4   : > { %v3165_v56 = vadd.f32 %v6952_v58, %v3164_v16  ;;  %v3277_v44 = vmul.f32 0.70710677, %v3173_v41  ;;  %v3337_v13 = vadd.f32 1.0, %v5147_v31 }
 0x6c5   : > { %v4612_v33 = vpop.f32.mrf.mxu0  ;;  %v5149_v20 = vpop.eup %5148 }
 0x6c6   : > { %v3275_v34 = vmul.f32 0.70710677, %v3165_v56  ;;  %v3176_v18 = vadd.f32 %v4612_v33, %v6952_v58  ;;  %v3335_v35 = vadd.f32 1.0, %v5149_v20  ;;  %v3369_v40 = vmul.f32 %v3337_v13, %v3241_v59 }
 0x6c7   : > { %v3167_v42 = vpop.f32.mrf.mxu0  ;;  %v5151_v3 = vpop.eup %5150 }
 0x6c8   : > { %5154 = verf.f32 %v3275_v34  ;;  %v3168_v8 = vadd.f32 %v6952_v58, %v3167_v42  ;;  %v3338_v29 = vadd.f32 1.0, %v5151_v3  ;;  %v3278_v22 = vmul.f32 0.70710677, %v3176_v18 }
 0x6c9   : > { %v5153_v21 = vpop.eup %5152  ;;  %5156 = verf.f32 %v3277_v44  ;;  %v3367_v50 = vmul.f32 %v3335_v35, %v3239_v5 }
 0x6ca   : > { %v3336_v30 = vadd.f32 1.0, %v5153_v21  ;;  %v3276_v0 = vmul.f32 0.70710677, %v3168_v8  ;;  %v3370_v62 = vmul.f32 %v3338_v29, %v3242_v1  ;;  %5158 = verf.f32 %v3278_v22 }
 0x6cb   : > { %v3246_v21 = vmul.f32 0.5, %v3176_v18 }
 0x6cc   : > { %v3368_v6 = vmul.f32 %v3336_v30, %v3240_v54  ;;  %5160 = verf.f32 %v3276_v0  ;;  %v3410_v24 = vpack.c.bf16 %v3370_v62, %v3369_v40  ;;  %v3243_v30 = vmul.f32 0.5, %v3165_v56 }
 0x6cd   : > { %v3244_v0 = vmul.f32 0.5, %v3168_v8 }
 0x6ce   : > { %v3409_v25 = vpack.c.bf16 %v3368_v6, %v3367_v50  ;;  %v3245_v50 = vmul.f32 0.5, %v3173_v41 }
 0x6d0   : > { %4653 = vmatprep.mubr.bf16.mxu1 %v3409_v25 }
 0x6d1   : > { %v4615_v16 = vpop.f32.mrf.mxu0  ;;  %4654 = vmatmul.mubr.bf16.gmra.mxu1 %v3410_v24 }
 0x6d2   : > { %v3189_v31 = vadd.f32 %v4615_v16, %v6952_v58 }
 0x6d3   : > { %v3180_v44 = vpop.f32.mrf.mxu0 }
 0x6d4   : > { %v3281_v33 = vmul.f32 0.70710677, %v3189_v31  ;;  %v3181_v39 = vadd.f32 %v6952_v58, %v3180_v44 }
 0x6d5   : > { %v5155_v9 = vpop.eup %5154  ;;  %v4616_v20 = vpop.f32.mrf.mxu0 }
 0x6d6   : > { %v5157_v32 = vpop.eup %5156  ;;  %v3279_v34 = vmul.f32 0.70710677, %v3181_v39  ;;  %v3192_v42 = vadd.f32 %v4616_v20, %v6952_v58  ;;  %v3339_v1 = vadd.f32 1.0, %v5155_v9  ;;  %5162 = verf.f32 %v3281_v33 }
 0x6d7   : > { %v3183_v3 = vpop.f32.mrf.mxu0  ;;  %v5159_v35 = vpop.eup %5158  ;;  %v3341_v22 = vadd.f32 1.0, %v5157_v32 }
 0x6d8   : > { %v3184_v13 = vadd.f32 %v6952_v58, %v3183_v3  ;;  %v3342_v5 = vadd.f32 1.0, %v5159_v35  ;;  %5164 = verf.f32 %v3279_v34  ;;  %v3282_v54 = vmul.f32 0.70710677, %v3192_v42 }
 0x6d9   : > { %v5161_v29 = vpop.eup %5160  ;;  %v3371_v40 = vmul.f32 %v3339_v1, %v3243_v30  ;;  %v3373_v24 = vmul.f32 %v3341_v22, %v3245_v50  ;;  %v3250_v30 = vmul.f32 0.5, %v3192_v42 }
 0x6da   : > { %v3340_v59 = vadd.f32 1.0, %v5161_v29  ;;  %v3280_v62 = vmul.f32 0.70710677, %v3184_v13  ;;  %v3374_v6 = vmul.f32 %v3342_v5, %v3246_v21  ;;  %5166 = verf.f32 %v3282_v54 }
 0x6dc   : > { %v3372_v25 = vmul.f32 %v3340_v59, %v3244_v0  ;;  %5168 = verf.f32 %v3280_v62  ;;  %v3412_v16 = vpack.c.bf16 %v3374_v6, %v3373_v24  ;;  %v3247_v59 = vmul.f32 0.5, %v3181_v39 }
 0x6dd   : > { %v3248_v62 = vmul.f32 0.5, %v3184_v13 }
 0x6de   : > { %v3411_v18 = vpack.c.bf16 %v3372_v25, %v3371_v40  ;;  %v3249_v40 = vmul.f32 0.5, %v3189_v31 }
 0x6e0   : > { %4657 = vmatprep.mubr.bf16.mxu1 %v3411_v18 }
 0x6e1   : > { %v4619_v44 = vpop.f32.mrf.mxu0  ;;  %4658 = vmatmul.mubr.bf16.gmra.mxu1 %v3412_v16 }
 0x6e2   : > { %v3205_v33 = vadd.f32 %v4619_v44, %v6952_v58 }
 0x6e3   : > { %v3196_v9 = vpop.f32.mrf.mxu0  ;;  %v5163_v32 = vpop.eup %5162 }
 0x6e4   : > { %v3285_v20 = vmul.f32 0.70710677, %v3205_v33  ;;  %v3197_v56 = vadd.f32 %v6952_v58, %v3196_v9  ;;  %v3345_v54 = vadd.f32 1.0, %v5163_v32 }
 0x6e5   : > { %v4620_v8 = vpop.f32.mrf.mxu0  ;;  %v5165_v3 = vpop.eup %5164 }
 0x6e6   : > { %v3283_v41 = vmul.f32 0.70710677, %v3197_v56  ;;  %v3208_v34 = vadd.f32 %v4620_v8, %v6952_v58  ;;  %5170 = verf.f32 %v3285_v20  ;;  %v3343_v29 = vadd.f32 1.0, %v5165_v3 }
 0x6e7   : > { %v3199_v35 = vpop.f32.mrf.mxu0  ;;  %v5167_v21 = vpop.eup %5166  ;;  %v3377_v16 = vmul.f32 %v3345_v54, %v3249_v40 }
 0x6e8   : > { %v3286_v1 = vmul.f32 0.70710677, %v3208_v34  ;;  %5172 = verf.f32 %v3283_v41  ;;  %v3200_v22 = vadd.f32 %v6952_v58, %v3199_v35  ;;  %v3346_v0 = vadd.f32 1.0, %v5167_v21 }
 0x6e9   : > { %v5169_v5 = vpop.eup %5168  ;;  %v3375_v24 = vmul.f32 %v3343_v29, %v3247_v59 }
 0x6ea   : > { %5174 = verf.f32 %v3286_v1  ;;  %v3344_v50 = vadd.f32 1.0, %v5169_v5  ;;  %v3284_v6 = vmul.f32 0.70710677, %v3200_v22  ;;  %v3378_v25 = vmul.f32 %v3346_v0, %v3250_v30 }
 0x6eb   : > { %v3252_v40 = vmul.f32 0.5, %v3200_v22 }
 0x6ec   : > { %v3376_v18 = vmul.f32 %v3344_v50, %v3248_v62  ;;  %5176 = verf.f32 %v3284_v6  ;;  %v3414_v20 = vpack.c.bf16 %v3378_v25, %v3377_v16  ;;  %v3254_v50 = vmul.f32 0.5, %v3208_v34 }
 0x6ed   : > { %v3251_v6 = vmul.f32 0.5, %v3197_v56 }
 0x6ee   : > { %v3413_v44 = vpack.c.bf16 %v3376_v18, %v3375_v24  ;;  %v3253_v24 = vmul.f32 0.5, %v3205_v33 }
 0x6f0   : > { %v4623_v9 = vpop.f32.mrf.mxu0  ;;  %4661 = vmatprep.mubr.bf16.mxu1 %v3413_v44 }
 0x6f1   : > { %v3221_v8 = vadd.f32 %v4623_v9, %v6952_v58  ;;  %4662 = vmatmul.mubr.bf16.gmra.mxu1 %v3414_v20 }
 0x6f2   : > { %v3212_v42 = vpop.f32.mrf.mxu0 }
 0x6f3   : > { %v3213_v32 = vadd.f32 %v6952_v58, %v3212_v42  ;;  %v3289_v39 = vmul.f32 0.70710677, %v3221_v8  ;;  %v5171_v41 = vpop.eup %5170  ;;  %v3257_v33 = vmul.f32 0.5, %v3221_v8 }
 0x6f4   : > { %v4624_v13 = vpop.f32.mrf.mxu0  ;;  %v3349_v62 = vadd.f32 1.0, %v5171_v41 }
 0x6f5   : > { %v3287_v3 = vmul.f32 0.70710677, %v3213_v32  ;;  %v3224_v31 = vadd.f32 %v4624_v13, %v6952_v58  ;;  %v5173_v35 = vpop.eup %5172  ;;  %v3255_v22 = vmul.f32 0.5, %v3213_v32 }
 0x6f6   : > { %v3215_v1 = vpop.f32.mrf.mxu0  ;;  %v3347_v30 = vadd.f32 1.0, %v5173_v35  ;;  %v3381_v9 = vmul.f32 %v3349_v62, %v3253_v24 }
 0x6f7   : > { %v5175_v21 = vpop.eup %5174  ;;  %5178 = verf.f32 %v3287_v3  ;;  %v3290_v29 = vmul.f32 0.70710677, %v3224_v31  ;;  %v3216_v5 = vadd.f32 %v6952_v58, %v3215_v1  ;;  %v3258_v56 = vmul.f32 0.5, %v3224_v31 }
 0x6f8   : > { %v3350_v54 = vadd.f32 1.0, %v5175_v21  ;;  %5180 = verf.f32 %v3289_v39  ;;  %v3379_v16 = vmul.f32 %v3347_v30, %v3251_v6  ;;  %v6989_v6 = vld [vmem:[%s7186_s18] ss:$0 sm:$0xff] }
 0x6f9   : > { %5182 = verf.f32 %v3290_v29  ;;  %v3288_v0 = vmul.f32 0.70710677, %v3216_v5  ;;  %v5177_v59 = vpop.eup %5176  ;;  %v3256_v1 = vmul.f32 0.5, %v3216_v5 }
 0x6fa   : > { %v3348_v25 = vadd.f32 1.0, %v5177_v59  ;;  %v3382_v18 = vmul.f32 %v3350_v54, %v3254_v50 }
 0x6fb   : > { %5184 = verf.f32 %v3288_v0 }
 0x6fc   : > { %v3380_v44 = vmul.f32 %v3348_v25, %v3252_v40  ;;  %v3416_v42 = vpack.c.bf16 %v3382_v18, %v3381_v9 }
 0x6fe   : > { %v3415_v20 = vpack.c.bf16 %v3380_v44, %v3379_v16 }
 0x700   : > { %4665 = vmatprep.mubr.bf16.mxu1 %v3415_v20 }
 0x701   : > { %4666 = vmatmul.mubr.bf16.gmra.mxu1 %v3416_v42 }
 0x704   : > { %v5179_v58 = vpop.eup %5178 }
 0x705   : > { %v5181_v39 = vpop.eup %5180  ;;  %v3351_v3 = vadd.f32 1.0, %v5179_v58 }
 0x706   : > { %v5183_v13 = vpop.eup %5182  ;;  %v3353_v34 = vadd.f32 1.0, %v5181_v39 }
 0x707   : > { %v3354_v35 = vadd.f32 1.0, %v5183_v13  ;;  %v3383_v54 = vmul.f32 %v3351_v3, %v3255_v22 }
 0x708   : > { %v5185_v41 = vpop.eup %5184  ;;  %v3385_v0 = vmul.f32 %v3353_v34, %v3257_v33  ;;  %v7187_v34 = vld [vmem:[#allocation22_spill] sm:$0xff] }
 0x709   : > { %v3352_v21 = vadd.f32 1.0, %v5185_v41  ;;  %v3386_v29 = vmul.f32 %v3354_v35, %v3258_v56 }
 0x70b   : > { %v3384_v30 = vmul.f32 %v3352_v21, %v3256_v1  ;;  %v3418_v62 = vpack.c.bf16 %v3386_v29, %v3385_v0 }
 0x70d   : > { %v3417_v59 = vpack.c.bf16 %v3384_v30, %v3383_v54 }
 0x70f   : > { %4669 = vmatprep.mubr.bf16.mxu1 %v3417_v59 }
 0x710   : > { %4670 = vmatmul.mubr.bf16.gmra.mxu1 %v3418_v62 }
 0x761   : > { %v4643_v50 = vpop.f32.mrf.mxu0 }
 0x762   : > { %v3517_v32 = vadd.f32 %v4643_v50, %v6989_v6 }
 0x763   : > { %v3508_v31 = vpop.f32.mrf.mxu0 }
 0x764   : > { %v3509_v8 = vadd.f32 %v6989_v6, %v3508_v31  ;;  %v3637_v24 = vadd.f32 %v3517_v32, %v6471_v51 }
 0x765   : > { %v4644_v5 = vpop.f32.mrf.mxu0 }
 0x766   : > { %v3520_v40 = vadd.f32 %v4644_v5, %v6989_v6  ;;  %v3635_v44 = vadd.f32 %v3509_v8, %v6477_v4 }
 0x767   : > { %v3511_v25 = vpop.f32.mrf.mxu0 }
 0x768   : > { %v3638_v18 = vadd.f32 %v3520_v40, %v6480_v37  ;;  %v3512_v16 = vadd.f32 %v6989_v6, %v3511_v25 }
 0x76a   : > { %v4154_v9 = vpack.c.bf16 %v3638_v18, %v3637_v24  ;;  %v3636_v20 = vadd.f32 %v3512_v16, %v6486_v27 }
 0x76c   : > { %4226 = vst [vmem:[%s7000_s16 + $0x8] sm:$0xff] %v4154_v9   ;;  %v4149_v42 = vpack.c.bf16 %v3636_v20, %v3635_v44 }
 0x76e   : > { %4150 = vst [vmem:[%s7000_s16] sm:$0xff] %v4149_v42  }
 0x771   : > { %v4647_v58 = vpop.f32.mrf.mxu0 }
 0x772   : > { %v3533_v37 = vadd.f32 %v4647_v58, %v6989_v6 }
 0x773   : > { %v3524_v51 = vpop.f32.mrf.mxu0 }
 0x774   : > { %v3525_v13 = vadd.f32 %v6989_v6, %v3524_v51  ;;  %v3641_v27 = vadd.f32 %v3533_v37, %v6497_v23 }
 0x775   : > { %v4648_v39 = vpop.f32.mrf.mxu0 }
 0x776   : > { %v3536_v4 = vadd.f32 %v4648_v39, %v6989_v6  ;;  %v3639_v56 = vadd.f32 %v3525_v13, %v7187_v34 }
 0x777   : > { %v3527_v3 = vpop.f32.mrf.mxu0 }
 0x778   : > { %v3642_v35 = vadd.f32 %v3536_v4, %v6508_v26  ;;  %v3528_v41 = vadd.f32 %v6989_v6, %v3527_v3 }
 0x77a   : > { %v4164_v22 = vpack.c.bf16 %v3642_v35, %v3641_v27  ;;  %v3640_v1 = vadd.f32 %v3528_v41, %v6514_v38 }
 0x77c   : > { %4228 = vst [vmem:[%s7000_s16 + $0x18] sm:$0xff] %v4164_v22   ;;  %v4159_v21 = vpack.c.bf16 %v3640_v1, %v3639_v56 }
 0x77e   : > { %4227 = vst [vmem:[%s7000_s16 + $0x10] sm:$0xff] %v4159_v21  }
 0x781   : > { %v4651_v33 = vpop.f32.mrf.mxu1 }
 0x782   : > { %v3549_v54 = vadd.f32 %v4651_v33, %v6989_v6 }
 0x783   : > { %v3540_v29 = vpop.f32.mrf.mxu1 }
 0x784   : > { %v3541_v23 = vadd.f32 %v6989_v6, %v3540_v29  ;;  %v3645_v59 = vadd.f32 %v3549_v54, %v6525_v2 }
 0x785   : > { %v4652_v30 = vpop.f32.mrf.mxu1 }
 0x786   : > { %v3552_v26 = vadd.f32 %v4652_v30, %v6989_v6  ;;  %v3643_v50 = vadd.f32 %v3541_v23, %v6533_v19 }
 0x787   : > { %v3543_v0 = vpop.f32.mrf.mxu1 }
 0x788   : > { %v3646_v62 = vadd.f32 %v3552_v26, %v6536_v45  ;;  %v3544_v38 = vadd.f32 %v6989_v6, %v3543_v0 }
 0x78a   : > { %v4174_v31 = vpack.c.bf16 %v3646_v62, %v3645_v59  ;;  %v3644_v32 = vadd.f32 %v3544_v38, %v6542_v36 }
 0x78c   : > { %4230 = vst [vmem:[%s7000_s16 + $0x28] sm:$0xff] %v4174_v31   ;;  %v4169_v5 = vpack.c.bf16 %v3644_v32, %v3643_v50 }
 0x78e   : > { %4229 = vst [vmem:[%s7000_s16 + $0x20] sm:$0xff] %v4169_v5  }
 0x791   : > { %v4655_v8 = vpop.f32.mrf.mxu1 }
 0x792   : > { %v3565_v25 = vadd.f32 %v4655_v8, %v6989_v6 }
 0x793   : > { %v3556_v40 = vpop.f32.mrf.mxu1 }
 0x794   : > { %v3557_v2 = vadd.f32 %v6989_v6, %v3556_v40  ;;  %v3649_v19 = vadd.f32 %v3565_v25, %v6553_v61 }
 0x795   : > { %v4656_v24 = vpop.f32.mrf.mxu1 }
 0x796   : > { %v3568_v45 = vadd.f32 %v4656_v24, %v6989_v6  ;;  %v3647_v44 = vadd.f32 %v3557_v2, %v6561_v12 }
 0x797   : > { %v3559_v18 = vpop.f32.mrf.mxu1 }
 0x798   : > { %v3650_v16 = vadd.f32 %v3568_v45, %v6564_v43  ;;  %v3560_v36 = vadd.f32 %v6989_v6, %v3559_v18 }
 0x79a   : > { %v4184_v9 = vpack.c.bf16 %v3650_v16, %v3649_v19  ;;  %v3648_v20 = vadd.f32 %v3560_v36, %v6570_v53 }
 0x79c   : > { %4232 = vst [vmem:[%s7000_s16 + $0x38] sm:$0xff] %v4184_v9   ;;  %v4179_v42 = vpack.c.bf16 %v3648_v20, %v3647_v44 }
 0x79e   : > { %4231 = vst [vmem:[%s7000_s16 + $0x30] sm:$0xff] %v4179_v42  }
 0x7a1   : > { %v4659_v58 = vpop.f32.mrf.mxu1 }
 0x7a2   : > { %v3581_v37 = vadd.f32 %v4659_v58, %v6989_v6 }
 0x7a3   : > { %v3572_v51 = vpop.f32.mrf.mxu1 }
 0x7a4   : > { %v3573_v61 = vadd.f32 %v6989_v6, %v3572_v51  ;;  %v3653_v12 = vadd.f32 %v3581_v37, %v6581_v60 }
 0x7a5   : > { %v4660_v39 = vpop.f32.mrf.mxu1 }
 0x7a6   : > { %v3584_v43 = vadd.f32 %v4660_v39, %v6989_v6  ;;  %v3651_v3 = vadd.f32 %v3573_v61, %v6589_v17 }
 0x7a7   : > { %v3575_v13 = vpop.f32.mrf.mxu1 }
 0x7a8   : > { %v3654_v4 = vadd.f32 %v3584_v43, %v6592_v7  ;;  %v3576_v53 = vadd.f32 %v6989_v6, %v3575_v13 }
 0x7aa   : > { %v4194_v27 = vpack.c.bf16 %v3654_v4, %v3653_v12  ;;  %v3652_v35 = vadd.f32 %v3576_v53, %v6598_v57 }
 0x7ac   : > { %4234 = vst [vmem:[%s7000_s16 + $0x48] sm:$0xff] %v4194_v27   ;;  %v4189_v41 = vpack.c.bf16 %v3652_v35, %v3651_v3 }
 0x7ae   : > { %4233 = vst [vmem:[%s7000_s16 + $0x40] sm:$0xff] %v4189_v41  }
 0x7b1   : > { %v4663_v34 = vpop.f32.mrf.mxu1 }
 0x7b2   : > { %v3597_v22 = vadd.f32 %v4663_v34, %v6989_v6 }
 0x7b3   : > { %v3588_v56 = vpop.f32.mrf.mxu1 }
 0x7b4   : > { %v3589_v60 = vadd.f32 %v6989_v6, %v3588_v56  ;;  %v3657_v17 = vadd.f32 %v3597_v22, %v6609_v14 }
 0x7b5   : > { %v4664_v1 = vpop.f32.mrf.mxu1 }
 0x7b6   : > { %v3600_v7 = vadd.f32 %v4664_v1, %v6989_v6  ;;  %v3655_v29 = vadd.f32 %v3589_v60, %v6617_v15 }
 0x7b7   : > { %v3591_v21 = vpop.f32.mrf.mxu1 }
 0x7b8   : > { %v3658_v33 = vadd.f32 %v3600_v7, %v6620_v11  ;;  %v3592_v57 = vadd.f32 %v6989_v6, %v3591_v21 }
 0x7ba   : > { %v4204_v54 = vpack.c.bf16 %v3658_v33, %v3657_v17  ;;  %v3656_v30 = vadd.f32 %v3592_v57, %v6626_v10 }
 0x7bc   : > { %4236 = vst [vmem:[%s7000_s16 + $0x58] sm:$0xff] %v4204_v54   ;;  %v4199_v23 = vpack.c.bf16 %v3656_v30, %v3655_v29 }
 0x7be   : > { %4235 = vst [vmem:[%s7000_s16 + $0x50] sm:$0xff] %v4199_v23  }
 0x7c1   : > { %v4667_v26 = vpop.f32.mrf.mxu1 }
 0x7c2   : > { %v3613_v59 = vadd.f32 %v4667_v26, %v6989_v6 }
 0x7c3   : > { %v3604_v0 = vpop.f32.mrf.mxu1 }
 0x7c4   : > { %v3605_v14 = vadd.f32 %v6989_v6, %v3604_v0  ;;  %v3661_v15 = vadd.f32 %v3613_v59, %v6637_v55 }
 0x7c5   : > { %v4668_v62 = vpop.f32.mrf.mxu1 }
 0x7c6   : > { %v3616_v11 = vadd.f32 %v4668_v62, %v6989_v6  ;;  %v3659_v31 = vadd.f32 %v3605_v14, %v6648_v47 }
 0x7c7   : > { %v3607_v38 = vpop.f32.mrf.mxu1 }
 0x7c8   : > { %v3662_v50 = vadd.f32 %v3616_v11, %v6644_v48  ;;  %v3608_v10 = vadd.f32 %v6989_v6, %v3607_v38 }
 0x7ca   : > { %v4214_v32 = vpack.c.bf16 %v3662_v50, %v3661_v15  ;;  %v3660_v5 = vadd.f32 %v3608_v10, %v6654_v49 }
 0x7cc   : > { %4238 = vst [vmem:[%s7000_s16 + $0x68] sm:$0xff] %v4214_v32   ;;  %v4209_v8 = vpack.c.bf16 %v3660_v5, %v3659_v31 }
 0x7ce   : > { %4237 = vst [vmem:[%s7000_s16 + $0x60] sm:$0xff] %v4209_v8  }
 0x7d0   : > { %v4671_v40 = vpop.f32.mrf.mxu1 }
 0x7d1   : > { %v3629_v24 = vadd.f32 %v4671_v40, %v6989_v6 }
 0x7d2   : > { %v3620_v25 = vpop.f32.mrf.mxu1 }
 0x7d3   : > { %v3621_v48 = vadd.f32 %v6989_v6, %v3620_v25  ;;  %v3665_v45 = vadd.f32 %v3629_v24, %v6665_v46 }
 0x7d4   : > { %v4672_v55 = vpop.f32.mrf.mxu1 }
 0x7d5   : > { %v3632_v47 = vadd.f32 %v4672_v55, %v6989_v6  ;;  %v3663_v19 = vadd.f32 %v3621_v48, %v6676_v52 }
 0x7d6   : > { %v3623_v2 = vpop.f32.mrf.mxu1 }
 0x7d7   : > { %v3666_v49 = vadd.f32 %v3632_v47, %v6672_v28  ;;  %v3624_v18 = vadd.f32 %v6989_v6, %v3623_v2 }
 0x7d9   : > { %v4224_v16 = vpack.c.bf16 %v3666_v49, %v3665_v45  ;;  %v3664_v36 = vadd.f32 %v3624_v18, %v6682_v63 }
 0x7db   : > { %4240 = vst [vmem:[%s7000_s16 + $0x78] sm:$0xff] %v4224_v16   ;;  %v4219_v46 = vpack.c.bf16 %v3664_v36, %v3663_v19 }
 0x7dd   : > { %4239 = vst [vmem:[%s7000_s16 + $0x70] sm:$0xff] %v4219_v46  }
 0x7de   : > { %5415 = shalt.err (!%p5412_p13)
}
 0x7df   : > { %s5416_s28 = scalar_lea.hbm %s7077_s25, 2048  ;;  %s5420_s30 = scalar_lea.hbm %s7188_s17, 4096 }
 0x7e0   : > { %p5417_p2 = scmp.ne.s32.totalorder %s7077_s25, %s5416_s28  ;;  %p5421_p8 = scmp.lt.s32.totalorder %s7077_s25, %s7188_s17 }
 0x7e1   : > { %p5422_p12 = scmp.lt.s32.totalorder %s5420_s30, %s5416_s28 }
 0x7e2   : > { %p5418_p9 = pnand %p5417_p2, %p5737_p11 }
 0x7e3   : > { %p5423_p4 = por %p5422_p12, %p5421_p8 }
 0x7e4   : > { %p5419_p6 = pneg %p5418_p9 }
 0x7e6   : > { %p5424_p1 = pnand %p5423_p4, %p5419_p6 }
 0x7e8   : > { %5427 = shalt.err (!%p5424_p1)
}
 0x7e9   : > { %s5508_s16 = smov 64   ;;  %s5509_s13 = smov 4  }
 0x7ea   : > { %4715 = dma.vmem_to_hbm [thread:$0]  (%p5737_p11), %s7079_s2, 2048, %s7077_s25, %s3828_s24, %s5508_s16, %s5508_s16, %s5509_s13  }
 0x7eb PF: > { %s3858_s8 = sand.u32 1, %s5474_s21   ;;  %p7189_p3 = scmp.ne.s32.totalorder %s7179_s0, 0 }
 0x7ec   : > { %p7190_p5 = scmp.ge.s32.totalorder %s5494_s26, 2  ;;  %s3859_s11 = scalar_lea.sflag [#allocation4], %s3858_s8 }
 0x7ee   : > { %p4741_p10 = pnand %p7190_p5, %p7189_p3 }
 0x7f0   : > { %p4742_p0 = pneg %p4741_p10 }
 0x7f2   : > { %5469 = dma.done.wait (%p4742_p0), %s3859_s11, 2048  }
 0x7f3   : > { %5471 = vsyncadd (%p4742_p0), %s3859_s11, 4294965248  ;;  %s35_s26 = sadd.s32 1, %s5494_s26   ;;  %s7191_s24 = sld [smem:[#allocation20_spill]] }
 0x7f4   : > { %p32_p7 = scmp.ge.s32.totalorder %s35_s26, 4   ;;  %s7192_s25 = sld [smem:[#allocation21_spill]] }
 0x7f5   : > { %s7193_s21 = smov %s5478_s22  ;;  %s7194_s22 = smov %s5482_s23 }
 0x7f6   : > { %s7195_s23 = smov %s5742_s15  ;;  %34 = sbr.rel (!%p32_p7) target bundleno = 22 (0x16), region = 155 }
 0x7fb   :  { %3864 = vsyncpa [#allocation3], 1 }
 0x7fc   :  { %3866 = vsyncpa [#allocation3 + $0x1], 1 }
 0x7fd   :  { %3867 = vsyncpa [#allocation6], 1 }
 0x7fe   :  { %3868 = vsyncpa [#allocation9], 1 }
 0x7ff   :  { %3869 = vsyncpa [#allocation12], 1 }
 0x800   :  { %3870 = vsyncpa [#allocation4], 1 }
 0x801   :  { %3872 = vsyncpa [#allocation4 + $0x1], 1 }

</bundles_post_ra>
